<compile_context>
chip_gen: v7x
topology: tpu7x:2x2x1
jax: 0.10.0
libtpu: 0.0.40
codegen_flags: <defaults>
</compile_context>

<pallas_src>
import jax
import jax.numpy as jnp
from jax import lax
from jax.experimental import pallas as pl
from jax.experimental.pallas import tpu as pltpu


_F32 = jnp.float32
# Kept: this script asserts element-wise parity with an f32 reference.
_MXU_PREC = lax.Precision.HIGHEST


# ----------------------------- kernels -------------------------------------


def _fused_flat_kernel(xt_ref, xf_ref, we_ref, be_ref, ww_ref, bw_ref, o_ref):
    """Lane-dense variant (E < 128): o[b, i*E + j] = emb[b,i]*emb[b,j]*w[i,j]."""
    emb = jnp.dot(xt_ref[...], we_ref[...], preferred_element_type=_F32,
                  precision=_MXU_PREC) + be_ref[...]                     # (tb, E)
    w = jnp.dot(xf_ref[...], ww_ref[...], preferred_element_type=_F32,
                precision=_MXU_PREC) + bw_ref[...]                       # (E, E), B == E
    res = emb[:, :, None] * emb[:, None, :] * w[None, :, :]              # (tb, E, E)
    o_ref[...] = res.reshape(res.shape[0], -1).astype(o_ref.dtype)       # (tb, E*E)


def _fused_3d_kernel(xt_ref, xf_ref, we_ref, be_ref, wej_ref, bej_ref,
                     wwj_ref, bwj_ref, o_ref):
    """3-D variant with optional trailing-j tiling:
       o[b, i, j0+j] = emb[b, i] * emb[b, j0+j] * w[i, j0+j]."""
    emb_i = jnp.dot(xt_ref[...], we_ref[...], preferred_element_type=_F32,
                    precision=_MXU_PREC) + be_ref[...]                   # (tb, E)
    emb_j = jnp.dot(xt_ref[...], wej_ref[...], preferred_element_type=_F32,
                    precision=_MXU_PREC) + bej_ref[...]                  # (tb, tj)
    w = jnp.dot(xf_ref[...], wwj_ref[...], preferred_element_type=_F32,
                precision=_MXU_PREC) + bwj_ref[...]                      # (E, tj)
    o_ref[...] = (emb_i[:, :, None] * emb_j[:, None, :]
                  * w[None, :, :]).astype(o_ref.dtype)                   # (tb, E, tj)


# --------------------------- tiling helpers ---------------------------------


def _pick_batch_tile(batch, row_bytes, budget_bytes):
    """Largest batch tile under the VMEM budget; sublane-aligned; keeps >= 2
    grid steps (so the "parallel" axis can split across v7x's two TensorCores);
    prefers an exact divisor of `batch` (no masked partial tiles)."""
    tb = max(1, int(budget_bytes) // max(1, int(row_bytes)))
    tb = min(tb, batch)
    if tb >= batch and batch > 1:
        tb = (batch + 1) // 2
    if batch >= 8:
        tb = max(8, (tb // 8) * 8)
        for cand in range(tb, 7, -8):
            if batch % cand == 0:
                return cand
    return max(1, tb)


def _vmem_limit_bytes(out_block_bytes, resident_bytes):
    # 2x for the double-buffered output block, ~2x more headroom for the f32
    # intermediates / spills, plus double-buffered resident inputs.
    need = 4 * out_block_bytes + 2 * resident_bytes + (1 << 20)
    # Floor well above the small demo need; cap inside v7x's 64 MiB physical.
    return int(min(max(need, 32 << 20), 48 << 20))


# ----------------------------- runners --------------------------------------


def _run_flat(x, we_t, be, ww_t, bw, budget_bytes):
    B, D = x.shape
    E = we_t.shape[1]
    tb = _pick_batch_tile(B, E * E * 4, budget_bytes)
    nb = pl.cdiv(B, tb)
    out_block_bytes = tb * E * E * 4
    resident = (B * D + tb * D + 2 * D * E + 2 * E) * 4
    cparams = pltpu.CompilerParams(
        dimension_semantics=("parallel",),
        vmem_limit_bytes=_vmem_limit_bytes(out_block_bytes, resident))
    return pl.pallas_call(
        _fused_flat_kernel,
        out_shape=jax.ShapeDtypeStruct((B, E * E), _F32),
        grid=(nb,),
        in_specs=[
            pl.BlockSpec((tb, D), lambda i: (i, 0)),    # x batch tile
            pl.BlockSpec((B, D), lambda i: (0, 0)),     # full x (resident; B == E)
            pl.BlockSpec((D, E), lambda i: (0, 0)),     # We^T (resident)
            pl.BlockSpec((1, E), lambda i: (0, 0)),     # be
            pl.BlockSpec((D, E), lambda i: (0, 0)),     # Ww^T (resident)
            pl.BlockSpec((1, E), lambda i: (0, 0)),     # bw
        ],
        out_specs=pl.BlockSpec((tb, E * E), lambda i: (i, 0)),   # lane-dense
        compiler_params=cparams,
    )(x, x, we_t, be, ww_t, bw)


def _run_3d(x, we_t, be, ww_t, bw, budget_bytes):
    B, D = x.shape
    E = we_t.shape[1]
    # Trailing-j tiling when even a tb=8 full-E block would blow the budget
    # (only possible when E is a multiple of 128, so tj stays lane-aligned).
    if E % 128 == 0 and 8 * E * E * 4 > budget_bytes:
        tj = max(128, ((budget_bytes // (8 * E * 4)) // 128) * 128)
        tj = min(tj, E)
        while E % tj:
            tj -= 128
    else:
        tj = E
    tb = _pick_batch_tile(B, E * tj * 4, budget_bytes)
    nb, nj = pl.cdiv(B, tb), pl.cdiv(E, tj)
    out_block_bytes = tb * E * tj * 4
    resident = (B * D + tb * D + 2 * D * E + 2 * D * tj + 2 * E + 2 * tj) * 4
    cparams = pltpu.CompilerParams(
        dimension_semantics=("parallel", "parallel"),
        vmem_limit_bytes=_vmem_limit_bytes(out_block_bytes, resident))
    return pl.pallas_call(
        _fused_3d_kernel,
        out_shape=jax.ShapeDtypeStruct((B, E, E), _F32),
        grid=(nb, nj),
        in_specs=[
            pl.BlockSpec((tb, D), lambda i, j: (i, 0)),   # x batch tile
            pl.BlockSpec((B, D), lambda i, j: (0, 0)),    # full x (B == E)
            pl.BlockSpec((D, E), lambda i, j: (0, 0)),    # We^T full (i axis)
            pl.BlockSpec((1, E), lambda i, j: (0, 0)),    # be full
            pl.BlockSpec((D, tj), lambda i, j: (0, j)),   # We^T j-columns
            pl.BlockSpec((1, tj), lambda i, j: (0, j)),   # be j-columns
            pl.BlockSpec((D, tj), lambda i, j: (0, j)),   # Ww^T j-columns
            pl.BlockSpec((1, tj), lambda i, j: (0, j)),   # bw j-columns
        ],
        out_specs=pl.BlockSpec((tb, E, tj), lambda i, j: (i, 0, j)),
        compiler_params=cparams,
    )(x, x, we_t, be, we_t, be, ww_t, bw)


# ----------------------------- public API -----------------------------------


def interaction_mechanism(x, w_embed, b_embed, w_inter, b_inter,
                          *, block_budget_bytes=8 << 20):
    """
    x:        (B, D) float32
    w_embed:  (E, D) PyTorch nn.Linear weight layout
    b_embed:  (E,)
    w_inter:  (E, D)
    b_inter:  (E,)
    returns:  (B, E, E) float32, identical to the PyTorch module's forward.
    """
    B, D = x.shape
    E = w_embed.shape[0]
    assert w_embed.shape == (E, D) and w_inter.shape == (E, D)
    assert b_embed.shape == (E,) and b_inter.shape == (E,)
    # The PyTorch broadcast (B,E,E)*(B,E) indexes the interaction weights by
    # [i, j] (not [b, j]) and therefore requires batch_size == embed_dim.
    assert B == E, "InteractionMechanism forward requires batch_size == embed_dim"

    x = x.astype(_F32)
    we_t = jnp.transpose(w_embed.astype(_F32))      # (D, E) — tiny one-time
    ww_t = jnp.transpose(w_inter.astype(_F32))      # (D, E)
    be = b_embed.astype(_F32).reshape(1, E)
    bw = b_inter.astype(_F32).reshape(1, E)

    # Lane-dense path for E < 128: emit (B, E*E) so every store is an unmasked
    # full-lane vst, then reshape in the wrapper (layout plumbing only).
    if E % 128 != 0 and (E * E) % 128 == 0:
        try:
            flat = _run_flat(x, we_t, be, ww_t, bw, block_budget_bytes)
            flat = jax.block_until_ready(flat)
            return flat.reshape(B, E, E)
        except Exception:
            # Mosaic on some generations cannot lower the in-kernel minor-dim
            # merge; the 3-D layout below is always supported.
            pass
    return _run_3d(x, we_t, be, ww_t, bw, block_budget_bytes)


if __name__ == "__main__":
    key = jax.random.PRNGKey(0)
    # Small shapes consistent with the module; batch must equal embed_dim for
    # the PyTorch broadcast to be valid.  E = 64 exercises the lane-dense path
    # and a 2-step "parallel" batch grid (megacore-splittable on v7x).
    batch = 64
    input_dim = 32
    embed_dim = 64

    k1, k2, k3, k4, k5 = jax.random.split(key, 5)
    x = jax.random.normal(k1, (batch, input_dim), dtype=jnp.float32)
    w_embed = 0.1 * jax.random.normal(k2, (embed_dim, input_dim), dtype=jnp.float32)
    b_embed = 0.1 * jax.random.normal(k3, (embed_dim,), dtype=jnp.float32)
    w_inter = 0.1 * jax.random.normal(k4, (embed_dim, input_dim), dtype=jnp.float32)
    b_inter = 0.1 * jax.random.normal(k5, (embed_dim,), dtype=jnp.float32)

    out = interaction_mechanism(x, w_embed, b_embed, w_inter, b_inter)
    out = jax.block_until_ready(out)

    # Pure-JAX reference with identical semantics (and matching matmul precision).
    embed_ref = jnp.dot(x, w_embed.T, precision=lax.Precision.HIGHEST) + b_embed
    w_ref = jnp.dot(x, w_inter.T, precision=lax.Precision.HIGHEST) + b_inter
    ref = (embed_ref[:, :, None] * embed_ref[:, None, :]) * w_ref  # same broadcast as torch

    assert out.shape == (batch, embed_dim, embed_dim)
    assert out.dtype == jnp.float32
    assert bool(jnp.allclose(out, ref, atol=1e-4, rtol=1e-4))

    print("KERNEL_OK")
</pallas_src>

<mosaic_0001>
module attributes {stable_mosaic.version = 11 : i64} {
  func.func @_fused_flat_kernel(%arg0: i32, %arg1: memref<32x32xf32, #tpu.memory_space<vmem>>, %arg2: memref<64x32xf32, #tpu.memory_space<vmem>>, %arg3: memref<32x64xf32, #tpu.memory_space<vmem>>, %arg4: memref<1x64xf32, #tpu.memory_space<vmem>>, %arg5: memref<32x64xf32, #tpu.memory_space<vmem>>, %arg6: memref<1x64xf32, #tpu.memory_space<vmem>>, %arg7: memref<32x4096xf32, #tpu.memory_space<vmem>>) attributes {dimension_semantics = [#tpu.dimension_semantics<parallel>], iteration_bounds = array<i64: 2>, scalar_prefetch = 0 : i64, scratch_operands = 0 : i64, tpu.core_type = #tpu.core_type<tc>, window_params = [{transform_indices = @transform_0, window_bounds = array<i64: 32, 32>}, {pipeline_mode = #tpu.pipeline_mode<synchronous>, transform_indices = @transform_1, window_bounds = array<i64: 64, 32>}, {pipeline_mode = #tpu.pipeline_mode<synchronous>, transform_indices = @transform_2, window_bounds = array<i64: 32, 64>}, {pipeline_mode = #tpu.pipeline_mode<synchronous>, transform_indices = @transform_3, window_bounds = array<i64: 1, 64>}, {pipeline_mode = #tpu.pipeline_mode<synchronous>, transform_indices = @transform_4, window_bounds = array<i64: 32, 64>}, {pipeline_mode = #tpu.pipeline_mode<synchronous>, transform_indices = @transform_5, window_bounds = array<i64: 1, 64>}, {transform_indices = @transform_6, window_bounds = array<i64: 32, 4096>}]} {
    %c0 = arith.constant 0 : index
    %c0_0 = arith.constant 0 : index
    %0 = vector.load %arg1[%c0, %c0_0] : memref<32x32xf32, #tpu.memory_space<vmem>>, vector<32x32xf32>
    %c0_1 = arith.constant 0 : index
    %c0_2 = arith.constant 0 : index
    %1 = vector.load %arg3[%c0_1, %c0_2] : memref<32x64xf32, #tpu.memory_space<vmem>>, vector<32x64xf32>
    %cst = arith.constant dense<0.000000e+00> : vector<32x64xf32>
    %2 = tpu.matmul %0, %1, %cst {dimension_numbers = #tpu.dot_dimension_numbers<[1], [0], [0], [1], [0, 0, 1, 1], [], []>, precision = #tpu.contract_precision<fp32>} : vector<32x32xf32>, vector<32x64xf32>, vector<32x64xf32> -> vector<32x64xf32>
    %c0_3 = arith.constant 0 : index
    %c0_4 = arith.constant 0 : index
    %3 = vector.load %arg4[%c0_3, %c0_4] : memref<1x64xf32, #tpu.memory_space<vmem>>, vector<1x64xf32>
    %4 = vector.broadcast %3 : vector<1x64xf32> to vector<32x64xf32>
    %5 = arith.addf %2, %4 : vector<32x64xf32>
    %c0_5 = arith.constant 0 : index
    %c0_6 = arith.constant 0 : index
    %6 = vector.load %arg2[%c0_5, %c0_6] : memref<64x32xf32, #tpu.memory_space<vmem>>, vector<64x32xf32>
    %c0_7 = arith.constant 0 : index
    %c0_8 = arith.constant 0 : index
    %7 = vector.load %arg5[%c0_7, %c0_8] : memref<32x64xf32, #tpu.memory_space<vmem>>, vector<32x64xf32>
    %cst_9 = arith.constant dense<0.000000e+00> : vector<64x64xf32>
    %8 = tpu.matmul %6, %7, %cst_9 {dimension_numbers = #tpu.dot_dimension_numbers<[1], [0], [0], [1], [0, 0, 1, 1], [], []>, precision = #tpu.contract_precision<fp32>} : vector<64x32xf32>, vector<32x64xf32>, vector<64x64xf32> -> vector<64x64xf32>
    %c0_10 = arith.constant 0 : index
    %c0_11 = arith.constant 0 : index
    %9 = vector.load %arg6[%c0_10, %c0_11] : memref<1x64xf32, #tpu.memory_space<vmem>>, vector<1x64xf32>
    %10 = vector.broadcast %9 : vector<1x64xf32> to vector<64x64xf32>
    %11 = arith.addf %8, %10 : vector<64x64xf32>
    %12 = vector.shape_cast %5 : vector<32x64xf32> to vector<32x64x1xf32>
    %13 = vector.shape_cast %5 : vector<32x64xf32> to vector<32x1x64xf32>
    %14 = vector.broadcast %12 : vector<32x64x1xf32> to vector<32x64x64xf32>
    %15 = vector.broadcast %13 : vector<32x1x64xf32> to vector<32x64x64xf32>
    %16 = arith.mulf %14, %15 : vector<32x64x64xf32>
    %17 = vector.shape_cast %11 : vector<64x64xf32> to vector<1x64x64xf32>
    %18 = vector.broadcast %17 : vector<1x64x64xf32> to vector<32x64x64xf32>
    %19 = arith.mulf %16, %18 : vector<32x64x64xf32>
    %20 = vector.shape_cast %19 : vector<32x64x64xf32> to vector<32x4096xf32>
    %c0_12 = arith.constant 0 : index
    %c0_13 = arith.constant 0 : index
    %21 = vector.load %arg7[%c0_12, %c0_13] : memref<32x4096xf32, #tpu.memory_space<vmem>>, vector<32x4096xf32>
    tpu.vector_store %arg7[%c0_12, %c0_13], %20 {strides = array<i32>} : memref<32x4096xf32, #tpu.memory_space<vmem>>, vector<32x4096xf32>,
    return
  }
  func.func @transform_0(%arg0: i32) -> (i32, i32) {
    %c0_i32 = arith.constant 0 : i32
    %c0_i32_0 = arith.constant 0 : i32
    return %arg0, %c0_i32 : i32, i32
  }
  func.func @transform_1(%arg0: i32) -> (i32, i32) {
    %c0_i32 = arith.constant 0 : i32
    %c0_i32_0 = arith.constant 0 : i32
    %c0_i32_1 = arith.constant 0 : i32
    return %c0_i32, %c0_i32_0 : i32, i32
  }
  func.func @transform_2(%arg0: i32) -> (i32, i32) {
    %c0_i32 = arith.constant 0 : i32
    %c0_i32_0 = arith.constant 0 : i32
    %c0_i32_1 = arith.constant 0 : i32
    return %c0_i32, %c0_i32_0 : i32, i32
  }
  func.func @transform_3(%arg0: i32) -> (i32, i32) {
    %c0_i32 = arith.constant 0 : i32
    %c0_i32_0 = arith.constant 0 : i32
    %c0_i32_1 = arith.constant 0 : i32
    return %c0_i32, %c0_i32_0 : i32, i32
  }
  func.func @transform_4(%arg0: i32) -> (i32, i32) {
    %c0_i32 = arith.constant 0 : i32
    %c0_i32_0 = arith.constant 0 : i32
    %c0_i32_1 = arith.constant 0 : i32
    return %c0_i32, %c0_i32_0 : i32, i32
  }
  func.func @transform_5(%arg0: i32) -> (i32, i32) {
    %c0_i32 = arith.constant 0 : i32
    %c0_i32_0 = arith.constant 0 : i32
    %c0_i32_1 = arith.constant 0 : i32
    return %c0_i32, %c0_i32_0 : i32, i32
  }
  func.func @transform_6(%arg0: i32) -> (i32, i32) {
    %c0_i32 = arith.constant 0 : i32
    %c0_i32_0 = arith.constant 0 : i32
    return %arg0, %c0_i32 : i32, i32
  }
}

module attributes {stable_mosaic.version = 11 : i64} {
  func.func @_fused_3d_kernel(%arg0: i32, %arg1: i32, %arg2: memref<32x32xf32, #tpu.memory_space<vmem>>, %arg3: memref<64x32xf32, #tpu.memory_space<vmem>>, %arg4: memref<32x64xf32, #tpu.memory_space<vmem>>, %arg5: memref<1x64xf32, #tpu.memory_space<vmem>>, %arg6: memref<32x64xf32, #tpu.memory_space<vmem>>, %arg7: memref<1x64xf32, #tpu.memory_space<vmem>>, %arg8: memref<32x64xf32, #tpu.memory_space<vmem>>, %arg9: memref<1x64xf32, #tpu.memory_space<vmem>>, %arg10: memref<32x64x64xf32, #tpu.memory_space<vmem>>) attributes {dimension_semantics = [#tpu.dimension_semantics<parallel>, #tpu.dimension_semantics<parallel>], iteration_bounds = array<i64: 2, 1>, scalar_prefetch = 0 : i64, scratch_operands = 0 : i64, tpu.core_type = #tpu.core_type<tc>, window_params = [{transform_indices = @transform_0, window_bounds = array<i64: 32, 32>}, {pipeline_mode = #tpu.pipeline_mode<synchronous>, transform_indices = @transform_1, window_bounds = array<i64: 64, 32>}, {pipeline_mode = #tpu.pipeline_mode<synchronous>, transform_indices = @transform_2, window_bounds = array<i64: 32, 64>}, {pipeline_mode = #tpu.pipeline_mode<synchronous>, transform_indices = @transform_3, window_bounds = array<i64: 1, 64>}, {transform_indices = @transform_4, window_bounds = array<i64: 32, 64>}, {transform_indices = @transform_5, window_bounds = array<i64: 1, 64>}, {transform_indices = @transform_6, window_bounds = array<i64: 32, 64>}, {transform_indices = @transform_7, window_bounds = array<i64: 1, 64>}, {transform_indices = @transform_8, window_bounds = array<i64: 32, 64, 64>}]} {
    %c0 = arith.constant 0 : index
    %c0_0 = arith.constant 0 : index
    %0 = vector.load %arg2[%c0, %c0_0] : memref<32x32xf32, #tpu.memory_space<vmem>>, vector<32x32xf32>
    %c0_1 = arith.constant 0 : index
    %c0_2 = arith.constant 0 : index
    %1 = vector.load %arg4[%c0_1, %c0_2] : memref<32x64xf32, #tpu.memory_space<vmem>>, vector<32x64xf32>
    %cst = arith.constant dense<0.000000e+00> : vector<32x64xf32>
    %2 = tpu.matmul %0, %1, %cst {dimension_numbers = #tpu.dot_dimension_numbers<[1], [0], [0], [1], [0, 0, 1, 1], [], []>, precision = #tpu.contract_precision<fp32>} : vector<32x32xf32>, vector<32x64xf32>, vector<32x64xf32> -> vector<32x64xf32>
    %c0_3 = arith.constant 0 : index
    %c0_4 = arith.constant 0 : index
    %3 = vector.load %arg5[%c0_3, %c0_4] : memref<1x64xf32, #tpu.memory_space<vmem>>, vector<1x64xf32>
    %4 = vector.broadcast %3 : vector<1x64xf32> to vector<32x64xf32>
    %5 = arith.addf %2, %4 : vector<32x64xf32>
    %c0_5 = arith.constant 0 : index
    %c0_6 = arith.constant 0 : index
    %6 = vector.load %arg2[%c0_5, %c0_6] : memref<32x32xf32, #tpu.memory_space<vmem>>, vector<32x32xf32>
    %c0_7 = arith.constant 0 : index
    %c0_8 = arith.constant 0 : index
    %7 = vector.load %arg6[%c0_7, %c0_8] : memref<32x64xf32, #tpu.memory_space<vmem>>, vector<32x64xf32>
    %cst_9 = arith.constant dense<0.000000e+00> : vector<32x64xf32>
    %8 = tpu.matmul %6, %7, %cst_9 {dimension_numbers = #tpu.dot_dimension_numbers<[1], [0], [0], [1], [0, 0, 1, 1], [], []>, precision = #tpu.contract_precision<fp32>} : vector<32x32xf32>, vector<32x64xf32>, vector<32x64xf32> -> vector<32x64xf32>
    %c0_10 = arith.constant 0 : index
    %c0_11 = arith.constant 0 : index
    %9 = vector.load %arg7[%c0_10, %c0_11] : memref<1x64xf32, #tpu.memory_space<vmem>>, vector<1x64xf32>
    %10 = vector.broadcast %9 : vector<1x64xf32> to vector<32x64xf32>
    %11 = arith.addf %8, %10 : vector<32x64xf32>
    %c0_12 = arith.constant 0 : index
    %c0_13 = arith.constant 0 : index
    %12 = vector.load %arg3[%c0_12, %c0_13] : memref<64x32xf32, #tpu.memory_space<vmem>>, vector<64x32xf32>
    %c0_14 = arith.constant 0 : index
    %c0_15 = arith.constant 0 : index
    %13 = vector.load %arg8[%c0_14, %c0_15] : memref<32x64xf32, #tpu.memory_space<vmem>>, vector<32x64xf32>
    %cst_16 = arith.constant dense<0.000000e+00> : vector<64x64xf32>
    %14 = tpu.matmul %12, %13, %cst_16 {dimension_numbers = #tpu.dot_dimension_numbers<[1], [0], [0], [1], [0, 0, 1, 1], [], []>, precision = #tpu.contract_precision<fp32>} : vector<64x32xf32>, vector<32x64xf32>, vector<64x64xf32> -> vector<64x64xf32>
    %c0_17 = arith.constant 0 : index
    %c0_18 = arith.constant 0 : index
    %15 = vector.load %arg9[%c0_17, %c0_18] : memref<1x64xf32, #tpu.memory_space<vmem>>, vector<1x64xf32>
    %16 = vector.broadcast %15 : vector<1x64xf32> to vector<64x64xf32>
    %17 = arith.addf %14, %16 : vector<64x64xf32>
    %18 = vector.shape_cast %5 : vector<32x64xf32> to vector<32x64x1xf32>
    %19 = vector.shape_cast %11 : vector<32x64xf32> to vector<32x1x64xf32>
    %20 = vector.broadcast %18 : vector<32x64x1xf32> to vector<32x64x64xf32>
    %21 = vector.broadcast %19 : vector<32x1x64xf32> to vector<32x64x64xf32>
    %22 = arith.mulf %20, %21 : vector<32x64x64xf32>
    %23 = vector.shape_cast %17 : vector<64x64xf32> to vector<1x64x64xf32>
    %24 = vector.broadcast %23 : vector<1x64x64xf32> to vector<32x64x64xf32>
    %25 = arith.mulf %22, %24 : vector<32x64x64xf32>
    %c0_19 = arith.constant 0 : index
    %c0_20 = arith.constant 0 : index
    %c0_21 = arith.constant 0 : index
    %26 = vector.load %arg10[%c0_19, %c0_20, %c0_21] : memref<32x64x64xf32, #tpu.memory_space<vmem>>, vector<32x64x64xf32>
    tpu.vector_store %arg10[%c0_19, %c0_20, %c0_21], %25 {strides = array<i32>} : memref<32x64x64xf32, #tpu.memory_space<vmem>>, vector<32x64x64xf32>,
    return
  }
  func.func @transform_0(%arg0: i32, %arg1: i32) -> (i32, i32) {
    %c0_i32 = arith.constant 0 : i32
    %c0_i32_0 = arith.constant 0 : i32
    return %arg0, %c0_i32 : i32, i32
  }
  func.func @transform_1(%arg0: i32, %arg1: i32) -> (i32, i32) {
    %c0_i32 = arith.constant 0 : i32
    %c0_i32_0 = arith.constant 0 : i32
    %c0_i32_1 = arith.constant 0 : i32
    return %c0_i32, %c0_i32_0 : i32, i32
  }
  func.func @transform_2(%arg0: i32, %arg1: i32) -> (i32, i32) {
    %c0_i32 = arith.constant 0 : i32
    %c0_i32_0 = arith.constant 0 : i32
    %c0_i32_1 = arith.constant 0 : i32
    return %c0_i32, %c0_i32_0 : i32, i32
  }
  func.func @transform_3(%arg0: i32, %arg1: i32) -> (i32, i32) {
    %c0_i32 = arith.constant 0 : i32
    %c0_i32_0 = arith.constant 0 : i32
    %c0_i32_1 = arith.constant 0 : i32
    return %c0_i32, %c0_i32_0 : i32, i32
  }
  func.func @transform_4(%arg0: i32, %arg1: i32) -> (i32, i32) {
    %c0_i32 = arith.constant 0 : i32
    %c0_i32_0 = arith.constant 0 : i32
    return %c0_i32, %arg1 : i32, i32
  }
  func.func @transform_5(%arg0: i32, %arg1: i32) -> (i32, i32) {
    %c0_i32 = arith.constant 0 : i32
    %c0_i32_0 = arith.constant 0 : i32
    return %c0_i32, %arg1 : i32, i32
  }
  func.func @transform_6(%arg0: i32, %arg1: i32) -> (i32, i32) {
    %c0_i32 = arith.constant 0 : i32
    %c0_i32_0 = arith.constant 0 : i32
    return %c0_i32, %arg1 : i32, i32
  }
  func.func @transform_7(%arg0: i32, %arg1: i32) -> (i32, i32) {
    %c0_i32 = arith.constant 0 : i32
    %c0_i32_0 = arith.constant 0 : i32
    return %c0_i32, %arg1 : i32, i32
  }
  func.func @transform_8(%arg0: i32, %arg1: i32) -> (i32, i32, i32) {
    %c0_i32 = arith.constant 0 : i32
    %c0_i32_0 = arith.constant 0 : i32
    return %arg0, %c0_i32, %arg1 : i32, i32, i32
  }
}

</mosaic_0001>

<bundles_post_ra>
// kernel: tpu_custom_call.1
= control target key start
LH: loop header
LB: loop body
LE: loop exit
PB: predicated region body
PF: predicated region fallthrough
CT: control target
= control target key end

     0   :  { %11 = vsyncpa [#allocation3], 0  ;;  %s16343_s0 = inlined_call_operand.vmem [shape: f32[64,32], index: 0, kind: input, shape index: {}]   ;;  %s16344_s1 = inlined_call_operand.vmem [shape: f32[64,32], index: 1, kind: input, shape index: {}]   ;;  %s16345_s2 = inlined_call_operand.vmem [shape: f32[32,64], index: 2, kind: input, shape index: {}]   ;;  %s16346_s3 = inlined_call_operand.vmem [shape: f32[1,64], index: 3, kind: input, shape index: {}]   ;;  %s16347_s4 = inlined_call_operand.vmem [shape: f32[32,64], index: 4, kind: input, shape index: {}]   ;;  %s16348_s5 = inlined_call_operand.vmem [shape: f32[1,64], index: 5, kind: input, shape index: {}]   ;;  %s16349_s6 = inlined_call_operand.hbm [shape: f32[64,4096], index: 6, kind: output, shape index: {}]  }
   0x1   :  { %13 = vsyncpa [#allocation3 + $0x1], 0  ;;  %s9578_s21 = smov 0   ;;  %s9580_s22 = smov 0  }
   0x2   :  { %s9582_s23 = smov 0   ;;  %s9584_s24 = smov 0  }
   0x3 LB: > { %s9599_s25 = sadd.s32 4294967295, %s9534_s24   ;;  %s8914_s26 = sadd.s32 4294967294, %s9534_s24   ;;  %s9534_s24 = sphi %s9584_s24, %s18451_s24   ;;  %s9530_s23 = sphi %s9582_s23, %s18450_s23   ;;  %s9526_s22 = sphi %s9580_s22, %s18449_s22   ;;  %s9522_s21 = sphi %s9578_s21, %s18448_s21  }
   0x4   : > { %s9603_s27 = sadd.s32 1, %s9534_s24   ;;  %s157_s28 = sadd.s32 1, %s9530_s23 }
   0x5   : > { %s154_s29 = ssub.s32 %s9534_s24, %s9603_s27  ;;  %p167_p0 = scmp.ne.s32.totalorder %s9530_s23, %s9526_s22 }
   0x6   : > { %p155_p1 = scmp.eq.s32.totalorder %s154_s29, 0  ;;  %p168_p2 = scmp.eq.s32.totalorder %s9599_s25, 1 }
   0x7   : > { %p173_p3 = scmp.ne.s32.totalorder %s9526_s22, %s9522_s21  ;;  %p174_p4 = scmp.eq.s32.totalorder %s8914_s26, 1 }
   0x8   : > { %s9614_s30 = scalar_select %p155_p1, %s9530_s23, %s157_s28  }
   0x9   : > { %p9616_p5 = por %p168_p2, %p167_p0  ;;  %p9620_p6 = por %p174_p4, %p173_p3 }
   0xa   : > { %p8917_p7 = scmp.ge.s32.totalorder %s9534_s24, 1  ;;  %p216_p8 = scmp.lt.s32.totalorder %s9534_s24, 3 }
   0xc   : > { %p217_p9 = pnand %p8917_p7, %p216_p8 }
   0xe   : > { %220 = sbr.rel (%p217_p9) target bundleno = 1332 (0x534), region = 44 }
  0x15   : > { %v257_v0 = vld [vmem:[%s16345_s2] sm:$0xff]  ;;  %v258_v1 = vld [vmem:[%s16345_s2 + $0x8] sm:$0xff]  ;;  %v259_v2 = vld [vmem:[%s16345_s2 + $0x10] sm:$0xff]  ;;  %s8919_s15 = sshll.u32 %s9599_s25, 2  ;;  %vm268_vm0 = vcmask 261120   ;;  %s9539_s20 = smov 64  }
  0x16   : > { %v282_v3 = vand.u32 4294901760, %v257_v0  ;;  %v285_v4 = vand.u32 4294901760, %v258_v1  ;;  %v260_v5 = vld [vmem:[%s16345_s2 + $0x18] sm:$0xff]  ;;  %v288_v6 = vand.u32 4294901760, %v259_v2  ;;  %p247_p10 = scmp.lt.s32.totalorder %s8919_s15, 7  ;;  %v9642_v7 = vld [vmem:[%s16347_s4] sm:$0xff] }
  0x17   : > { %v291_v8 = vand.u32 4294901760, %v260_v5  ;;  %v9647_v9 = vld [vmem:[%s16347_s4 + $0x8] sm:$0xff]  ;;  %v939_v10 = vand.u32 4294901760, %v9642_v7  ;;  %v9718_v48 = vld [vmem:[%s16347_s4 + $0x10] sm:$0xff]  ;;  %v9723_v49 = vld [vmem:[%s16347_s4 + $0x18] sm:$0xff]  ;;  %vm8580_vm1 = vcmask 523264  }
  0x18   : > { %v9650_v11 = vpack.c.bf16 %v285_v4, %v282_v3  ;;  %s18453_s15 = smov (!%p247_p10, %s8919_s15), 7  ;;  %v9652_v12 = vsub.f32 %v257_v0, %v282_v3  ;;  %v9654_v13 = vsub.f32 %v258_v1, %v285_v4  ;;  %v9656_v14 = vsub.f32 %v259_v2, %v288_v6  ;;  %v899_v57 = vld [vmem:[%s16344_s1 + $0x20] sm:$0xff]  ;;  %s243_s26 = sand.u32 1, %s9526_s22  }
  0x19   : > { %v9658_v15 = vpack.c.bf16 %v291_v8, %v288_v6  ;;  %v9660_v16 = vsub.f32 %v260_v5, %v291_v8  ;;  %v942_v17 = vand.u32 4294901760, %v9647_v9  ;;  %v9666_v18 = vsub.f32 %v9642_v7, %v939_v10  ;;  %s8920_s28 = sshll.u32 %s18453_s15, 3  ;;  %s8930_s9 = sshll.u32 %s9599_s25, 14 }
  0x1a   : > { %9256 = vmatprep.subr.bf16.mxu0 %v9650_v11  ;;  %v393_v19 = vand.u32 4294901760, %v9652_v12  ;;  %v400_v20 = vand.u32 4294901760, %v9654_v13  ;;  %v407_v21 = vand.u32 4294901760, %v9656_v14  ;;  %s250_s10 = scalar_lea.vmem %s16343_s0, %s8920_s28  ;;  %v945_v60 = vand.u32 4294901760, %v9718_v48  ;;  %s8918_s28 = sshll.u32 %s243_s26, 10 }
  0x1b   : > { %9258 = vmatpush3.bf16.msra.mxu0 %v9650_v11  ;;  %v414_v22 = vand.u32 4294901760, %v9660_v16  ;;  %v1090_v23 = vand.u32 4294901760, %v9666_v18  ;;  %v253_v24 = vld [vmem:[%s250_s10] sm:$0xff]  ;;  %v254_v27 = vld [vmem:[%s250_s10 + $0x8] sm:$0xff]  ;;  %v255_v28 = vld [vmem:[%s250_s10 + $0x10] sm:$0xff]  ;;  %v9691_v30 = vsub.f32 %v9647_v9, %v942_v17  ;;  %v948_v61 = vand.u32 4294901760, %v9723_v49  ;;  %s16291_s13 = scalar_lea.hbm %s16349_s6, %s8930_s9 }
  0x1c   : > { %9260 = vmatprep.subr.bf16.mxu0 %v9658_v15  ;;  %v394_v25 = vsub.f32 %v9652_v12, %v393_v19  ;;  %v401_v26 = vsub.f32 %v9654_v13, %v400_v20  ;;  %v408_v29 = vsub.f32 %v9656_v14, %v407_v21  ;;  %v270_v31 = vsel %vm268_vm0, %v253_v24, 0  ;;  %v256_v35 = vld [vmem:[%s250_s10 + $0x18] sm:$0xff]  ;;  %s14919_s29 = scalar_lea.vmem [#allocation2], %s8918_s28  ;;  %s16302_s25 = scalar_lea.sflag [#allocation3], %s243_s26 }
  0x1d   : > { %v273_v32 = vsel %vm268_vm0, %v254_v27, 0  ;;  %v276_v33 = vsel %vm268_vm0, %v255_v28, 0  ;;  %v415_v34 = vsub.f32 %v9660_v16, %v414_v22  ;;  %v9699_v36 = vand.u32 4294901760, %v270_v31  ;;  %s8852_s10 = sshll.u32 %s14919_s29, 4  ;;  %s9540_s15 = smov [#allocation2]   ;;  %s16293_s10 = int_to_ptr.vmem [resolvable:$true] %s8852_s10 }
  0x1e   : > { %v395_v37 = vand.u32 4294901760, %v394_v25  ;;  %v402_v38 = vand.u32 4294901760, %v401_v26  ;;  %v9701_v39 = vand.u32 4294901760, %v273_v32  ;;  %v9704_v40 = vand.u32 4294901760, %v276_v33  ;;  %s9472_s14 = scalar_lea.vmem %s16293_s10, 16384  ;;  %s9476_s16 = sshll.u32 %s9540_s15, 4  ;;  %s9477_s16 = int_to_ptr.vmem [resolvable:$false] %s9476_s16 }
  0x1f   : > { %9262 = vmatpush3.bf16.msra.mxu0 %v9658_v15  ;;  %v409_v41 = vand.u32 4294901760, %v408_v29  ;;  %v416_v42 = vand.u32 4294901760, %v415_v34  ;;  %v279_v43 = vsel %vm268_vm0, %v256_v35, 0  ;;  %v9708_v44 = vsub.f32 %v270_v31, %v9699_v36  ;;  %v900_v35 = vld [vmem:[%s16344_s1 + $0x28] sm:$0xff]  ;;  %p9473_p11 = scmp.ne.s32.totalorder %s16293_s10, %s9472_s14  ;;  %s9478_s17 = scalar_lea.vmem %s9477_s16, 32768 }
  0x20   : > { %v9263_v45 = vpack.c.bf16 %v402_v38, %v395_v37  ;;  %v9711_v46 = vsub.f32 %v273_v32, %v9701_v39  ;;  %v9713_v47 = vand.u32 4294901760, %v279_v43  ;;  %v9726_v50 = vsub.f32 %v276_v33, %v9704_v40  ;;  %v901_v37 = vld [vmem:[%s16344_s1 + $0x30] sm:$0xff]  ;;  %v895_v38 = vld [vmem:[%s16344_s1] sm:$0xff]  ;;  %p9479_p0 = scmp.lt.s32.totalorder %s16293_s10, %s9477_s16  ;;  %p9480_p1 = scmp.lt.s32.totalorder %s9478_s17, %s9472_s14 }
  0x21   : > { %v9267_v51 = vpack.c.bf16 %v416_v42, %v409_v41  ;;  %v1091_v52 = vsub.f32 %v9666_v18, %v1090_v23  ;;  %v352_v53 = vand.u32 4294901760, %v9708_v44  ;;  %v1097_v56 = vand.u32 4294901760, %v9691_v30  ;;  %p9474_p12 = pnand %p9473_p11, %p9616_p5 }
  0x22   : > { %9264 = vmatprep.subr.bf16.mxu0 %v9263_v45  ;;  %v362_v54 = vand.u32 4294901760, %v9711_v46  ;;  %v9734_v55 = vsub.f32 %v279_v43, %v9713_v47  ;;  %v372_v58 = vand.u32 4294901760, %v9726_v50  ;;  %v9759_v3 = vsub.f32 %v9718_v48, %v945_v60  ;;  %p9481_p2 = por %p9480_p1, %p9479_p0 }
  0x23   : > { %v1092_v59 = vand.u32 4294901760, %v1091_v52  ;;  %v353_v62 = vsub.f32 %v9708_v44, %v352_v53  ;;  %v1098_v1 = vsub.f32 %v9691_v30, %v1097_v56  ;;  %v9764_v4 = vsub.f32 %v9723_v49, %v948_v61  ;;  %p9475_p13 = pneg %p9474_p12 }
  0x24   : > { %v363_v63 = vsub.f32 %v9711_v46, %v362_v54  ;;  %v382_v0 = vand.u32 4294901760, %v9734_v55  ;;  %v373_v2 = vsub.f32 %v9726_v50, %v372_v58  ;;  %v9767_v5 = vsel %vm268_vm0, %v899_v57, 0 }
  0x25   : > { %v354_v6 = vand.u32 4294901760, %v353_v62  ;;  %v1099_v25 = vand.u32 4294901760, %v1098_v1  ;;  %v1104_v27 = vand.u32 4294901760, %v9759_v3  ;;  %v1111_v28 = vand.u32 4294901760, %v9764_v4  ;;  %v902_v62 = vld [vmem:[%s16344_s1 + $0x38] sm:$0xff]  ;;  %v896_v1 = vld [vmem:[%s16344_s1 + $0x8] sm:$0xff]  ;;  %p9482_p3 = pnand %p9481_p2, %p9475_p13 }
  0x26   : > { %v364_v8 = vand.u32 4294901760, %v363_v63  ;;  %v383_v24 = vsub.f32 %v9734_v55, %v382_v0  ;;  %v374_v26 = vand.u32 4294901760, %v373_v2  ;;  %v9775_v29 = vand.u32 4294901760, %v9767_v5  ;;  %v897_v2 = vld [vmem:[%s16344_s1 + $0x10] sm:$0xff] }
  0x27   : > { %9059 = vmatprep.mubr.f32.mxu0 %v354_v6  ;;  %v9777_v31 = vpack.c.bf16 %v1099_v25, %v1092_v59  ;;  %v1105_v33 = vsub.f32 %v9759_v3, %v1104_v27  ;;  %v1112_v34 = vsub.f32 %v9764_v4, %v1111_v28  ;;  %v9271_v41 = vpack.c.bf16 %v9654_v13, %v9652_v12 }
  0x28   : > { %9060 = vmatmul.mubr.f32.vlgmr.msra.gmra.mrb[0].mxu0 %v364_v8  ;;  %v384_v32 = vand.u32 4294901760, %v383_v24  ;;  %9169 = vmatprep.mubr.f32.mxu1 %v9775_v29  ;;  %v9319_v57 = vpack.c.bf16 %v9691_v30, %v9666_v18  ;;  %v9807_v59 = vsel %vm268_vm0, %v901_v37, 0  ;;  %v915_v63 = vsel %vm268_vm0, %v895_v38, 0 }
  0x29   : > { %9266 = vmatpush3.bf16.msra.mxu0 %v9263_v45  ;;  %9062 = vmatprep.mubr.f32.mxu0 %v374_v26  ;;  %v1106_v42 = vand.u32 4294901760, %v1105_v33  ;;  %v1113_v43 = vand.u32 4294901760, %v1112_v34  ;;  %v9800_v45 = vsel %vm268_vm0, %v900_v35, 0  ;;  %v9275_v6 = vpack.c.bf16 %v9660_v16, %v9656_v14  ;;  %v898_v34 = vld [vmem:[%s16344_s1 + $0x18] sm:$0xff] }
  0x2a   : > { %9268 = vmatprep.subr.bf16.mxu0 %v9267_v51  ;;  %9351 = vmatprep.subr.bf16.mxu1 %v9777_v31  ;;  %v9824_v8 = vand.u32 4294901760, %v9800_v45  ;;  %v9828_v24 = vand.u32 4294901760, %v9807_v59  ;;  %v9831_v25 = vand.u32 4294901760, %v915_v63  ;;  %v918_v26 = vsel %vm268_vm0, %v896_v1, 0 }
  0x2b   : > { %9353 = vmatpush3.bf16.msra.mxu1 %v9777_v31  ;;  %v9802_v52 = vpack.c.bf16 %v1113_v43, %v1106_v42  ;;  %v921_v33 = vsel %vm268_vm0, %v897_v2, 0  ;;  %v9845_v37 = vand.u32 4294901760, %v918_v26  ;;  %v924_v43 = vsel %vm268_vm0, %v898_v34, 0 }
  0x2c   : > { %9063 = vmatmul.mubr.f32.gmra.mrb[2].mxu0 %v384_v32  ;;  %v9323_v32 = vpack.c.bf16 %v9764_v4, %v9759_v3  ;;  %v9849_v38 = vsub.f32 %v915_v63, %v9831_v25  ;;  %v9851_v42 = vand.u32 4294901760, %v921_v33  ;;  %v9879_v9 = vpack.c.bf16 %v948_v61, %v945_v60 }
  0x2d   : > { %9270 = vmatpush3.bf16.msra.mxu0 %v9267_v51  ;;  %9073 = vmatprep.mubr.f32.mxu0 %v9699_v36  ;;  %v936_v51 = vsel %vm268_vm0, %v902_v62, 0  ;;  %v9867_v62 = vand.u32 4294901760, %v924_v43  ;;  %v9895_v48 = vsub.f32 %v9767_v5, %v9775_v29  ;;  %v9335_v12 = vpack.c.bf16 %v1097_v56, %v1090_v23 }
  0x2e   : > { %9272 = vmatprep.subr.bf16.mxu0 %v9271_v41  ;;  %9352 = vmatprep.subr.bf16.mxu1 %v9802_v52  ;;  %v9843_v35 = vand.u32 4294901760, %v936_v51  ;;  %v9871_v7 = vsub.f32 %v921_v33, %v9851_v42  ;;  %v9291_v13 = vpack.c.bf16 %v414_v22, %v407_v21  ;;  %v9919_v18 = vsub.f32 %v9807_v59, %v9828_v24 }
  0x2f   : > { %9354 = vmatpush3.bf16.msra.mxu1 %v9802_v52  ;;  %v1009_v16 = vand.u32 4294901760, %v9849_v38  ;;  %v9339_v22 = vpack.c.bf16 %v1111_v28, %v1104_v27  ;;  %v1049_v30 = vand.u32 4294901760, %v9895_v48  ;;  %v1724_v4 = vlaneseq }
  0x30   : > { %9074 = vmatmul.mubr.f32.vlgmr.msra.gmra.mrb[0].mxu0 %v9701_v39  ;;  %9320 = vmatprep.subr.bf16.mxu1 %v9319_v57  ;;  %v9928_v14 = vsub.f32 %v936_v51, %v9843_v35  ;;  %v1029_v21 = vand.u32 4294901760, %v9871_v7  ;;  %v9536_v5 = vmov 1966171168  }
  0x31   : > { %9274 = vmatpush3.bf16.msra.mxu0 %v9271_v41  ;;  %9076 = vmatprep.mubr.f32.mxu0 %v9704_v40  ;;  %v9859_v41 = vpack.c.bf16 %v942_v17, %v939_v10  ;;  %v9287_v10 = vpack.c.bf16 %v400_v20, %v393_v19  ;;  %v9890_v17 = vsub.f32 %v924_v43, %v9867_v62  ;;  %v2850_v27 = vunpack.c.l.s4 %v9536_v5 }
  0x32   : > { %9276 = vmatprep.subr.bf16.mxu0 %v9275_v6  ;;  %9170 = vmatmul.mubr.f32.vlgmr.msra.gmra.mrb[0].mxu1 %v9824_v8  ;;  %v9914_v19 = vsub.f32 %v9800_v45, %v9824_v8  ;;  %v9998_v28 = vshrl.u32 %v1724_v4, 7  ;;  %v8921_v45 = vld [vmem:[%s16346_s3] ss:$0 sm:$0xff] }
  0x33   : > { %9322 = vmatpush3.bf16.msra.mxu1 %v9319_v57  ;;  %9172 = vmatprep.mubr.f32.mxu1 %v9828_v24  ;;  %v9865_v57 = vsub.f32 %v918_v26, %v9845_v37  ;;  %v1039_v23 = vand.u32 4294901760, %v9890_v17 }
  0x34   : > { %9077 = vmatmul.mubr.f32.gmra.mrb[2].mxu0 %v9713_v47  ;;  %9324 = vmatprep.subr.bf16.mxu1 %v9323_v32  ;;  %v10010_v63 = vsub.s32 4, %v9998_v28  ;;  %v10013_v1 = vsub.s32 5, %v9998_v28  ;;  %v10016_v2 = vsub.s32 6, %v9998_v28  ;;  %v10029_v26 = vsub.s32 2, %v9998_v28 }
  0x35   : > { %9278 = vmatpush3.bf16.msra.mxu0 %v9275_v6  ;;  %9087 = vmatprep.mubr.f32.mxu0 %v9708_v44  ;;  %v1019_v20 = vand.u32 4294901760, %v9865_v57  ;;  %v1059_v44 = vand.u32 4294901760, %v9914_v19  ;;  %v10019_v6 = vsub.s32 7, %v9998_v28 }
  0x36   : > { %9280 = vmatprep.subr.bf16.mxu0 %v9650_v11  ;;  %9173 = vmatmul.mubr.f32.gmra.mrb[2].mxu1 %v9843_v35 }
  0x37   : > { %9326 = vmatpush3.bf16.msra.mxu1 %v9323_v32  ;;  %9183 = vmatprep.mubr.f32.mxu1 %v9849_v38  ;;  %v1020_v49 = vsub.f32 %v9865_v57, %v1019_v20  ;;  %v1060_v56 = vsub.f32 %v9914_v19, %v1059_v44  ;;  %v10032_v32 = vsub.s32 3, %v9998_v28 }
  0x38   : > { %9088 = vmatmul.mubr.f32.vlgmr.msra.gmra.mrb[0].mxu0 %v9711_v46  ;;  %9328 = vmatprep.subr.bf16.mxu1 %v9859_v41  ;;  %v1069_v46 = vand.u32 4294901760, %v9919_v18 }
  0x39   : > { %9282 = vmatpush3.bf16.msra.mxu0 %v9650_v11  ;;  %9090 = vmatprep.mubr.f32.mxu0 %v9726_v50  ;;  %v1079_v50 = vand.u32 4294901760, %v9928_v14  ;;  %v1061_v60 = vand.u32 4294901760, %v1060_v56 }
  0x3a   : > { %9284 = vmatprep.subr.bf16.mxu0 %v9658_v15  ;;  %9184 = vmatmul.mubr.f32.vlgmr.msra.gmra.mrb[4].mxu1 %v9865_v57 }
  0x3b   : > { %9186 = vmatprep.mubr.f32.mxu1 %v9871_v7  ;;  %9330 = vmatpush3.bf16.msra.mxu1 %v9859_v41  ;;  %v1080_v61 = vsub.f32 %v9928_v14, %v1079_v50 }
  0x3c   : > { %9091 = vmatmul.mubr.f32.gmra.mrb[2].mxu0 %v9734_v55  ;;  %9332 = vmatprep.subr.bf16.mxu1 %v9879_v9 }
  0x3d   : > { %9286 = vmatpush3.bf16.msra.mxu0 %v9658_v15  ;;  %9101 = vmatprep.mubr.f32.mxu0 %v352_v53  ;;  %v1040_v53 = vsub.f32 %v9890_v17, %v1039_v23  ;;  %v1081_v3 = vand.u32 4294901760, %v1080_v61 }
  0x3e   : > { %9288 = vmatprep.subr.bf16.mxu0 %v9287_v10  ;;  %9187 = vmatmul.mubr.f32.gmra.mrb[6].mxu1 %v9890_v17 }
  0x3f   : > { %9189 = vmatprep.mubr.f32.mxu1 %v9895_v48  ;;  %9334 = vmatpush3.bf16.msra.mxu1 %v9879_v9  ;;  %v1041_v55 = vand.u32 4294901760, %v1040_v53 }
  0x40   : > { %9102 = vmatmul.mubr.f32.vlgmr.msra.gmra.mrb[0].mxu0 %v362_v54  ;;  %9336 = vmatprep.subr.bf16.mxu1 %v9335_v12  ;;  %v1050_v54 = vsub.f32 %v9895_v48, %v1049_v30 }
  0x41   : > { %9290 = vmatpush3.bf16.msra.mxu0 %v9287_v10  ;;  %9104 = vmatprep.mubr.f32.mxu0 %v372_v58  ;;  %v1070_v58 = vsub.f32 %v9919_v18, %v1069_v46 }
  0x42   : > { %9292 = vmatprep.subr.bf16.mxu0 %v9291_v13  ;;  %9190 = vmatmul.mubr.f32.gmra.mrb[0].mxu1 %v9914_v19 }
  0x43   : > { %9192 = vmatprep.mubr.f32.mxu1 %v9919_v18 }
  0x44   : > { %9105 = vmatmul.mubr.f32.gmra.mrb[2].mxu0 %v382_v0  ;;  %v1071_v0 = vand.u32 4294901760, %v1070_v58 }
  0x45   : > { %9294 = vmatpush3.bf16.msra.mxu0 %v9291_v13  ;;  %9115 = vmatprep.mubr.f32.mxu0 %v9699_v36 }
  0x46   : > { %9296 = vmatprep.subr.bf16.mxu0 %v9650_v11  ;;  %9193 = vmatmul.mubr.f32.gmra.mrb[2].mxu1 %v9928_v14 }
  0x47   : > { %9203 = vmatprep.mubr.f32.mxu1 %v1009_v16 }
  0x48   : > { %9116 = vmatmul.mubr.f32.vlgmr.msra.gmra.mrb[0].mxu0 %v9701_v39 }
  0x49   : > { %9298 = vmatpush3.bf16.msra.mxu0 %v9650_v11  ;;  %9118 = vmatprep.mubr.f32.mxu0 %v9704_v40  ;;  %v1010_v11 = vsub.f32 %v9849_v38, %v1009_v16 }
  0x4a   : > { %9300 = vmatprep.subr.bf16.mxu0 %v9658_v15  ;;  %9204 = vmatmul.mubr.f32.vlgmr.msra.gmra.mrb[4].mxu1 %v1019_v20 }
  0x4b   : > { %9206 = vmatprep.mubr.f32.mxu1 %v1029_v21  ;;  %9338 = vmatpush3.bf16.msra.mxu1 %v9335_v12 }
  0x4c   : > { %9119 = vmatmul.mubr.f32.gmra.mrb[2].mxu0 %v9713_v47  ;;  %9340 = vmatprep.subr.bf16.mxu1 %v9339_v22 }
  0x4d   : > { %9302 = vmatpush3.bf16.msra.mxu0 %v9658_v15  ;;  %9129 = vmatprep.mubr.f32.mxu0 %v9699_v36  ;;  %v1011_v15 = vand.u32 4294901760, %v1010_v11  ;;  %v1030_v36 = vsub.f32 %v9871_v7, %v1029_v21 }
  0x4e   : > { %9207 = vmatmul.mubr.f32.gmra.mrb[6].mxu1 %v1039_v23  ;;  %9304 = vmatprep.subr.bf16.mxu0 %v9859_v41 }
  0x4f   : > { %9209 = vmatprep.mubr.f32.mxu1 %v1049_v30  ;;  %9342 = vmatpush3.bf16.msra.mxu1 %v9339_v22 }
  0x50   : > { %9130 = vmatmul.mubr.f32.vlgmr.msra.gmra.mrb[0].mxu0 %v9701_v39  ;;  %9344 = vmatprep.subr.bf16.mxu1 %v9859_v41  ;;  %v1021_v39 = vand.u32 4294901760, %v1020_v49 }
  0x51   : > { %9132 = vmatprep.mubr.f32.mxu0 %v9704_v40  ;;  %9306 = vmatpush3.bf16.msra.mxu0 %v9859_v41  ;;  %v1031_v40 = vand.u32 4294901760, %v1030_v36 }
  0x52   : > { %9210 = vmatmul.mubr.f32.gmra.mrb[0].mxu1 %v1059_v44  ;;  %9308 = vmatprep.subr.bf16.mxu0 %v9879_v9 }
  0x53   : > { %9212 = vmatprep.mubr.f32.mxu1 %v1069_v46 }
  0x54   : > { %9133 = vmatmul.mubr.f32.gmra.mrb[2].mxu0 %v9713_v47  ;;  %v1051_v47 = vand.u32 4294901760, %v1050_v54 }
  0x55   : > { %9310 = vmatpush3.bf16.msra.mxu0 %v9879_v9  ;;  %9143 = vmatprep.mubr.f32.mxu0 %v1011_v15 }
  0x56   : > { %9213 = vmatmul.mubr.f32.gmra.mrb[2].mxu1 %v1079_v50  ;;  %9312 = vmatprep.subr.bf16.mxu0 %v9777_v31 }
  0x57   : > { %9223 = vmatprep.mubr.f32.mxu1 %v9831_v25 }
  0x58   : > { %9144 = vmatmul.mubr.f32.vlgmr.msra.gmra.mrb[4].mxu0 %v1021_v39 }
  0x59   : > { %9146 = vmatprep.mubr.f32.mxu0 %v1031_v40  ;;  %9314 = vmatpush3.bf16.msra.mxu0 %v9777_v31  ;;  %v2851_v31 = vunpack.c.0.s8 %v2850_v27 }
  0x5a   : > { %9224 = vmatmul.mubr.f32.vlgmr.msra.gmra.mrb[4].mxu1 %v9845_v37  ;;  %9316 = vmatprep.subr.bf16.mxu0 %v9802_v52 }
  0x5b   : > { %9226 = vmatprep.mubr.f32.mxu1 %v9851_v42  ;;  %9346 = vmatpush3.bf16.msra.mxu1 %v9859_v41  ;;  %v10024_v51 = vsub.s32 %v2851_v31, %v9998_v28 }
  0x5c   : > { %9147 = vmatmul.mubr.f32.gmra.mrb[6].mxu0 %v1041_v55  ;;  %9348 = vmatprep.subr.bf16.mxu1 %v9879_v9 }
  0x5d   : > { %9149 = vmatprep.mubr.f32.mxu0 %v1051_v47  ;;  %9318 = vmatpush3.bf16.msra.mxu0 %v9802_v52  ;;  %v10004_v52 = vsub.s32 0, %v9998_v28 }
  0x5e   : > { %9227 = vmatmul.mubr.f32.gmra.mrb[6].mxu1 %v9867_v62 }
  0x5f   : > { %9229 = vmatprep.mubr.f32.mxu1 %v9775_v29  ;;  %9350 = vmatpush3.bf16.msra.mxu1 %v9879_v9 }
  0x60   : > { %9150 = vmatmul.mubr.f32.gmra.mrb[8].mxu0 %v1061_v60 }
  0x61   : > { %9152 = vmatprep.mubr.f32.mxu0 %v1071_v0 }
  0x62   : > { %9230 = vmatmul.mubr.f32.gmra.mrb[0].mxu1 %v9824_v8 }
  0x63   : > { %9232 = vmatprep.mubr.f32.mxu1 %v9828_v24 }
  0x64   : > { %9153 = vmatmul.mubr.f32.gmra.mrb[10].mxu0 %v1081_v3 }
  0x65   : > { %9163 = vmatprep.mubr.f32.mxu0 %v9831_v25 }
  0x66   : > { %9233 = vmatmul.mubr.f32.gmra.mrb[2].mxu1 %v9843_v35 }
  0x67   : > { %9243 = vmatprep.mubr.f32.mxu1 %v9831_v25 }
  0x68   : > { %9164 = vmatmul.mubr.f32.vlgmr.msra.gmra.mrb[4].mxu0 %v9845_v37 }
  0x69   : > { %9166 = vmatprep.mubr.f32.mxu0 %v9851_v42 }
  0x6a   : > { %9244 = vmatmul.mubr.f32.vlgmr.msra.gmra.mrb[4].mxu1 %v9845_v37 }
  0x6b   : > { %9246 = vmatprep.mubr.f32.mxu1 %v9851_v42 }
  0x6c   : > { %9167 = vmatmul.mubr.f32.gmra.mrb[6].mxu0 %v9867_v62 }
  0x6e   : > { %9247 = vmatmul.mubr.f32.gmra.mrb[6].mxu1 %v9867_v62 }
  0x6f   : > { %9249 = vmatprep.mubr.f32.mxu1 %v9775_v29  ;;  %v10007_v29 = vsub.s32 1, %v9998_v28 }
  0x72   : > { %9250 = vmatmul.mubr.f32.gmra.mrb[0].mxu1 %v9824_v8 }
  0x73   : > { %9252 = vmatprep.mubr.f32.mxu1 %v9828_v24 }
  0x76   : > { %9253 = vmatmul.mubr.f32.gmra.mrb[2].mxu1 %v9843_v35 }
 0x123   : > { %v9131_v59 = vpop.f32.mrb[0].mxu0 }
 0x124   : > { %v10021_v8 = vadd.f32 %v9131_v59, %v8921_v45  ;;  %v873_v24 = vpop.f32.mrb[1].mxu0 }
 0x125   : > { %v10026_v25 = vadd.f32 %v8921_v45, %v873_v24 }
 0x126   : > { %v2007_v33 = vrot.slane %v10021_v8, %v10004_v52  ;;  %v10038_v34 = vrot.slane %v10021_v8, %v10007_v29  ;;  %v10042_v37 = vrot.slane %v10021_v8, %v10010_v63  ;;  %v10046_v38 = vrot.slane %v10021_v8, %v10013_v1 }
 0x127   : > { %v9134_v35 = vpop.f32.mrb[2].mxu0  ;;  %v10050_v42 = vrot.slane %v10021_v8, %v10016_v2  ;;  %v10054_v43 = vrot.slane %v10021_v8, %v10019_v6  ;;  %v2904_v62 = vrot.slane %v10021_v8, %v10024_v51  ;;  %v10062_v7 = vrot.slane %v10026_v25, %v10004_v52 }
 0x128   : > { %v10056_v41 = vadd.f32 %v9134_v35, %v8921_v45  ;;  %2013 = vbcast.lane.b32.xlu1 %v2007_v33, 264  ;;  %2009 = vbcast.lane.b32.xlu0 %v2007_v33, 256  ;;  %v885_v57 = vpop.f32.mrb[3].mxu0  ;;  %v10068_v10 = vrot.slane %v10026_v25, %v10007_v29  ;;  %v10072_v17 = vrot.slane %v10026_v25, %v10029_v26 }
 0x129   : > { %v10064_v9 = vadd.f32 %v8921_v45, %v885_v57  ;;  %v10076_v48 = vrot.slane %v10026_v25, %v10032_v32  ;;  %v2920_v12 = vrot.slane %v2904_v62, %v10024_v51  ;;  %v2912_v13 = vcombine.high %v2904_v62, %v2904_v62  ;;  %v10150_v45 = vld [vmem:[%s16348_s5] ss:$0 sm:$0xff] }
 0x12a   : > { %v2897_v19 = vcombine.high %v10021_v8, %v10021_v8  ;;  %v10083_v18 = vrot.slane %v10026_v25, %v10010_v63  ;;  %v10087_v14 = vrot.slane %v10026_v25, %v10013_v1  ;;  %v10091_v16 = vrot.slane %v10026_v25, %v10016_v2 }
 0x12b   : > { %v10095_v20 = vrot.slane %v10026_v25, %v10019_v6  ;;  %v2855_v21 = vrot.slane %v10026_v25, %v10024_v51  ;;  %v10100_v22 = vrot.slane %v2920_v12, %v10004_v52  ;;  %v2934_v23 = vrot.slane %v2912_v13, %v10024_v51 }
 0x12c   : > { %16973 = vst [vmem:[#allocation5_spill] sm:$0xff] %v10091_v16  ;;  %2021 = vbcast.lane.b32.xlu1 %v2007_v33, 280  ;;  %2017 = vbcast.lane.b32.xlu0 %v2007_v33, 272  ;;  %v2942_v30 = vcombine.high %v2920_v12, %v2920_v12  ;;  %v2911_v11 = vrot.slane %v2897_v19, %v10024_v51 }
 0x12d   : > { %16974 = vst [vmem:[#allocation6_spill] sm:$0xff] %v10095_v20  ;;  %v2871_v44 = vrot.slane %v2855_v21, %v10024_v51  ;;  %v10107_v46 = vrot.slane %v10064_v9, %v10004_v52  ;;  %v2863_v49 = vcombine.high %v2855_v21, %v2855_v21  ;;  %v10110_v15 = vrot.slane %v2934_v23, %v10004_v52 }
 0x12e   : > { %v10113_v36 = vrot.slane %v2942_v30, %v10004_v52  ;;  %v2944_v50 = vcombine.high %v2934_v23, %v2934_v23  ;;  %v10117_v39 = vrot.slane %v10064_v9, %v10007_v29  ;;  %v2927_v53 = vrot.slane %v2911_v11, %v10024_v51 }
 0x12f   : > { %16975 = vst [vmem:[#allocation7_spill] sm:$0xff] %v10107_v46  ;;  %v2913_v40 = vcombine.high %v2911_v11, %v2911_v11  ;;  %v10121_v54 = vrot.slane %v2871_v44, %v10004_v52  ;;  %v2885_v55 = vrot.slane %v2863_v49, %v10024_v51  ;;  %v2893_v47 = vcombine.high %v2871_v44, %v2871_v44 }
 0x130   : > { %16976 = vst [vmem:[#allocation8_spill] sm:$0xff] %v10117_v39  ;;  %2029 = vbcast.lane.b32.xlu1 %v2007_v33, 296  ;;  %2025 = vbcast.lane.b32.xlu0 %v2007_v33, 288  ;;  %v10125_v56 = vrot.slane %v2944_v50, %v10004_v52  ;;  %v10129_v58 = vrot.slane %v10064_v9, %v10029_v26 }
 0x131   : > { %16977 = vst [vmem:[#allocation9_spill] sm:$0xff] %v10121_v54  ;;  %v10132_v60 = vrot.slane %v2927_v53, %v10004_v52  ;;  %v2941_v61 = vrot.slane %v2913_v40, %v10024_v51  ;;  %v2943_v0 = vcombine.high %v2927_v53, %v2927_v53  ;;  %v10136_v3 = vrot.slane %v2885_v55, %v10004_v52 }
 0x132   : > { %16978 = vst [vmem:[#allocation10_spill] sm:$0xff] %v10129_v58  ;;  %v10139_v4 = vrot.slane %v2893_v47, %v10004_v52  ;;  %v2895_v5 = vcombine.high %v2885_v55, %v2885_v55  ;;  %v10143_v27 = vrot.slane %v10064_v9, %v10032_v32  ;;  %v2848_v31 = vcombine.high %v10026_v25, %v10026_v25 }
 0x133   : > { %16979 = vst [vmem:[#allocation11_spill] sm:$0xff] %v10136_v3  ;;  %v9151_v59 = vpop.f32.mrb[8].mxu0  ;;  %v10153_v24 = vrot.slane %v2941_v61, %v10004_v52  ;;  %v10156_v35 = vrot.slane %v2943_v0, %v10004_v52  ;;  %v2945_v57 = vcombine.high %v2941_v61, %v2941_v61  ;;  %v10160_v62 = vrot.slane %v10064_v9, %v10010_v63 }
 0x134   : > { %16980 = vst [vmem:[#allocation12_spill] sm:$0xff] %v10139_v4  ;;  %16981 = vst [vmem:[#allocation13_spill] sm:$0xff] %v10143_v27  ;;  %2037 = vbcast.lane.b32.xlu1 %v2007_v33, 312  ;;  %2033 = vbcast.lane.b32.xlu0 %v2007_v33, 304  ;;  %v10163_v25 = vadd.f32 %v9151_v59, %v10150_v45  ;;  %v1053_v12 = vpop.f32.mrb[9].mxu0  ;;  %v10166_v13 = vrot.slane %v2895_v5, %v10004_v52 }
 0x135   : > { %16982 = vst [vmem:[#allocation14_spill] sm:$0xff] %v10160_v62  ;;  %v2862_v19 = vrot.slane %v2848_v31, %v10024_v51  ;;  %v10170_v21 = vadd.f32 %v10150_v45, %v1053_v12  ;;  %v10173_v23 = vrot.slane %v2945_v57, %v10004_v52  ;;  %v10177_v30 = vrot.slane %v10064_v9, %v10013_v1 }
 0x136   : > { %16983 = vst [vmem:[#allocation15_spill] sm:$0xff] %v10166_v13  ;;  %v10181_v33 = vrot.slane %v10064_v9, %v10016_v2  ;;  %v10186_v49 = vrot.slane %v10064_v9, %v10019_v6  ;;  %v2953_v50 = vrot.slane %v10064_v9, %v10024_v51  ;;  %v10192_v40 = vrot.slane %v10056_v41, %v10004_v52 }
 0x137   : > { %16984 = vst [vmem:[#allocation16_spill] sm:$0xff] %v10173_v23  ;;  %16985 = vst [vmem:[#allocation17_spill] sm:$0xff] %v10177_v30  ;;  %v2878_v11 = vrot.slane %v2862_v19, %v10024_v51  ;;  %v2864_v44 = vcombine.high %v2862_v19, %v2862_v19  ;;  %v9154_v53 = vpop.f32.mrb[10].mxu0  ;;  %v10196_v55 = vrot.slane %v10056_v41, %v10007_v29 }
 0x138   : > { %16986 = vst [vmem:[#allocation18_spill] sm:$0xff] %v10181_v33  ;;  %16987 = vst [vmem:[#allocation19_spill] sm:$0xff] %v10186_v49  ;;  %v10200_v47 = vrot.slane %v10056_v41, %v10029_v26  ;;  %v10204_v61 = vrot.slane %v10056_v41, %v10032_v32  ;;  %2048 = vbcast.lane.b32.xlu1 %v10038_v34, 264  ;;  %2044 = vbcast.lane.b32.xlu0 %v10038_v34, 256  ;;  %v1073_v5 = vpop.f32.mrb[11].mxu0 }
 0x139   : > { %16988 = vst [vmem:[#allocation20_spill] sm:$0xff] %v10192_v40  ;;  %16989 = vst [vmem:[#allocation21_spill] sm:$0xff] %v10196_v55  ;;  %v10209_v0 = vadd.f32 %v9154_v53, %v10150_v45  ;;  %v10212_v31 = vrot.slane %v2878_v11, %v10004_v52  ;;  %v2892_v29 = vrot.slane %v2864_v44, %v10024_v51 }
 0x13a   : > { %16990 = vst [vmem:[#allocation22_spill] sm:$0xff] %v10200_v47  ;;  %16991 = vst [vmem:[#allocation23_spill] sm:$0xff] %v10204_v61  ;;  %v10216_v59 = vadd.f32 %v10150_v45, %v1073_v5  ;;  %v2894_v57 = vcombine.high %v2878_v11, %v2878_v11  ;;  %v2969_v12 = vrot.slane %v2953_v50, %v10024_v51 }
 0x13b   : > { %16992 = vst [vmem:[#allocation24_spill] sm:$0xff] %v10212_v31  ;;  %v2961_v19 = vcombine.high %v2953_v50, %v2953_v50  ;;  %v10220_v61 = vrot.slane %v2892_v29, %v10004_v52  ;;  %v2896_v47 = vcombine.high %v2892_v29, %v2892_v29  ;;  %v2946_v53 = vcombine.high %v10064_v9, %v10064_v9  ;;  %v9165_v40 = vpop.f32.mrb[4].mxu0 }
 0x13c   : > { %v10226_v55 = vrot.slane %v10056_v41, %v10010_v63  ;;  %v10229_v44 = vrot.slane %v2894_v57, %v10004_v52  ;;  %v10232_v11 = vrot.slane %v2969_v12, %v10004_v52  ;;  %v2991_v5 = vcombine.high %v2969_v12, %v2969_v12  ;;  %2056 = vbcast.lane.b32.xlu1 %v10038_v34, 280  ;;  %v1174_v29 = vpop.f32.mrb[5].mxu0 }
 0x13d   : > { %16993 = vst [vmem:[#allocation25_spill] sm:$0xff] %v10220_v61  ;;  %v2983_v50 = vrot.slane %v2961_v19, %v10024_v51  ;;  %2052 = vbcast.lane.b32.xlu0 %v10038_v34, 272  ;;  %v9359_v9 = vadd.f32 %v9165_v40, %v10150_v45  ;;  %v10239_v63 = vrot.slane %v2896_v47, %v10004_v52  ;;  %v9245_v49 = vpop.f32.mrb[4].mxu1 }
 0x13e   : > { %16994 = vst [vmem:[#allocation26_spill] sm:$0xff] %v10226_v55  ;;  %16995 = vst [vmem:[#allocation27_spill] sm:$0xff] %v10229_v44  ;;  %v2960_v55 = vrot.slane %v2946_v53, %v10024_v51  ;;  %v9361_v57 = vadd.f32 %v10150_v45, %v1174_v29  ;;  %v10247_v12 = vrot.slane %v2991_v5, %v10004_v52  ;;  %v1678_v61 = vpop.f32.mrb[5].mxu1 }
 0x13f   : > { %16996 = vst [vmem:[#allocation28_spill] sm:$0xff] %v10232_v11  ;;  %16997 = vst [vmem:[#allocation29_spill] sm:$0xff] %v10239_v63  ;;  %v10244_v11 = vrot.slane %v2983_v50, %v10004_v52  ;;  %v2993_v19 = vcombine.high %v2983_v50, %v2983_v50  ;;  %v10249_v33 = vadd.f32 %v9359_v9, %v9245_v49  ;;  %v9168_v29 = vpop.f32.mrb[6].mxu0 }
 0x140   : > { %16999 = vst [vmem:[#allocation31_spill] sm:$0xff] %v10247_v12  ;;  %v2976_v40 = vrot.slane %v2960_v55, %v10024_v51  ;;  %v2962_v44 = vcombine.high %v2960_v55, %v2960_v55  ;;  %v10254_v47 = vrot.slane %v10056_v41, %v10013_v1  ;;  %v10256_v53 = vadd.f32 %v9361_v57, %v1678_v61  ;;  %v1186_v55 = vpop.f32.mrb[7].mxu0 }
 0x141   : > { %16998 = vst [vmem:[#allocation30_spill] sm:$0xff] %v10244_v11  ;;  %v10259_v63 = vrot.slane %v2993_v19, %v10004_v52  ;;  %v10263_v5 = vrot.slane %v10056_v41, %v10016_v2  ;;  %v10267_v49 = vrot.slane %v10056_v41, %v10019_v6  ;;  %2064 = vbcast.lane.b32.xlu1 %v10038_v34, 296  ;;  %v9248_v2 = vpop.f32.mrb[6].mxu1 }
 0x142   : > { %17000 = vst [vmem:[#allocation32_spill] sm:$0xff] %v10254_v47  ;;  %2060 = vbcast.lane.b32.xlu0 %v10038_v34, 288  ;;  %v9363_v1 = vadd.f32 %v9168_v29, %v10150_v45  ;;  %v10273_v61 = vrot.slane %v2976_v40, %v10004_v52  ;;  %v2990_v50 = vrot.slane %v2962_v44, %v10024_v51 }
 0x143   : > { %17001 = vst [vmem:[#allocation33_spill] sm:$0xff] %v10259_v63  ;;  %17002 = vst [vmem:[#allocation34_spill] sm:$0xff] %v10263_v5  ;;  %v9365_v9 = vadd.f32 %v10150_v45, %v1186_v55  ;;  %v2992_v57 = vcombine.high %v2976_v40, %v2976_v40  ;;  %v3002_v6 = vrot.slane %v10056_v41, %v10024_v51  ;;  %v1690_v5 = vpop.f32.mrb[7].mxu1 }
 0x144   : > { %17003 = vst [vmem:[#allocation35_spill] sm:$0xff] %v10267_v49  ;;  %17004 = vst [vmem:[#allocation36_spill] sm:$0xff] %v10273_v61  ;;  %v2995_v19 = vcombine.high %v10056_v41, %v10056_v41  ;;  %v10281_v49 = vadd.f32 %v9363_v1, %v9248_v2  ;;  %v10284_v29 = vrot.slane %v2990_v50, %v10004_v52 }
 0x145   : > { %v2994_v47 = vcombine.high %v2990_v50, %v2990_v50  ;;  %v10286_v61 = vadd.f32 %v9365_v9, %v1690_v5  ;;  %v10289_v44 = vrot.slane %v2992_v57, %v10004_v52  ;;  %v3018_v45 = vrot.slane %v3002_v6, %v10024_v51  ;;  %2072 = vbcast.lane.b32.xlu1 %v10038_v34, 312  ;;  %v9251_v55 = vpop.f32.mrb[0].mxu1 }
 0x146   : > { %17005 = vst [vmem:[#allocation37_spill] sm:$0xff] %v10284_v29  ;;  %v3010_v40 = vcombine.high %v3002_v6, %v3002_v6  ;;  %2068 = vbcast.lane.b32.xlu0 %v10038_v34, 304  ;;  %v3009_v1 = vrot.slane %v2995_v19, %v10024_v51  ;;  %v2077_v2 = vrot.slane %v10021_v8, %v10029_v26  ;;  %v1702_v6 = vpop.f32.mrb[1].mxu1 }
 0x147   : > { %17006 = vst [vmem:[#allocation38_spill] sm:$0xff] %v10289_v44  ;;  %v10295_v41 = vrot.slane %v2994_v47, %v10004_v52  ;;  %v10299_v50 = vrot.slane %v3018_v45, %v10004_v52  ;;  %v3040_v9 = vcombine.high %v3018_v45, %v3018_v45  ;;  %v10305_v57 = vadd.f32 %v9251_v55, %v10163_v25 }
 0x148   : > { %v3032_v5 = vrot.slane %v3010_v40, %v10024_v51  ;;  %v3025_v34 = vrot.slane %v3009_v1, %v10024_v51  ;;  %v3011_v47 = vcombine.high %v3009_v1, %v3009_v1 }
 0x149   : > { %17007 = vst [vmem:[#allocation39_spill] sm:$0xff] %v10295_v41  ;;  %17008 = vst [vmem:[#allocation40_spill] sm:$0xff] %v10299_v50  ;;  %v10309_v41 = vadd.f32 %v1702_v6, %v10170_v21  ;;  %v10315_v50 = vrot.slane %v3040_v9, %v10004_v52  ;;  %2083 = vbcast.lane.b32.xlu1 %v2077_v2, 264  ;;  %v9254_v55 = vpop.f32.mrb[2].mxu1 }
 0x14a   : > { %17009 = vst [vmem:[#allocation41_spill] sm:$0xff] %v10305_v57  ;;  %v10312_v19 = vrot.slane %v3032_v5, %v10004_v52  ;;  %v3042_v45 = vcombine.high %v3032_v5, %v3032_v5  ;;  %2079 = vbcast.lane.b32.xlu0 %v2077_v2, 256  ;;  %v10318_v26 = vrot.slane %v3025_v34, %v10004_v52  ;;  %v1714_v6 = vpop.f32.mrb[3].mxu1 }
 0x14b   : > { %17010 = vst [vmem:[#allocation42_spill] sm:$0xff] %v10309_v41  ;;  %17012 = vst [vmem:[#allocation44_spill] sm:$0xff] %v10315_v50  ;;  %v3039_v25 = vrot.slane %v3011_v47, %v10024_v51  ;;  %v3041_v40 = vcombine.high %v3025_v34, %v3025_v34  ;;  %v10325_v21 = vadd.f32 %v9254_v55, %v10209_v0 }
 0x14c   : > { %17011 = vst [vmem:[#allocation43_spill] sm:$0xff] %v10312_v19  ;;  %17013 = vst [vmem:[#allocation45_spill] sm:$0xff] %v10318_v26  ;;  %v10322_v1 = vrot.slane %v3042_v45, %v10004_v52  ;;  %v10334_v26 = vadd.f32 %v1714_v6, %v10216_v59  ;;  %v2112_v0 = vrot.slane %v10021_v8, %v10032_v32 }
 0x14d   : > { %17015 = vst [vmem:[#allocation47_spill] sm:$0xff] %v10325_v21  ;;  %v10328_v9 = vrot.slane %v3039_v25, %v10004_v52  ;;  %v10331_v5 = vrot.slane %v3041_v40, %v10004_v52  ;;  %v3043_v50 = vcombine.high %v3039_v25, %v3039_v25  ;;  %2091 = vbcast.lane.b32.xlu1 %v2077_v2, 280 }
 0x14e   : > { %17014 = vst [vmem:[#allocation46_spill] sm:$0xff] %v10322_v1  ;;  %17018 = vst [vmem:[#allocation50_spill] sm:$0xff] %v10334_v26  ;;  %2087 = vbcast.lane.b32.xlu0 %v2077_v2, 272 }
 0x14f   : > { %17016 = vst [vmem:[#allocation48_spill] sm:$0xff] %v10328_v9  ;;  %17017 = vst [vmem:[#allocation49_spill] sm:$0xff] %v10331_v5  ;;  %v10337_v51 = vrot.slane %v3043_v50, %v10004_v52 }
 0x151   : > { %17019 = vst [vmem:[#allocation51_spill] sm:$0xff] %v10337_v51  ;;  %2099 = vbcast.lane.b32.xlu1 %v2077_v2, 296 }
 0x152   : > { %2095 = vbcast.lane.b32.xlu0 %v2077_v2, 288 }
 0x155   : > { %2107 = vbcast.lane.b32.xlu1 %v2077_v2, 312 }
 0x156   : > { %2103 = vbcast.lane.b32.xlu0 %v2077_v2, 304 }
 0x159   : > { %2118 = vbcast.lane.b32.xlu1 %v2112_v0, 264 }
 0x15a   : > { %2114 = vbcast.lane.b32.xlu0 %v2112_v0, 256 }
 0x15d   : > { %2126 = vbcast.lane.b32.xlu1 %v2112_v0, 280 }
 0x15e   : > { %2122 = vbcast.lane.b32.xlu0 %v2112_v0, 272 }
 0x161   : > { %2134 = vbcast.lane.b32.xlu1 %v2112_v0, 296 }
 0x162   : > { %2130 = vbcast.lane.b32.xlu0 %v2112_v0, 288 }
 0x165   : > { %2142 = vbcast.lane.b32.xlu1 %v2112_v0, 312 }
 0x166   : > { %2138 = vbcast.lane.b32.xlu0 %v2112_v0, 304  ;;  %v9537_v0 = vmov 1983009808  }
 0x167   : > { %v3719_v51 = vunpack.c.l.s4 %v9537_v0 }
 0x169   : > { %2153 = vbcast.lane.b32.xlu1 %v10042_v37, 264  ;;  %v3720_v44 = vunpack.c.0.s8 %v3719_v51 }
 0x16a   : > { %2149 = vbcast.lane.b32.xlu0 %v10042_v37, 256 }
 0x16d   : > { %2161 = vbcast.lane.b32.xlu1 %v10042_v37, 280 }
 0x16e   : > { %2157 = vbcast.lane.b32.xlu0 %v10042_v37, 272 }
 0x171   : > { %2169 = vbcast.lane.b32.xlu1 %v10042_v37, 296 }
 0x172   : > { %2165 = vbcast.lane.b32.xlu0 %v10042_v37, 288 }
 0x175   : > { %2177 = vbcast.lane.b32.xlu1 %v10042_v37, 312 }
 0x176   : > { %2173 = vbcast.lane.b32.xlu0 %v10042_v37, 304 }
 0x179   : > { %2188 = vbcast.lane.b32.xlu1 %v10046_v38, 264 }
 0x17a   : > { %2184 = vbcast.lane.b32.xlu0 %v10046_v38, 256 }
 0x17d   : > { %2196 = vbcast.lane.b32.xlu1 %v10046_v38, 280 }
 0x17e   : > { %2192 = vbcast.lane.b32.xlu0 %v10046_v38, 272 }
 0x181   : > { %2204 = vbcast.lane.b32.xlu1 %v10046_v38, 296 }
 0x182   : > { %2200 = vbcast.lane.b32.xlu0 %v10046_v38, 288 }
 0x185   : > { %2212 = vbcast.lane.b32.xlu1 %v10046_v38, 312 }
 0x186   : > { %2208 = vbcast.lane.b32.xlu0 %v10046_v38, 304 }
 0x189   : > { %2223 = vbcast.lane.b32.xlu1 %v10050_v42, 264 }
 0x18a   : > { %2219 = vbcast.lane.b32.xlu0 %v10050_v42, 256 }
 0x18d   : > { %2231 = vbcast.lane.b32.xlu1 %v10050_v42, 280 }
 0x18e   : > { %2227 = vbcast.lane.b32.xlu0 %v10050_v42, 272 }
 0x191   : > { %2239 = vbcast.lane.b32.xlu1 %v10050_v42, 296 }
 0x192   : > { %2235 = vbcast.lane.b32.xlu0 %v10050_v42, 288 }
 0x195   : > { %2247 = vbcast.lane.b32.xlu1 %v10050_v42, 312 }
 0x196   : > { %2243 = vbcast.lane.b32.xlu0 %v10050_v42, 304 }
 0x199   : > { %2258 = vbcast.lane.b32.xlu1 %v10054_v43, 264 }
 0x19a   : > { %2254 = vbcast.lane.b32.xlu0 %v10054_v43, 256  ;;  %v2014_v52 = vpop.permute.xlu1 %2013  ;;  %v2010_v8 = vpop.permute.xlu0 %2009 }
 0x19b   : > { %v3269_v6 = vmul.f32 %v10100_v22, %v2014_v52  ;;  %v3268_v5 = vmul.f32 %v10100_v22, %v2010_v8 }
 0x19d   : > { %2266 = vbcast.lane.b32.xlu1 %v10054_v43, 280  ;;  %v10386_v19 = vmul.f32 %v10249_v33, %v3269_v6  ;;  %v10391_v52 = vmul.f32 %v10256_v53, %v3268_v5 }
 0x19e   : > { %2262 = vbcast.lane.b32.xlu0 %v10054_v43, 272  ;;  %v2022_v32 = vpop.permute.xlu1 %2021  ;;  %v2018_v37 = vpop.permute.xlu0 %2017 }
 0x19f   : > { %v3271_v0 = vmul.f32 %v10100_v22, %v2022_v32  ;;  %v3270_v8 = vmul.f32 %v10100_v22, %v2018_v37 }
 0x1a1   : > { %2274 = vbcast.lane.b32.xlu1 %v10054_v43, 296  ;;  %v10421_v32 = vmul.f32 %v10281_v49, %v3271_v0  ;;  %v10424_v37 = vmul.f32 %v10286_v61, %v3270_v8 }
 0x1a2   : > { %2270 = vbcast.lane.b32.xlu0 %v10054_v43, 288  ;;  %v2030_v38 = vpop.permute.xlu1 %2029  ;;  %v2026_v59 = vpop.permute.xlu0 %2025 }
 0x1a3   : > { %v3273_v63 = vmul.f32 %v10100_v22, %v2030_v38  ;;  %v3272_v6 = vmul.f32 %v10100_v22, %v2026_v59 }
 0x1a5   : > { %2282 = vbcast.lane.b32.xlu1 %v10054_v43, 312  ;;  %v10427_v12 = vmul.f32 %v10305_v57, %v3273_v63 }
 0x1a6   : > { %2278 = vbcast.lane.b32.xlu0 %v10054_v43, 304  ;;  %v2038_v42 = vpop.permute.xlu1 %2037  ;;  %v2034_v50 = vpop.permute.xlu0 %2033 }
 0x1a9   : > { %1737 = vbcast.lane.b32.xlu1 %v10062_v7, 272 }
 0x1aa   : > { %1729 = vbcast.lane.b32.xlu0 %v10062_v7, 256  ;;  %v2049_v2 = vpop.permute.xlu1 %2048  ;;  %v2045_v34 = vpop.permute.xlu0 %2044 }
 0x1ab   : > { %v3277_v8 = vmul.f32 %v10110_v15, %v2049_v2  ;;  %v3276_v31 = vmul.f32 %v10110_v15, %v2045_v34 }
 0x1ad   : > { %1741 = vbcast.lane.b32.xlu1 %v10062_v7, 280 }
 0x1ae   : > { %1733 = vbcast.lane.b32.xlu0 %v10062_v7, 264  ;;  %v2057_v47 = vpop.permute.xlu1 %2056 }
 0x1af   : > { %v2053_v45 = vpop.permute.xlu0 %2052  ;;  %v3279_v2 = vmul.f32 %v10110_v15, %v2057_v47 }
 0x1b0   : > { %v3278_v34 = vmul.f32 %v10110_v15, %v2053_v45 }
 0x1b1   : > { %1749 = vbcast.lane.b32.xlu1 %v10062_v7, 296 }
 0x1b2   : > { %1745 = vbcast.lane.b32.xlu0 %v10062_v7, 288 }
 0x1b3   : > { %v2065_v25 = vpop.permute.xlu1 %2064 }
 0x1b4   : > { %v2061_v43 = vpop.permute.xlu0 %2060 }
 0x1b5   : > { %1757 = vbcast.lane.b32.xlu1 %v10062_v7, 312 }
 0x1b6   : > { %1753 = vbcast.lane.b32.xlu0 %v10062_v7, 304 }
 0x1b7   : > { %v2073_v40 = vpop.permute.xlu1 %2072 }
 0x1b8   : > { %v2069_v55 = vpop.permute.xlu0 %2068 }
 0x1b9   : > { %1768 = vbcast.lane.b32.xlu1 %v10068_v10, 264 }
 0x1ba   : > { %1764 = vbcast.lane.b32.xlu0 %v10068_v10, 256 }
 0x1bb   : > { %v2084_v9 = vpop.permute.xlu1 %2083 }
 0x1bc   : > { %v2080_v1 = vpop.permute.xlu0 %2079  ;;  %v3285_v29 = vmul.f32 %v10113_v36, %v2084_v9 }
 0x1bd   : > { %v3284_v7 = vmul.f32 %v10113_v36, %v2080_v1  ;;  %1776 = vbcast.lane.b32.xlu1 %v10068_v10, 280 }
 0x1be   : > { %1772 = vbcast.lane.b32.xlu0 %v10068_v10, 272  ;;  %v10400_v9 = vmul.f32 %v10249_v33, %v3285_v29  ;;  %v10414_v29 = vsub.s32 %v3720_v44, %v9998_v28  ;;  %v10430_v44 = vmul.f32 %v10309_v41, %v3272_v6 }
 0x1bf   : > { %v10403_v1 = vmul.f32 %v10256_v53, %v3284_v7  ;;  %v2092_v5 = vpop.permute.xlu1 %2091 }
 0x1c0   : > { %v2088_v51 = vpop.permute.xlu0 %2087  ;;  %17020 = vst [vmem:[#allocation52_spill] sm:$0xff] %v10414_v29  ;;  %v3287_v59 = vmul.f32 %v10113_v36, %v2092_v5  ;;  %v3275_v5 = vmul.f32 %v10100_v22, %v2038_v42 }
 0x1c1   : > { %v3286_v7 = vmul.f32 %v10113_v36, %v2088_v51  ;;  %1784 = vbcast.lane.b32.xlu1 %v10068_v10, 296  ;;  %v3274_v51 = vmul.f32 %v10100_v22, %v2034_v50 }
 0x1c2   : > { %1780 = vbcast.lane.b32.xlu0 %v10068_v10, 288  ;;  %v3543_v38 = vmul.f32 %v10281_v49, %v3287_v59 }
 0x1c3   : > { %v10436_v11 = vmul.f32 %v10286_v61, %v3286_v7  ;;  %v2100_v0 = vpop.permute.xlu1 %2099 }
 0x1c4   : > { %v2096_v30 = vpop.permute.xlu0 %2095  ;;  %v3289_v63 = vmul.f32 %v10113_v36, %v2100_v0  ;;  %v5484_v62 = vcombine.low %v10421_v32, %v3543_v38  ;;  %v5485_v42 = vcombine.high %v10421_v32, %v3543_v38  ;;  %v3281_v32 = vmul.f32 %v10110_v15, %v2065_v25 }
 0x1c5   : > { %v3288_v6 = vmul.f32 %v10113_v36, %v2096_v30  ;;  %v4940_v22 = vcombine.low %v10424_v37, %v10436_v11  ;;  %v4941_v50 = vcombine.high %v10424_v37, %v10436_v11  ;;  %1792 = vbcast.lane.b32.xlu1 %v10068_v10, 312  ;;  %v3280_v38 = vmul.f32 %v10110_v15, %v2061_v43 }
 0x1c6   : > { %v10452_v59 = vmul.f32 %v10305_v57, %v3289_v63  ;;  %1788 = vbcast.lane.b32.xlu0 %v10068_v10, 304  ;;  %v3283_v11 = vmul.f32 %v10110_v15, %v2073_v40  ;;  %v3282_v37 = vmul.f32 %v10110_v15, %v2069_v55  ;;  %v10471_v25 = vmul.f32 %v10325_v21, %v3275_v5 }
 0x1c7   : > { %v10455_v30 = vmul.f32 %v10309_v41, %v3288_v6  ;;  %v2108_v7 = vpop.permute.xlu1 %2107  ;;  %v10474_v43 = vmul.f32 %v10334_v26, %v3274_v51  ;;  %v3532_v55 = vmul.f32 %v10256_v53, %v3276_v31  ;;  %v10482_v6 = vmul.f32 %v10281_v49, %v3279_v2 }
 0x1c8   : > { %v2104_v47 = vpop.permute.xlu0 %2103  ;;  %v6572_v45 = vcombine.low %v10427_v12, %v10452_v59  ;;  %v6573_v0 = vcombine.high %v10427_v12, %v10452_v59  ;;  %v3291_v15 = vmul.f32 %v10113_v36, %v2108_v7  ;;  %v3533_v12 = vmul.f32 %v10249_v33, %v3277_v8 }
 0x1c9   : > { %v3290_v40 = vmul.f32 %v10113_v36, %v2104_v47  ;;  %1803 = vbcast.lane.b32.xlu1 %v10072_v17, 264  ;;  %v10485_v59 = vmul.f32 %v10286_v61, %v3278_v34  ;;  %v10489_v5 = vmul.f32 %v10305_v57, %v3281_v32  ;;  %v10492_v51 = vmul.f32 %v10309_v41, %v3280_v38 }
 0x1ca   : > { %1799 = vbcast.lane.b32.xlu0 %v10072_v17, 256  ;;  %v10495_v36 = vmul.f32 %v10325_v21, %v3291_v15  ;;  %v10501_v7 = vmul.f32 %v10325_v21, %v3283_v11  ;;  %v10504_v34 = vmul.f32 %v10334_v26, %v3282_v37  ;;  %v17021_v37 = vcombine.low %v10386_v19, %v10400_v9 }
 0x1cb   : > { %v10498_v8 = vmul.f32 %v10334_v26, %v3290_v40  ;;  %v2119_v31 = vpop.permute.xlu1 %2118  ;;  %v17023_v11 = vcombine.low %v10391_v52, %v10403_v1  ;;  %v10554_v4 = vrot.slane %v4941_v50, %v10414_v29  ;;  %v10573_v50 = vrot.slane %v6572_v45, %v10414_v29 }
 0x1cc   : > { %v2115_v2 = vpop.permute.xlu0 %2114  ;;  %v3293_v32 = vmul.f32 %v10125_v56, %v2119_v31  ;;  %v10521_v31 = vrot.slane %v17021_v37, %v10414_v29  ;;  %v17024_v37 = vcombine.high %v10391_v52, %v10403_v1 }
 0x1cd   : > { %v3292_v47 = vmul.f32 %v10125_v56, %v2115_v2  ;;  %1811 = vbcast.lane.b32.xlu1 %v10072_v17, 280  ;;  %v17022_v2 = vcombine.high %v10386_v19, %v10400_v9  ;;  %v10536_v10 = vrot.slane %v17023_v11, %v10414_v29  ;;  %v10545_v19 = vrot.slane %v5484_v62, %v10414_v29 }
 0x1ce   : > { %v3549_v15 = vmul.f32 %v10249_v33, %v3293_v32  ;;  %1807 = vbcast.lane.b32.xlu0 %v10072_v17, 272  ;;  %v10542_v63 = vrot.slane %v17024_v37, %v10414_v29  ;;  %v10548_v9 = vrot.slane %v5485_v42, %v10414_v29  ;;  %v10551_v11 = vrot.slane %v4940_v22, %v10414_v29 }
 0x1cf   : > { %v10527_v38 = vrot.slane %v17022_v2, %v10414_v29  ;;  %v3548_v40 = vmul.f32 %v10256_v53, %v3292_v47  ;;  %v2127_v32 = vpop.permute.xlu1 %2126 }
 0x1d0   : > { %v2123_v47 = vpop.permute.xlu0 %2122  ;;  %v4412_v2 = vcombine.low %v3533_v12, %v3549_v15  ;;  %v4413_v27 = vcombine.high %v3533_v12, %v3549_v15  ;;  %v3295_v52 = vmul.f32 %v10125_v56, %v2127_v32 }
 0x1d1   : > { %v3868_v13 = vcombine.low %v3532_v55, %v3548_v40  ;;  %v3869_v58 = vcombine.high %v3532_v55, %v3548_v40  ;;  %v3294_v62 = vmul.f32 %v10125_v56, %v2123_v47  ;;  %1819 = vbcast.lane.b32.xlu1 %v10072_v17, 296  ;;  %v10576_v55 = vrot.slane %v6573_v0, %v10414_v29 }
 0x1d2   : > { %v10560_v1 = vrot.slane %v4412_v2, %v10414_v29  ;;  %v10563_v42 = vrot.slane %v4413_v27, %v10414_v29  ;;  %1815 = vbcast.lane.b32.xlu0 %v10072_v17, 288  ;;  %v3551_v15 = vmul.f32 %v10281_v49, %v3295_v52  ;;  %v17026_v52 = vcombine.high %v10430_v44, %v10455_v30 }
 0x1d3   : > { %v10566_v12 = vrot.slane %v3868_v13, %v10414_v29  ;;  %v10569_v22 = vrot.slane %v3869_v58, %v10414_v29  ;;  %v3550_v40 = vmul.f32 %v10286_v61, %v3294_v62  ;;  %v2135_v27 = vpop.permute.xlu1 %2134  ;;  %v17025_v13 = vcombine.low %v10430_v44, %v10455_v30 }
 0x1d4   : > { %v2131_v37 = vpop.permute.xlu0 %2130  ;;  %v5500_v62 = vcombine.low %v10482_v6, %v3551_v15  ;;  %v5501_v32 = vcombine.high %v10482_v6, %v3551_v15  ;;  %v10612_v47 = vrot.slane %v17026_v52, %v10414_v29  ;;  %v3297_v6 = vmul.f32 %v10125_v56, %v2135_v27 }
 0x1d5   : > { %1827 = vbcast.lane.b32.xlu1 %v10072_v17, 312  ;;  %v4956_v45 = vcombine.low %v10485_v59, %v3550_v40  ;;  %v4957_v58 = vcombine.high %v10485_v59, %v3550_v40  ;;  %v10606_v2 = vrot.slane %v17025_v13, %v10414_v29  ;;  %v3296_v15 = vmul.f32 %v10125_v56, %v2131_v37 }
 0x1d6   : > { %1823 = vbcast.lane.b32.xlu0 %v10072_v17, 304  ;;  %v10617_v17 = vrot.slane %v5500_v62, %v10414_v29  ;;  %v10620_v40 = vrot.slane %v5501_v32, %v10414_v29  ;;  %v3553_v44 = vmul.f32 %v10305_v57, %v3297_v6  ;;  %v17029_v6 = vcombine.high %v10471_v25, %v10495_v36 }
 0x1d7   : > { %v2143_v0 = vpop.permute.xlu1 %2142  ;;  %v10623_v13 = vrot.slane %v4956_v45, %v10414_v29  ;;  %v10626_v39 = vrot.slane %v4957_v58, %v10414_v29  ;;  %v3552_v30 = vmul.f32 %v10309_v41, %v3296_v15 }
 0x1d8   : > { %v2139_v59 = vpop.permute.xlu0 %2138  ;;  %v3299_v27 = vmul.f32 %v10125_v56, %v2143_v0  ;;  %v6588_v52 = vcombine.low %v10489_v5, %v3553_v44  ;;  %v6589_v58 = vcombine.high %v10489_v5, %v3553_v44  ;;  %v10668_v0 = vrot.slane %v17029_v6, %v10414_v29 }
 0x1d9   : > { %v3298_v37 = vmul.f32 %v10125_v56, %v2139_v59  ;;  %1838 = vbcast.lane.b32.xlu1 %v10076_v48, 264  ;;  %v6044_v45 = vcombine.low %v10492_v51, %v3552_v30  ;;  %v6045_v32 = vcombine.high %v10492_v51, %v3552_v30  ;;  %v17027_v56 = vcombine.low %v10471_v25, %v10495_v36 }
 0x1da   : > { %1834 = vbcast.lane.b32.xlu0 %v10076_v48, 256  ;;  %17030 = vst [vmem:[#allocation54_spill] sm:$0xff] %v10668_v0  ;;  %v3555_v3 = vmul.f32 %v10325_v21, %v3299_v27  ;;  %v10674_v51 = vrot.slane %v6588_v52, %v10414_v29  ;;  %v10677_v44 = vrot.slane %v6589_v58, %v10414_v29 }
 0x1db   : > { %v10650_v15 = vpop.permute.xlu1 %2153  ;;  %v10662_v62 = vrot.slane %v17027_v56, %v10414_v29  ;;  %v3554_v5 = vmul.f32 %v10334_v26, %v3298_v37  ;;  %v10680_v30 = vrot.slane %v6044_v45, %v10414_v29  ;;  %v10683_v56 = vrot.slane %v6045_v32, %v10414_v29 }
 0x1dc   : > { %v10652_v59 = vpop.permute.xlu0 %2149  ;;  %v7676_v25 = vcombine.low %v10501_v7, %v3555_v3  ;;  %v7677_v36 = vcombine.high %v10501_v7, %v3555_v3 }
 0x1dd   : > { %17028 = vst [vmem:[#allocation53_spill] sm:$0xff] %v10662_v62  ;;  %1846 = vbcast.lane.b32.xlu1 %v10076_v48, 280  ;;  %v7132_v27 = vcombine.low %v10504_v34, %v3554_v5  ;;  %v7133_v37 = vcombine.high %v10504_v34, %v3554_v5  ;;  %v17034_v5 = vcombine.low %v10474_v43, %v10498_v8 }
 0x1de   : > { %1842 = vbcast.lane.b32.xlu0 %v10076_v48, 272  ;;  %v10708_v45 = vrot.slane %v7676_v25, %v10414_v29  ;;  %v10711_v32 = vrot.slane %v7677_v36, %v10414_v29  ;;  %v17035_v25 = vcombine.high %v10474_v43, %v10498_v8 }
 0x1df   : > { %v2162_v52 = vpop.permute.xlu1 %2161  ;;  %v10714_v46 = vrot.slane %v7132_v27, %v10414_v29  ;;  %v10717_v58 = vrot.slane %v7133_v37, %v10414_v29  ;;  %v10724_v34 = vrot.slane %v17034_v5, %v10414_v29  ;;  %v9538_v5 = vmov 1934713408  }
 0x1e0   : > { %v2158_v6 = vpop.permute.xlu0 %2157  ;;  %17031 = vst [vmem:[#allocation55_spill] sm:$0xff] %v10708_v45  ;;  %17032 = vst [vmem:[#allocation56_spill] sm:$0xff] %v10711_v32  ;;  %v10730_v36 = vrot.slane %v17035_v25, %v10414_v29  ;;  %v3783_v37 = vunpack.c.l.s4 %v9538_v5  ;;  %v3301_v45 = vmul.f32 %v10132_v60, %v10650_v15  ;;  %v3303_v62 = vmul.f32 %v10132_v60, %v2162_v52 }
 0x1e1   : > { %1854 = vbcast.lane.b32.xlu1 %v10076_v48, 296  ;;  %17033 = vst [vmem:[#allocation57_spill] sm:$0xff] %v10717_v58  ;;  %v3302_v23 = vmul.f32 %v10132_v60, %v2158_v6  ;;  %v17039_v6 = vcombine.high %v10536_v10, %v10566_v12 }
 0x1e2   : > { %1850 = vbcast.lane.b32.xlu0 %v10076_v48, 288  ;;  %v3784_v8 = vunpack.c.0.s8 %v3783_v37  ;;  %v3300_v37 = vmul.f32 %v10132_v60, %v10652_v59  ;;  %v17037_v59 = vcombine.low %v10536_v10, %v10566_v12  ;;  %v17041_v10 = vcombine.low %v10542_v63, %v10569_v22 }
 0x1e3   : > { %v2170_v7 = vpop.permute.xlu1 %2169 }
 0x1e4   : > { %v2166_v27 = vpop.permute.xlu0 %2165  ;;  %v3305_v29 = vmul.f32 %v10132_v60, %v2170_v7 }
 0x1e5   : > { %1862 = vbcast.lane.b32.xlu1 %v10076_v48, 312 }
 0x1e6   : > { %1858 = vbcast.lane.b32.xlu0 %v10076_v48, 304  ;;  %v10761_v48 = vsub.s32 %v3784_v8, %v9998_v28  ;;  %v3304_v28 = vmul.f32 %v10132_v60, %v2166_v27 }
 0x1e7   : > { %v2178_v54 = vpop.permute.xlu1 %2177 }
 0x1e8   : > { %v2174_v3 = vpop.permute.xlu0 %2173  ;;  %17036 = vst [vmem:[#allocation58_spill] sm:$0xff] %v10761_v48  ;;  %v3307_v8 = vmul.f32 %v10132_v60, %v2178_v54  ;;  %v10787_v52 = vrot.slane %v17037_v59, %v10761_v48  ;;  %v10793_v7 = vrot.slane %v17039_v6, %v10761_v48  ;;  %v10799_v54 = vmul.f32 %v10256_v53, %v3300_v37 }
 0x1e9   : > { %1873 = vbcast.lane.b32.xlu1 %v10083_v18, 264  ;;  %v3306_v16 = vmul.f32 %v10132_v60, %v2174_v3  ;;  %v10802_v60 = vmul.f32 %v10281_v49, %v3303_v62  ;;  %v10805_v3 = vmul.f32 %v10286_v61, %v3302_v23  ;;  %v10812_v12 = vrot.slane %v17041_v10, %v10761_v48 }
 0x1ea   : > { %1869 = vbcast.lane.b32.xlu0 %v10083_v18, 256  ;;  %17038 = vst [vmem:[#allocation59_spill] sm:$0xff] %v10787_v52  ;;  %17040 = vst [vmem:[#allocation60_spill] sm:$0xff] %v10793_v7  ;;  %v17045_v62 = vcombine.low %v10521_v31, %v10560_v1  ;;  %v17047_v37 = vcombine.high %v10521_v31, %v10560_v1  ;;  %v10833_v6 = vmul.f32 %v10305_v57, %v3305_v29 }
 0x1eb   : > { %v2189_v20 = vpop.permute.xlu1 %2188  ;;  %17042 = vst [vmem:[#allocation61_spill] sm:$0xff] %v10812_v12  ;;  %v10836_v10 = vmul.f32 %v10309_v41, %v3304_v28  ;;  %v17051_v31 = vcombine.high %v10527_v38, %v10563_v42  ;;  %v10852_v29 = vmul.f32 %v10325_v21, %v3307_v8  ;;  %v10855_v28 = vmul.f32 %v10334_v26, %v3306_v16 }
 0x1ec   : > { %v2185_v43 = vpop.permute.xlu0 %2184  ;;  %v10824_v23 = vrot.slane %v17045_v62, %v10761_v48  ;;  %v10830_v59 = vrot.slane %v17047_v37, %v10761_v48  ;;  %v17053_v37 = vcombine.low %v10551_v11, %v10623_v13  ;;  %v17057_v16 = vcombine.low %v10554_v4, %v10626_v39 }
 0x1ed   : > { %1881 = vbcast.lane.b32.xlu1 %v10083_v18, 280  ;;  %v10849_v1 = vrot.slane %v17051_v31, %v10761_v48 }
 0x1ee   : > { %1877 = vbcast.lane.b32.xlu0 %v10083_v18, 272  ;;  %17046 = vst [vmem:[#allocation63_spill] sm:$0xff] %v10824_v23  ;;  %17048 = vst [vmem:[#allocation64_spill] sm:$0xff] %v10830_v59 }
 0x1ef   : > { %v10754_v25 = vpop.permute.xlu1 %2196  ;;  %17052 = vst [vmem:[#allocation66_spill] sm:$0xff] %v10849_v1  ;;  %v10875_v1 = vrot.slane %v17057_v16, %v10761_v48 }
 0x1f0   : > { %v10756_v32 = vpop.permute.xlu0 %2192 }
 0x1f1   : > { %1889 = vbcast.lane.b32.xlu1 %v10083_v18, 296  ;;  %17058 = vst [vmem:[#allocation69_spill] sm:$0xff] %v10875_v1 }
 0x1f2   : > { %1885 = vbcast.lane.b32.xlu0 %v10083_v18, 288 }
 0x1f3   : > { %v10763_v0 = vpop.permute.xlu1 %2204 }
 0x1f4   : > { %v10765_v5 = vpop.permute.xlu0 %2200 }
 0x1f5   : > { %1897 = vbcast.lane.b32.xlu1 %v10083_v18, 312 }
 0x1f6   : > { %1893 = vbcast.lane.b32.xlu0 %v10083_v18, 304  ;;  %v10796_v18 = vmul.f32 %v10249_v33, %v3301_v45  ;;  %v17043_v45 = vcombine.high %v10542_v63, %v10569_v22  ;;  %v17049_v63 = vcombine.low %v10527_v38, %v10563_v42  ;;  %v17055_v38 = vcombine.high %v10551_v11, %v10623_v13 }
 0x1f7   : > { %v10779_v15 = vpop.permute.xlu1 %2212  ;;  %v17061_v11 = vcombine.low %v10545_v19, %v10617_v17 }
 0x1f8   : > { %v10781_v58 = vpop.permute.xlu0 %2208  ;;  %v10818_v27 = vrot.slane %v17043_v45, %v10761_v48  ;;  %v10843_v22 = vrot.slane %v17049_v63, %v10761_v48  ;;  %v10861_v63 = vrot.slane %v17053_v37, %v10761_v48  ;;  %v10867_v42 = vrot.slane %v17055_v38, %v10761_v48 }
 0x1f9   : > { %1908 = vbcast.lane.b32.xlu1 %v10087_v14, 264  ;;  %v17059_v37 = vcombine.high %v10554_v4, %v10626_v39  ;;  %v10888_v13 = vrot.slane %v17061_v11, %v10761_v48  ;;  %v17065_v39 = vcombine.low %v10548_v9, %v10620_v40  ;;  %v17067_v38 = vcombine.high %v10548_v9, %v10620_v40 }
 0x1fa   : > { %17044 = vst [vmem:[#allocation62_spill] sm:$0xff] %v10818_v27  ;;  %1904 = vbcast.lane.b32.xlu0 %v10087_v14, 256  ;;  %17050 = vst [vmem:[#allocation65_spill] sm:$0xff] %v10843_v22  ;;  %v3308_v11 = vmul.f32 %v10153_v24, %v2185_v43  ;;  %v17069_v9 = vcombine.low %v10606_v2, %v10680_v30 }
 0x1fb   : > { %v2224_v45 = vpop.permute.xlu1 %2223  ;;  %17054 = vst [vmem:[#allocation67_spill] sm:$0xff] %v10861_v63  ;;  %17056 = vst [vmem:[#allocation68_spill] sm:$0xff] %v10867_v42  ;;  %v10881_v63 = vrot.slane %v17059_v37, %v10761_v48  ;;  %v10900_v4 = vrot.slane %v17065_v39, %v10761_v48  ;;  %v10906_v16 = vrot.slane %v17067_v38, %v10761_v48 }
 0x1fc   : > { %v2220_v62 = vpop.permute.xlu0 %2219  ;;  %v3317_v8 = vmul.f32 %v10156_v35, %v2224_v45  ;;  %17062 = vst [vmem:[#allocation71_spill] sm:$0xff] %v10888_v13  ;;  %v17063_v45 = vcombine.high %v10545_v19, %v10617_v17  ;;  %v3309_v37 = vmul.f32 %v10153_v24, %v2189_v20  ;;  %v10921_v40 = vrot.slane %v17069_v9, %v10761_v48 }
 0x1fd   : > { %v3316_v31 = vmul.f32 %v10156_v35, %v2220_v62  ;;  %17060 = vst [vmem:[#allocation70_spill] sm:$0xff] %v10881_v63  ;;  %1916 = vbcast.lane.b32.xlu1 %v10087_v14, 280  ;;  %17066 = vst [vmem:[#allocation73_spill] sm:$0xff] %v10900_v4  ;;  %v17071_v20 = vcombine.high %v10606_v2, %v10680_v30  ;;  %v17075_v38 = vcombine.high %v10612_v47, %v10683_v56 }
 0x1fe   : > { %v10894_v62 = vrot.slane %v17063_v45, %v10761_v48  ;;  %17068 = vst [vmem:[#allocation74_spill] sm:$0xff] %v10906_v16  ;;  %v10911_v19 = vmul.f32 %v10249_v33, %v3317_v8  ;;  %1912 = vbcast.lane.b32.xlu0 %v10087_v14, 272  ;;  %17070 = vst [vmem:[#allocation75_spill] sm:$0xff] %v10921_v40  ;;  %v17073_v8 = vcombine.low %v10612_v47, %v10683_v56 }
 0x1ff   : > { %v10914_v17 = vmul.f32 %v10256_v53, %v3316_v31  ;;  %v2232_v45 = vpop.permute.xlu1 %2231  ;;  %v10927_v43 = vrot.slane %v17071_v20, %v10761_v48  ;;  %v10939_v16 = vrot.slane %v17075_v38, %v10761_v48  ;;  %v17077_v47 = vcombine.low %v10573_v50, %v10674_v51 }
 0x200   : > { %17064 = vst [vmem:[#allocation72_spill] sm:$0xff] %v10894_v62  ;;  %v2228_v39 = vpop.permute.xlu0 %2227  ;;  %v10933_v31 = vrot.slane %v17073_v8, %v10761_v48  ;;  %v4428_v9 = vcombine.low %v10796_v18, %v10911_v19  ;;  %v4429_v2 = vcombine.high %v10796_v18, %v10911_v19  ;;  %v3319_v8 = vmul.f32 %v10156_v35, %v2232_v45 }
 0x201   : > { %17072 = vst [vmem:[#allocation76_spill] sm:$0xff] %v10927_v43  ;;  %17076 = vst [vmem:[#allocation78_spill] sm:$0xff] %v10939_v16  ;;  %v3884_v30 = vcombine.low %v10799_v54, %v10914_v17  ;;  %v3885_v20 = vcombine.high %v10799_v54, %v10914_v17  ;;  %1924 = vbcast.lane.b32.xlu1 %v10087_v14, 296  ;;  %v10956_v56 = vrot.slane %v17077_v47, %v10761_v48 }
 0x202   : > { %17074 = vst [vmem:[#allocation77_spill] sm:$0xff] %v10933_v31  ;;  %v3318_v31 = vmul.f32 %v10156_v35, %v2228_v39  ;;  %v17079_v18 = vcombine.high %v10573_v50, %v10674_v51  ;;  %v10965_v54 = vmul.f32 %v10249_v33, %v3309_v37  ;;  %v10968_v17 = vmul.f32 %v10256_v53, %v3308_v11 }
 0x203   : > { %17078 = vst [vmem:[#allocation79_spill] sm:$0xff] %v10956_v56  ;;  %1920 = vbcast.lane.b32.xlu0 %v10087_v14, 288  ;;  %v17081_v45 = vcombine.low %v10576_v55, %v10677_v44  ;;  %v17083_v50 = vcombine.high %v10576_v55, %v10677_v44  ;;  %v3311_v37 = vmul.f32 %v10153_v24, %v10754_v25 }
 0x204   : > { %v10962_v19 = vrot.slane %v17079_v18, %v10761_v48  ;;  %v3310_v11 = vmul.f32 %v10153_v24, %v10756_v32  ;;  %v3575_v38 = vmul.f32 %v10281_v49, %v3319_v8  ;;  %v3574_v47 = vmul.f32 %v10286_v61, %v3318_v31  ;;  %v2240_v18 = vpop.permute.xlu1 %2239 }
 0x205   : > { %v10975_v39 = vrot.slane %v17081_v45, %v10761_v48  ;;  %v10981_v51 = vrot.slane %v17083_v50, %v10761_v48  ;;  %v3313_v45 = vmul.f32 %v10153_v24, %v10763_v0  ;;  %v3312_v55 = vmul.f32 %v10153_v24, %v10765_v5  ;;  %1932 = vbcast.lane.b32.xlu1 %v10087_v14, 312 }
 0x206   : > { %17080 = vst [vmem:[#allocation80_spill] sm:$0xff] %v10962_v19  ;;  %v2236_v19 = vpop.permute.xlu0 %2235  ;;  %v3321_v44 = vmul.f32 %v10156_v35, %v2240_v18  ;;  %v5516_v25 = vcombine.low %v10802_v60, %v3575_v38  ;;  %v5517_v32 = vcombine.high %v10802_v60, %v3575_v38  ;;  %v4972_v8 = vcombine.low %v10805_v3, %v3574_v47 }
 0x207   : > { %17082 = vst [vmem:[#allocation81_spill] sm:$0xff] %v10975_v39  ;;  %17084 = vst [vmem:[#allocation82_spill] sm:$0xff] %v10981_v51  ;;  %v3320_v50 = vmul.f32 %v10156_v35, %v2236_v19  ;;  %v4973_v31 = vcombine.high %v10805_v3, %v3574_v47  ;;  %v3315_v0 = vmul.f32 %v10153_v24, %v10779_v15  ;;  %1928 = vbcast.lane.b32.xlu0 %v10087_v14, 304 }
 0x208   : > { %v3314_v5 = vmul.f32 %v10153_v24, %v10781_v58  ;;  %v3577_v18 = vmul.f32 %v10305_v57, %v3321_v44  ;;  %v2248_v51 = vpop.permute.xlu1 %2247  ;;  %v17085_v3 = vcombine.low %v10724_v34, %v10714_v46  ;;  %v17087_v15 = vcombine.high %v10724_v34, %v10714_v46  ;;  %v17089_v24 = vld [vmem:[#allocation57_spill] sm:$0xff] }
 0x209   : > { %v3576_v19 = vmul.f32 %v10309_v41, %v3320_v50  ;;  %v17090_v58 = vcombine.low %v10730_v36, %v17089_v24  ;;  %v17092_v14 = vcombine.high %v10730_v36, %v17089_v24  ;;  %v17094_v24 = vld [vmem:[#allocation5_spill] sm:$0xff] }
 0x20a   : > { %v2244_v60 = vpop.permute.xlu0 %2243  ;;  %v11011_v38 = vrot.slane %v17085_v3, %v10761_v48  ;;  %v11017_v47 = vrot.slane %v17087_v15, %v10761_v48  ;;  %v6604_v3 = vcombine.low %v10833_v6, %v3577_v18  ;;  %v11036_v15 = vmul.f32 %v10281_v49, %v3311_v37  ;;  %1943 = vbcast.lane.b32.xlu1 %v17094_v24, 264 }
 0x20b   : > { %v11023_v44 = vrot.slane %v17090_v58, %v10761_v48  ;;  %v11029_v50 = vrot.slane %v17092_v14, %v10761_v48  ;;  %v6060_v46 = vcombine.low %v10836_v10, %v3576_v19  ;;  %v6061_v34 = vcombine.high %v10836_v10, %v3576_v19  ;;  %1939 = vbcast.lane.b32.xlu0 %v17094_v24, 256 }
 0x20c   : > { %17086 = vst [vmem:[#allocation83_spill] sm:$0xff] %v11011_v38  ;;  %17088 = vst [vmem:[#allocation84_spill] sm:$0xff] %v11017_v47  ;;  %v6605_v38 = vcombine.high %v10833_v6, %v3577_v18  ;;  %v11039_v58 = vmul.f32 %v10286_v61, %v3310_v11  ;;  %v3322_v36 = vmul.f32 %v10156_v35, %v2244_v60  ;;  %v17095_v11 = vld [vmem:[#allocation52_spill] sm:$0xff] }
 0x20d   : > { %17091 = vst [vmem:[#allocation57_spill] sm:$0xff] %v11023_v44  ;;  %17093 = vst [vmem:[#allocation85_spill] sm:$0xff] %v11029_v50  ;;  %v3323_v44 = vmul.f32 %v10156_v35, %v2248_v51  ;;  %v11045_v14 = vmul.f32 %v10305_v57, %v3313_v45  ;;  %v11048_v6 = vmul.f32 %v10309_v41, %v3312_v55  ;;  %v2259_v55 = vpop.permute.xlu1 %2258  ;;  %v17096_v60 = vld [vmem:[#allocation16_spill] sm:$0xff] }
 0x20e   : > { %v11051_v10 = vmul.f32 %v10325_v21, %v3315_v0  ;;  %v11054_v37 = vmul.f32 %v10334_v26, %v3314_v5  ;;  %v11058_v51 = vrot.slane %v4428_v9, %v17095_v11  ;;  %v11061_v35 = vrot.slane %v4429_v2, %v17095_v11  ;;  %v2255_v19 = vpop.permute.xlu0 %2254  ;;  %1951 = vbcast.lane.b32.xlu1 %v17094_v24, 280 }
 0x20f   : > { %v3579_v45 = vmul.f32 %v10325_v21, %v3323_v44  ;;  %v3578_v18 = vmul.f32 %v10334_v26, %v3322_v36  ;;  %v11066_v0 = vrot.slane %v3884_v30, %v17095_v11  ;;  %v11069_v5 = vrot.slane %v3885_v20, %v17095_v11  ;;  %1947 = vbcast.lane.b32.xlu0 %v17094_v24, 272 }
 0x210   : > { %v3325_v50 = vmul.f32 %v17096_v60, %v2259_v55  ;;  %v3324_v9 = vmul.f32 %v17096_v60, %v2255_v19  ;;  %v11079_v30 = vrot.slane %v5516_v25, %v17095_v11  ;;  %v11082_v20 = vrot.slane %v5517_v32, %v17095_v11 }
 0x211   : > { %v7692_v47 = vcombine.low %v10852_v29, %v3579_v45  ;;  %v7693_v2 = vcombine.high %v10852_v29, %v3579_v45  ;;  %v7148_v44 = vcombine.low %v10855_v28, %v3578_v18  ;;  %v7149_v36 = vcombine.high %v10855_v28, %v3578_v18  ;;  %v2267_v32 = vpop.permute.xlu1 %2266 }
 0x212   : > { %v3581_v55 = vmul.f32 %v10249_v33, %v3325_v50  ;;  %v3580_v19 = vmul.f32 %v10256_v53, %v3324_v9  ;;  %v11088_v29 = vrot.slane %v4972_v8, %v17095_v11  ;;  %v11091_v45 = vrot.slane %v4973_v31, %v17095_v11  ;;  %v2263_v18 = vpop.permute.xlu0 %2262  ;;  %1959 = vbcast.lane.b32.xlu1 %v17094_v24, 296 }
 0x213   : > { %v11094_v28 = vrot.slane %v6604_v3, %v17095_v11  ;;  %v11097_v25 = vrot.slane %v6605_v38, %v17095_v11  ;;  %v11104_v56 = vrot.slane %v6060_v46, %v17095_v11  ;;  %v11107_v31 = vrot.slane %v6061_v34, %v17095_v11  ;;  %1955 = vbcast.lane.b32.xlu0 %v17094_v24, 288 }
 0x214   : > { %v4444_v50 = vcombine.low %v10965_v54, %v3581_v55  ;;  %v4445_v9 = vcombine.high %v10965_v54, %v3581_v55  ;;  %v3900_v39 = vcombine.low %v10968_v17, %v3580_v19  ;;  %v3901_v8 = vcombine.high %v10968_v17, %v3580_v19 }
 0x215   : > { %17097 = vst [vmem:[#allocation5_spill] sm:$0xff] %v11097_v25  ;;  %v3327_v3 = vmul.f32 %v17096_v60, %v2267_v32  ;;  %v3326_v38 = vmul.f32 %v17096_v60, %v2263_v18  ;;  %v11124_v34 = vrot.slane %v7692_v47, %v17095_v11  ;;  %v11127_v55 = vrot.slane %v7693_v2, %v17095_v11  ;;  %v2275_v18 = vpop.permute.xlu1 %2274 }
 0x216   : > { %v11113_v16 = vrot.slane %v4444_v50, %v17095_v11  ;;  %v11116_v54 = vrot.slane %v4445_v9, %v17095_v11  ;;  %v3908_v17 = vrot.slane %v3900_v39, %v17095_v11  ;;  %v11120_v46 = vrot.slane %v3901_v8, %v17095_v11  ;;  %v2271_v50 = vpop.permute.xlu0 %2270  ;;  %1967 = vbcast.lane.b32.xlu1 %v17094_v24, 312 }
 0x217   : > { %17098 = vst [vmem:[#allocation16_spill] sm:$0xff] %v11124_v34  ;;  %17099 = vst [vmem:[#allocation86_spill] sm:$0xff] %v11127_v55  ;;  %v3583_v19 = vmul.f32 %v10281_v49, %v3327_v3  ;;  %v3582_v32 = vmul.f32 %v10286_v61, %v3326_v38  ;;  %1963 = vbcast.lane.b32.xlu0 %v17094_v24, 304  ;;  %v3329_v43 = vmul.f32 %v17096_v60, %v2275_v18  ;;  %v17123_v34 = vld [vmem:[#allocation7_spill] sm:$0xff] }
 0x218   : > { %v3948_v2 = vcombine.low %v11066_v0, %v3908_v17  ;;  %v3949_v3 = vcombine.high %v11066_v0, %v3908_v17  ;;  %v11152_v0 = vrot.slane %v7148_v44, %v17095_v11  ;;  %v11155_v17 = vrot.slane %v7149_v36, %v17095_v11 }
 0x219   : > { %v5532_v9 = vcombine.low %v11036_v15, %v3583_v19  ;;  %v5533_v39 = vcombine.high %v11036_v15, %v3583_v19  ;;  %v4988_v8 = vcombine.low %v11039_v58, %v3582_v32  ;;  %v4989_v47 = vcombine.high %v11039_v58, %v3582_v32  ;;  %v2283_v40 = vpop.permute.xlu1 %2282 }
 0x21a   : > { %v3328_v38 = vmul.f32 %v17096_v60, %v2271_v50  ;;  %v2279_v4 = vpop.permute.xlu0 %2278  ;;  %v3585_v44 = vmul.f32 %v10305_v57, %v3329_v43  ;;  %v3331_v32 = vmul.f32 %v17096_v60, %v2283_v40  ;;  %v17100_v50 = vld [vmem:[#allocation6_spill] sm:$0xff] }
 0x21b   : > { %v11160_v15 = vrot.slane %v5532_v9, %v17095_v11  ;;  %v11163_v19 = vrot.slane %v5533_v39, %v17095_v11  ;;  %v11166_v58 = vrot.slane %v4988_v8, %v17095_v11  ;;  %v11169_v24 = vrot.slane %v4989_v47, %v17095_v11  ;;  %1978 = vbcast.lane.b32.xlu1 %v17100_v50, 264 }
 0x21c   : > { %v3584_v36 = vmul.f32 %v10309_v41, %v3328_v38  ;;  %v3330_v18 = vmul.f32 %v17096_v60, %v2279_v4  ;;  %1974 = vbcast.lane.b32.xlu0 %v17100_v50, 256  ;;  %v6620_v8 = vcombine.low %v11045_v14, %v3585_v44  ;;  %v6621_v43 = vcombine.high %v11045_v14, %v3585_v44 }
 0x21d   : > { %v1738_v38 = vpop.permute.xlu1 %1737  ;;  %v3587_v40 = vmul.f32 %v10325_v21, %v3331_v32  ;;  %v11201_v60 = vrot.slane %v3948_v2, %v10761_v48  ;;  %v11204_v47 = vrot.slane %v3949_v3, %v10761_v48 }
 0x21e   : > { %v1730_v9 = vpop.permute.xlu0 %1729  ;;  %v6076_v39 = vcombine.low %v11048_v6, %v3584_v36  ;;  %v6077_v62 = vcombine.high %v11048_v6, %v3584_v36  ;;  %v3586_v4 = vmul.f32 %v10334_v26, %v3330_v18  ;;  %v11207_v13 = vrot.slane %v6620_v8, %v17095_v11 }
 0x21f   : > { %1986 = vbcast.lane.b32.xlu1 %v17100_v50, 280  ;;  %17101 = vst [vmem:[#allocation6_spill] sm:$0xff] %v11201_v60  ;;  %17102 = vst [vmem:[#allocation87_spill] sm:$0xff] %v11204_v47  ;;  %v11210_v14 = vrot.slane %v6621_v43, %v17095_v11  ;;  %v7708_v2 = vcombine.low %v11051_v10, %v3587_v40  ;;  %v7709_v36 = vcombine.high %v11051_v10, %v3587_v40  ;;  %v17106_v40 = vld [vmem:[#allocation9_spill] sm:$0xff] }
 0x220   : > { %v11213_v6 = vrot.slane %v6076_v39, %v17095_v11  ;;  %v11216_v44 = vrot.slane %v6077_v62, %v17095_v11  ;;  %1982 = vbcast.lane.b32.xlu0 %v17100_v50, 272  ;;  %v7164_v3 = vcombine.low %v11054_v37, %v3586_v4  ;;  %v7165_v32 = vcombine.high %v11054_v37, %v3586_v4 }
 0x221   : > { %17103 = vst [vmem:[#allocation88_spill] sm:$0xff] %v11210_v14  ;;  %v1742_v18 = vpop.permute.xlu1 %1741  ;;  %v11241_v39 = vrot.slane %v7708_v2, %v17095_v11  ;;  %v11244_v62 = vrot.slane %v7709_v36, %v17095_v11  ;;  %v3206_v37 = vmul.f32 %v17106_v40, %v1738_v38  ;;  %v3204_v4 = vmul.f32 %v17106_v40, %v1730_v9 }
 0x222   : > { %v1734_v8 = vpop.permute.xlu0 %1733  ;;  %v11247_v26 = vrot.slane %v7164_v3, %v17095_v11  ;;  %v11250_v43 = vrot.slane %v7165_v32, %v17095_v11  ;;  %v3207_v10 = vmul.f32 %v17106_v40, %v1742_v18  ;;  %v17107_v32 = vld [vmem:[#allocation53_spill] sm:$0xff]  ;;  %v17108_v3 = vld [vmem:[#allocation55_spill] sm:$0xff] }
 0x223   : > { %1994 = vbcast.lane.b32.xlu1 %v17100_v50, 296  ;;  %17104 = vst [vmem:[#allocation89_spill] sm:$0xff] %v11241_v39  ;;  %17105 = vst [vmem:[#allocation90_spill] sm:$0xff] %v11244_v62  ;;  %v3205_v2 = vmul.f32 %v17106_v40, %v1734_v8  ;;  %v17109_v38 = vcombine.low %v17107_v32, %v17108_v3  ;;  %v17111_v18 = vcombine.high %v17107_v32, %v17108_v3  ;;  %v17113_v8 = vld [vmem:[#allocation54_spill] sm:$0xff]  ;;  %v17114_v62 = vld [vmem:[#allocation56_spill] sm:$0xff] }
 0x224   : > { %1990 = vbcast.lane.b32.xlu0 %v17100_v50, 288  ;;  %v17115_v36 = vcombine.low %v17113_v8, %v17114_v62  ;;  %v17193_v22 = vcombine.high %v11152_v0, %v11247_v26 }
 0x225   : > { %v1750_v14 = vpop.permute.xlu1 %1749  ;;  %v11279_v11 = vrot.slane %v17109_v38, %v10761_v48  ;;  %v11285_v9 = vrot.slane %v17111_v18, %v10761_v48  ;;  %v11321_v3 = vmul.f32 %v10249_v33, %v3205_v2  ;;  %v17128_v2 = vcombine.high %v11058_v51, %v11113_v16 }
 0x226   : > { %v1746_v25 = vpop.permute.xlu0 %1745  ;;  %v11291_v55 = vrot.slane %v17115_v36, %v10761_v48  ;;  %v17119_v36 = vcombine.low %v11069_v5, %v11120_v46  ;;  %v3209_v32 = vmul.f32 %v17106_v40, %v1750_v14  ;;  %v11566_v14 = vrot.slane %v17193_v22, %v10761_v48 }
 0x227   : > { %2002 = vbcast.lane.b32.xlu1 %v17100_v50, 312  ;;  %17110 = vst [vmem:[#allocation9_spill] sm:$0xff] %v11279_v11  ;;  %17112 = vst [vmem:[#allocation53_spill] sm:$0xff] %v11285_v9  ;;  %v11342_v60 = vrot.slane %v17128_v2, %v10761_v48  ;;  %v3208_v52 = vmul.f32 %v17106_v40, %v1746_v25 }
 0x228   : > { %1998 = vbcast.lane.b32.xlu0 %v17100_v50, 304  ;;  %17116 = vst [vmem:[#allocation55_spill] sm:$0xff] %v11291_v55  ;;  %v17117_v50 = vcombine.high %v17113_v8, %v17114_v62  ;;  %v11309_v18 = vrot.slane %v17119_v36, %v10761_v48  ;;  %v11312_v62 = vmul.f32 %v10286_v61, %v3206_v37  ;;  %17194 = vst [vmem:[#allocation116_spill] sm:$0xff] %v11566_v14 }
 0x229   : > { %v1758_v38 = vpop.permute.xlu1 %1757  ;;  %v11315_v8 = vmul.f32 %v10256_v53, %v3204_v4  ;;  %v17124_v36 = vcombine.high %v11069_v5, %v11120_v46  ;;  %v17126_v4 = vcombine.low %v11058_v51, %v11113_v16  ;;  %17129 = vst [vmem:[#allocation94_spill] sm:$0xff] %v11342_v60  ;;  %v17130_v5 = vcombine.low %v11061_v35, %v11116_v54 }
 0x22a   : > { %v11297_v39 = vrot.slane %v17117_v50, %v10761_v48  ;;  %v1754_v11 = vpop.permute.xlu0 %1753  ;;  %17120 = vst [vmem:[#allocation56_spill] sm:$0xff] %v11309_v18  ;;  %17121 = vst [vmem:[#allocation91_spill] sm:$0xff] %v11312_v62  ;;  %v11318_v50 = vmul.f32 %v10281_v49, %v3207_v10  ;;  %v11399_v25 = vmul.f32 %v10305_v57, %v3209_v32  ;;  %v17204_v23 = vld [vmem:[#allocation89_spill] sm:$0xff]  ;;  %v17212_v27 = vld [vmem:[#allocation90_spill] sm:$0xff] }
 0x22b   : > { %2293 = vbcast.lane.b32.xlu1 %v17123_v34, 264  ;;  %v11330_v37 = vrot.slane %v17124_v36, %v10761_v48  ;;  %v11336_v10 = vrot.slane %v17126_v4, %v10761_v48  ;;  %v11351_v46 = vrot.slane %v17130_v5, %v10761_v48  ;;  %v17132_v36 = vcombine.high %v11061_v35, %v11116_v54 }
 0x22c   : > { %17118 = vst [vmem:[#allocation54_spill] sm:$0xff] %v11297_v39  ;;  %17122 = vst [vmem:[#allocation92_spill] sm:$0xff] %v11318_v50  ;;  %2289 = vbcast.lane.b32.xlu0 %v17123_v34, 256  ;;  %v17134_v5 = vcombine.low %v11088_v29, %v11166_v58  ;;  %v3211_v35 = vmul.f32 %v17106_v40, %v1758_v38  ;;  %v3210_v54 = vmul.f32 %v17106_v40, %v1754_v11 }
 0x22d   : > { %17125 = vst [vmem:[#allocation7_spill] sm:$0xff] %v11330_v37  ;;  %17127 = vst [vmem:[#allocation93_spill] sm:$0xff] %v11336_v10  ;;  %v11357_v4 = vrot.slane %v17132_v36, %v10761_v48  ;;  %v1769_v16 = vpop.permute.xlu1 %1768  ;;  %v17140_v11 = vcombine.low %v11091_v45, %v11169_v24  ;;  %v17142_v38 = vcombine.high %v11091_v45, %v11169_v24  ;;  %v17180_v10 = vld [vmem:[#allocation88_spill] sm:$0xff] }
 0x22e   : > { %17131 = vst [vmem:[#allocation95_spill] sm:$0xff] %v11351_v46  ;;  %v1765_v51 = vpop.permute.xlu0 %1764  ;;  %v11369_v39 = vrot.slane %v17134_v5, %v10761_v48  ;;  %v17138_v5 = vcombine.high %v11088_v29, %v11166_v58  ;;  %17144 = vst [vmem:[#allocation101_spill] sm:$0xff] %v11399_v25  ;;  %v11402_v36 = vmul.f32 %v10309_v41, %v3208_v52  ;;  %v17162_v41 = vld [vmem:[#allocation11_spill] sm:$0xff] }
 0x22f   : > { %17133 = vst [vmem:[#allocation96_spill] sm:$0xff] %v11357_v4  ;;  %2301 = vbcast.lane.b32.xlu1 %v17123_v34, 280  ;;  %v11390_v40 = vrot.slane %v17140_v11, %v10761_v48  ;;  %v11396_v62 = vrot.slane %v17142_v38, %v10761_v48  ;;  %v17146_v29 = vcombine.low %v11079_v30, %v11160_v15 }
 0x230   : > { %17135 = vst [vmem:[#allocation97_spill] sm:$0xff] %v11369_v39  ;;  %v11384_v50 = vrot.slane %v17138_v5, %v10761_v48  ;;  %17145 = vst [vmem:[#allocation102_spill] sm:$0xff] %v11402_v36  ;;  %2297 = vbcast.lane.b32.xlu0 %v17123_v34, 272  ;;  %v17148_v45 = vcombine.high %v11079_v30, %v11160_v15  ;;  %v11430_v30 = vmul.f32 %v10325_v21, %v3211_v35  ;;  %v17153_v15 = vld [vmem:[#allocation50_spill] sm:$0xff] }
 0x231   : > { %17141 = vst [vmem:[#allocation99_spill] sm:$0xff] %v11390_v40  ;;  %17143 = vst [vmem:[#allocation100_spill] sm:$0xff] %v11396_v62  ;;  %v11409_v58 = vrot.slane %v17146_v29, %v10761_v48  ;;  %v1777_v5 = vpop.permute.xlu1 %1776  ;;  %v17150_v29 = vcombine.low %v11082_v20, %v11163_v19  ;;  %v17160_v25 = vcombine.low %v11104_v56, %v11213_v6  ;;  %v17198_v40 = vld [vmem:[#allocation12_spill] sm:$0xff] }
 0x232   : > { %17139 = vst [vmem:[#allocation98_spill] sm:$0xff] %v11384_v50  ;;  %v11415_v24 = vrot.slane %v17148_v45, %v10761_v48  ;;  %v1773_v32 = vpop.permute.xlu0 %1772  ;;  %17152 = vst [vmem:[#allocation106_spill] sm:$0xff] %v11430_v30  ;;  %v11433_v45 = vmul.f32 %v17153_v15, %v3210_v54  ;;  %v3213_v30 = vmul.f32 %v17162_v41, %v1769_v16 }
 0x233   : > { %17147 = vst [vmem:[#allocation103_spill] sm:$0xff] %v11409_v58  ;;  %v11427_v36 = vrot.slane %v17150_v29, %v10761_v48  ;;  %2309 = vbcast.lane.b32.xlu1 %v17123_v34, 296  ;;  %v17158_v29 = vcombine.high %v11082_v20, %v11163_v19  ;;  %v3212_v15 = vmul.f32 %v17162_v41, %v1765_v51 }
 0x234   : > { %17149 = vst [vmem:[#allocation104_spill] sm:$0xff] %v11415_v24  ;;  %17154 = vst [vmem:[#allocation107_spill] sm:$0xff] %v11433_v45  ;;  %v11454_v45 = vrot.slane %v17160_v25, %v10761_v48  ;;  %2305 = vbcast.lane.b32.xlu0 %v17123_v34, 288  ;;  %v17163_v19 = vcombine.high %v11104_v56, %v11213_v6  ;;  %v17167_v20 = vcombine.low %v11107_v31, %v11216_v44 }
 0x235   : > { %17151 = vst [vmem:[#allocation105_spill] sm:$0xff] %v11427_v36  ;;  %v11446_v35 = vrot.slane %v17158_v29, %v10761_v48  ;;  %v1785_v54 = vpop.permute.xlu1 %1784  ;;  %v3215_v56 = vmul.f32 %v17162_v41, %v1777_v5  ;;  %v3214_v6 = vmul.f32 %v17162_v41, %v1773_v32  ;;  %v17173_v32 = vcombine.low %v11094_v28, %v11207_v13 }
 0x236   : > { %17161 = vst [vmem:[#allocation109_spill] sm:$0xff] %v11454_v45  ;;  %v11465_v29 = vrot.slane %v17163_v19, %v10761_v48  ;;  %v1781_v57 = vpop.permute.xlu0 %1780  ;;  %v11477_v18 = vrot.slane %v17167_v20, %v10761_v48  ;;  %v17171_v20 = vcombine.high %v11107_v31, %v11216_v44  ;;  %v11503_v47 = vmul.f32 %v10249_v33, %v3213_v30  ;;  %v17221_v45 = vld [vmem:[#allocation91_spill] sm:$0xff] }
 0x237   : > { %17159 = vst [vmem:[#allocation108_spill] sm:$0xff] %v11446_v35  ;;  %2317 = vbcast.lane.b32.xlu1 %v17123_v34, 312  ;;  %v11500_v12 = vrot.slane %v17173_v32, %v10761_v48  ;;  %v11506_v7 = vmul.f32 %v10256_v53, %v3212_v15  ;;  %v17175_v44 = vcombine.high %v11094_v28, %v11207_v13 }
 0x238   : > { %17164 = vst [vmem:[#allocation11_spill] sm:$0xff] %v11465_v29  ;;  %17168 = vst [vmem:[#allocation110_spill] sm:$0xff] %v11477_v18  ;;  %v11492_v37 = vrot.slane %v17171_v20, %v10761_v48  ;;  %2313 = vbcast.lane.b32.xlu0 %v17123_v34, 304  ;;  %v17179_v34 = vld [vmem:[#allocation5_spill] sm:$0xff]  ;;  %v11530_v13 = vmul.f32 %v10281_v49, %v3215_v56  ;;  %v11543_v4 = vmul.f32 %v10286_v61, %v3214_v6 }
 0x239   : > { %17174 = vst [vmem:[#allocation112_spill] sm:$0xff] %v11500_v12  ;;  %v11515_v20 = vrot.slane %v17175_v44, %v10761_v48  ;;  %v1793_v5 = vpop.permute.xlu1 %1792  ;;  %v17181_v31 = vcombine.low %v17179_v34, %v17180_v10  ;;  %v17185_v15 = vcombine.high %v17179_v34, %v17180_v10  ;;  %v17190_v60 = vcombine.low %v11152_v0, %v11247_v26  ;;  %v17203_v0 = vld [vmem:[#allocation16_spill] sm:$0xff]  ;;  %v17225_v29 = vld [vmem:[#allocation101_spill] sm:$0xff] }
 0x23a   : > { %17172 = vst [vmem:[#allocation111_spill] sm:$0xff] %v11492_v37  ;;  %17183 = vst [vmem:[#allocation88_spill] sm:$0xff] %v11530_v13  ;;  %v1789_v28 = vpop.permute.xlu0 %1788  ;;  %v3217_v10 = vmul.f32 %v17162_v41, %v1785_v54  ;;  %v3216_v50 = vmul.f32 %v17162_v41, %v1781_v57  ;;  %v17200_v54 = vcombine.high %v11155_v17, %v11250_v43 }
 0x23b   : > { %17176 = vst [vmem:[#allocation113_spill] sm:$0xff] %v11515_v20  ;;  %v11527_v46 = vrot.slane %v17181_v31, %v10761_v48  ;;  %v11540_v59 = vrot.slane %v17185_v15, %v10761_v48  ;;  %17187 = vst [vmem:[#allocation115_spill] sm:$0xff] %v11543_v4  ;;  %v17188_v31 = vld [vmem:[#allocation8_spill] sm:$0xff]  ;;  %v11554_v39 = vrot.slane %v17190_v60, %v10761_v48  ;;  %v17230_v56 = vld [vmem:[#allocation107_spill] sm:$0xff] }
 0x23c   : > { %2328 = vbcast.lane.b32.xlu1 %v17188_v31, 264  ;;  %2324 = vbcast.lane.b32.xlu0 %v17188_v31, 256  ;;  %v17196_v15 = vcombine.low %v11155_v17, %v11250_v43  ;;  %v11588_v2 = vrot.slane %v17200_v54, %v10761_v48  ;;  %v17205_v57 = vcombine.low %v17203_v0, %v17204_v23  ;;  %v17211_v54 = vld [vmem:[#allocation86_spill] sm:$0xff] }
 0x23d   : > { %17182 = vst [vmem:[#allocation5_spill] sm:$0xff] %v11527_v46  ;;  %17186 = vst [vmem:[#allocation114_spill] sm:$0xff] %v11540_v59  ;;  %v1804_v60 = vpop.permute.xlu1 %1803  ;;  %v17208_v63 = vcombine.high %v17203_v0, %v17204_v23  ;;  %v17213_v4 = vcombine.low %v17211_v54, %v17212_v27  ;;  %v3219_v25 = vmul.f32 %v17162_v41, %v1793_v5  ;;  %v17215_v0 = vld [vmem:[#allocation41_spill] sm:$0xff] }
 0x23e   : > { %17191 = vst [vmem:[#allocation8_spill] sm:$0xff] %v11554_v39  ;;  %v11577_v34 = vrot.slane %v17196_v15, %v10761_v48  ;;  %v3221_v1 = vmul.f32 %v17198_v40, %v1804_v60  ;;  %v1800_v26 = vpop.permute.xlu0 %1799  ;;  %17201 = vst [vmem:[#allocation12_spill] sm:$0xff] %v11588_v2  ;;  %v11600_v58 = vrot.slane %v17205_v57, %v10761_v48 }
 0x23f   : > { %v3220_v62 = vmul.f32 %v17198_v40, %v1800_v26  ;;  %v11612_v60 = vrot.slane %v17208_v63, %v10761_v48  ;;  %v11623_v26 = vrot.slane %v17213_v4, %v10761_v48 }
 0x240   : > { %17197 = vst [vmem:[#allocation117_spill] sm:$0xff] %v11577_v34  ;;  %2336 = vbcast.lane.b32.xlu1 %v17188_v31, 280  ;;  %17206 = vst [vmem:[#allocation16_spill] sm:$0xff] %v11600_v58  ;;  %v3477_v17 = vmul.f32 %v10249_v33, %v3221_v1  ;;  %2332 = vbcast.lane.b32.xlu0 %v17188_v31, 272 }
 0x241   : > { %17209 = vst [vmem:[#allocation89_spill] sm:$0xff] %v11612_v60  ;;  %v3476_v24 = vmul.f32 %v10256_v53, %v3220_v62  ;;  %v1812_v57 = vpop.permute.xlu1 %1811  ;;  %17214 = vst [vmem:[#allocation86_spill] sm:$0xff] %v11623_v26 }
 0x242   : > { %v4260_v36 = vcombine.low %v11321_v3, %v3477_v17  ;;  %v4261_v23 = vcombine.high %v11321_v3, %v3477_v17  ;;  %v3223_v63 = vmul.f32 %v17198_v40, %v1812_v57  ;;  %v1808_v62 = vpop.permute.xlu0 %1807  ;;  %v3218_v3 = vmul.f32 %v17162_v41, %v1789_v28  ;;  %v17220_v28 = vld [vmem:[#allocation92_spill] sm:$0xff] }
 0x243   : > { %v3716_v1 = vcombine.low %v11315_v8, %v3476_v24  ;;  %v3717_v52 = vcombine.high %v11315_v8, %v3476_v24  ;;  %v3222_v35 = vmul.f32 %v17198_v40, %v1808_v62  ;;  %v11643_v8 = vmul.f32 %v17215_v0, %v3217_v10  ;;  %v17216_v24 = vld [vmem:[#allocation42_spill] sm:$0xff] }
 0x244   : > { %2344 = vbcast.lane.b32.xlu1 %v17188_v31, 296  ;;  %v3479_v17 = vmul.f32 %v10281_v49, %v3223_v63  ;;  %2340 = vbcast.lane.b32.xlu0 %v17188_v31, 288  ;;  %v11646_v62 = vmul.f32 %v17216_v24, %v3216_v50  ;;  %v17218_v41 = vcombine.high %v17211_v54, %v17212_v27 }
 0x245   : > { %v3478_v38 = vmul.f32 %v10286_v61, %v3222_v35  ;;  %v1820_v4 = vpop.permute.xlu1 %1819 }
 0x246   : > { %17217 = vst [vmem:[#allocation90_spill] sm:$0xff] %v11646_v62  ;;  %v11653_v5 = vrot.slane %v17218_v41, %v10761_v48  ;;  %v5348_v63 = vcombine.low %v17220_v28, %v3479_v17  ;;  %v5349_v13 = vcombine.high %v17220_v28, %v3479_v17  ;;  %v3225_v57 = vmul.f32 %v17198_v40, %v1820_v4  ;;  %v1816_v10 = vpop.permute.xlu0 %1815  ;;  %v17223_v17 = vld [vmem:[#allocation50_spill] sm:$0xff] }
 0x247   : > { %v4804_v16 = vcombine.low %v17221_v45, %v3478_v38  ;;  %v4805_v35 = vcombine.high %v17221_v45, %v3478_v38  ;;  %v3224_v62 = vmul.f32 %v17198_v40, %v1816_v10  ;;  %v11667_v41 = vmul.f32 %v10325_v21, %v3219_v25  ;;  %v17224_v45 = vld [vmem:[#allocation52_spill] sm:$0xff]  ;;  %v17227_v48 = vld [vmem:[#allocation10_spill] sm:$0xff] }
 0x248   : > { %17219 = vst [vmem:[#allocation41_spill] sm:$0xff] %v11653_v5  ;;  %2352 = vbcast.lane.b32.xlu1 %v17188_v31, 312  ;;  %v11670_v4 = vmul.f32 %v17223_v17, %v3218_v3  ;;  %v3481_v28 = vmul.f32 %v17215_v0, %v3225_v57  ;;  %2348 = vbcast.lane.b32.xlu0 %v17188_v31, 304 }
 0x249   : > { %v11677_v10 = vrot.slane %v4260_v36, %v17224_v45  ;;  %v11680_v50 = vrot.slane %v4261_v23, %v17224_v45  ;;  %v11683_v54 = vmul.f32 %v17216_v24, %v3224_v62  ;;  %v1828_v25 = vpop.permute.xlu1 %1827  ;;  %v17226_v23 = vld [vmem:[#allocation102_spill] sm:$0xff]  ;;  %v17229_v36 = vld [vmem:[#allocation15_spill] sm:$0xff]  ;;  %v11739_v18 = vrot.slane %v4804_v16, %v17224_v45 }
 0x24a   : > { %v6436_v57 = vcombine.low %v17225_v29, %v3481_v28  ;;  %v6437_v31 = vcombine.high %v17225_v29, %v3481_v28  ;;  %v3227_v19 = vmul.f32 %v17198_v40, %v1828_v25  ;;  %v1824_v38 = vpop.permute.xlu0 %1823  ;;  %v11701_v29 = vrot.slane %v3716_v1, %v17224_v45 }
 0x24b   : > { %v3226_v51 = vmul.f32 %v17198_v40, %v1824_v38  ;;  %v11704_v28 = vrot.slane %v3717_v52, %v17224_v45  ;;  %v11713_v40 = vrot.slane %v5348_v63, %v17224_v45  ;;  %v11716_v38 = vrot.slane %v5349_v13, %v17224_v45 }
 0x24c   : > { %2363 = vbcast.lane.b32.xlu1 %v17227_v48, 264  ;;  %v11707_v25 = vmul.f32 %v10325_v21, %v3227_v19  ;;  %2359 = vbcast.lane.b32.xlu0 %v17227_v48, 256  ;;  %v17228_v19 = vld [vmem:[#allocation106_spill] sm:$0xff] }
 0x24d   : > { %v11719_v1 = vmul.f32 %v17223_v17, %v3226_v51  ;;  %v1839_v3 = vpop.permute.xlu1 %1838  ;;  %v11752_v51 = vrot.slane %v6437_v31, %v17224_v45 }
 0x24e   : > { %v3229_v46 = vmul.f32 %v17229_v36, %v1839_v3  ;;  %v1835_v63 = vpop.permute.xlu0 %1834  ;;  %v11742_v3 = vrot.slane %v4805_v35, %v17224_v45  ;;  %v17231_v35 = vld [vmem:[#allocation88_spill] sm:$0xff] }
 0x24f   : > { %v3228_v52 = vmul.f32 %v17229_v36, %v1835_v63  ;;  %v11749_v63 = vrot.slane %v6436_v57, %v17224_v45  ;;  %v17233_v57 = vcombine.low %v17226_v23, %v11683_v54 }
 0x250   : > { %2371 = vbcast.lane.b32.xlu1 %v17227_v48, 280  ;;  %v3485_v13 = vmul.f32 %v10249_v33, %v3229_v46  ;;  %2367 = vbcast.lane.b32.xlu0 %v17227_v48, 272 }
 0x251   : > { %v3484_v62 = vmul.f32 %v10256_v53, %v3228_v52  ;;  %v1847_v16 = vpop.permute.xlu1 %1846 }
 0x252   : > { %v4276_v14 = vcombine.low %v11503_v47, %v3485_v13  ;;  %v4277_v46 = vcombine.high %v11503_v47, %v3485_v13  ;;  %v3231_v22 = vmul.f32 %v17229_v36, %v1847_v16  ;;  %v1843_v39 = vpop.permute.xlu0 %1842 }
 0x253   : > { %v3732_v20 = vcombine.low %v11506_v7, %v3484_v62  ;;  %v3733_v31 = vcombine.high %v11506_v7, %v3484_v62  ;;  %v3230_v52 = vmul.f32 %v17229_v36, %v1843_v39 }
 0x254   : > { %2379 = vbcast.lane.b32.xlu1 %v17227_v48, 296  ;;  %v11769_v2 = vrot.slane %v4276_v14, %v17224_v45  ;;  %v11772_v47 = vrot.slane %v4277_v46, %v17224_v45  ;;  %v3487_v13 = vmul.f32 %v10281_v49, %v3231_v22  ;;  %2375 = vbcast.lane.b32.xlu0 %v17227_v48, 288 }
 0x255   : > { %v11779_v39 = vrot.slane %v3732_v20, %v17224_v45  ;;  %v11782_v62 = vrot.slane %v3733_v31, %v17224_v45  ;;  %v3486_v16 = vmul.f32 %v10286_v61, %v3230_v52  ;;  %v1855_v14 = vpop.permute.xlu1 %1854  ;;  %v17232_v20 = vld [vmem:[#allocation115_spill] sm:$0xff]  ;;  %v11813_v46 = vrot.slane %v17233_v57, %v17224_v45 }
 0x256   : > { %v1851_v31 = vpop.permute.xlu0 %1850  ;;  %v5364_v7 = vcombine.low %v17231_v35, %v3487_v13  ;;  %v5365_v5 = vcombine.high %v17231_v35, %v3487_v13  ;;  %v17234_v22 = vcombine.high %v17226_v23, %v11683_v54  ;;  %v3233_v35 = vmul.f32 %v17229_v36, %v1855_v14 }
 0x257   : > { %v4820_v27 = vcombine.low %v17232_v20, %v3486_v16  ;;  %v4821_v26 = vcombine.high %v17232_v20, %v3486_v16  ;;  %v3232_v13 = vmul.f32 %v17229_v36, %v1851_v31 }
 0x258   : > { %2387 = vbcast.lane.b32.xlu1 %v17227_v48, 312  ;;  %2383 = vbcast.lane.b32.xlu0 %v17227_v48, 304  ;;  %v11819_v52 = vrot.slane %v17234_v22, %v17224_v45  ;;  %v11824_v16 = vrot.slane %v5364_v7, %v17224_v45  ;;  %v11827_v48 = vrot.slane %v5365_v5, %v17224_v45  ;;  %v17235_v7 = vld [vmem:[#allocation13_spill] sm:$0xff] }
 0x259   : > { %v1863_v55 = vpop.permute.xlu1 %1862  ;;  %v11830_v57 = vrot.slane %v4820_v27, %v17224_v45  ;;  %v11833_v20 = vrot.slane %v4821_v26, %v17224_v45  ;;  %v3489_v23 = vmul.f32 %v17215_v0, %v3233_v35  ;;  %v3488_v14 = vmul.f32 %v17216_v24, %v3232_v13  ;;  %v17236_v35 = vld [vmem:[#allocation90_spill] sm:$0xff] }
 0x25a   : > { %v1859_v54 = vpop.permute.xlu0 %1858  ;;  %v3235_v22 = vmul.f32 %v17229_v36, %v1863_v55 }
 0x25b   : > { %v3234_v31 = vmul.f32 %v17229_v36, %v1859_v54  ;;  %v6452_v26 = vcombine.low %v11643_v8, %v3489_v23  ;;  %v6453_v5 = vcombine.high %v11643_v8, %v3489_v23  ;;  %v5908_v60 = vcombine.low %v17236_v35, %v3488_v14 }
 0x25c   : > { %2398 = vbcast.lane.b32.xlu1 %v17235_v7, 264  ;;  %2394 = vbcast.lane.b32.xlu0 %v17235_v7, 256  ;;  %v5909_v9 = vcombine.high %v17236_v35, %v3488_v14  ;;  %v17237_v36 = vcombine.low %v17228_v19, %v11707_v25  ;;  %v17238_v54 = vcombine.high %v17228_v19, %v11707_v25 }
 0x25d   : > { %v1874_v27 = vpop.permute.xlu1 %1873  ;;  %v3491_v11 = vmul.f32 %v10325_v21, %v3235_v22  ;;  %v3490_v8 = vmul.f32 %v17223_v17, %v3234_v31  ;;  %v11877_v23 = vrot.slane %v6452_v26, %v17224_v45  ;;  %v11880_v14 = vrot.slane %v6453_v5, %v17224_v45 }
 0x25e   : > { %v1870_v58 = vpop.permute.xlu0 %1869  ;;  %v11865_v55 = vrot.slane %v17237_v36, %v17224_v45  ;;  %v11871_v13 = vrot.slane %v17238_v54, %v17224_v45  ;;  %v11883_v35 = vrot.slane %v5908_v60, %v17224_v45  ;;  %v11886_v36 = vrot.slane %v5909_v9, %v17224_v45 }
 0x25f   : > { %v7540_v25 = vcombine.low %v11667_v41, %v3491_v11  ;;  %v7541_v19 = vcombine.high %v11667_v41, %v3491_v11  ;;  %v6996_v22 = vcombine.low %v11670_v4, %v3490_v8  ;;  %v6997_v31 = vcombine.high %v11670_v4, %v3490_v8 }
 0x260   : > { %17239 = vst [vmem:[#allocation92_spill] sm:$0xff] %v11871_v13  ;;  %2406 = vbcast.lane.b32.xlu1 %v17235_v7, 280  ;;  %2402 = vbcast.lane.b32.xlu0 %v17235_v7, 272  ;;  %v17242_v8 = vcombine.low %v17230_v56, %v11719_v1 }
 0x261   : > { %v1882_v26 = vpop.permute.xlu1 %1881  ;;  %v11911_v9 = vrot.slane %v7540_v25, %v17224_v45  ;;  %v11914_v54 = vrot.slane %v7541_v19, %v17224_v45  ;;  %v11917_v60 = vrot.slane %v6996_v22, %v17224_v45  ;;  %v11920_v5 = vrot.slane %v6997_v31, %v17224_v45 }
 0x262   : > { %v1878_v43 = vpop.permute.xlu0 %1877  ;;  %v11927_v4 = vrot.slane %v17242_v8, %v17224_v45  ;;  %v17243_v25 = vcombine.high %v17230_v56, %v11719_v1  ;;  %v17244_v8 = vld [vmem:[#allocation14_spill] sm:$0xff] }
 0x263   : > { %17240 = vst [vmem:[#allocation91_spill] sm:$0xff] %v11911_v9  ;;  %17241 = vst [vmem:[#allocation101_spill] sm:$0xff] %v11914_v54 }
 0x264   : > { %2414 = vbcast.lane.b32.xlu1 %v17235_v7, 296  ;;  %2410 = vbcast.lane.b32.xlu0 %v17235_v7, 288  ;;  %v11933_v19 = vrot.slane %v17243_v25, %v17224_v45 }
 0x265   : > { %v1890_v41 = vpop.permute.xlu1 %1889 }
 0x266   : > { %v1886_v34 = vpop.permute.xlu0 %1885 }
 0x268   : > { %2422 = vbcast.lane.b32.xlu1 %v17235_v7, 312  ;;  %2418 = vbcast.lane.b32.xlu0 %v17235_v7, 304  ;;  %v17245_v7 = vld [vmem:[#allocation24_spill] sm:$0xff] }
 0x269   : > { %v1898_v11 = vpop.permute.xlu1 %1897  ;;  %v3237_v25 = vmul.f32 %v17245_v7, %v1874_v27  ;;  %v3236_v59 = vmul.f32 %v17245_v7, %v1870_v58  ;;  %v3239_v6 = vmul.f32 %v17245_v7, %v1882_v26  ;;  %v3238_v44 = vmul.f32 %v17245_v7, %v1878_v43  ;;  %v17246_v26 = vld [vmem:[#allocation58_spill] sm:$0xff] }
 0x26a   : > { %v1894_v31 = vpop.permute.xlu0 %1893  ;;  %v3241_v30 = vmul.f32 %v17245_v7, %v1890_v41  ;;  %v3240_v37 = vmul.f32 %v17245_v7, %v1886_v34  ;;  %v3243_v32 = vmul.f32 %v17245_v7, %v1898_v11  ;;  %v17247_v43 = vcombine.low %v11701_v29, %v11779_v39 }
 0x26b   : > { %v11976_v27 = vmul.f32 %v10249_v33, %v3237_v25  ;;  %v17249_v41 = vcombine.high %v11701_v29, %v11779_v39  ;;  %v11997_v25 = vmul.f32 %v10281_v49, %v3239_v6  ;;  %v12000_v11 = vmul.f32 %v10286_v61, %v3238_v44 }
 0x26c   : > { %2433 = vbcast.lane.b32.xlu1 %v17244_v8, 264  ;;  %2429 = vbcast.lane.b32.xlu0 %v17244_v8, 256  ;;  %v11985_v54 = vrot.slane %v17247_v43, %v17246_v26  ;;  %v3242_v13 = vmul.f32 %v17245_v7, %v1894_v31  ;;  %v17251_v43 = vld [vmem:[#allocation17_spill] sm:$0xff]  ;;  %v17252_v29 = vcombine.low %v11704_v28, %v11782_v62 }
 0x26d   : > { %v1909_v22 = vpop.permute.xlu1 %1908  ;;  %v11991_v34 = vrot.slane %v17249_v41, %v17246_v26  ;;  %v17256_v44 = vcombine.low %v11677_v10, %v11769_v2  ;;  %v17258_v7 = vcombine.high %v11677_v10, %v11769_v2  ;;  %v17262_v2 = vcombine.high %v11680_v50, %v11772_v47 }
 0x26e   : > { %v1905_v15 = vpop.permute.xlu0 %1904  ;;  %17248 = vst [vmem:[#allocation102_spill] sm:$0xff] %v11985_v54  ;;  %v12010_v39 = vrot.slane %v17252_v29, %v17246_v26  ;;  %v12031_v29 = vmul.f32 %v17215_v0, %v3241_v30  ;;  %v12050_v30 = vmul.f32 %v10325_v21, %v3243_v32  ;;  %v12071_v32 = vmul.f32 %v17223_v17, %v3242_v13 }
 0x26f   : > { %17250 = vst [vmem:[#allocation10_spill] sm:$0xff] %v11991_v34  ;;  %v12022_v31 = vrot.slane %v17256_v44, %v17246_v26  ;;  %v12028_v41 = vrot.slane %v17258_v7, %v17246_v26  ;;  %v12047_v10 = vrot.slane %v17262_v2, %v17246_v26  ;;  %v17266_v7 = vcombine.high %v11739_v18, %v11830_v57  ;;  %v17270_v2 = vld [vmem:[#allocation27_spill] sm:$0xff] }
 0x270   : > { %2441 = vbcast.lane.b32.xlu1 %v17244_v8, 280  ;;  %2437 = vbcast.lane.b32.xlu0 %v17244_v8, 272  ;;  %17253 = vst [vmem:[#allocation106_spill] sm:$0xff] %v12010_v39  ;;  %v12034_v39 = vmul.f32 %v17216_v24, %v3240_v37  ;;  %v17264_v37 = vcombine.low %v11739_v18, %v11830_v57 }
 0x271   : > { %v11957_v1 = vpop.permute.xlu1 %1916  ;;  %17257 = vst [vmem:[#allocation107_spill] sm:$0xff] %v12022_v31  ;;  %17259 = vst [vmem:[#allocation88_spill] sm:$0xff] %v12028_v41  ;;  %v17273_v18 = vcombine.low %v11713_v40, %v11824_v16  ;;  %v17275_v13 = vcombine.high %v11713_v40, %v11824_v16  ;;  %v17282_v40 = vcombine.low %v11813_v46, %v11883_v35 }
 0x272   : > { %v11959_v56 = vpop.permute.xlu0 %1912  ;;  %17263 = vst [vmem:[#allocation13_spill] sm:$0xff] %v12047_v10  ;;  %v12056_v44 = vrot.slane %v17264_v37, %v17246_v26  ;;  %v17271_v37 = vcombine.high %v11742_v3, %v11833_v20 }
 0x273   : > { %v12084_v57 = vrot.slane %v17273_v18, %v17246_v26  ;;  %v12115_v16 = vrot.slane %v17282_v40, %v17246_v26  ;;  %v17288_v40 = vcombine.high %v11819_v52, %v11886_v36 }
 0x274   : > { %2449 = vbcast.lane.b32.xlu1 %v17244_v8, 296  ;;  %2445 = vbcast.lane.b32.xlu0 %v17244_v8, 288  ;;  %17265 = vst [vmem:[#allocation90_spill] sm:$0xff] %v12056_v44  ;;  %v12078_v44 = vrot.slane %v17271_v37, %v17246_v26 }
 0x275   : > { %v11964_v42 = vpop.permute.xlu1 %1924  ;;  %17274 = vst [vmem:[#allocation27_spill] sm:$0xff] %v12084_v57 }
 0x276   : > { %v11969_v12 = vpop.permute.xlu0 %1920  ;;  %17272 = vst [vmem:[#allocation17_spill] sm:$0xff] %v12078_v44 }
 0x278   : > { %2457 = vbcast.lane.b32.xlu1 %v17244_v8, 312  ;;  %2453 = vbcast.lane.b32.xlu0 %v17244_v8, 304  ;;  %v11994_v8 = vmul.f32 %v10256_v53, %v3236_v59  ;;  %v17254_v59 = vcombine.high %v11704_v28, %v11782_v62  ;;  %v17260_v28 = vcombine.low %v11680_v50, %v11772_v47 }
 0x279   : > { %v11979_v58 = vpop.permute.xlu1 %1932  ;;  %v17268_v50 = vcombine.low %v11742_v3, %v11833_v20  ;;  %v17277_v3 = vcombine.low %v11716_v38, %v11827_v48 }
 0x27a   : > { %v12003_v9 = vpop.permute.xlu0 %1928  ;;  %v12016_v6 = vrot.slane %v17254_v59, %v17246_v26  ;;  %v12041_v62 = vrot.slane %v17260_v28, %v17246_v26  ;;  %v12062_v28 = vrot.slane %v17266_v7, %v17246_v26 }
 0x27b   : > { %v12068_v47 = vrot.slane %v17268_v50, %v17246_v26  ;;  %v12098_v20 = vrot.slane %v17277_v3, %v17246_v26  ;;  %v17279_v50 = vcombine.high %v11716_v38, %v11827_v48  ;;  %v17286_v3 = vcombine.low %v11819_v52, %v11886_v36 }
 0x27c   : > { %2468 = vbcast.lane.b32.xlu1 %v17251_v43, 264  ;;  %17255 = vst [vmem:[#allocation15_spill] sm:$0xff] %v12016_v6  ;;  %2464 = vbcast.lane.b32.xlu0 %v17251_v43, 256  ;;  %17261 = vst [vmem:[#allocation115_spill] sm:$0xff] %v12041_v62 }
 0x27d   : > { %v1944_v59 = vpop.permute.xlu1 %1943  ;;  %17267 = vst [vmem:[#allocation14_spill] sm:$0xff] %v12062_v28  ;;  %17269 = vst [vmem:[#allocation24_spill] sm:$0xff] %v12068_v47  ;;  %v12104_v37 = vrot.slane %v17279_v50, %v17246_v26  ;;  %v12131_v50 = vrot.slane %v17286_v3, %v17246_v26 }
 0x27e   : > { %v3253_v10 = vmul.f32 %v17270_v2, %v1944_v59  ;;  %v1940_v62 = vpop.permute.xlu0 %1939  ;;  %v12092_v59 = vrot.slane %v17275_v13, %v17246_v26  ;;  %17278 = vst [vmem:[#allocation119_spill] sm:$0xff] %v12098_v20  ;;  %v17284_v13 = vcombine.high %v11813_v46, %v11883_v35 }
 0x27f   : > { %v3252_v7 = vmul.f32 %v17270_v2, %v1940_v62  ;;  %17280 = vst [vmem:[#allocation120_spill] sm:$0xff] %v12104_v37  ;;  %v17281_v62 = vld [vmem:[#allocation25_spill] sm:$0xff]  ;;  %17287 = vst [vmem:[#allocation122_spill] sm:$0xff] %v12131_v50 }
 0x280   : > { %2476 = vbcast.lane.b32.xlu1 %v17251_v43, 280  ;;  %17276 = vst [vmem:[#allocation118_spill] sm:$0xff] %v12092_v59  ;;  %v3245_v18 = vmul.f32 %v17281_v62, %v1909_v22  ;;  %v12108_v57 = vmul.f32 %v10249_v33, %v3253_v10  ;;  %2472 = vbcast.lane.b32.xlu0 %v17251_v43, 272  ;;  %17283 = vst [vmem:[#allocation25_spill] sm:$0xff] %v12115_v16 }
 0x281   : > { %v12121_v38 = vrot.slane %v17284_v13, %v17246_v26  ;;  %v3244_v48 = vmul.f32 %v17281_v62, %v1905_v15  ;;  %v12125_v22 = vmul.f32 %v10256_v53, %v3252_v7  ;;  %v1952_v10 = vpop.permute.xlu1 %1951  ;;  %v12137_v16 = vrot.slane %v17288_v40, %v17246_v26 }
 0x282   : > { %v4292_v46 = vcombine.low %v11976_v27, %v12108_v57  ;;  %v4293_v15 = vcombine.high %v11976_v27, %v12108_v57  ;;  %v3255_v35 = vmul.f32 %v17270_v2, %v1952_v10  ;;  %v1948_v7 = vpop.permute.xlu0 %1947  ;;  %v17290_v13 = vcombine.low %v11749_v63, %v11877_v23 }
 0x283   : > { %17285 = vst [vmem:[#allocation121_spill] sm:$0xff] %v12121_v38  ;;  %17289 = vst [vmem:[#allocation123_spill] sm:$0xff] %v12137_v16  ;;  %v3748_v52 = vcombine.low %v11994_v8, %v12125_v22  ;;  %v3749_v36 = vcombine.high %v11994_v8, %v12125_v22  ;;  %v3254_v40 = vmul.f32 %v17270_v2, %v1948_v7 }
 0x284   : > { %v12148_v3 = vrot.slane %v17290_v13, %v17246_v26  ;;  %2484 = vbcast.lane.b32.xlu1 %v17251_v43, 296  ;;  %v17292_v27 = vcombine.high %v11749_v63, %v11877_v23  ;;  %v12163_v10 = vmul.f32 %v10249_v33, %v3245_v18  ;;  %v3511_v13 = vmul.f32 %v10281_v49, %v3255_v35 }
 0x285   : > { %2480 = vbcast.lane.b32.xlu0 %v17251_v43, 288  ;;  %v17294_v8 = vcombine.low %v11752_v51, %v11880_v14  ;;  %v17296_v7 = vcombine.high %v11752_v51, %v11880_v14  ;;  %v12180_v23 = vmul.f32 %v10256_v53, %v3244_v48  ;;  %v3510_v18 = vmul.f32 %v10286_v61, %v3254_v40  ;;  %v1960_v35 = vpop.permute.xlu1 %1959 }
 0x286   : > { %17291 = vst [vmem:[#allocation124_spill] sm:$0xff] %v12148_v3  ;;  %v12160_v57 = vrot.slane %v17292_v27, %v17246_v26  ;;  %v17298_v27 = vcombine.low %v11927_v4, %v11917_v60  ;;  %v3247_v51 = vmul.f32 %v17281_v62, %v11957_v1  ;;  %v5380_v14 = vcombine.low %v11997_v25, %v3511_v13 }
 0x287   : > { %v12171_v22 = vrot.slane %v17294_v8, %v17246_v26  ;;  %v12177_v63 = vrot.slane %v17296_v7, %v17246_v26  ;;  %v17300_v8 = vcombine.high %v11927_v4, %v11917_v60  ;;  %v5381_v48 = vcombine.high %v11997_v25, %v3511_v13  ;;  %v1956_v7 = vpop.permute.xlu0 %1955 }
 0x288   : > { %17293 = vst [vmem:[#allocation125_spill] sm:$0xff] %v12160_v57  ;;  %v12187_v57 = vrot.slane %v17298_v27, %v17246_v26  ;;  %v3257_v40 = vmul.f32 %v17270_v2, %v1960_v35  ;;  %v3246_v27 = vmul.f32 %v17281_v62, %v11959_v56  ;;  %v3256_v60 = vmul.f32 %v17270_v2, %v1956_v7 }
 0x289   : > { %17295 = vst [vmem:[#allocation126_spill] sm:$0xff] %v12171_v22  ;;  %17297 = vst [vmem:[#allocation127_spill] sm:$0xff] %v12177_v63  ;;  %v12193_v22 = vrot.slane %v17300_v8, %v17246_v26  ;;  %v4837_v63 = vcombine.high %v12000_v11, %v3510_v18  ;;  %2492 = vbcast.lane.b32.xlu1 %v17251_v43, 312  ;;  %v3249_v4 = vmul.f32 %v17281_v62, %v11964_v42 }
 0x28a   : > { %17299 = vst [vmem:[#allocation128_spill] sm:$0xff] %v12187_v57  ;;  %v4836_v57 = vcombine.low %v12000_v11, %v3510_v18  ;;  %v3248_v1 = vmul.f32 %v17281_v62, %v11969_v12  ;;  %v3251_v25 = vmul.f32 %v17281_v62, %v11979_v58  ;;  %v3513_v13 = vmul.f32 %v17215_v0, %v3257_v40  ;;  %v1968_v18 = vpop.permute.xlu1 %1967 }
 0x28b   : > { %17301 = vst [vmem:[#allocation129_spill] sm:$0xff] %v12193_v22  ;;  %2488 = vbcast.lane.b32.xlu0 %v17251_v43, 304  ;;  %v3250_v56 = vmul.f32 %v17281_v62, %v12003_v9  ;;  %v3512_v11 = vmul.f32 %v17216_v24, %v3256_v60  ;;  %v17302_v42 = vcombine.low %v11933_v19, %v11920_v5  ;;  %v1964_v40 = vpop.permute.xlu0 %1963 }
 0x28c   : > { %v17304_v12 = vcombine.high %v11933_v19, %v11920_v5  ;;  %v12230_v43 = vmul.f32 %v10281_v49, %v3247_v51  ;;  %v6468_v9 = vcombine.low %v12031_v29, %v3513_v13  ;;  %v6469_v62 = vcombine.high %v12031_v29, %v3513_v13  ;;  %v17306_v19 = vld [vmem:[#allocation18_spill] sm:$0xff] }
 0x28d   : > { %v12221_v35 = vrot.slane %v17302_v42, %v17246_v26  ;;  %v3259_v8 = vmul.f32 %v17270_v2, %v1968_v18  ;;  %v12236_v7 = vmul.f32 %v10286_v61, %v3246_v27  ;;  %v5924_v60 = vcombine.low %v12034_v39, %v3512_v11  ;;  %2503 = vbcast.lane.b32.xlu1 %v17306_v19, 264 }
 0x28e   : > { %v12227_v58 = vrot.slane %v17304_v12, %v17246_v26  ;;  %v5925_v42 = vcombine.high %v12034_v39, %v3512_v11  ;;  %v3258_v5 = vmul.f32 %v17270_v2, %v1964_v40  ;;  %v12243_v51 = vmul.f32 %v17215_v0, %v3249_v4 }
 0x28f   : > { %17303 = vst [vmem:[#allocation130_spill] sm:$0xff] %v12221_v35  ;;  %v12246_v12 = vmul.f32 %v17216_v24, %v3248_v1  ;;  %v12249_v29 = vmul.f32 %v10325_v21, %v3251_v25  ;;  %v3515_v27 = vmul.f32 %v10325_v21, %v3259_v8  ;;  %2499 = vbcast.lane.b32.xlu0 %v17306_v19, 256  ;;  %v1979_v1 = vpop.permute.xlu1 %1978  ;;  %v17307_v8 = vld [vmem:[#allocation29_spill] sm:$0xff] }
 0x290   : > { %17305 = vst [vmem:[#allocation131_spill] sm:$0xff] %v12227_v58  ;;  %v12254_v13 = vmul.f32 %v17223_v17, %v3250_v56  ;;  %v12257_v39 = vrot.slane %v4292_v46, %v17224_v45  ;;  %v12260_v2 = vrot.slane %v4293_v15, %v17224_v45  ;;  %v3514_v4 = vmul.f32 %v17223_v17, %v3258_v5  ;;  %v1975_v56 = vpop.permute.xlu0 %1974 }
 0x291   : > { %v12264_v11 = vrot.slane %v3748_v52, %v17224_v45  ;;  %v7556_v25 = vcombine.low %v12050_v30, %v3515_v27  ;;  %v7557_v18 = vcombine.high %v12050_v30, %v3515_v27  ;;  %v3261_v40 = vmul.f32 %v17307_v8, %v1979_v1  ;;  %2511 = vbcast.lane.b32.xlu1 %v17306_v19, 280 }
 0x292   : > { %v12270_v58 = vrot.slane %v3749_v36, %v17224_v45  ;;  %v7012_v46 = vcombine.low %v12071_v32, %v3514_v4  ;;  %v7013_v15 = vcombine.high %v12071_v32, %v3514_v4  ;;  %v3260_v5 = vmul.f32 %v17307_v8, %v1975_v56 }
 0x293   : > { %v12277_v52 = vrot.slane %v5380_v14, %v17224_v45  ;;  %v12280_v35 = vrot.slane %v5381_v48, %v17224_v45  ;;  %v12283_v30 = vrot.slane %v4836_v57, %v17224_v45  ;;  %v3517_v36 = vmul.f32 %v10249_v33, %v3261_v40  ;;  %2507 = vbcast.lane.b32.xlu0 %v17306_v19, 272  ;;  %v1987_v48 = vpop.permute.xlu1 %1986 }
 0x294   : > { %v12288_v27 = vrot.slane %v4837_v63, %v17224_v45  ;;  %v12291_v32 = vrot.slane %v6468_v9, %v17224_v45  ;;  %v12294_v4 = vrot.slane %v6469_v62, %v17224_v45  ;;  %v3516_v14 = vmul.f32 %v10256_v53, %v3260_v5  ;;  %v1983_v63 = vpop.permute.xlu0 %1982 }
 0x295   : > { %v12298_v1 = vrot.slane %v5924_v60, %v17224_v45  ;;  %v4308_v57 = vcombine.low %v12163_v10, %v3517_v36  ;;  %v4309_v40 = vcombine.high %v12163_v10, %v3517_v36  ;;  %v3263_v56 = vmul.f32 %v17307_v8, %v1987_v48  ;;  %2519 = vbcast.lane.b32.xlu1 %v17306_v19, 296 }
 0x296   : > { %v12304_v22 = vrot.slane %v5925_v42, %v17224_v45  ;;  %v3764_v9 = vcombine.low %v12180_v23, %v3516_v14  ;;  %v3765_v62 = vcombine.high %v12180_v23, %v3516_v14  ;;  %v3262_v5 = vmul.f32 %v17307_v8, %v1983_v63 }
 0x297   : > { %v12311_v60 = vrot.slane %v7556_v25, %v17224_v45  ;;  %v12314_v3 = vrot.slane %v4308_v57, %v17224_v45  ;;  %v12317_v10 = vrot.slane %v4309_v40, %v17224_v45  ;;  %v3519_v42 = vmul.f32 %v10281_v49, %v3263_v56  ;;  %2515 = vbcast.lane.b32.xlu0 %v17306_v19, 288  ;;  %v1995_v48 = vpop.permute.xlu1 %1994 }
 0x298   : > { %v12322_v36 = vrot.slane %v7557_v18, %v17224_v45  ;;  %v3772_v23 = vrot.slane %v3764_v9, %v17224_v45  ;;  %v12326_v14 = vrot.slane %v3765_v62, %v17224_v45  ;;  %v3518_v25 = vmul.f32 %v10286_v61, %v3262_v5  ;;  %v1991_v63 = vpop.permute.xlu0 %1990 }
 0x299   : > { %17308 = vst [vmem:[#allocation18_spill] sm:$0xff] %v12311_v60  ;;  %2527 = vbcast.lane.b32.xlu1 %v17306_v19, 312  ;;  %v5396_v40 = vcombine.low %v12230_v43, %v3519_v42  ;;  %v5397_v56 = vcombine.high %v12230_v43, %v3519_v42  ;;  %v3265_v57 = vmul.f32 %v17307_v8, %v1995_v48 }
 0x29a   : > { %17309 = vst [vmem:[#allocation29_spill] sm:$0xff] %v12322_v36  ;;  %v3812_v9 = vcombine.low %v12264_v11, %v3772_v23  ;;  %v3813_v62 = vcombine.high %v12264_v11, %v3772_v23  ;;  %v4852_v16 = vcombine.low %v12236_v7, %v3518_v25  ;;  %v4853_v18 = vcombine.high %v12236_v7, %v3518_v25 }
 0x29b   : > { %2523 = vbcast.lane.b32.xlu0 %v17306_v19, 304  ;;  %v12350_v11 = vrot.slane %v7012_v46, %v17224_v45  ;;  %v12353_v23 = vrot.slane %v7013_v15, %v17224_v45  ;;  %v3264_v5 = vmul.f32 %v17307_v8, %v1991_v63  ;;  %v2003_v50 = vpop.permute.xlu1 %2002  ;;  %v12358_v38 = vrot.slane %v5396_v40, %v17224_v45  ;;  %v17310_v40 = vld [vmem:[#allocation19_spill] sm:$0xff] }
 0x29c   : > { %v12361_v43 = vrot.slane %v5397_v56, %v17224_v45  ;;  %v12364_v7 = vrot.slane %v4852_v16, %v17224_v45  ;;  %v12367_v19 = vrot.slane %v4853_v18, %v17224_v45  ;;  %v1999_v46 = vpop.permute.xlu0 %1998  ;;  %v3521_v15 = vmul.f32 %v17215_v0, %v3265_v57 }
 0x29d   : > { %v3520_v42 = vmul.f32 %v17216_v24, %v3264_v5  ;;  %v3267_v25 = vmul.f32 %v17307_v8, %v2003_v50  ;;  %v3266_v48 = vmul.f32 %v17307_v8, %v1999_v46  ;;  %2538 = vbcast.lane.b32.xlu1 %v17310_v40, 264  ;;  %v12399_v63 = vrot.slane %v3812_v9, %v17246_v26 }
 0x29e   : > { %v6484_v18 = vcombine.low %v12243_v51, %v3521_v15  ;;  %v6485_v16 = vcombine.high %v12243_v51, %v3521_v15  ;;  %v12402_v5 = vrot.slane %v3813_v62, %v17246_v26 }
 0x29f   : > { %2534 = vbcast.lane.b32.xlu0 %v17310_v40, 256  ;;  %v2294_v46 = vpop.permute.xlu1 %2293  ;;  %v5940_v57 = vcombine.low %v12246_v12, %v3520_v42  ;;  %v5941_v56 = vcombine.high %v12246_v12, %v3520_v42  ;;  %v3523_v50 = vmul.f32 %v10325_v21, %v3267_v25  ;;  %v3522_v8 = vmul.f32 %v17223_v17, %v3266_v48 }
 0x2a0   : > { %v2290_v37 = vpop.permute.xlu0 %2289  ;;  %17311 = vst [vmem:[#allocation19_spill] sm:$0xff] %v12399_v63  ;;  %17312 = vst [vmem:[#allocation132_spill] sm:$0xff] %v12402_v5  ;;  %v12405_v20 = vrot.slane %v6484_v18, %v17224_v45  ;;  %v12408_v51 = vrot.slane %v6485_v16, %v17224_v45 }
 0x2a1   : > { %2546 = vbcast.lane.b32.xlu1 %v17310_v40, 280  ;;  %v12411_v12 = vrot.slane %v5940_v57, %v17224_v45  ;;  %v12414_v15 = vrot.slane %v5941_v56, %v17224_v45  ;;  %v7572_v9 = vcombine.low %v12249_v29, %v3523_v50  ;;  %v7573_v42 = vcombine.high %v12249_v29, %v3523_v50  ;;  %v17316_v50 = vld [vmem:[#allocation28_spill] sm:$0xff] }
 0x2a2   : > { %17313 = vst [vmem:[#allocation133_spill] sm:$0xff] %v12408_v51  ;;  %v7028_v62 = vcombine.low %v12254_v13, %v3522_v8  ;;  %v7029_v25 = vcombine.high %v12254_v13, %v3522_v8  ;;  %v3333_v13 = vmul.f32 %v17316_v50, %v2294_v46  ;;  %v3332_v8 = vmul.f32 %v17316_v50, %v2290_v37 }
 0x2a3   : > { %2542 = vbcast.lane.b32.xlu0 %v17310_v40, 272  ;;  %v2302_v48 = vpop.permute.xlu1 %2301  ;;  %v12439_v56 = vrot.slane %v7572_v9, %v17224_v45  ;;  %v12442_v57 = vrot.slane %v7573_v42, %v17224_v45  ;;  %v17387_v6 = vcombine.high %v12291_v32, %v12405_v20 }
 0x2a4   : > { %v2298_v17 = vpop.permute.xlu0 %2297  ;;  %v12445_v18 = vrot.slane %v7028_v62, %v17224_v45  ;;  %v12448_v16 = vrot.slane %v7029_v25, %v17224_v45  ;;  %v3335_v29 = vmul.f32 %v17316_v50, %v2302_v48  ;;  %v17317_v45 = vld [vmem:[#allocation91_spill] sm:$0xff]  ;;  %v17322_v48 = vld [vmem:[#allocation92_spill] sm:$0xff] }
 0x2a5   : > { %2554 = vbcast.lane.b32.xlu1 %v17310_v40, 296  ;;  %17314 = vst [vmem:[#allocation134_spill] sm:$0xff] %v12439_v56  ;;  %17315 = vst [vmem:[#allocation135_spill] sm:$0xff] %v12442_v57  ;;  %v3334_v9 = vmul.f32 %v17316_v50, %v2298_v17  ;;  %v17318_v25 = vcombine.low %v11865_v55, %v17317_v45  ;;  %v17320_v17 = vcombine.high %v11865_v55, %v17317_v45  ;;  %v17323_v57 = vld [vmem:[#allocation101_spill] sm:$0xff] }
 0x2a6   : > { %v17324_v42 = vcombine.low %v17322_v48, %v17323_v57  ;;  %v17328_v55 = vcombine.low %v12270_v58, %v12326_v14  ;;  %v12520_v45 = vmul.f32 %v10281_v49, %v3335_v29  ;;  %v17340_v29 = vcombine.high %v12257_v39, %v12314_v3 }
 0x2a7   : > { %2550 = vbcast.lane.b32.xlu0 %v17310_v40, 288  ;;  %v2310_v51 = vpop.permute.xlu1 %2309  ;;  %v12477_v62 = vrot.slane %v17318_v25, %v17246_v26  ;;  %v12483_v37 = vrot.slane %v17320_v17, %v17246_v26 }
 0x2a8   : > { %v2306_v46 = vpop.permute.xlu0 %2305  ;;  %v12489_v36 = vrot.slane %v17324_v42, %v17246_v26  ;;  %v12505_v17 = vrot.slane %v17328_v55, %v17246_v26  ;;  %v17330_v42 = vcombine.high %v12270_v58, %v12326_v14  ;;  %17334 = vst [vmem:[#allocation140_spill] sm:$0xff] %v12520_v45  ;;  %v17335_v55 = vcombine.low %v12257_v39, %v12314_v3  ;;  %v17338_v14 = vld [vmem:[#allocation20_spill] sm:$0xff] }
 0x2a9   : > { %2562 = vbcast.lane.b32.xlu1 %v17310_v40, 312  ;;  %17319 = vst [vmem:[#allocation28_spill] sm:$0xff] %v12477_v62  ;;  %17321 = vst [vmem:[#allocation91_spill] sm:$0xff] %v12483_v37  ;;  %v12529_v58 = vmul.f32 %v10286_v61, %v3334_v9  ;;  %v12540_v45 = vrot.slane %v17340_v29, %v17246_v26  ;;  %v3336_v39 = vmul.f32 %v17316_v50, %v2306_v46 }
 0x2aa   : > { %17325 = vst [vmem:[#allocation92_spill] sm:$0xff] %v12489_v36  ;;  %17329 = vst [vmem:[#allocation136_spill] sm:$0xff] %v12505_v17  ;;  %v17346_v9 = vcombine.low %v12283_v30, %v12364_v7  ;;  %v17401_v46 = vcombine.low %v12350_v11, %v12445_v18 }
 0x2ab   : > { %2558 = vbcast.lane.b32.xlu0 %v17310_v40, 304  ;;  %v17326_v40 = vcombine.high %v17322_v48, %v17323_v57  ;;  %v2318_v25 = vpop.permute.xlu1 %2317  ;;  %v12511_v57 = vrot.slane %v17330_v42, %v17246_v26  ;;  %v12514_v48 = vmul.f32 %v10249_v33, %v3333_v13  ;;  %17337 = vst [vmem:[#allocation142_spill] sm:$0xff] %v12529_v58  ;;  %17341 = vst [vmem:[#allocation20_spill] sm:$0xff] %v12540_v45 }
 0x2ac   : > { %v2314_v62 = vpop.permute.xlu0 %2313  ;;  %v17342_v42 = vcombine.low %v12260_v2, %v12317_v10  ;;  %v12565_v36 = vrot.slane %v17346_v9, %v17246_v26  ;;  %v17352_v9 = vcombine.low %v12288_v27, %v12367_v19  ;;  %v17423_v31 = vld [vmem:[#allocation135_spill] sm:$0xff] }
 0x2ad   : > { %v12495_v56 = vrot.slane %v17326_v40, %v17246_v26  ;;  %17331 = vst [vmem:[#allocation137_spill] sm:$0xff] %v12511_v57  ;;  %17332 = vst [vmem:[#allocation138_spill] sm:$0xff] %v12514_v48  ;;  %v12517_v40 = vmul.f32 %v10256_v53, %v3332_v8  ;;  %2573 = vbcast.lane.b32.xlu1 %v17338_v14, 264  ;;  %v17344_v8 = vcombine.high %v12260_v2, %v12317_v10 }
 0x2ae   : > { %v12550_v58 = vrot.slane %v17342_v42, %v17246_v26  ;;  %17347 = vst [vmem:[#allocation145_spill] sm:$0xff] %v12565_v36  ;;  %v17348_v42 = vcombine.high %v12283_v30, %v12364_v7  ;;  %v3339_v2 = vmul.f32 %v17316_v50, %v2318_v25  ;;  %v12582_v48 = vrot.slane %v17352_v9, %v17246_v26 }
 0x2af   : > { %17327 = vst [vmem:[#allocation101_spill] sm:$0xff] %v12495_v56  ;;  %17333 = vst [vmem:[#allocation139_spill] sm:$0xff] %v12517_v40  ;;  %v12526_v56 = vrot.slane %v17335_v55, %v17246_v26  ;;  %v3337_v55 = vmul.f32 %v17316_v50, %v2310_v51  ;;  %2569 = vbcast.lane.b32.xlu0 %v17338_v14, 256  ;;  %v12556_v3 = vrot.slane %v17344_v8, %v17246_v26  ;;  %v2329_v51 = vpop.permute.xlu1 %2328 }
 0x2b0   : > { %17343 = vst [vmem:[#allocation143_spill] sm:$0xff] %v12550_v58  ;;  %v12571_v40 = vrot.slane %v17348_v42, %v17246_v26  ;;  %v2325_v10 = vpop.permute.xlu0 %2324  ;;  %17353 = vst [vmem:[#allocation147_spill] sm:$0xff] %v12582_v48  ;;  %v3338_v60 = vmul.f32 %v17316_v50, %v2314_v62  ;;  %v17355_v42 = vcombine.high %v12288_v27, %v12367_v19  ;;  %v17409_v48 = vld [vmem:[#allocation31_spill] sm:$0xff] }
 0x2b1   : > { %17336 = vst [vmem:[#allocation141_spill] sm:$0xff] %v12526_v56  ;;  %17345 = vst [vmem:[#allocation144_spill] sm:$0xff] %v12556_v3  ;;  %2581 = vbcast.lane.b32.xlu1 %v17338_v14, 280  ;;  %v12597_v8 = vmul.f32 %v17215_v0, %v3337_v55  ;;  %v17358_v62 = vcombine.low %v12277_v52, %v12358_v38  ;;  %v17360_v27 = vcombine.high %v12277_v52, %v12358_v38  ;;  %v17415_v56 = vld [vmem:[#allocation134_spill] sm:$0xff] }
 0x2b2   : > { %17349 = vst [vmem:[#allocation146_spill] sm:$0xff] %v12571_v40  ;;  %v12594_v37 = vrot.slane %v17355_v42, %v17246_v26  ;;  %v12615_v55 = vmul.f32 %v17216_v24, %v3336_v39  ;;  %v17363_v50 = vcombine.low %v12280_v35, %v12361_v43  ;;  %v12628_v38 = vmul.f32 %v10325_v21, %v3339_v2 }
 0x2b3   : > { %17357 = vst [vmem:[#allocation149_spill] sm:$0xff] %v12597_v8  ;;  %2577 = vbcast.lane.b32.xlu0 %v17338_v14, 272  ;;  %v12606_v9 = vrot.slane %v17358_v62, %v17246_v26  ;;  %v12612_v19 = vrot.slane %v17360_v27, %v17246_v26  ;;  %v2337_v42 = vpop.permute.xlu1 %2336  ;;  %v17366_v25 = vcombine.high %v12280_v35, %v12361_v43  ;;  %v17373_v35 = vld [vmem:[#allocation30_spill] sm:$0xff] }
 0x2b4   : > { %17356 = vst [vmem:[#allocation148_spill] sm:$0xff] %v12594_v37  ;;  %17362 = vst [vmem:[#allocation152_spill] sm:$0xff] %v12615_v55  ;;  %v12623_v7 = vrot.slane %v17363_v50, %v17246_v26  ;;  %v2333_v52 = vpop.permute.xlu0 %2332  ;;  %v17368_v50 = vld [vmem:[#allocation50_spill] sm:$0xff]  ;;  %v17371_v55 = vcombine.low %v12298_v1, %v12411_v12  ;;  %v3341_v43 = vmul.f32 %v17373_v35, %v2329_v51 }
 0x2b5   : > { %17359 = vst [vmem:[#allocation150_spill] sm:$0xff] %v12606_v9  ;;  %17361 = vst [vmem:[#allocation151_spill] sm:$0xff] %v12612_v19  ;;  %v12638_v8 = vrot.slane %v17366_v25, %v17246_v26  ;;  %v12641_v24 = vmul.f32 %v17368_v50, %v3338_v60  ;;  %2589 = vbcast.lane.b32.xlu1 %v17338_v14, 296  ;;  %v17375_v27 = vcombine.high %v12298_v1, %v12411_v12  ;;  %v17440_v12 = vld [vmem:[#allocation22_spill] sm:$0xff] }
 0x2b6   : > { %17364 = vst [vmem:[#allocation153_spill] sm:$0xff] %v12623_v7  ;;  %v12652_v63 = vrot.slane %v17371_v55, %v17246_v26  ;;  %v3340_v5 = vmul.f32 %v17373_v35, %v2325_v10  ;;  %v17378_v25 = vcombine.low %v12304_v22, %v12414_v15  ;;  %v3343_v17 = vmul.f32 %v17373_v35, %v2337_v42  ;;  %v17426_v7 = vld [vmem:[#allocation138_spill] sm:$0xff] }
 0x2b7   : > { %17367 = vst [vmem:[#allocation154_spill] sm:$0xff] %v12638_v8  ;;  %17369 = vst [vmem:[#allocation155_spill] sm:$0xff] %v12641_v24  ;;  %2585 = vbcast.lane.b32.xlu0 %v17338_v14, 288  ;;  %v12664_v62 = vrot.slane %v17375_v27, %v17246_v26  ;;  %v2345_v55 = vpop.permute.xlu1 %2344  ;;  %v17381_v51 = vcombine.high %v12304_v22, %v12414_v15  ;;  %v3342_v57 = vmul.f32 %v17373_v35, %v2333_v52  ;;  %v17391_v52 = vld [vmem:[#allocation133_spill] sm:$0xff] }
 0x2b8   : > { %17372 = vst [vmem:[#allocation156_spill] sm:$0xff] %v12652_v63  ;;  %v12675_v54 = vrot.slane %v17378_v25, %v17246_v26  ;;  %v2341_v1 = vpop.permute.xlu0 %2340  ;;  %v17384_v10 = vcombine.low %v12291_v32, %v12405_v20  ;;  %v12701_v22 = vmul.f32 %v10249_v33, %v3341_v43  ;;  %v12712_v42 = vrot.slane %v17387_v6, %v17246_v26  ;;  %v17435_v63 = vld [vmem:[#allocation142_spill] sm:$0xff] }
 0x2b9   : > { %17376 = vst [vmem:[#allocation30_spill] sm:$0xff] %v12664_v62  ;;  %v12686_v24 = vrot.slane %v17381_v51, %v17246_v26  ;;  %2597 = vbcast.lane.b32.xlu1 %v17338_v14, 312  ;;  %v17392_v51 = vcombine.low %v12294_v4, %v17391_v52  ;;  %v12728_v20 = vmul.f32 %v10281_v49, %v3343_v17 }
 0x2ba   : > { %17379 = vst [vmem:[#allocation157_spill] sm:$0xff] %v12675_v54  ;;  %v12698_v27 = vrot.slane %v17384_v10, %v17246_v26  ;;  %17388 = vst [vmem:[#allocation160_spill] sm:$0xff] %v12712_v42  ;;  %v12715_v10 = vmul.f32 %v10256_v53, %v3340_v5  ;;  %v12741_v3 = vmul.f32 %v10286_v61, %v3342_v57 }
 0x2bb   : > { %17382 = vst [vmem:[#allocation158_spill] sm:$0xff] %v12686_v24  ;;  %2593 = vbcast.lane.b32.xlu0 %v17338_v14, 304  ;;  %v2353_v45 = vpop.permute.xlu1 %2352  ;;  %v12725_v58 = vrot.slane %v17392_v51, %v17246_v26  ;;  %17394 = vst [vmem:[#allocation162_spill] sm:$0xff] %v12728_v20  ;;  %v17396_v14 = vcombine.high %v12294_v4, %v17391_v52  ;;  %v17399_v51 = vld [vmem:[#allocation21_spill] sm:$0xff]  ;;  %v12752_v36 = vrot.slane %v17401_v46, %v17246_v26 }
 0x2bc   : > { %17385 = vst [vmem:[#allocation159_spill] sm:$0xff] %v12698_v27  ;;  %17389 = vst [vmem:[#allocation161_spill] sm:$0xff] %v12715_v10  ;;  %v2349_v6 = vpop.permute.xlu0 %2348  ;;  %v3345_v4 = vmul.f32 %v17373_v35, %v2345_v55  ;;  %v17404_v5 = vcombine.high %v12350_v11, %v12445_v18  ;;  %v3344_v40 = vmul.f32 %v17373_v35, %v2341_v1 }
 0x2bd   : > { %17393 = vst [vmem:[#allocation133_spill] sm:$0xff] %v12725_v58  ;;  %v12738_v41 = vrot.slane %v17396_v14, %v17246_v26  ;;  %17398 = vst [vmem:[#allocation164_spill] sm:$0xff] %v12741_v3  ;;  %2608 = vbcast.lane.b32.xlu1 %v17399_v51, 264  ;;  %v17407_v52 = vcombine.low %v12353_v23, %v12448_v16  ;;  %v17411_v55 = vcombine.high %v12353_v23, %v12448_v16 }
 0x2be   : > { %17402 = vst [vmem:[#allocation21_spill] sm:$0xff] %v12752_v36  ;;  %v12764_v29 = vrot.slane %v17404_v5, %v17246_v26  ;;  %v17414_v5 = vld [vmem:[#allocation18_spill] sm:$0xff]  ;;  %v3347_v10 = vmul.f32 %v17373_v35, %v2353_v45  ;;  %v17442_v58 = vld [vmem:[#allocation155_spill] sm:$0xff] }
 0x2bf   : > { %17397 = vst [vmem:[#allocation163_spill] sm:$0xff] %v12738_v41  ;;  %2604 = vbcast.lane.b32.xlu0 %v17399_v51, 256  ;;  %v2364_v46 = vpop.permute.xlu1 %2363  ;;  %v12775_v14 = vrot.slane %v17407_v52, %v17246_v26  ;;  %v12786_v30 = vrot.slane %v17411_v55, %v17246_v26  ;;  %v17416_v1 = vcombine.low %v17414_v5, %v17415_v56  ;;  %v17422_v55 = vld [vmem:[#allocation29_spill] sm:$0xff] }
 0x2c0   : > { %17405 = vst [vmem:[#allocation165_spill] sm:$0xff] %v12764_v29  ;;  %v3349_v47 = vmul.f32 %v17409_v48, %v2364_v46  ;;  %v2360_v11 = vpop.permute.xlu0 %2359  ;;  %v17419_v44 = vcombine.high %v17414_v5, %v17415_v56  ;;  %v17424_v13 = vcombine.low %v17422_v55, %v17423_v31  ;;  %v17432_v45 = vcombine.high %v17422_v55, %v17423_v31  ;;  %v17438_v55 = vld [vmem:[#allocation149_spill] sm:$0xff] }
 0x2c1   : > { %17408 = vst [vmem:[#allocation166_spill] sm:$0xff] %v12775_v14  ;;  %17412 = vst [vmem:[#allocation31_spill] sm:$0xff] %v12786_v30  ;;  %v3348_v37 = vmul.f32 %v17409_v48, %v2360_v11  ;;  %2616 = vbcast.lane.b32.xlu1 %v17399_v51, 280  ;;  %v12798_v9 = vrot.slane %v17416_v1, %v17246_v26 }
 0x2c2   : > { %v3605_v23 = vmul.f32 %v10249_v33, %v3349_v47  ;;  %v12810_v46 = vrot.slane %v17419_v44, %v17246_v26  ;;  %v12821_v11 = vrot.slane %v17424_v13, %v17246_v26  ;;  %v17428_v47 = vld [vmem:[#allocation139_spill] sm:$0xff] }
 0x2c3   : > { %17417 = vst [vmem:[#allocation18_spill] sm:$0xff] %v12798_v9  ;;  %2612 = vbcast.lane.b32.xlu0 %v17399_v51, 272  ;;  %v3604_v19 = vmul.f32 %v10256_v53, %v3348_v37  ;;  %v2372_v1 = vpop.permute.xlu1 %2371  ;;  %v17443_v17 = vld [vmem:[#allocation161_spill] sm:$0xff] }
 0x2c4   : > { %17420 = vst [vmem:[#allocation134_spill] sm:$0xff] %v12810_v46  ;;  %17425 = vst [vmem:[#allocation29_spill] sm:$0xff] %v12821_v11  ;;  %v4532_v2 = vcombine.low %v17426_v7, %v3605_v23  ;;  %v4533_v44 = vcombine.high %v17426_v7, %v3605_v23  ;;  %v3351_v56 = vmul.f32 %v17409_v48, %v2372_v1  ;;  %v2368_v37 = vpop.permute.xlu0 %2367 }
 0x2c5   : > { %v3988_v20 = vcombine.low %v17428_v47, %v3604_v19  ;;  %v3989_v39 = vcombine.high %v17428_v47, %v3604_v19  ;;  %v3350_v8 = vmul.f32 %v17409_v48, %v2368_v37  ;;  %2624 = vbcast.lane.b32.xlu1 %v17399_v51, 296  ;;  %v3346_v7 = vmul.f32 %v17373_v35, %v2349_v6  ;;  %v17430_v47 = vld [vmem:[#allocation42_spill] sm:$0xff]  ;;  %v17434_v6 = vld [vmem:[#allocation140_spill] sm:$0xff] }
 0x2c6   : > { %v3607_v23 = vmul.f32 %v10281_v49, %v3351_v56  ;;  %v12841_v19 = vmul.f32 %v17215_v0, %v3345_v4  ;;  %v12844_v37 = vmul.f32 %v17430_v47, %v3344_v40  ;;  %v12851_v35 = vrot.slane %v17432_v45, %v17246_v26 }
 0x2c7   : > { %2620 = vbcast.lane.b32.xlu0 %v17399_v51, 288  ;;  %v3606_v3 = vmul.f32 %v10286_v61, %v3350_v8  ;;  %v2380_v60 = vpop.permute.xlu1 %2379  ;;  %v12865_v45 = vmul.f32 %v10325_v21, %v3347_v10 }
 0x2c8   : > { %17431 = vst [vmem:[#allocation135_spill] sm:$0xff] %v12844_v37  ;;  %17433 = vst [vmem:[#allocation138_spill] sm:$0xff] %v12851_v35  ;;  %v5620_v56 = vcombine.low %v17434_v6, %v3607_v23  ;;  %v5621_v13 = vcombine.high %v17434_v6, %v3607_v23  ;;  %v3353_v1 = vmul.f32 %v17409_v48, %v2380_v60  ;;  %v2376_v4 = vpop.permute.xlu0 %2375 }
 0x2c9   : > { %v5076_v34 = vcombine.low %v17435_v63, %v3606_v3  ;;  %v5077_v8 = vcombine.high %v17435_v63, %v3606_v3  ;;  %v3352_v37 = vmul.f32 %v17409_v48, %v2376_v4  ;;  %2632 = vbcast.lane.b32.xlu1 %v17399_v51, 312  ;;  %v12868_v60 = vmul.f32 %v17368_v50, %v3346_v7  ;;  %v17437_v3 = vld [vmem:[#allocation52_spill] sm:$0xff] }
 0x2ca   : > { %v3609_v23 = vmul.f32 %v17215_v0, %v3353_v1  ;;  %v12875_v6 = vrot.slane %v4532_v2, %v17437_v3  ;;  %v12878_v4 = vrot.slane %v4533_v44, %v17437_v3  ;;  %v17439_v44 = vld [vmem:[#allocation152_spill] sm:$0xff]  ;;  %v17441_v2 = vld [vmem:[#allocation33_spill] sm:$0xff] }
 0x2cb   : > { %2628 = vbcast.lane.b32.xlu0 %v17399_v51, 304  ;;  %v12881_v40 = vmul.f32 %v17430_v47, %v3352_v37  ;;  %v2388_v10 = vpop.permute.xlu1 %2387  ;;  %v12937_v37 = vrot.slane %v5076_v34, %v17437_v3 }
 0x2cc   : > { %v6708_v1 = vcombine.low %v17438_v55, %v3609_v23  ;;  %v6709_v51 = vcombine.high %v17438_v55, %v3609_v23  ;;  %v3355_v62 = vmul.f32 %v17409_v48, %v2388_v10  ;;  %v2384_v63 = vpop.permute.xlu0 %2383  ;;  %v12899_v55 = vrot.slane %v3988_v20, %v17437_v3 }
 0x2cd   : > { %v3354_v25 = vmul.f32 %v17409_v48, %v2384_v63  ;;  %2643 = vbcast.lane.b32.xlu1 %v17440_v12, 264  ;;  %v12902_v23 = vrot.slane %v3989_v39, %v17437_v3  ;;  %v12911_v48 = vrot.slane %v5620_v56, %v17437_v3  ;;  %v12914_v63 = vrot.slane %v5621_v13, %v17437_v3 }
 0x2ce   : > { %v12905_v10 = vmul.f32 %v10325_v21, %v3355_v62  ;;  %v17447_v11 = vcombine.low %v17439_v44, %v12881_v40 }
 0x2cf   : > { %2639 = vbcast.lane.b32.xlu0 %v17440_v12, 256  ;;  %v12917_v20 = vmul.f32 %v17368_v50, %v3354_v25  ;;  %v2399_v7 = vpop.permute.xlu1 %2398  ;;  %v12950_v25 = vrot.slane %v6709_v51, %v17437_v3 }
 0x2d0   : > { %v3357_v54 = vmul.f32 %v17441_v2, %v2399_v7  ;;  %v2395_v56 = vpop.permute.xlu0 %2394  ;;  %v12940_v7 = vrot.slane %v5077_v8, %v17437_v3 }
 0x2d1   : > { %v3356_v39 = vmul.f32 %v17441_v2, %v2395_v56  ;;  %2651 = vbcast.lane.b32.xlu1 %v17440_v12, 280  ;;  %v12947_v56 = vrot.slane %v6708_v1, %v17437_v3  ;;  %v17445_v1 = vld [vmem:[#allocation162_spill] sm:$0xff] }
 0x2d2   : > { %v3613_v13 = vmul.f32 %v10249_v33, %v3357_v54 }
 0x2d3   : > { %2647 = vbcast.lane.b32.xlu0 %v17440_v12, 272  ;;  %v3612_v62 = vmul.f32 %v10256_v53, %v3356_v39  ;;  %v2407_v34 = vpop.permute.xlu1 %2406 }
 0x2d4   : > { %v4548_v29 = vcombine.low %v12701_v22, %v3613_v13  ;;  %v4549_v54 = vcombine.high %v12701_v22, %v3613_v13  ;;  %v3359_v18 = vmul.f32 %v17441_v2, %v2407_v34  ;;  %v2403_v36 = vpop.permute.xlu0 %2402 }
 0x2d5   : > { %v4004_v14 = vcombine.low %v17443_v17, %v3612_v62  ;;  %v4005_v51 = vcombine.high %v17443_v17, %v3612_v62  ;;  %v3358_v39 = vmul.f32 %v17441_v2, %v2403_v36  ;;  %2659 = vbcast.lane.b32.xlu1 %v17440_v12, 296 }
 0x2d6   : > { %v12967_v30 = vrot.slane %v4548_v29, %v17437_v3  ;;  %v12970_v22 = vrot.slane %v4549_v54, %v17437_v3  ;;  %v3615_v13 = vmul.f32 %v10281_v49, %v3359_v18  ;;  %v13011_v54 = vrot.slane %v17447_v11, %v17437_v3 }
 0x2d7   : > { %2655 = vbcast.lane.b32.xlu0 %v17440_v12, 288  ;;  %v12977_v36 = vrot.slane %v4004_v14, %v17437_v3  ;;  %v12980_v62 = vrot.slane %v4005_v51, %v17437_v3  ;;  %v3614_v8 = vmul.f32 %v10286_v61, %v3358_v39  ;;  %v2415_v29 = vpop.permute.xlu1 %2414  ;;  %v17446_v14 = vld [vmem:[#allocation164_spill] sm:$0xff]  ;;  %v17448_v18 = vcombine.high %v17439_v44, %v12881_v40 }
 0x2d8   : > { %v2411_v51 = vpop.permute.xlu0 %2410  ;;  %v5636_v17 = vcombine.low %v17445_v1, %v3615_v13  ;;  %v5637_v35 = vcombine.high %v17445_v1, %v3615_v13  ;;  %v3361_v1 = vmul.f32 %v17441_v2, %v2415_v29 }
 0x2d9   : > { %2667 = vbcast.lane.b32.xlu1 %v17440_v12, 312  ;;  %v5092_v31 = vcombine.low %v17446_v14, %v3614_v8  ;;  %v5093_v34 = vcombine.high %v17446_v14, %v3614_v8  ;;  %v13017_v39 = vrot.slane %v17448_v18, %v17437_v3  ;;  %v3360_v13 = vmul.f32 %v17441_v2, %v2411_v51 }
 0x2da   : > { %v13022_v8 = vrot.slane %v5636_v17, %v17437_v3  ;;  %v3617_v44 = vmul.f32 %v17215_v0, %v3361_v1  ;;  %v17449_v17 = vld [vmem:[#allocation23_spill] sm:$0xff] }
 0x2db   : > { %2663 = vbcast.lane.b32.xlu0 %v17440_v12, 304  ;;  %v2423_v46 = vpop.permute.xlu1 %2422  ;;  %v13025_v12 = vrot.slane %v5637_v35, %v17437_v3  ;;  %v13028_v11 = vrot.slane %v5092_v31, %v17437_v3  ;;  %v13031_v14 = vrot.slane %v5093_v34, %v17437_v3  ;;  %v3616_v29 = vmul.f32 %v17430_v47, %v3360_v13  ;;  %v17450_v35 = vld [vmem:[#allocation135_spill] sm:$0xff] }
 0x2dc   : > { %v2419_v40 = vpop.permute.xlu0 %2418  ;;  %v3363_v18 = vmul.f32 %v17441_v2, %v2423_v46  ;;  %v6724_v34 = vcombine.low %v12841_v19, %v3617_v44  ;;  %v6725_v1 = vcombine.high %v12841_v19, %v3617_v44 }
 0x2dd   : > { %v3362_v51 = vmul.f32 %v17441_v2, %v2419_v40  ;;  %2678 = vbcast.lane.b32.xlu1 %v17449_v17, 264  ;;  %v6180_v5 = vcombine.low %v17450_v35, %v3616_v29  ;;  %v6181_v9 = vcombine.high %v17450_v35, %v3616_v29  ;;  %v17451_v2 = vcombine.low %v12628_v38, %v12905_v10 }
 0x2de   : > { %v17452_v40 = vcombine.high %v12628_v38, %v12905_v10  ;;  %v3619_v16 = vmul.f32 %v10325_v21, %v3363_v18  ;;  %v13077_v44 = vrot.slane %v6724_v34, %v17437_v3  ;;  %v13080_v29 = vrot.slane %v6725_v1, %v17437_v3 }
 0x2df   : > { %2674 = vbcast.lane.b32.xlu0 %v17449_v17, 256  ;;  %v13055_v31 = vpop.permute.xlu1 %2433  ;;  %v13065_v59 = vrot.slane %v17451_v2, %v17437_v3  ;;  %v3618_v19 = vmul.f32 %v17368_v50, %v3362_v51  ;;  %v13083_v35 = vrot.slane %v6180_v5, %v17437_v3  ;;  %v13086_v2 = vrot.slane %v6181_v9, %v17437_v3 }
 0x2e0   : > { %v2430_v46 = vpop.permute.xlu0 %2429  ;;  %v13071_v13 = vrot.slane %v17452_v40, %v17437_v3  ;;  %v7812_v38 = vcombine.low %v12865_v45, %v3619_v16  ;;  %v7813_v10 = vcombine.high %v12865_v45, %v3619_v16 }
 0x2e1   : > { %2686 = vbcast.lane.b32.xlu1 %v17449_v17, 280  ;;  %v7268_v18 = vcombine.low %v12868_v60, %v3618_v19  ;;  %v7269_v51 = vcombine.high %v12868_v60, %v3618_v19  ;;  %v17456_v19 = vcombine.low %v17442_v58, %v12917_v20 }
 0x2e2   : > { %17453 = vst [vmem:[#allocation139_spill] sm:$0xff] %v13071_v13  ;;  %v13111_v9 = vrot.slane %v7812_v38, %v17437_v3  ;;  %v13114_v40 = vrot.slane %v7813_v10, %v17437_v3  ;;  %v17457_v38 = vcombine.high %v17442_v58, %v12917_v20 }
 0x2e3   : > { %2682 = vbcast.lane.b32.xlu0 %v17449_v17, 272  ;;  %v2442_v34 = vpop.permute.xlu1 %2441  ;;  %v13117_v5 = vrot.slane %v7268_v18, %v17437_v3  ;;  %v13120_v1 = vrot.slane %v7269_v51, %v17437_v3  ;;  %v13127_v60 = vrot.slane %v17456_v19, %v17437_v3  ;;  %v17458_v19 = vld [vmem:[#allocation26_spill] sm:$0xff] }
 0x2e4   : > { %v2438_v52 = vpop.permute.xlu0 %2437  ;;  %17454 = vst [vmem:[#allocation140_spill] sm:$0xff] %v13111_v9  ;;  %17455 = vst [vmem:[#allocation142_spill] sm:$0xff] %v13114_v40  ;;  %v13133_v10 = vrot.slane %v17457_v38, %v17437_v3  ;;  %v17459_v38 = vld [vmem:[#allocation36_spill] sm:$0xff] }
 0x2e5   : > { %2694 = vbcast.lane.b32.xlu1 %v17449_v17, 296  ;;  %v3365_v57 = vmul.f32 %v17459_v38, %v13055_v31  ;;  %v3364_v42 = vmul.f32 %v17459_v38, %v2430_v46  ;;  %v3367_v32 = vmul.f32 %v17459_v38, %v2442_v34  ;;  %v3366_v27 = vmul.f32 %v17459_v38, %v2438_v52  ;;  %v17464_v9 = vld [vmem:[#allocation32_spill] sm:$0xff] }
 0x2e6   : > { %v17460_v31 = vcombine.low %v12899_v55, %v12977_v36  ;;  %v17462_v52 = vcombine.high %v12899_v55, %v12977_v36 }
 0x2e7   : > { %2690 = vbcast.lane.b32.xlu0 %v17449_v17, 288  ;;  %v2450_v45 = vpop.permute.xlu1 %2449 }
 0x2e8   : > { %v2446_v28 = vpop.permute.xlu0 %2445  ;;  %v3369_v24 = vmul.f32 %v17459_v38, %v2450_v45  ;;  %v13183_v46 = vrot.slane %v17460_v31, %v17246_v26  ;;  %v13189_v34 = vrot.slane %v17462_v52, %v17246_v26  ;;  %v13195_v45 = vmul.f32 %v10256_v53, %v3364_v42 }
 0x2e9   : > { %2702 = vbcast.lane.b32.xlu1 %v17449_v17, 312  ;;  %v3368_v15 = vmul.f32 %v17459_v38, %v2446_v28  ;;  %v13192_v28 = vmul.f32 %v10249_v33, %v3365_v57  ;;  %v17465_v57 = vcombine.low %v12902_v23, %v12980_v62  ;;  %v17467_v42 = vcombine.high %v12902_v23, %v12980_v62 }
 0x2ea   : > { %17461 = vst [vmem:[#allocation149_spill] sm:$0xff] %v13183_v46  ;;  %17463 = vst [vmem:[#allocation152_spill] sm:$0xff] %v13189_v34  ;;  %v17471_v23 = vcombine.high %v12875_v6, %v12967_v30  ;;  %v17473_v52 = vcombine.low %v12878_v4, %v12970_v22 }
 0x2eb   : > { %2698 = vbcast.lane.b32.xlu0 %v17449_v17, 304  ;;  %v2458_v16 = vpop.permute.xlu1 %2457  ;;  %v13211_v55 = vrot.slane %v17465_v57, %v17246_v26 }
 0x2ec   : > { %v2454_v51 = vpop.permute.xlu0 %2453  ;;  %v3371_v40 = vmul.f32 %v17459_v38, %v2458_v16  ;;  %v13198_v16 = vmul.f32 %v10281_v49, %v3367_v32  ;;  %v13217_v32 = vrot.slane %v17467_v42, %v17246_v26  ;;  %v13236_v62 = vrot.slane %v17471_v23, %v17246_v26 }
 0x2ed   : > { %2713 = vbcast.lane.b32.xlu1 %v17458_v19, 264  ;;  %v3370_v46 = vmul.f32 %v17459_v38, %v2454_v51  ;;  %17466 = vst [vmem:[#allocation22_spill] sm:$0xff] %v13211_v55  ;;  %v13226_v51 = vmul.f32 %v17215_v0, %v3369_v24  ;;  %v13229_v38 = vmul.f32 %v17430_v47, %v3368_v15 }
 0x2ee   : > { %17468 = vst [vmem:[#allocation33_spill] sm:$0xff] %v13217_v32  ;;  %17472 = vst [vmem:[#allocation161_spill] sm:$0xff] %v13236_v62  ;;  %v13242_v57 = vrot.slane %v17473_v52, %v17246_v26  ;;  %v13245_v24 = vmul.f32 %v10325_v21, %v3371_v40  ;;  %v17475_v15 = vcombine.high %v12878_v4, %v12970_v22  ;;  %v17481_v40 = vld [vmem:[#allocation38_spill] sm:$0xff] }
 0x2ef   : > { %2709 = vbcast.lane.b32.xlu0 %v17458_v19, 256  ;;  %v2469_v18 = vpop.permute.xlu1 %2468  ;;  %v17479_v23 = vcombine.high %v12937_v37, %v13028_v11  ;;  %v17482_v4 = vcombine.low %v12940_v7, %v13031_v14 }
 0x2f0   : > { %v2465_v41 = vpop.permute.xlu0 %2464  ;;  %17474 = vst [vmem:[#allocation162_spill] sm:$0xff] %v13242_v57 }
 0x2f1   : > { %2721 = vbcast.lane.b32.xlu1 %v17458_v19, 280  ;;  %v13263_v52 = vrot.slane %v17479_v23, %v17246_v26  ;;  %v13270_v22 = vrot.slane %v17482_v4, %v17246_v26  ;;  %v17488_v4 = vcombine.high %v12911_v48, %v13022_v8 }
 0x2f3   : > { %2717 = vbcast.lane.b32.xlu0 %v17458_v19, 272  ;;  %v13157_v20 = vpop.permute.xlu1 %2476  ;;  %17480 = vst [vmem:[#allocation135_spill] sm:$0xff] %v13263_v52  ;;  %17483 = vst [vmem:[#allocation26_spill] sm:$0xff] %v13270_v22 }
 0x2f4   : > { %v13159_v58 = vpop.permute.xlu0 %2472 }
 0x2f5   : > { %2729 = vbcast.lane.b32.xlu1 %v17458_v19, 296 }
 0x2f7   : > { %2725 = vbcast.lane.b32.xlu0 %v17458_v19, 288  ;;  %v13163_v17 = vpop.permute.xlu1 %2484 }
 0x2f8   : > { %v13170_v43 = vpop.permute.xlu0 %2480 }
 0x2f9   : > { %2737 = vbcast.lane.b32.xlu1 %v17458_v19, 312 }
 0x2fb   : > { %2733 = vbcast.lane.b32.xlu0 %v17458_v19, 304  ;;  %v13177_v13 = vpop.permute.xlu1 %2492  ;;  %v13201_v19 = vmul.f32 %v10286_v61, %v3366_v27  ;;  %v17469_v27 = vcombine.low %v12875_v6, %v12967_v30  ;;  %v17477_v30 = vcombine.low %v12937_v37, %v13028_v11  ;;  %v17486_v37 = vcombine.low %v12911_v48, %v13022_v8 }
 0x2fc   : > { %v17495_v8 = vcombine.low %v13011_v54, %v13083_v35 }
 0x2fd   : > { %v13203_v31 = vpop.permute.xlu0 %2488  ;;  %2748 = vbcast.lane.b32.xlu1 %v17464_v9, 264  ;;  %v13223_v36 = vrot.slane %v17469_v27, %v17246_v26  ;;  %v13251_v27 = vrot.slane %v17475_v15, %v17246_v26  ;;  %v13257_v6 = vrot.slane %v17477_v30, %v17246_v26  ;;  %v17484_v15 = vcombine.high %v12940_v7, %v13031_v14 }
 0x2fe   : > { %v13282_v11 = vrot.slane %v17486_v37, %v17246_v26  ;;  %v13293_v7 = vrot.slane %v17488_v4, %v17246_v26  ;;  %v17490_v14 = vcombine.low %v12914_v63, %v13025_v12  ;;  %v17492_v37 = vld [vmem:[#allocation37_spill] sm:$0xff]  ;;  %v13316_v4 = vrot.slane %v17495_v8, %v17246_v26 }
 0x2ff   : > { %17470 = vst [vmem:[#allocation155_spill] sm:$0xff] %v13223_v36  ;;  %2744 = vbcast.lane.b32.xlu0 %v17464_v9, 256  ;;  %v2504_v42 = vpop.permute.xlu1 %2503  ;;  %17476 = vst [vmem:[#allocation164_spill] sm:$0xff] %v13251_v27  ;;  %v13276_v30 = vrot.slane %v17484_v15, %v17246_v26 }
 0x300   : > { %17478 = vst [vmem:[#allocation23_spill] sm:$0xff] %v13257_v6  ;;  %v3381_v57 = vmul.f32 %v17481_v40, %v2504_v42  ;;  %17487 = vst [vmem:[#allocation32_spill] sm:$0xff] %v13282_v11  ;;  %v13285_v42 = vmul.f32 %v17368_v50, %v3370_v46  ;;  %v13299_v15 = vrot.slane %v17490_v14, %v17246_v26 }
 0x301   : > { %v2500_v62 = vpop.permute.xlu0 %2499  ;;  %17485 = vst [vmem:[#allocation36_spill] sm:$0xff] %v13276_v30  ;;  %2756 = vbcast.lane.b32.xlu1 %v17464_v9, 280  ;;  %17489 = vst [vmem:[#allocation38_spill] sm:$0xff] %v13293_v7  ;;  %v3373_v11 = vmul.f32 %v17492_v37, %v2469_v18  ;;  %v3372_v14 = vmul.f32 %v17492_v37, %v2465_v41 }
 0x302   : > { %v3380_v23 = vmul.f32 %v17481_v40, %v2500_v62  ;;  %17491 = vst [vmem:[#allocation167_spill] sm:$0xff] %v13299_v15  ;;  %v13303_v46 = vmul.f32 %v10249_v33, %v3381_v57  ;;  %v17493_v62 = vcombine.high %v12914_v63, %v13025_v12  ;;  %17496 = vst [vmem:[#allocation168_spill] sm:$0xff] %v13316_v4 }
 0x303   : > { %2752 = vbcast.lane.b32.xlu0 %v17464_v9, 272  ;;  %v2512_v57 = vpop.permute.xlu1 %2511  ;;  %v17497_v15 = vcombine.high %v13011_v54, %v13083_v35  ;;  %v17499_v63 = vcombine.low %v13017_v39, %v13086_v2  ;;  %v17501_v54 = vcombine.high %v13017_v39, %v13086_v2  ;;  %v13358_v39 = vmul.f32 %v10249_v33, %v3373_v11 }
 0x304   : > { %v13310_v48 = vrot.slane %v17493_v62, %v17246_v26  ;;  %v13320_v18 = vmul.f32 %v10256_v53, %v3380_v23  ;;  %v4564_v62 = vcombine.low %v13192_v28, %v13303_v46  ;;  %v4565_v41 = vcombine.high %v13192_v28, %v13303_v46 }
 0x305   : > { %v13326_v7 = vrot.slane %v17497_v15, %v17246_v26  ;;  %v13332_v12 = vrot.slane %v17499_v63, %v17246_v26  ;;  %v3383_v23 = vmul.f32 %v17481_v40, %v2512_v57  ;;  %v2508_v8 = vpop.permute.xlu0 %2507  ;;  %v13343_v35 = vrot.slane %v17501_v54, %v17246_v26  ;;  %2764 = vbcast.lane.b32.xlu1 %v17464_v9, 296 }
 0x306   : > { %17494 = vst [vmem:[#allocation37_spill] sm:$0xff] %v13310_v48  ;;  %v4020_v15 = vcombine.low %v13195_v45, %v13320_v18  ;;  %v17503_v28 = vcombine.low %v12947_v56, %v13077_v44  ;;  %v17505_v57 = vcombine.high %v12947_v56, %v13077_v44  ;;  %v17507_v54 = vcombine.low %v12950_v25, %v13080_v29 }
 0x307   : > { %17498 = vst [vmem:[#allocation169_spill] sm:$0xff] %v13326_v7  ;;  %17500 = vst [vmem:[#allocation170_spill] sm:$0xff] %v13332_v12  ;;  %v3382_v12 = vmul.f32 %v17481_v40, %v2508_v8  ;;  %v3639_v2 = vmul.f32 %v10281_v49, %v3383_v23  ;;  %2760 = vbcast.lane.b32.xlu0 %v17464_v9, 288  ;;  %v2520_v23 = vpop.permute.xlu1 %2519  ;;  %v17511_v56 = vcombine.low %v13127_v60, %v13117_v5 }
 0x308   : > { %17502 = vst [vmem:[#allocation171_spill] sm:$0xff] %v13343_v35  ;;  %v13355_v46 = vrot.slane %v17503_v28, %v17246_v26  ;;  %v13366_v8 = vrot.slane %v17505_v57, %v17246_v26  ;;  %v13372_v63 = vrot.slane %v17507_v54, %v17246_v26  ;;  %v13375_v28 = vmul.f32 %v10256_v53, %v3372_v14 }
 0x309   : > { %v3638_v11 = vmul.f32 %v10286_v61, %v3382_v12  ;;  %v13388_v44 = vrot.slane %v17511_v56, %v17246_v26  ;;  %v5652_v57 = vcombine.low %v13198_v16, %v3639_v2  ;;  %v5653_v14 = vcombine.high %v13198_v16, %v3639_v2  ;;  %v2516_v12 = vpop.permute.xlu0 %2515  ;;  %2772 = vbcast.lane.b32.xlu1 %v17464_v9, 312 }
 0x30a   : > { %17504 = vst [vmem:[#allocation172_spill] sm:$0xff] %v13355_v46  ;;  %17506 = vst [vmem:[#allocation173_spill] sm:$0xff] %v13366_v8  ;;  %v17509_v46 = vcombine.high %v12950_v25, %v13080_v29  ;;  %v3385_v54 = vmul.f32 %v17481_v40, %v2520_v23  ;;  %v3375_v29 = vmul.f32 %v17492_v37, %v13157_v20 }
 0x30b   : > { %17508 = vst [vmem:[#allocation174_spill] sm:$0xff] %v13372_v63  ;;  %17512 = vst [vmem:[#allocation176_spill] sm:$0xff] %v13388_v44  ;;  %v17513_v63 = vcombine.high %v13127_v60, %v13117_v5  ;;  %v5109_v56 = vcombine.high %v13201_v19, %v3638_v11  ;;  %v3384_v44 = vmul.f32 %v17481_v40, %v2516_v12  ;;  %2768 = vbcast.lane.b32.xlu0 %v17464_v9, 304 }
 0x30c   : > { %v13382_v35 = vrot.slane %v17509_v46, %v17246_v26  ;;  %v5108_v46 = vcombine.low %v13201_v19, %v3638_v11  ;;  %v3374_v16 = vmul.f32 %v17492_v37, %v13159_v58  ;;  %v3377_v2 = vmul.f32 %v17492_v37, %v13163_v17  ;;  %v2528_v11 = vpop.permute.xlu1 %2527 }
 0x30d   : > { %v13397_v25 = vrot.slane %v17513_v63, %v17246_v26  ;;  %v3376_v5 = vmul.f32 %v17492_v37, %v13170_v43  ;;  %v3641_v60 = vmul.f32 %v17215_v0, %v3385_v54  ;;  %v3379_v20 = vmul.f32 %v17492_v37, %v13177_v13  ;;  %v2524_v54 = vpop.permute.xlu0 %2523 }
 0x30e   : > { %17510 = vst [vmem:[#allocation175_spill] sm:$0xff] %v13382_v35  ;;  %v3378_v19 = vmul.f32 %v17492_v37, %v13203_v31  ;;  %v3640_v63 = vmul.f32 %v17430_v47, %v3384_v44  ;;  %v17515_v58 = vcombine.low %v13133_v10, %v13120_v1  ;;  %v3387_v9 = vmul.f32 %v17481_v40, %v2528_v11  ;;  %v17520_v11 = vld [vmem:[#allocation39_spill] sm:$0xff] }
 0x30f   : > { %17514 = vst [vmem:[#allocation177_spill] sm:$0xff] %v13397_v25  ;;  %v6740_v43 = vcombine.low %v13226_v51, %v3641_v60  ;;  %v6741_v23 = vcombine.high %v13226_v51, %v3641_v60  ;;  %v17517_v13 = vcombine.high %v13133_v10, %v13120_v1  ;;  %v13434_v37 = vmul.f32 %v10281_v49, %v3375_v29 }
 0x310   : > { %v13422_v17 = vrot.slane %v17515_v58, %v17246_v26  ;;  %v6196_v44 = vcombine.low %v13229_v38, %v3640_v63  ;;  %v6197_v12 = vcombine.high %v13229_v38, %v3640_v63  ;;  %v3386_v58 = vmul.f32 %v17481_v40, %v2524_v54 }
 0x311   : > { %v13431_v31 = vrot.slane %v17517_v13, %v17246_v26  ;;  %v13441_v51 = vmul.f32 %v10286_v61, %v3374_v16  ;;  %v13444_v60 = vmul.f32 %v17215_v0, %v3377_v2  ;;  %v13447_v1 = vmul.f32 %v17430_v47, %v3376_v5  ;;  %v2539_v2 = vpop.permute.xlu1 %2538 }
 0x312   : > { %17516 = vst [vmem:[#allocation178_spill] sm:$0xff] %v13422_v17  ;;  %v17519_v17 = vld [vmem:[#allocation34_spill] sm:$0xff]  ;;  %v13450_v10 = vmul.f32 %v10325_v21, %v3387_v9  ;;  %v13454_v38 = vmul.f32 %v10325_v21, %v3379_v20  ;;  %v13457_v40 = vmul.f32 %v17368_v50, %v3378_v19  ;;  %v13460_v29 = vrot.slane %v4564_v62, %v17437_v3  ;;  %v2535_v19 = vpop.permute.xlu0 %2534 }
 0x313   : > { %17518 = vst [vmem:[#allocation179_spill] sm:$0xff] %v13431_v31  ;;  %2783 = vbcast.lane.b32.xlu1 %v17519_v17, 264  ;;  %2779 = vbcast.lane.b32.xlu0 %v17519_v17, 256  ;;  %v13463_v16 = vmul.f32 %v17368_v50, %v3386_v58  ;;  %v13466_v5 = vrot.slane %v4565_v41, %v17437_v3 }
 0x314   : > { %v7828_v63 = vcombine.low %v13245_v24, %v13450_v10  ;;  %v7829_v20 = vcombine.high %v13245_v24, %v13450_v10  ;;  %v3389_v9 = vmul.f32 %v17520_v11, %v2539_v2  ;;  %v13474_v54 = vrot.slane %v4020_v15, %v17437_v3 }
 0x315   : > { %v7284_v62 = vcombine.low %v13285_v42, %v13463_v16  ;;  %v3388_v41 = vmul.f32 %v17520_v11, %v2535_v19  ;;  %v17521_v24 = vcombine.high %v13195_v45, %v13320_v18  ;;  %v13489_v10 = vrot.slane %v5652_v57, %v17437_v3  ;;  %v2547_v57 = vpop.permute.xlu1 %2546 }
 0x316   : > { %v13492_v15 = vrot.slane %v5653_v14, %v17437_v3  ;;  %v3645_v2 = vmul.f32 %v10249_v33, %v3389_v9  ;;  %v13497_v19 = vrot.slane %v5108_v46, %v17437_v3  ;;  %v13500_v13 = vrot.slane %v5109_v56, %v17437_v3  ;;  %v2543_v46 = vpop.permute.xlu0 %2542 }
 0x317   : > { %2791 = vbcast.lane.b32.xlu1 %v17519_v17, 280  ;;  %v13486_v58 = vrot.slane %v17521_v24, %v17437_v3  ;;  %2787 = vbcast.lane.b32.xlu0 %v17519_v17, 272  ;;  %v13503_v45 = vrot.slane %v6740_v43, %v17437_v3  ;;  %v3644_v18 = vmul.f32 %v10256_v53, %v3388_v41 }
 0x318   : > { %17522 = vst [vmem:[#allocation34_spill] sm:$0xff] %v13492_v15  ;;  %v13507_v24 = vrot.slane %v6741_v23, %v17437_v3  ;;  %v4580_v14 = vcombine.low %v13358_v39, %v3645_v2  ;;  %v4581_v9 = vcombine.high %v13358_v39, %v3645_v2  ;;  %v3391_v31 = vmul.f32 %v17520_v11, %v2547_v57 }
 0x319   : > { %v13513_v25 = vrot.slane %v6196_v44, %v17437_v3  ;;  %v4036_v56 = vcombine.low %v13375_v28, %v3644_v18  ;;  %v4037_v43 = vcombine.high %v13375_v28, %v3644_v18  ;;  %v3390_v41 = vmul.f32 %v17520_v11, %v2543_v46  ;;  %v2555_v57 = vpop.permute.xlu1 %2554 }
 0x31a   : > { %v13520_v23 = vrot.slane %v6197_v12, %v17437_v3  ;;  %v13523_v35 = vrot.slane %v4580_v14, %v17437_v3  ;;  %v13526_v39 = vrot.slane %v4581_v9, %v17437_v3  ;;  %v3647_v44 = vmul.f32 %v10281_v49, %v3391_v31  ;;  %v2551_v46 = vpop.permute.xlu0 %2550 }
 0x31b   : > { %2799 = vbcast.lane.b32.xlu1 %v17519_v17, 296  ;;  %2795 = vbcast.lane.b32.xlu0 %v17519_v17, 288  ;;  %v13531_v2 = vrot.slane %v7828_v63, %v17437_v3  ;;  %v13534_v28 = vrot.slane %v4036_v56, %v17437_v3  ;;  %v13537_v18 = vrot.slane %v4037_v43, %v17437_v3 }
 0x31c   : > { %v3646_v12 = vmul.f32 %v10286_v61, %v3390_v41  ;;  %v5668_v9 = vcombine.low %v13434_v37, %v3647_v44  ;;  %v5669_v31 = vcombine.high %v13434_v37, %v3647_v44  ;;  %v13563_v43 = vrot.slane %v7829_v20, %v17437_v3 }
 0x31d   : > { %17523 = vst [vmem:[#allocation39_spill] sm:$0xff] %v13531_v2  ;;  %v4084_v56 = vcombine.low %v13474_v54, %v13534_v28  ;;  %v13566_v41 = vrot.slane %v7284_v62, %v17437_v3  ;;  %v3393_v14 = vmul.f32 %v17520_v11, %v2555_v57  ;;  %v3392_v7 = vmul.f32 %v17520_v11, %v2551_v46  ;;  %v2563_v4 = vpop.permute.xlu1 %2562 }
 0x31e   : > { %v5124_v63 = vcombine.low %v13441_v51, %v3646_v12  ;;  %v5125_v8 = vcombine.high %v13441_v51, %v3646_v12  ;;  %17524 = vst [vmem:[#allocation180_spill] sm:$0xff] %v13563_v43  ;;  %v13571_v48 = vrot.slane %v5668_v9, %v17437_v3  ;;  %v13574_v37 = vrot.slane %v5669_v31, %v17437_v3  ;;  %v2559_v20 = vpop.permute.xlu0 %2558  ;;  %v17526_v9 = vld [vmem:[#allocation35_spill] sm:$0xff] }
 0x31f   : > { %2807 = vbcast.lane.b32.xlu1 %v17519_v17, 312  ;;  %2803 = vbcast.lane.b32.xlu0 %v17519_v17, 304  ;;  %v3649_v62 = vmul.f32 %v17215_v0, %v3393_v14  ;;  %v3648_v44 = vmul.f32 %v17430_v47, %v3392_v7  ;;  %v3395_v12 = vmul.f32 %v17520_v11, %v2563_v4 }
 0x320   : > { %17525 = vst [vmem:[#allocation181_spill] sm:$0xff] %v13574_v37  ;;  %v13577_v51 = vrot.slane %v5124_v63, %v17437_v3  ;;  %v13580_v17 = vrot.slane %v5125_v8, %v17437_v3  ;;  %v3394_v57 = vmul.f32 %v17520_v11, %v2559_v20  ;;  %v17527_v4 = vcombine.high %v13285_v42, %v13463_v16 }
 0x321   : > { %v2574_v20 = vpop.permute.xlu1 %2573  ;;  %v6756_v8 = vcombine.low %v13444_v60, %v3649_v62  ;;  %v6757_v63 = vcombine.high %v13444_v60, %v3649_v62  ;;  %v6212_v14 = vcombine.low %v13447_v1, %v3648_v44  ;;  %v6213_v31 = vcombine.high %v13447_v1, %v3648_v44 }
 0x322   : > { %v2570_v37 = vpop.permute.xlu0 %2569  ;;  %v13612_v7 = vrot.slane %v17527_v4, %v17437_v3  ;;  %v3651_v11 = vmul.f32 %v10325_v21, %v3395_v12  ;;  %v3650_v46 = vmul.f32 %v17368_v50, %v3394_v57  ;;  %v13618_v15 = vrot.slane %v4084_v56, %v17246_v26 }
 0x323   : > { %2818 = vbcast.lane.b32.xlu1 %v17526_v9, 264  ;;  %2814 = vbcast.lane.b32.xlu0 %v17526_v9, 256  ;;  %v13621_v60 = vrot.slane %v6756_v8, %v17437_v3  ;;  %v13624_v1 = vrot.slane %v6757_v63, %v17437_v3  ;;  %v13627_v62 = vrot.slane %v6212_v14, %v17437_v3 }
 0x324   : > { %17528 = vst [vmem:[#allocation35_spill] sm:$0xff] %v13618_v15  ;;  %v13630_v42 = vrot.slane %v6213_v31, %v17437_v3  ;;  %v7844_v16 = vcombine.low %v13454_v38, %v3651_v11  ;;  %v7845_v44 = vcombine.high %v13454_v38, %v3651_v11  ;;  %v7300_v56 = vcombine.low %v13457_v40, %v3650_v46  ;;  %v17532_v11 = vld [vmem:[#allocation40_spill] sm:$0xff] }
 0x325   : > { %17529 = vst [vmem:[#allocation182_spill] sm:$0xff] %v13624_v1  ;;  %v7301_v12 = vcombine.high %v13457_v40, %v3650_v46  ;;  %v2582_v57 = vpop.permute.xlu1 %2581  ;;  %v3397_v40 = vmul.f32 %v17532_v11, %v2574_v20  ;;  %v3396_v46 = vmul.f32 %v17532_v11, %v2570_v37  ;;  %v17535_v37 = vld [vmem:[#allocation140_spill] sm:$0xff] }
 0x326   : > { %v2578_v4 = vpop.permute.xlu0 %2577  ;;  %v13655_v31 = vrot.slane %v7844_v16, %v17437_v3  ;;  %v13658_v14 = vrot.slane %v7845_v44, %v17437_v3  ;;  %v13661_v8 = vrot.slane %v7300_v56, %v17437_v3  ;;  %v3399_v38 = vmul.f32 %v17532_v11, %v2582_v57 }
 0x327   : > { %2826 = vbcast.lane.b32.xlu1 %v17526_v9, 280  ;;  %2822 = vbcast.lane.b32.xlu0 %v17526_v9, 272  ;;  %v13664_v63 = vrot.slane %v7301_v12, %v17437_v3  ;;  %v17533_v16 = vcombine.high %v13474_v54, %v13534_v28  ;;  %v17536_v20 = vcombine.low %v13065_v59, %v17535_v37  ;;  %v17540_v28 = vld [vmem:[#allocation139_spill] sm:$0xff]  ;;  %v17541_v3 = vld [vmem:[#allocation142_spill] sm:$0xff] }
 0x328   : > { %17530 = vst [vmem:[#allocation183_spill] sm:$0xff] %v13655_v31  ;;  %17531 = vst [vmem:[#allocation184_spill] sm:$0xff] %v13658_v14  ;;  %v17538_v56 = vcombine.high %v13065_v59, %v17535_v37  ;;  %v3398_v59 = vmul.f32 %v17532_v11, %v2578_v4  ;;  %v17564_v4 = vcombine.low %v13466_v5, %v13526_v39 }
 0x329   : > { %v2590_v1 = vpop.permute.xlu1 %2589  ;;  %v13674_v44 = vrot.slane %v17533_v16, %v17246_v26  ;;  %v13698_v12 = vrot.slane %v17536_v20, %v17246_v26  ;;  %v17542_v16 = vcombine.low %v17540_v28, %v17541_v3 }
 0x32a   : > { %v2586_v57 = vpop.permute.xlu0 %2585  ;;  %v13704_v54 = vrot.slane %v17538_v56, %v17246_v26  ;;  %v17547_v56 = vcombine.low %v13486_v58, %v13537_v18 }
 0x32b   : > { %2834 = vbcast.lane.b32.xlu1 %v17526_v9, 296  ;;  %2830 = vbcast.lane.b32.xlu0 %v17526_v9, 288  ;;  %17534 = vst [vmem:[#allocation40_spill] sm:$0xff] %v13674_v44  ;;  %17537 = vst [vmem:[#allocation140_spill] sm:$0xff] %v13698_v12  ;;  %v13710_v14 = vrot.slane %v17542_v16, %v17246_v26  ;;  %v17546_v12 = vld [vmem:[#allocation149_spill] sm:$0xff]  ;;  %v17549_v16 = vcombine.high %v13486_v58, %v13537_v18  ;;  %v17556_v58 = vld [vmem:[#allocation59_spill] sm:$0xff] }
 0x32c   : > { %17539 = vst [vmem:[#allocation185_spill] sm:$0xff] %v13704_v54  ;;  %v4117_v31 = vcombine.high %v17546_v12, %v13618_v15  ;;  %v13726_v37 = vrot.slane %v17547_v56, %v17246_v26  ;;  %v17553_v56 = vcombine.low %v13460_v29, %v13523_v35  ;;  %v13748_v54 = vmul.f32 %v10281_v49, %v3399_v38  ;;  %v17557_v18 = vld [vmem:[#allocation6_spill] sm:$0xff] }
 0x32d   : > { %17543 = vst [vmem:[#allocation139_spill] sm:$0xff] %v13710_v14  ;;  %v2598_v20 = vpop.permute.xlu1 %2597  ;;  %v3401_v38 = vmul.f32 %v17532_v11, %v2590_v1  ;;  %v3400_v1 = vmul.f32 %v17532_v11, %v2586_v57 }
 0x32e   : > { %17548 = vst [vmem:[#allocation186_spill] sm:$0xff] %v13726_v37  ;;  %v13745_v14 = vrot.slane %v17553_v56, %v17246_v26  ;;  %17555 = vst [vmem:[#allocation191_spill] sm:$0xff] %v13748_v54  ;;  %v17561_v54 = vld [vmem:[#allocation102_spill] sm:$0xff] }
 0x32f   : > { %2842 = vbcast.lane.b32.xlu1 %v17526_v9, 312  ;;  %2838 = vbcast.lane.b32.xlu0 %v17526_v9, 304  ;;  %v17544_v9 = vcombine.high %v17540_v28, %v17541_v3  ;;  %v13732_v3 = vrot.slane %v17549_v16, %v17246_v26  ;;  %v13735_v28 = vmul.f32 %v10249_v33, %v3397_v40 }
 0x330   : > { %17554 = vst [vmem:[#allocation190_spill] sm:$0xff] %v13745_v14  ;;  %v17558_v40 = vcombine.high %v17556_v58, %v17557_v18  ;;  %v17559_v16 = vcombine.high %v13460_v29, %v13523_v35  ;;  %v17566_v35 = vcombine.high %v13466_v5, %v13526_v39  ;;  %v3403_v5 = vmul.f32 %v17532_v11, %v2598_v20 }
 0x331   : > { %v13716_v43 = vrot.slane %v17544_v9, %v17246_v26  ;;  %17550 = vst [vmem:[#allocation187_spill] sm:$0xff] %v13732_v3  ;;  %17551 = vst [vmem:[#allocation188_spill] sm:$0xff] %v13735_v28  ;;  %v13738_v9 = vmul.f32 %v10256_v53, %v3396_v46  ;;  %v13775_v46 = vrot.slane %v17564_v4, %v17246_v26 }
 0x332   : > { %v13762_v56 = vrot.slane %v17559_v16, %v17246_v26  ;;  %v13781_v29 = vrot.slane %v17566_v35, %v17246_v26  ;;  %v2609_v16 = vpop.permute.xlu1 %2608  ;;  %v17571_v4 = vcombine.high %v13497_v19, %v13577_v51  ;;  %v17576_v20 = vcombine.high %v13500_v13, %v13580_v17 }
 0x333   : > { %17545 = vst [vmem:[#allocation142_spill] sm:$0xff] %v13716_v43  ;;  %17552 = vst [vmem:[#allocation189_spill] sm:$0xff] %v13738_v9  ;;  %v2594_v43 = vpop.permute.xlu0 %2593  ;;  %8074 = vrot.lane.b32.xlu1 %v17558_v40, %s9539_s20  ;;  %v17562_v9 = vld [vmem:[#allocation19_spill] sm:$0xff]  ;;  %v17569_v40 = vcombine.low %v13497_v19, %v13577_v51  ;;  %v17585_v51 = vld [vmem:[#allocation34_spill] sm:$0xff] }
 0x334   : > { %17560 = vst [vmem:[#allocation192_spill] sm:$0xff] %v13762_v56  ;;  %v17563_v28 = vcombine.high %v17561_v54, %v17562_v9  ;;  %17565 = vst [vmem:[#allocation193_spill] sm:$0xff] %v13775_v46  ;;  %v13796_v18 = vrot.slane %v17571_v4, %v17246_v26  ;;  %v3402_v2 = vmul.f32 %v17532_v11, %v2594_v43  ;;  %v17628_v56 = vld [vmem:[#allocation106_spill] sm:$0xff] }
 0x335   : > { %17567 = vst [vmem:[#allocation194_spill] sm:$0xff] %v13781_v29  ;;  %v13790_v54 = vrot.slane %v17569_v40, %v17246_v26  ;;  %v17574_v40 = vcombine.low %v13500_v13, %v13580_v17  ;;  %v13818_v4 = vrot.slane %v17576_v20, %v17246_v26  ;;  %v13821_v9 = vmul.f32 %v10286_v61, %v3398_v59 }
 0x336   : > { %8072 = vrot.lane.b32.xlu0 %v17563_v28, %s9539_s20  ;;  %17572 = vst [vmem:[#allocation196_spill] sm:$0xff] %v13796_v18  ;;  %v17579_v11 = vcombine.low %v13489_v10, %v13571_v48  ;;  %v17581_v13 = vcombine.high %v13489_v10, %v13571_v48  ;;  %v13839_v59 = vmul.f32 %v17215_v0, %v3401_v38  ;;  %v2617_v20 = vpop.permute.xlu1 %2616  ;;  %v17646_v18 = vld [vmem:[#allocation183_spill] sm:$0xff] }
 0x337   : > { %17570 = vst [vmem:[#allocation195_spill] sm:$0xff] %v13790_v54  ;;  %v2605_v39 = vpop.permute.xlu0 %2604  ;;  %v13807_v58 = vrot.slane %v17574_v40, %v17246_v26  ;;  %17577 = vst [vmem:[#allocation198_spill] sm:$0xff] %v13818_v4  ;;  %v13853_v48 = vmul.f32 %v10325_v21, %v3403_v5  ;;  %v13862_v43 = vmul.f32 %v17368_v50, %v3402_v2  ;;  %v17596_v21 = vld [vmem:[#allocation43_spill] sm:$0xff] }
 0x338   : > { %17578 = vst [vmem:[#allocation199_spill] sm:$0xff] %v13821_v9  ;;  %v13830_v40 = vrot.slane %v17579_v11, %v17246_v26  ;;  %v13836_v17 = vrot.slane %v17581_v13, %v17246_v26  ;;  %17583 = vst [vmem:[#allocation202_spill] sm:$0xff] %v13839_v59  ;;  %v17586_v11 = vld [vmem:[#allocation181_spill] sm:$0xff]  ;;  %v17598_v59 = vld [vmem:[#allocation132_spill] sm:$0xff]  ;;  %v17600_v2 = vcombine.low %v13513_v25, %v13627_v62 }
 0x339   : > { %17575 = vst [vmem:[#allocation197_spill] sm:$0xff] %v13807_v58  ;;  %v17587_v19 = vcombine.low %v17585_v51, %v17586_v11  ;;  %17589 = vst [vmem:[#allocation181_spill] sm:$0xff] %v13853_v48  ;;  %v17594_v5 = vcombine.high %v17585_v51, %v17586_v11  ;;  %v17602_v11 = vcombine.high %v13513_v25, %v13627_v62  ;;  %v17638_v58 = vld [vmem:[#allocation44_spill] sm:$0xff]  ;;  %v17699_v4 = vld [vmem:[#allocation143_spill] sm:$0xff] }
 0x33a   : > { %8076 = vrot.lane.b32.xlu0 %v4117_v31, %s9539_s20  ;;  %17580 = vst [vmem:[#allocation200_spill] sm:$0xff] %v13830_v40  ;;  %17582 = vst [vmem:[#allocation201_spill] sm:$0xff] %v13836_v17  ;;  %v13842_v31 = vmul.f32 %v17430_v47, %v3400_v1  ;;  %v17597_v47 = vld [vmem:[#allocation10_spill] sm:$0xff]  ;;  %v2625_v13 = vpop.permute.xlu1 %2624  ;;  %v3407_v12 = vmul.f32 %v17596_v21, %v2617_v20  ;;  %v17653_v17 = vld [vmem:[#allocation184_spill] sm:$0xff] }
 0x33b   : > { %v13850_v35 = vrot.slane %v17587_v19, %v17246_v26  ;;  %v2613_v10 = vpop.permute.xlu0 %2612  ;;  %17592 = vst [vmem:[#allocation204_spill] sm:$0xff] %v13862_v43  ;;  %v13870_v48 = vrot.slane %v17594_v5, %v17246_v26  ;;  %v17599_v15 = vcombine.high %v17597_v47, %v17598_v59  ;;  %v13883_v19 = vrot.slane %v17600_v2, %v17246_v26  ;;  %v17629_v43 = vld [vmem:[#allocation136_spill] sm:$0xff] }
 0x33c   : > { %17584 = vst [vmem:[#allocation203_spill] sm:$0xff] %v13842_v31  ;;  %v3405_v31 = vmul.f32 %v17596_v21, %v2609_v16  ;;  %v13891_v5 = vrot.slane %v17602_v11, %v17246_v26  ;;  %v3404_v16 = vmul.f32 %v17596_v21, %v2605_v39  ;;  %v17605_v2 = vcombine.low %v13520_v23, %v13630_v42 }
 0x33d   : > { %17588 = vst [vmem:[#allocation34_spill] sm:$0xff] %v13850_v35  ;;  %17595 = vst [vmem:[#allocation205_spill] sm:$0xff] %v13870_v48  ;;  %v3406_v47 = vmul.f32 %v17596_v21, %v2613_v10  ;;  %v17612_v59 = vcombine.high %v13189_v34, %v13674_v44  ;;  %v17613_v10 = vcombine.low %v13503_v45, %v13621_v60  ;;  %v17618_v44 = vld [vmem:[#allocation182_spill] sm:$0xff]  ;;  %v17656_v35 = vld [vmem:[#allocation188_spill] sm:$0xff] }
 0x33e   : > { %8088 = vrot.lane.b32.xlu0 %v17599_v15, %s9539_s20  ;;  %17601 = vst [vmem:[#allocation43_spill] sm:$0xff] %v13883_v19  ;;  %17603 = vst [vmem:[#allocation206_spill] sm:$0xff] %v13891_v5  ;;  %v13902_v51 = vrot.slane %v17605_v2, %v17246_v26  ;;  %v17610_v2 = vcombine.high %v13520_v23, %v13630_v42  ;;  %v13923_v50 = vmul.f32 %v10249_v33, %v3405_v31  ;;  %v2633_v11 = vpop.permute.xlu1 %2632  ;;  %v17671_v19 = vld [vmem:[#allocation47_spill] sm:$0xff] }
 0x33f   : > { %v2621_v25 = vpop.permute.xlu0 %2620  ;;  %v13933_v32 = vrot.slane %v17613_v10, %v17246_v26  ;;  %v17615_v42 = vcombine.high %v13503_v45, %v13621_v60  ;;  %v17619_v23 = vcombine.low %v13507_v24, %v17618_v44  ;;  %v13957_v45 = vmul.f32 %v10281_v49, %v3407_v12  ;;  %v17678_v5 = vld [vmem:[#allocation202_spill] sm:$0xff] }
 0x340   : > { %17606 = vst [vmem:[#allocation207_spill] sm:$0xff] %v13902_v51  ;;  %v13918_v20 = vrot.slane %v17610_v2, %v17246_v26  ;;  %v13944_v2 = vmul.f32 %v10256_v53, %v3404_v16  ;;  %v13966_v10 = vmul.f32 %v10286_v61, %v3406_v47  ;;  %v17626_v12 = vcombine.high %v13507_v24, %v17618_v44 }
 0x341   : > { %17614 = vst [vmem:[#allocation209_spill] sm:$0xff] %v13933_v32  ;;  %v13941_v31 = vrot.slane %v17615_v42, %v17246_v26  ;;  %v13954_v34 = vrot.slane %v17619_v23, %v17246_v26  ;;  %17621 = vst [vmem:[#allocation211_spill] sm:$0xff] %v13957_v45  ;;  %v3409_v57 = vmul.f32 %v17596_v21, %v2625_v13 }
 0x342   : > { %17611 = vst [vmem:[#allocation208_spill] sm:$0xff] %v13918_v20  ;;  %8092 = vrot.lane.b32.xlu0 %v17612_v59, %s9539_s20  ;;  %17624 = vst [vmem:[#allocation212_spill] sm:$0xff] %v13966_v10  ;;  %v13974_v27 = vrot.slane %v17626_v12, %v17246_v26  ;;  %v17630_v54 = vcombine.high %v17628_v56, %v17629_v43  ;;  %v17631_v47 = vcombine.low %v13566_v41, %v13661_v8  ;;  %v2644_v42 = vpop.permute.xlu1 %2643  ;;  %v17685_v46 = vld [vmem:[#allocation204_spill] sm:$0xff] }
 0x343   : > { %17616 = vst [vmem:[#allocation210_spill] sm:$0xff] %v13941_v31  ;;  %17620 = vst [vmem:[#allocation182_spill] sm:$0xff] %v13954_v34  ;;  %v2629_v60 = vpop.permute.xlu0 %2628  ;;  %v17633_v44 = vcombine.high %v13566_v41, %v13661_v8  ;;  %v3408_v13 = vmul.f32 %v17596_v21, %v2621_v25  ;;  %v3413_v22 = vmul.f32 %v17638_v58, %v2644_v42 }
 0x344   : > { %17627 = vst [vmem:[#allocation213_spill] sm:$0xff] %v13974_v27  ;;  %v13987_v23 = vrot.slane %v17631_v47, %v17246_v26  ;;  %v17636_v47 = vcombine.low %v13612_v7, %v13664_v63  ;;  %v17644_v43 = vcombine.high %v13211_v55, %v13726_v37  ;;  %v17658_v37 = vld [vmem:[#allocation189_spill] sm:$0xff]  ;;  %v3411_v28 = vmul.f32 %v17596_v21, %v2633_v11 }
 0x345   : > { %v13995_v12 = vrot.slane %v17633_v44, %v17246_v26  ;;  %v3669_v52 = vmul.f32 %v10249_v33, %v3413_v22  ;;  %v3410_v10 = vmul.f32 %v17596_v21, %v2629_v60  ;;  %v17667_v60 = vld [vmem:[#allocation191_spill] sm:$0xff] }
 0x346   : > { %8104 = vrot.lane.b32.xlu0 %v17630_v54, %s9539_s20  ;;  %17632 = vst [vmem:[#allocation214_spill] sm:$0xff] %v13987_v23  ;;  %v14006_v24 = vrot.slane %v17636_v47, %v17246_v26  ;;  %v17642_v47 = vcombine.high %v13612_v7, %v13664_v63  ;;  %v2652_v44 = vpop.permute.xlu1 %2651 }
 0x347   : > { %17634 = vst [vmem:[#allocation215_spill] sm:$0xff] %v13995_v12  ;;  %v2640_v41 = vpop.permute.xlu0 %2639  ;;  %v4668_v9 = vcombine.low %v17656_v35, %v3669_v52 }
 0x348   : > { %17637 = vst [vmem:[#allocation216_spill] sm:$0xff] %v14006_v24  ;;  %v3412_v56 = vmul.f32 %v17638_v58, %v2640_v41  ;;  %v14022_v42 = vrot.slane %v17642_v47, %v17246_v26  ;;  %v17645_v41 = vld [vmem:[#allocation39_spill] sm:$0xff] }
 0x349   : > { %v17647_v30 = vcombine.low %v17645_v41, %v17646_v18  ;;  %v17649_v63 = vcombine.high %v17645_v41, %v17646_v18  ;;  %v4669_v18 = vcombine.high %v17656_v35, %v3669_v52  ;;  %v3415_v41 = vmul.f32 %v17638_v58, %v2652_v44  ;;  %v17660_v35 = vld [vmem:[#allocation15_spill] sm:$0xff]  ;;  %v17661_v44 = vld [vmem:[#allocation137_spill] sm:$0xff]  ;;  %v17692_v38 = vld [vmem:[#allocation212_spill] sm:$0xff] }
 0x34a   : > { %17643 = vst [vmem:[#allocation44_spill] sm:$0xff] %v14022_v42  ;;  %8108 = vrot.lane.b32.xlu0 %v17644_v43, %s9539_s20  ;;  %v3668_v22 = vmul.f32 %v10256_v53, %v3412_v56  ;;  %v17662_v45 = vcombine.high %v17660_v35, %v17661_v44 }
 0x34b   : > { %v14035_v40 = vrot.slane %v17647_v30, %v17246_v26  ;;  %v14043_v47 = vrot.slane %v17649_v63, %v17246_v26  ;;  %v17652_v30 = vld [vmem:[#allocation180_spill] sm:$0xff]  ;;  %v2648_v56 = vpop.permute.xlu0 %2647  ;;  %v3671_v52 = vmul.f32 %v10281_v49, %v3415_v41 }
 0x34c   : > { %v17654_v1 = vcombine.low %v17652_v30, %v17653_v17  ;;  %v4124_v6 = vcombine.low %v17658_v37, %v3668_v22  ;;  %v4125_v55 = vcombine.high %v17658_v37, %v3668_v22  ;;  %v3414_v48 = vmul.f32 %v17638_v58, %v2648_v56  ;;  %v17665_v22 = vld [vmem:[#allocation42_spill] sm:$0xff] }
 0x34d   : > { %17648 = vst [vmem:[#allocation39_spill] sm:$0xff] %v14035_v40  ;;  %17650 = vst [vmem:[#allocation183_spill] sm:$0xff] %v14043_v47  ;;  %v14076_v37 = vmul.f32 %v17215_v0, %v3409_v57  ;;  %v14079_v56 = vmul.f32 %v17665_v22, %v3408_v13  ;;  %v5756_v41 = vcombine.low %v17667_v60, %v3671_v52  ;;  %v17670_v13 = vld [vmem:[#allocation199_spill] sm:$0xff]  ;;  %v17693_v40 = vld [vmem:[#allocation161_spill] sm:$0xff] }
 0x34e   : > { %v14054_v7 = vrot.slane %v17654_v1, %v17246_v26  ;;  %8120 = vrot.lane.b32.xlu0 %v17662_v45, %s9539_s20  ;;  %v3670_v11 = vmul.f32 %v10286_v61, %v3414_v48  ;;  %v2660_v1 = vpop.permute.xlu1 %2659  ;;  %v5757_v44 = vcombine.high %v17667_v60, %v3671_v52  ;;  %v17668_v57 = vcombine.high %v17652_v30, %v17653_v17  ;;  %v17673_v17 = vld [vmem:[#allocation33_spill] sm:$0xff]  ;;  %v17674_v30 = vld [vmem:[#allocation187_spill] sm:$0xff] }
 0x34f   : > { %17664 = vst [vmem:[#allocation184_spill] sm:$0xff] %v14076_v37  ;;  %17666 = vst [vmem:[#allocation188_spill] sm:$0xff] %v14079_v56  ;;  %v3417_v45 = vmul.f32 %v17638_v58, %v2660_v1  ;;  %v2656_v35 = vpop.permute.xlu0 %2655  ;;  %v14099_v52 = vmul.f32 %v17671_v19, %v3411_v28  ;;  %v17672_v1 = vld [vmem:[#allocation50_spill] sm:$0xff] }
 0x350   : > { %17655 = vst [vmem:[#allocation180_spill] sm:$0xff] %v14054_v7  ;;  %v14091_v63 = vrot.slane %v17668_v57, %v17246_v26  ;;  %v5212_v56 = vcombine.low %v17670_v13, %v3670_v11  ;;  %v5213_v48 = vcombine.high %v17670_v13, %v3670_v11  ;;  %v3416_v37 = vmul.f32 %v17638_v58, %v2656_v35  ;;  %v17677_v35 = vld [vmem:[#allocation52_spill] sm:$0xff] }
 0x351   : > { %v14102_v60 = vmul.f32 %v17672_v1, %v3410_v10  ;;  %v3673_v62 = vmul.f32 %v17215_v0, %v3417_v45  ;;  %v17675_v57 = vcombine.high %v17673_v17, %v17674_v30  ;;  %v14112_v26 = vrot.slane %v4668_v9, %v17677_v35  ;;  %v17681_v9 = vld [vmem:[#allocation141_spill] sm:$0xff] }
 0x352   : > { %17669 = vst [vmem:[#allocation189_spill] sm:$0xff] %v14091_v63  ;;  %v14115_v21 = vrot.slane %v4669_v18, %v17677_v35  ;;  %v14118_v28 = vmul.f32 %v17665_v22, %v3416_v37  ;;  %v2668_v10 = vpop.permute.xlu1 %2667  ;;  %v17679_v18 = vld [vmem:[#allocation203_spill] sm:$0xff]  ;;  %v14135_v51 = vrot.slane %v4124_v6, %v17677_v35  ;;  %v14153_v6 = vrot.slane %v5757_v44, %v17677_v35  ;;  %v17683_v37 = vld [vmem:[#allocation181_spill] sm:$0xff] }
 0x353   : > { %8124 = vrot.lane.b32.xlu0 %v17675_v57, %s9539_s20  ;;  %v6844_v39 = vcombine.low %v17678_v5, %v3673_v62  ;;  %v6845_v57 = vcombine.high %v17678_v5, %v3673_v62  ;;  %v3419_v30 = vmul.f32 %v17638_v58, %v2668_v10  ;;  %v2664_v13 = vpop.permute.xlu0 %2663  ;;  %v14138_v5 = vrot.slane %v4125_v55, %v17677_v35  ;;  %v17680_v10 = vld [vmem:[#allocation107_spill] sm:$0xff] }
 0x354   : > { %v3418_v11 = vmul.f32 %v17638_v58, %v2664_v13  ;;  %v17682_v17 = vcombine.high %v17680_v10, %v17681_v9  ;;  %v14150_v13 = vrot.slane %v5756_v41, %v17677_v35  ;;  %v17684_v58 = vld [vmem:[#allocation46_spill] sm:$0xff]  ;;  %v14175_v34 = vrot.slane %v5212_v56, %v17677_v35 }
 0x355   : > { %v14141_v62 = vmul.f32 %v17671_v19, %v3419_v30  ;;  %v17686_v44 = vcombine.high %v13223_v36, %v13745_v14  ;;  %v14191_v32 = vrot.slane %v6845_v57, %v17677_v35  ;;  %v17697_v25 = vcombine.high %v17679_v18, %v14118_v28  ;;  %v17721_v36 = vld [vmem:[#allocation23_spill] sm:$0xff] }
 0x356   : > { %v14156_v55 = vmul.f32 %v17672_v1, %v3418_v11  ;;  %v2679_v45 = vpop.permute.xlu1 %2678  ;;  %v17702_v54 = vld [vmem:[#allocation188_spill] sm:$0xff] }
 0x357   : > { %8136 = vrot.lane.b32.xlu0 %v17682_v17, %s9539_s20  ;;  %v3421_v31 = vmul.f32 %v17684_v58, %v2679_v45  ;;  %v2675_v41 = vpop.permute.xlu0 %2674  ;;  %v14178_v45 = vrot.slane %v5213_v48, %v17677_v35 }
 0x358   : > { %v3420_v30 = vmul.f32 %v17684_v58, %v2675_v41  ;;  %v14188_v41 = vrot.slane %v6844_v39, %v17677_v35  ;;  %v17689_v39 = vld [vmem:[#allocation20_spill] sm:$0xff] }
 0x359   : > { %v3677_v17 = vmul.f32 %v10249_v33, %v3421_v31 }
 0x35a   : > { %v3676_v56 = vmul.f32 %v10256_v53, %v3420_v30  ;;  %v2687_v48 = vpop.permute.xlu1 %2686 }
 0x35b   : > { %8140 = vrot.lane.b32.xlu0 %v17686_v44, %s9539_s20  ;;  %v4684_v11 = vcombine.low %v13923_v50, %v3677_v17  ;;  %v4685_v23 = vcombine.high %v13923_v50, %v3677_v17  ;;  %v3423_v44 = vmul.f32 %v17684_v58, %v2687_v48  ;;  %v2683_v8 = vpop.permute.xlu0 %2682  ;;  %v17688_v48 = vld [vmem:[#allocation88_spill] sm:$0xff] }
 0x35c   : > { %v4140_v16 = vcombine.low %v13944_v2, %v3676_v56  ;;  %v4141_v57 = vcombine.high %v13944_v2, %v3676_v56  ;;  %v3422_v30 = vmul.f32 %v17684_v58, %v2683_v8  ;;  %v17690_v42 = vcombine.high %v17688_v48, %v17689_v39  ;;  %v17718_v39 = vld [vmem:[#allocation90_spill] sm:$0xff]  ;;  %v17719_v48 = vld [vmem:[#allocation145_spill] sm:$0xff] }
 0x35d   : > { %v14207_v31 = vrot.slane %v4684_v11, %v17677_v35  ;;  %v14210_v50 = vrot.slane %v4685_v23, %v17677_v35  ;;  %v3679_v17 = vmul.f32 %v10281_v49, %v3423_v44  ;;  %v17696_v44 = vcombine.low %v17679_v18, %v14118_v28 }
 0x35e   : > { %v14220_v8 = vrot.slane %v4140_v16, %v17677_v35  ;;  %v14223_v56 = vrot.slane %v4141_v57, %v17677_v35  ;;  %v3678_v11 = vmul.f32 %v10286_v61, %v3422_v30  ;;  %v2695_v23 = vpop.permute.xlu1 %2694  ;;  %v17694_v30 = vld [vmem:[#allocation192_spill] sm:$0xff]  ;;  %v17720_v20 = vcombine.high %v17718_v39, %v17719_v48  ;;  %v17726_v48 = vld [vmem:[#allocation14_spill] sm:$0xff] }
 0x35f   : > { %8152 = vrot.lane.b32.xlu0 %v17690_v42, %s9539_s20  ;;  %v2691_v57 = vpop.permute.xlu0 %2690  ;;  %v17691_v42 = vld [vmem:[#allocation211_spill] sm:$0xff]  ;;  %v17695_v12 = vcombine.high %v17693_v40, %v17694_v30  ;;  %v14256_v47 = vrot.slane %v17696_v44, %v17677_v35  ;;  %v17727_v39 = vld [vmem:[#allocation146_spill] sm:$0xff] }
 0x360   : > { %v5772_v7 = vcombine.low %v17691_v42, %v3679_v17  ;;  %v5773_v2 = vcombine.high %v17691_v42, %v3679_v17  ;;  %v5228_v15 = vcombine.low %v17692_v38, %v3678_v11  ;;  %v5229_v16 = vcombine.high %v17692_v38, %v3678_v11 }
 0x361   : > { %v14262_v17 = vrot.slane %v17697_v25, %v17677_v35  ;;  %v3425_v42 = vmul.f32 %v17684_v58, %v2695_v23  ;;  %v3424_v38 = vmul.f32 %v17684_v58, %v2691_v57 }
 0x362   : > { %v2703_v11 = vpop.permute.xlu1 %2702  ;;  %v14267_v43 = vrot.slane %v5772_v7, %v17677_v35  ;;  %v14273_v44 = vrot.slane %v5228_v15, %v17677_v35  ;;  %v14276_v24 = vrot.slane %v5229_v16, %v17677_v35  ;;  %v17701_v7 = vld [vmem:[#allocation184_spill] sm:$0xff]  ;;  %v17704_v15 = vcombine.high %v17683_v37, %v14141_v62 }
 0x363   : > { %8156 = vrot.lane.b32.xlu0 %v17695_v12, %s9539_s20  ;;  %v14270_v12 = vrot.slane %v5773_v2, %v17677_v35  ;;  %v2699_v28 = vpop.permute.xlu0 %2698  ;;  %v3681_v25 = vmul.f32 %v17215_v0, %v3425_v42  ;;  %v3680_v18 = vmul.f32 %v17665_v22, %v3424_v38  ;;  %v3427_v23 = vmul.f32 %v17684_v58, %v2703_v11  ;;  %v17698_v42 = vld [vmem:[#allocation115_spill] sm:$0xff] }
 0x364   : > { %v3426_v57 = vmul.f32 %v17684_v58, %v2699_v28  ;;  %v17700_v38 = vcombine.high %v17698_v42, %v17699_v4  ;;  %v17703_v11 = vcombine.low %v17683_v37, %v14141_v62  ;;  %v14316_v28 = vrot.slane %v17704_v15, %v17677_v35  ;;  %v17706_v37 = vld [vmem:[#allocation162_spill] sm:$0xff]  ;;  %v17707_v62 = vld [vmem:[#allocation193_spill] sm:$0xff] }
 0x365   : > { %v6860_v16 = vcombine.low %v17701_v7, %v3681_v25  ;;  %v6861_v27 = vcombine.high %v17701_v7, %v3681_v25  ;;  %v6316_v29 = vcombine.low %v17702_v54, %v3680_v18  ;;  %v3683_v42 = vmul.f32 %v17671_v19, %v3427_v23 }
 0x366   : > { %v2714_v2 = vpop.permute.xlu1 %2713  ;;  %v14310_v58 = vrot.slane %v17703_v11, %v17677_v35  ;;  %17705 = vst [vmem:[#allocation42_spill] sm:$0xff] %v14316_v28  ;;  %v3682_v25 = vmul.f32 %v17672_v1, %v3426_v57  ;;  %v17708_v15 = vcombine.high %v17706_v37, %v17707_v62 }
 0x367   : > { %8168 = vrot.lane.b32.xlu0 %v17700_v38, %s9539_s20  ;;  %v6317_v38 = vcombine.high %v17702_v54, %v3680_v18  ;;  %v2710_v4 = vpop.permute.xlu0 %2709  ;;  %v14321_v7 = vrot.slane %v6860_v16, %v17677_v35  ;;  %v14324_v54 = vrot.slane %v6861_v27, %v17677_v35  ;;  %v14327_v18 = vrot.slane %v6316_v29, %v17677_v35 }
 0x368   : > { %v7948_v23 = vcombine.low %v14099_v52, %v3683_v42  ;;  %v7949_v57 = vcombine.high %v14099_v52, %v3683_v42  ;;  %v7404_v16 = vcombine.low %v14102_v60, %v3682_v25  ;;  %v7405_v27 = vcombine.high %v14102_v60, %v3682_v25  ;;  %v17710_v60 = vld [vmem:[#allocation13_spill] sm:$0xff]  ;;  %v17711_v52 = vld [vmem:[#allocation144_spill] sm:$0xff] }
 0x369   : > { %v14330_v11 = vrot.slane %v6317_v38, %v17677_v35  ;;  %v17712_v37 = vcombine.high %v17710_v60, %v17711_v52  ;;  %v17713_v25 = vcombine.low %v17685_v46, %v14156_v55  ;;  %v17715_v52 = vld [vmem:[#allocation164_spill] sm:$0xff] }
 0x36a   : > { %v2722_v30 = vpop.permute.xlu1 %2721  ;;  %v14357_v38 = vrot.slane %v7948_v23, %v17677_v35  ;;  %v14360_v40 = vrot.slane %v7949_v57, %v17677_v35  ;;  %v14366_v29 = vrot.slane %v7405_v27, %v17677_v35  ;;  %v17714_v57 = vcombine.high %v17685_v46, %v14156_v55  ;;  %v17716_v27 = vld [vmem:[#allocation194_spill] sm:$0xff]  ;;  %v17722_v55 = vld [vmem:[#allocation195_spill] sm:$0xff] }
 0x36b   : > { %8172 = vrot.lane.b32.xlu0 %v17708_v15, %s9539_s20  ;;  %v2718_v62 = vpop.permute.xlu0 %2717  ;;  %v14363_v15 = vrot.slane %v7404_v16, %v17677_v35  ;;  %v14376_v23 = vrot.slane %v17713_v25, %v17677_v35  ;;  %v17723_v3 = vcombine.high %v17721_v36, %v17722_v55 }
 0x36c   : > { %17709 = vst [vmem:[#allocation191_spill] sm:$0xff] %v14360_v40  ;;  %v14382_v16 = vrot.slane %v17714_v57, %v17677_v35  ;;  %v17728_v40 = vcombine.high %v17726_v48, %v17727_v39  ;;  %v17735_v39 = vld [vmem:[#allocation196_spill] sm:$0xff] }
 0x36e   : > { %v2730_v42 = vpop.permute.xlu1 %2729 }
 0x36f   : > { %8184 = vrot.lane.b32.xlu0 %v17712_v37, %s9539_s20  ;;  %v2726_v60 = vpop.permute.xlu0 %2725  ;;  %v17717_v37 = vcombine.high %v17715_v52, %v17716_v27  ;;  %v17725_v52 = vld [vmem:[#allocation45_spill] sm:$0xff] }
 0x370   : > { %v3429_v10 = vmul.f32 %v17725_v52, %v2714_v2  ;;  %v3428_v35 = vmul.f32 %v17725_v52, %v2710_v4  ;;  %v3433_v36 = vmul.f32 %v17725_v52, %v2730_v42  ;;  %v3432_v28 = vmul.f32 %v17725_v52, %v2726_v60  ;;  %v17729_v2 = vld [vmem:[#allocation58_spill] sm:$0xff] }
 0x371   : > { %v17730_v4 = vcombine.low %v14135_v51, %v14220_v8 }
 0x372   : > { %v2738_v59 = vpop.permute.xlu1 %2737  ;;  %v14448_v42 = vmul.f32 %v10256_v53, %v3428_v35  ;;  %v17737_v35 = vcombine.low %v14138_v5, %v14223_v56 }
 0x373   : > { %8188 = vrot.lane.b32.xlu0 %v17717_v37, %s9539_s20  ;;  %v2734_v25 = vpop.permute.xlu0 %2733  ;;  %v3435_v37 = vmul.f32 %v17725_v52, %v2738_v59  ;;  %v17739_v59 = vcombine.high %v14138_v5, %v14223_v56  ;;  %v17742_v5 = vcombine.high %v14112_v26, %v14207_v31 }
 0x375   : > { %v14494_v56 = vrot.slane %v17742_v5, %v17729_v2  ;;  %v14521_v5 = vmul.f32 %v17671_v19, %v3435_v37 }
 0x376   : > { %v2749_v14 = vpop.permute.xlu1 %2748 }
 0x377   : > { %8200 = vrot.lane.b32.xlu0 %v17720_v20, %s9539_s20  ;;  %v2745_v46 = vpop.permute.xlu0 %2744  ;;  %v3431_v20 = vmul.f32 %v17725_v52, %v2722_v30  ;;  %v14436_v30 = vrot.slane %v17730_v4, %v17729_v2  ;;  %v17734_v4 = vld [vmem:[#allocation135_spill] sm:$0xff] }
 0x378   : > { %v17736_v48 = vcombine.high %v17734_v4, %v17735_v39 }
 0x379   : > { %17731 = vst [vmem:[#allocation199_spill] sm:$0xff] %v14436_v30  ;;  %v14451_v60 = vmul.f32 %v10281_v49, %v3431_v20  ;;  %v14468_v20 = vrot.slane %v17737_v35, %v17729_v2 }
 0x37a   : > { %v14412_v57 = vpop.permute.xlu1 %2756 }
 0x37b   : > { %8204 = vrot.lane.b32.xlu0 %v17723_v3, %s9539_s20  ;;  %v14414_v9 = vpop.permute.xlu0 %2752  ;;  %v3430_v3 = vmul.f32 %v17725_v52, %v2718_v62  ;;  %v14445_v62 = vmul.f32 %v10249_v33, %v3429_v10  ;;  %17738 = vst [vmem:[#allocation50_spill] sm:$0xff] %v14468_v20 }
 0x37e   : > { %v14426_v55 = vpop.permute.xlu1 %2764 }
 0x37f   : > { %8216 = vrot.lane.b32.xlu0 %v17728_v40, %s9539_s20  ;;  %v14430_v27 = vpop.permute.xlu0 %2760  ;;  %v17732_v40 = vcombine.high %v14135_v51, %v14220_v8  ;;  %v14459_v51 = vmul.f32 %v10286_v61, %v3430_v3  ;;  %v3434_v8 = vmul.f32 %v17725_v52, %v2734_v25  ;;  %v14480_v3 = vmul.f32 %v17665_v22, %v3432_v28 }
 0x380   : > { %v17741_v25 = vcombine.low %v14112_v26, %v14207_v31  ;;  %v17749_v26 = vcombine.high %v14175_v34, %v14273_v44 }
 0x381   : > { %v14442_v63 = vrot.slane %v17732_v40, %v17729_v2  ;;  %v14474_v40 = vrot.slane %v17739_v59, %v17729_v2  ;;  %v17745_v59 = vcombine.high %v14115_v21, %v14210_v50  ;;  %v14541_v37 = vmul.f32 %v17672_v1, %v3434_v8 }
 0x382   : > { %v14462_v10 = vpop.permute.xlu1 %2772  ;;  %v14488_v35 = vrot.slane %v17741_v25, %v17729_v2  ;;  %v17747_v25 = vcombine.low %v14175_v34, %v14273_v44  ;;  %v14518_v31 = vrot.slane %v17749_v26, %v17729_v2  ;;  %v17757_v34 = vcombine.high %v14178_v45, %v14276_v24 }
 0x383   : > { %17733 = vst [vmem:[#allocation47_spill] sm:$0xff] %v14442_v63  ;;  %8220 = vrot.lane.b32.xlu0 %v17736_v48, %s9539_s20  ;;  %17740 = vst [vmem:[#allocation202_spill] sm:$0xff] %v14474_v40  ;;  %v14477_v48 = vmul.f32 %v17215_v0, %v3433_v36  ;;  %v14482_v52 = vpop.permute.xlu0 %2768  ;;  %v17743_v36 = vcombine.low %v14115_v21, %v14210_v50  ;;  %v14506_v39 = vrot.slane %v17745_v59, %v17729_v2  ;;  %v17752_v21 = vld [vmem:[#allocation24_spill] sm:$0xff]  ;;  %v17753_v50 = vld [vmem:[#allocation147_spill] sm:$0xff] }
 0x384   : > { %v14512_v4 = vrot.slane %v17747_v25, %v17729_v2  ;;  %17750 = vst [vmem:[#allocation204_spill] sm:$0xff] %v14518_v31  ;;  %v17754_v59 = vcombine.high %v17752_v21, %v17753_v50  ;;  %v17755_v25 = vcombine.low %v14178_v45, %v14276_v24  ;;  %v14538_v44 = vrot.slane %v17757_v34, %v17729_v2  ;;  %v17765_v34 = vld [vmem:[#allocation49_spill] sm:$0xff] }
 0x385   : > { %v14500_v28 = vrot.slane %v17743_v36, %v17729_v2  ;;  %17746 = vst [vmem:[#allocation181_spill] sm:$0xff] %v14506_v39  ;;  %v17751_v36 = vld [vmem:[#allocation48_spill] sm:$0xff]  ;;  %v17759_v26 = vcombine.low %v14150_v13, %v14267_v43  ;;  %v17763_v24 = vcombine.low %v14153_v6, %v14270_v12 }
 0x386   : > { %17748 = vst [vmem:[#allocation46_spill] sm:$0xff] %v14512_v4  ;;  %v14532_v4 = vrot.slane %v17755_v25, %v17729_v2  ;;  %17758 = vst [vmem:[#allocation212_spill] sm:$0xff] %v14538_v44  ;;  %v17761_v25 = vcombine.high %v14150_v13, %v14267_v43  ;;  %v3436_v8 = vmul.f32 %v17751_v36, %v2745_v46 }
 0x387   : > { %17744 = vst [vmem:[#allocation203_spill] sm:$0xff] %v14500_v28  ;;  %v3437_v28 = vmul.f32 %v17751_v36, %v2749_v14  ;;  %8232 = vrot.lane.b32.xlu0 %v17754_v59, %s9539_s20  ;;  %v2784_v14 = vpop.permute.xlu1 %2783  ;;  %v14547_v59 = vrot.slane %v17759_v26, %v17729_v2  ;;  %v14559_v45 = vrot.slane %v17763_v24, %v17729_v2  ;;  %v2780_v44 = vpop.permute.xlu0 %2779 }
 0x388   : > { %17756 = vst [vmem:[#allocation211_spill] sm:$0xff] %v14532_v4  ;;  %v14553_v50 = vrot.slane %v17761_v25, %v17729_v2  ;;  %v3445_v21 = vmul.f32 %v17765_v34, %v2784_v14  ;;  %v17766_v26 = vcombine.high %v14153_v6, %v14270_v12  ;;  %v17768_v43 = vcombine.low %v14256_v47, %v14327_v18 }
 0x389   : > { %17760 = vst [vmem:[#allocation184_spill] sm:$0xff] %v14547_v59  ;;  %17764 = vst [vmem:[#allocation45_spill] sm:$0xff] %v14559_v45  ;;  %v3444_v25 = vmul.f32 %v17765_v34, %v2780_v44  ;;  %v17770_v46 = vcombine.high %v14256_v47, %v14327_v18  ;;  %v17772_v6 = vcombine.low %v14262_v17, %v14330_v11  ;;  %v17776_v47 = vld [vmem:[#allocation26_spill] sm:$0xff]  ;;  %v17777_v18 = vld [vmem:[#allocation197_spill] sm:$0xff] }
 0x38a   : > { %17762 = vst [vmem:[#allocation188_spill] sm:$0xff] %v14553_v50  ;;  %v14567_v59 = vrot.slane %v17766_v26, %v17729_v2  ;;  %v14573_v13 = vrot.slane %v17768_v43, %v17729_v2  ;;  %v17774_v24 = vcombine.high %v14262_v17, %v14330_v11  ;;  %v14595_v44 = vmul.f32 %v10249_v33, %v3437_v28 }
 0x38b   : > { %v14580_v14 = vrot.slane %v17770_v46, %v17729_v2  ;;  %v14586_v12 = vrot.slane %v17772_v6, %v17729_v2  ;;  %v3701_v43 = vmul.f32 %v10249_v33, %v3445_v21  ;;  %v17778_v46 = vcombine.high %v17776_v47, %v17777_v18  ;;  %v2792_v21 = vpop.permute.xlu1 %2791 }
 0x38c   : > { %17767 = vst [vmem:[#allocation58_spill] sm:$0xff] %v14567_v59  ;;  %17769 = vst [vmem:[#allocation48_spill] sm:$0xff] %v14573_v13  ;;  %v14592_v26 = vrot.slane %v17774_v24, %v17729_v2  ;;  %v17779_v6 = vcombine.low %v14188_v41, %v14321_v7  ;;  %v17781_v17 = vcombine.high %v14188_v41, %v14321_v7 }
 0x38d   : > { %17771 = vst [vmem:[#allocation49_spill] sm:$0xff] %v14580_v14  ;;  %17773 = vst [vmem:[#allocation217_spill] sm:$0xff] %v14586_v12  ;;  %8236 = vrot.lane.b32.xlu0 %v17778_v46, %s9539_s20  ;;  %v3700_v28 = vmul.f32 %v10256_v53, %v3444_v25  ;;  %v17783_v24 = vcombine.low %v14191_v32, %v14324_v54  ;;  %v17787_v41 = vcombine.low %v14376_v23, %v14363_v15 }
 0x38e   : > { %17775 = vst [vmem:[#allocation218_spill] sm:$0xff] %v14592_v26  ;;  %v14606_v12 = vrot.slane %v17779_v6, %v17729_v2  ;;  %v14612_v11 = vrot.slane %v17781_v17, %v17729_v2  ;;  %v17785_v6 = vcombine.high %v14191_v32, %v14324_v54  ;;  %v14634_v25 = vmul.f32 %v10256_v53, %v3436_v8 }
 0x38f   : > { %v14619_v46 = vrot.slane %v17783_v24, %v17729_v2  ;;  %v14631_v7 = vrot.slane %v17787_v41, %v17729_v2  ;;  %v4700_v17 = vcombine.low %v14445_v62, %v3701_v43  ;;  %v4701_v24 = vcombine.high %v14445_v62, %v3701_v43  ;;  %v17791_v43 = vld [vmem:[#allocation17_spill] sm:$0xff] }
 0x390   : > { %17780 = vst [vmem:[#allocation219_spill] sm:$0xff] %v14606_v12  ;;  %17782 = vst [vmem:[#allocation220_spill] sm:$0xff] %v14612_v11  ;;  %v14625_v18 = vrot.slane %v17785_v6, %v17729_v2  ;;  %v3447_v47 = vmul.f32 %v17765_v34, %v2792_v21  ;;  %v4156_v32 = vcombine.low %v14448_v42, %v3700_v28  ;;  %v17792_v21 = vld [vmem:[#allocation148_spill] sm:$0xff] }
 0x391   : > { %17784 = vst [vmem:[#allocation221_spill] sm:$0xff] %v14619_v46  ;;  %17788 = vst [vmem:[#allocation223_spill] sm:$0xff] %v14631_v7  ;;  %v2788_v46 = vpop.permute.xlu0 %2787  ;;  %v4157_v54 = vcombine.high %v14448_v42, %v3700_v28  ;;  %v17789_v41 = vcombine.high %v14376_v23, %v14363_v15  ;;  %v3439_v8 = vmul.f32 %v17751_v36, %v14412_v57 }
 0x392   : > { %17786 = vst [vmem:[#allocation222_spill] sm:$0xff] %v14625_v18  ;;  %v3446_v6 = vmul.f32 %v17765_v34, %v2788_v46  ;;  %v3703_v62 = vmul.f32 %v10281_v49, %v3447_v47  ;;  %v17793_v18 = vcombine.high %v17791_v43, %v17792_v21  ;;  %v17794_v42 = vcombine.low %v14382_v16, %v14366_v29  ;;  %v2800_v46 = vpop.permute.xlu1 %2799 }
 0x393   : > { %v14646_v7 = vrot.slane %v17789_v41, %v17729_v2  ;;  %v17796_v15 = vcombine.high %v14382_v16, %v14366_v29  ;;  %v3438_v57 = vmul.f32 %v17751_v36, %v14414_v9  ;;  %v3441_v29 = vmul.f32 %v17751_v36, %v14426_v55 }
 0x394   : > { %8248 = vrot.lane.b32.xlu0 %v17793_v18, %s9539_s20  ;;  %v14659_v28 = vrot.slane %v17794_v42, %v17729_v2  ;;  %v3702_v47 = vmul.f32 %v10286_v61, %v3446_v6  ;;  %v17798_v18 = vcombine.low %v14310_v58, %v14357_v38  ;;  %v17800_v42 = vcombine.high %v14310_v58, %v14357_v38 }
 0x395   : > { %17790 = vst [vmem:[#allocation224_spill] sm:$0xff] %v14646_v7  ;;  %v14665_v23 = vrot.slane %v17796_v15, %v17729_v2  ;;  %v5788_v9 = vcombine.low %v14451_v60, %v3703_v62  ;;  %v5789_v16 = vcombine.high %v14451_v60, %v3703_v62  ;;  %v3449_v6 = vmul.f32 %v17765_v34, %v2800_v46  ;;  %v2796_v15 = vpop.permute.xlu0 %2795  ;;  %v17802_v62 = vld [vmem:[#allocation36_spill] sm:$0xff]  ;;  %v17803_v46 = vld [vmem:[#allocation198_spill] sm:$0xff] }
 0x396   : > { %17795 = vst [vmem:[#allocation225_spill] sm:$0xff] %v14659_v28  ;;  %v14674_v41 = vrot.slane %v17798_v18, %v17729_v2  ;;  %v14680_v21 = vrot.slane %v17800_v42, %v17729_v2  ;;  %v3440_v18 = vmul.f32 %v17751_v36, %v14430_v27  ;;  %v5244_v43 = vcombine.low %v14459_v51, %v3702_v47  ;;  %v17805_v27 = vld [vmem:[#allocation42_spill] sm:$0xff] }
 0x397   : > { %17797 = vst [vmem:[#allocation226_spill] sm:$0xff] %v14665_v23  ;;  %v3448_v58 = vmul.f32 %v17765_v34, %v2796_v15  ;;  %v3443_v38 = vmul.f32 %v17751_v36, %v14462_v10  ;;  %v3442_v55 = vmul.f32 %v17751_v36, %v14482_v52  ;;  %v3705_v60 = vmul.f32 %v17215_v0, %v3449_v6  ;;  %v2808_v36 = vpop.permute.xlu1 %2807 }
 0x398   : > { %17799 = vst [vmem:[#allocation227_spill] sm:$0xff] %v14674_v41  ;;  %17801 = vst [vmem:[#allocation228_spill] sm:$0xff] %v14680_v21  ;;  %v5245_v41 = vcombine.high %v14459_v51, %v3702_v47  ;;  %v17804_v42 = vcombine.high %v17802_v62, %v17803_v46  ;;  %v17806_v21 = vld [vmem:[#allocation191_spill] sm:$0xff]  ;;  %v14708_v47 = vmul.f32 %v10281_v49, %v3439_v8 }
 0x399   : > { %v17807_v23 = vcombine.low %v17805_v27, %v17806_v21  ;;  %v14711_v10 = vmul.f32 %v10286_v61, %v3438_v57  ;;  %v3704_v52 = vmul.f32 %v17665_v22, %v3448_v58  ;;  %v17809_v6 = vcombine.high %v17805_v27, %v17806_v21  ;;  %v2804_v57 = vpop.permute.xlu0 %2803 }
 0x39a   : > { %8252 = vrot.lane.b32.xlu0 %v17804_v42, %s9539_s20  ;;  %v14721_v42 = vmul.f32 %v17215_v0, %v3441_v29  ;;  %v6877_v8 = vcombine.high %v14477_v48, %v3705_v60  ;;  %v3451_v46 = vmul.f32 %v17765_v34, %v2808_v36  ;;  %v14727_v62 = vmul.f32 %v17665_v22, %v3440_v18  ;;  %v17812_v18 = vld [vmem:[#allocation27_spill] sm:$0xff]  ;;  %v17813_v36 = vld [vmem:[#allocation150_spill] sm:$0xff] }
 0x39b   : > { %v14705_v51 = vrot.slane %v17807_v23, %v17729_v2  ;;  %v14718_v15 = vrot.slane %v17809_v6, %v17729_v2  ;;  %v6876_v23 = vcombine.low %v14477_v48, %v3705_v60  ;;  %v6332_v58 = vcombine.low %v14480_v3, %v3704_v52  ;;  %v17811_v6 = vld [vmem:[#allocation52_spill] sm:$0xff] }
 0x39c   : > { %v3450_v21 = vmul.f32 %v17765_v34, %v2804_v57  ;;  %v14733_v27 = vmul.f32 %v17671_v19, %v3443_v38  ;;  %v14736_v29 = vmul.f32 %v17672_v1, %v3442_v55  ;;  %v14739_v48 = vrot.slane %v4700_v17, %v17811_v6  ;;  %v2819_v17 = vpop.permute.xlu1 %2818 }
 0x39d   : > { %17808 = vst [vmem:[#allocation42_spill] sm:$0xff] %v14705_v51  ;;  %17810 = vst [vmem:[#allocation191_spill] sm:$0xff] %v14718_v15  ;;  %v6333_v51 = vcombine.high %v14480_v3, %v3704_v52  ;;  %v3707_v60 = vmul.f32 %v17671_v19, %v3451_v46  ;;  %v17814_v15 = vcombine.high %v17812_v18, %v17813_v36 }
 0x39e   : > { %v14747_v3 = vrot.slane %v4701_v24, %v17811_v6  ;;  %v14750_v34 = vrot.slane %v4156_v32, %v17811_v6  ;;  %v14753_v38 = vrot.slane %v4157_v54, %v17811_v6  ;;  %v3706_v55 = vmul.f32 %v17672_v1, %v3450_v21  ;;  %v2815_v24 = vpop.permute.xlu0 %2814 }
 0x39f   : > { %8264 = vrot.lane.b32.xlu0 %v17814_v15, %s9539_s20  ;;  %v14757_v52 = vrot.slane %v5788_v9, %v17811_v6  ;;  %v7964_v46 = vcombine.low %v14521_v5, %v3707_v60  ;;  %v7965_v57 = vcombine.high %v14521_v5, %v3707_v60  ;;  %v17815_v15 = vld [vmem:[#allocation51_spill] sm:$0xff]  ;;  %v14763_v18 = vrot.slane %v5789_v16, %v17811_v6  ;;  %v17816_v16 = vld [vmem:[#allocation32_spill] sm:$0xff] }
 0x3a0   : > { %v3453_v36 = vmul.f32 %v17815_v15, %v2819_v17  ;;  %v7420_v32 = vcombine.low %v14541_v37, %v3706_v55  ;;  %v7421_v54 = vcombine.high %v14541_v37, %v3706_v55  ;;  %v3452_v21 = vmul.f32 %v17815_v15, %v2815_v24  ;;  %v17817_v17 = vld [vmem:[#allocation200_spill] sm:$0xff] }
 0x3a1   : > { %v14769_v28 = vrot.slane %v5244_v43, %v17811_v6  ;;  %v14772_v9 = vrot.slane %v5245_v41, %v17811_v6  ;;  %v14775_v5 = vrot.slane %v6876_v23, %v17811_v6  ;;  %v17818_v7 = vcombine.high %v17816_v16, %v17817_v17  ;;  %v2827_v23 = vpop.permute.xlu1 %2826 }
 0x3a2   : > { %v3709_v60 = vmul.f32 %v10249_v33, %v3453_v36  ;;  %v14783_v37 = vrot.slane %v6877_v8, %v17811_v6  ;;  %v14786_v55 = vrot.slane %v6332_v58, %v17811_v6  ;;  %v14789_v43 = vrot.slane %v6333_v51, %v17811_v6  ;;  %v2823_v8 = vpop.permute.xlu0 %2822 }
 0x3a3   : > { %8268 = vrot.lane.b32.xlu0 %v17818_v7, %s9539_s20  ;;  %v3708_v41 = vmul.f32 %v10256_v53, %v3452_v21  ;;  %v14793_v24 = vrot.slane %v7964_v46, %v17811_v6  ;;  %v3455_v7 = vmul.f32 %v17815_v15, %v2827_v23  ;;  %v14799_v17 = vrot.slane %v7965_v57, %v17811_v6  ;;  %v17819_v57 = vld [vmem:[#allocation118_spill] sm:$0xff]  ;;  %v17820_v23 = vld [vmem:[#allocation151_spill] sm:$0xff] }
 0x3a4   : > { %v4716_v33 = vcombine.low %v14595_v44, %v3709_v60  ;;  %v4717_v36 = vcombine.high %v14595_v44, %v3709_v60  ;;  %v3454_v53 = vmul.f32 %v17815_v15, %v2823_v8  ;;  %v14805_v21 = vrot.slane %v7420_v32, %v17811_v6 }
 0x3a5   : > { %v4172_v58 = vcombine.low %v14634_v25, %v3708_v41  ;;  %v4173_v51 = vcombine.high %v14634_v25, %v3708_v41  ;;  %v3711_v60 = vmul.f32 %v10281_v49, %v3455_v7  ;;  %v17821_v16 = vcombine.high %v17819_v57, %v17820_v23  ;;  %v17822_v23 = vld [vmem:[#allocation38_spill] sm:$0xff]  ;;  %v17823_v57 = vld [vmem:[#allocation201_spill] sm:$0xff] }
 0x3a6   : > { %v14808_v46 = vrot.slane %v4716_v33, %v17811_v6  ;;  %v14811_v44 = vrot.slane %v4717_v36, %v17811_v6  ;;  %v14819_v25 = vrot.slane %v7421_v54, %v17811_v6  ;;  %v3710_v33 = vmul.f32 %v10286_v61, %v3454_v53  ;;  %v2835_v36 = vpop.permute.xlu1 %2834  ;;  %v2831_v8 = vpop.permute.xlu0 %2830 }
 0x3a7   : > { %8280 = vrot.lane.b32.xlu0 %v17821_v16, %s9539_s20  ;;  %v4180_v32 = vrot.slane %v4172_v58, %v17811_v6  ;;  %v14823_v41 = vrot.slane %v4173_v51, %v17811_v6  ;;  %v5804_v7 = vcombine.low %v14708_v47, %v3711_v60  ;;  %v5805_v16 = vcombine.high %v14708_v47, %v3711_v60 }
 0x3a8   : > { %v5260_v49 = vcombine.low %v14711_v10, %v3710_v33  ;;  %v5261_v54 = vcombine.high %v14711_v10, %v3710_v33  ;;  %v3456_v61 = vmul.f32 %v17815_v15, %v2831_v8 }
 0x3a9   : > { %v4220_v58 = vcombine.low %v14750_v34, %v4180_v32  ;;  %v4221_v51 = vcombine.high %v14750_v34, %v4180_v32  ;;  %v17824_v34 = vcombine.high %v17822_v23, %v17823_v57  ;;  %v3457_v32 = vmul.f32 %v17815_v15, %v2835_v36  ;;  %v17831_v57 = vld [vmem:[#allocation6_spill] sm:$0xff] }
 0x3aa   : > { %v2843_v53 = vpop.permute.xlu1 %2842  ;;  %v14858_v47 = vrot.slane %v5804_v7, %v17811_v6  ;;  %v14861_v10 = vrot.slane %v5805_v16, %v17811_v6  ;;  %v14864_v60 = vrot.slane %v5260_v49, %v17811_v6  ;;  %v14867_v33 = vrot.slane %v5261_v54, %v17811_v6  ;;  %v2839_v36 = vpop.permute.xlu0 %2838 }
 0x3ab   : > { %8284 = vrot.lane.b32.xlu0 %v17824_v34, %s9539_s20  ;;  %v14852_v11 = vrot.slane %v4220_v58, %v17729_v2  ;;  %v14855_v12 = vrot.slane %v4221_v51, %v17729_v2  ;;  %v3713_v8 = vmul.f32 %v17215_v0, %v3457_v32  ;;  %v3712_v58 = vmul.f32 %v17665_v22, %v3456_v61  ;;  %v17827_v0 = vld [vmem:[#allocation119_spill] sm:$0xff]  ;;  %v17828_v32 = vld [vmem:[#allocation153_spill] sm:$0xff] }
 0x3ac   : > { %v3459_v51 = vmul.f32 %v17815_v15, %v2843_v53  ;;  %v3458_v7 = vmul.f32 %v17815_v15, %v2839_v36  ;;  %v17829_v22 = vcombine.high %v17827_v0, %v17828_v32  ;;  %v17830_v0 = vld [vmem:[#allocation59_spill] sm:$0xff] }
 0x3ad   : > { %17825 = vst [vmem:[#allocation52_spill] sm:$0xff] %v14852_v11  ;;  %17826 = vst [vmem:[#allocation51_spill] sm:$0xff] %v14855_v12  ;;  %v6892_v34 = vcombine.low %v14721_v42, %v3713_v8  ;;  %v6893_v49 = vcombine.high %v14721_v42, %v3713_v8  ;;  %v6348_v16 = vcombine.low %v14727_v62, %v3712_v58 }
 0x3ae   : > { %v8075_v54 = vpop.permute.xlu1 %8074  ;;  %v8073_v32 = vpop.permute.xlu0 %8072  ;;  %v3715_v15 = vmul.f32 %v17671_v19, %v3459_v51  ;;  %v3714_v61 = vmul.f32 %v17672_v1, %v3458_v7  ;;  %v4253_v53 = vcombine.high %v14436_v30, %v14852_v11  ;;  %v17832_v36 = vcombine.low %v17830_v0, %v17831_v57  ;;  %v17834_v1 = vld [vmem:[#allocation167_spill] sm:$0xff]  ;;  %v17835_v57 = vld [vmem:[#allocation34_spill] sm:$0xff] }
 0x3af   : > { %8296 = vrot.lane.b32.xlu0 %v17829_v22, %s9539_s20  ;;  %v6349_v22 = vcombine.high %v14727_v62, %v3712_v58  ;;  %v14908_v26 = vrot.slane %v6892_v34, %v17811_v6  ;;  %v14911_v42 = vrot.slane %v6893_v49, %v17811_v6  ;;  %v14914_v62 = vrot.slane %v6348_v16, %v17811_v6  ;;  %v17837_v34 = vld [vmem:[#allocation120_spill] sm:$0xff]  ;;  %v17840_v49 = vld [vmem:[#allocation102_spill] sm:$0xff] }
 0x3b0   : > { %v8582_v23 = vsel %vm8580_vm1, %v17832_v36, %v8075_v54  ;;  %v17836_v8 = vcombine.high %v17834_v1, %v17835_v57  ;;  %v7980_v58 = vcombine.low %v14733_v27, %v3715_v15  ;;  %v7981_v51 = vcombine.high %v14733_v27, %v3715_v15  ;;  %8078 = vrot.lane.b32.xlu1 %v4253_v53, %s9539_s20  ;;  %v17838_v54 = vld [vmem:[#allocation154_spill] sm:$0xff]  ;;  %v17847_v1 = vld [vmem:[#allocation35_spill] sm:$0xff] }
 0x3b1   : > { %17833 = vst [vmem:[#allocation59_spill] sm:$0xff] %v14911_v42  ;;  %v14917_v19 = vrot.slane %v6349_v22, %v17811_v6  ;;  %8741 = vst [vmem:[%s14919_s29 + $0x100] sm:$0xff] %v8582_v23  ;;  %v7436_v7 = vcombine.low %v14736_v29, %v3714_v61  ;;  %v7437_v16 = vcombine.high %v14736_v29, %v3714_v61  ;;  %v17841_v61 = vld [vmem:[#allocation19_spill] sm:$0xff]  ;;  %v17843_v29 = vld [vmem:[#allocation60_spill] sm:$0xff] }
 0x3b2   : > { %v8077_v0 = vpop.permute.xlu0 %8076  ;;  %v6396_v27 = vcombine.low %v14786_v55, %v14914_v62  ;;  %v14948_v53 = vrot.slane %v7980_v58, %v17811_v6  ;;  %v14951_v36 = vrot.slane %v7981_v51, %v17811_v6  ;;  %v17839_v23 = vcombine.high %v17837_v34, %v17838_v54  ;;  %v17844_v51 = vld [vmem:[#allocation87_spill] sm:$0xff]  ;;  %v17896_v54 = vld [vmem:[#allocation184_spill] sm:$0xff]  ;;  %v17909_v34 = vld [vmem:[#allocation217_spill] sm:$0xff] }
 0x3b3   : > { %8300 = vrot.lane.b32.xlu0 %v17836_v8, %s9539_s20  ;;  %v14954_v22 = vrot.slane %v7436_v7, %v17811_v6  ;;  %v14957_v8 = vrot.slane %v7437_v16, %v17811_v6  ;;  %v17842_v15 = vcombine.low %v17840_v49, %v17841_v61  ;;  %v17845_v57 = vcombine.high %v17843_v29, %v17844_v51  ;;  %v17846_v7 = vld [vmem:[#allocation149_spill] sm:$0xff]  ;;  %v17877_v29 = vld [vmem:[#allocation46_spill] sm:$0xff] }
 0x3b4   : > { %v17848_v42 = vcombine.low %v17846_v7, %v17847_v1  ;;  %v4255_v16 = vcombine.high %v14442_v63, %v14855_v12  ;;  %v17852_v1 = vld [vmem:[#allocation132_spill] sm:$0xff]  ;;  %v17857_v7 = vcombine.high %v14753_v38, %v14823_v41 }
 0x3b5   : > { %v8581_v58 = vsel %vm8580_vm1, %v17842_v15, %v8073_v32  ;;  %8090 = vrot.lane.b32.xlu1 %v17845_v57, %s9539_s20  ;;  %v17851_v57 = vld [vmem:[#allocation10_spill] sm:$0xff]  ;;  %v18017_v63 = vld [vmem:[#allocation144_spill] sm:$0xff] }
 0x3b6   : > { %v8583_v6 = vsel %vm8580_vm1, %v17848_v42, %v8077_v0  ;;  %8709 = vst [vmem:[%s14919_s29] sm:$0xff] %v8581_v58  ;;  %v8089_v0 = vpop.permute.xlu0 %8088  ;;  %v17853_v32 = vcombine.low %v17851_v57, %v17852_v1  ;;  %v17854_v58 = vld [vmem:[#allocation37_spill] sm:$0xff]  ;;  %v15015_v61 = vrot.slane %v17857_v7, %v17729_v2  ;;  %v17859_v57 = vcombine.low %v14739_v48, %v14808_v46 }
 0x3b7   : > { %8312 = vrot.lane.b32.xlu0 %v17839_v23, %s9539_s20  ;;  %v17849_v23 = vcombine.low %v14753_v38, %v14823_v41  ;;  %8773 = vst [vmem:[%s14919_s29 + $0x200] sm:$0xff] %v8583_v6  ;;  %v17855_v6 = vld [vmem:[#allocation205_spill] sm:$0xff]  ;;  %v17861_v38 = vcombine.low %v14747_v3, %v14811_v44 }
 0x3b8   : > { %v8585_v42 = vsel %vm8580_vm1, %v17853_v32, %v8089_v0  ;;  %v17856_v51 = vcombine.high %v17854_v58, %v17855_v6  ;;  %17858 = vst [vmem:[#allocation102_spill] sm:$0xff] %v15015_v61  ;;  %v15021_v1 = vrot.slane %v17859_v57, %v17729_v2  ;;  %v17862_v0 = vcombine.high %v14747_v3, %v14811_v44  ;;  %v17873_v6 = vld [vmem:[#allocation203_spill] sm:$0xff]  ;;  %v17881_v58 = vld [vmem:[#allocation56_spill] sm:$0xff] }
 0x3b9   : > { %v14981_v49 = vrot.slane %v17849_v23, %v17729_v2  ;;  %8094 = vrot.lane.b32.xlu1 %v4255_v16, %s9539_s20  ;;  %8710 = vst [vmem:[%s14919_s29 + $0x8] sm:$0xff] %v8585_v42  ;;  %v15035_v41 = vrot.slane %v17861_v38, %v17729_v2  ;;  %v17864_v16 = vcombine.low %v14769_v28, %v14864_v60 }
 0x3ba   : > { %v15041_v7 = vrot.slane %v17862_v0, %v17729_v2  ;;  %v17868_v44 = vcombine.low %v14772_v9, %v14867_v33  ;;  %v17870_v0 = vld [vmem:[#allocation152_spill] sm:$0xff] }
 0x3bb   : > { %17850 = vst [vmem:[#allocation6_spill] sm:$0xff] %v14981_v49  ;;  %8316 = vrot.lane.b32.xlu0 %v17856_v51, %s9539_s20  ;;  %v4257_v15 = vcombine.high %v14468_v20, %v14981_v49  ;;  %v17860_v51 = vcombine.high %v14739_v48, %v14808_v46  ;;  %v15047_v42 = vrot.slane %v17864_v16, %v17729_v2  ;;  %v8093_v48 = vpop.permute.xlu0 %8092  ;;  %v17871_v16 = vld [vmem:[#allocation40_spill] sm:$0xff]  ;;  %v17914_v20 = vld [vmem:[#allocation30_spill] sm:$0xff] }
 0x3bc   : > { %17863 = vst [vmem:[#allocation19_spill] sm:$0xff] %v15041_v7  ;;  %v15063_v38 = vrot.slane %v17868_v44, %v17729_v2  ;;  %v17872_v23 = vcombine.low %v17870_v0, %v17871_v16  ;;  %v17878_v16 = vcombine.high %v14772_v9, %v14867_v33  ;;  %v17883_v0 = vcombine.low %v14757_v52, %v14858_v47 }
 0x3bd   : > { %v15029_v32 = vrot.slane %v17860_v51, %v17729_v2  ;;  %17865 = vst [vmem:[#allocation149_spill] sm:$0xff] %v15047_v42  ;;  %v17866_v51 = vcombine.high %v14769_v28, %v14864_v60  ;;  %v17874_v60 = vld [vmem:[#allocation25_spill] sm:$0xff]  ;;  %v17887_v9 = vcombine.low %v14763_v18, %v14861_v10  ;;  %v17911_v49 = vcombine.high %v14775_v5, %v14908_v26 }
 0x3be   : > { %17869 = vst [vmem:[#allocation10_spill] sm:$0xff] %v15063_v38  ;;  %v8587_v46 = vsel %vm8580_vm1, %v17872_v23, %v8093_v48  ;;  %v17880_v28 = vld [vmem:[#allocation61_spill] sm:$0xff]  ;;  %v15100_v23 = vrot.slane %v17883_v0, %v17729_v2  ;;  %v17885_v48 = vcombine.high %v14757_v52, %v14858_v47  ;;  %v17902_v47 = vcombine.low %v14789_v43, %v14917_v19  ;;  %v17910_v0 = vld [vmem:[#allocation218_spill] sm:$0xff] }
 0x3bf   : > { %v15057_v3 = vrot.slane %v17866_v51, %v17729_v2  ;;  %8774 = vst [vmem:[%s14919_s29 + $0x208] sm:$0xff] %v8587_v46  ;;  %v17875_v51 = vld [vmem:[#allocation156_spill] sm:$0xff]  ;;  %v15090_v46 = vrot.slane %v17878_v16, %v17729_v2  ;;  %v15112_v33 = vrot.slane %v17887_v9, %v17729_v2  ;;  %v17893_v9 = vld [vmem:[#allocation106_spill] sm:$0xff] }
 0x3c0   : > { %v17876_v44 = vcombine.high %v17874_v60, %v17875_v51  ;;  %17884 = vst [vmem:[#allocation152_spill] sm:$0xff] %v15100_v23  ;;  %v15106_v57 = vrot.slane %v17885_v48, %v17729_v2  ;;  %v15127_v48 = vrot.slane %v6396_v27, %v17729_v2  ;;  %v17894_v51 = vld [vmem:[#allocation136_spill] sm:$0xff] }
 0x3c1   : > { %17867 = vst [vmem:[#allocation35_spill] sm:$0xff] %v15057_v3  ;;  %17879 = vst [vmem:[#allocation132_spill] sm:$0xff] %v15090_v46  ;;  %v17895_v60 = vcombine.low %v17893_v9, %v17894_v51  ;;  %v17900_v9 = vcombine.high %v14786_v55, %v14914_v62  ;;  %v17903_v55 = vcombine.high %v14789_v43, %v14917_v19  ;;  %v17907_v43 = vld [vmem:[#allocation186_spill] sm:$0xff] }
 0x3c2   : > { %8328 = vrot.lane.b32.xlu0 %v17876_v44, %s9539_s20  ;;  %v17882_v44 = vcombine.high %v17880_v28, %v17881_v58  ;;  %17886 = vst [vmem:[#allocation40_spill] sm:$0xff] %v15106_v57  ;;  %17888 = vst [vmem:[#allocation203_spill] sm:$0xff] %v15112_v33  ;;  %v17889_v58 = vld [vmem:[#allocation212_spill] sm:$0xff]  ;;  %v17890_v28 = vcombine.high %v14763_v18, %v14861_v10  ;;  %v17906_v18 = vld [vmem:[#allocation22_spill] sm:$0xff] }
 0x3c3   : > { %17892 = vst [vmem:[#allocation230_spill] sm:$0xff] %v15127_v48  ;;  %v17897_v10 = vld [vmem:[#allocation168_spill] sm:$0xff]  ;;  %v15171_v62 = vrot.slane %v17903_v55, %v17729_v2  ;;  %v17908_v19 = vcombine.low %v17906_v18, %v17907_v43  ;;  %v17916_v18 = vld [vmem:[#allocation219_spill] sm:$0xff]  ;;  %v17961_v48 = vld [vmem:[#allocation157_spill] sm:$0xff] }
 0x3c4   : > { %8106 = vrot.lane.b32.xlu1 %v17882_v44, %s9539_s20  ;;  %v8105_v44 = vpop.permute.xlu0 %8104  ;;  %v15122_v52 = vrot.slane %v17890_v28, %v17729_v2  ;;  %v17898_v28 = vld [vmem:[#allocation43_spill] sm:$0xff] }
 0x3c5   : > { %v8589_v16 = vsel %vm8580_vm1, %v17895_v60, %v8105_v44  ;;  %v17899_v27 = vcombine.high %v17897_v10, %v17898_v28  ;;  %v15163_v60 = vrot.slane %v17902_v47, %v17729_v2  ;;  %v17904_v47 = vcombine.low %v14775_v5, %v14908_v26  ;;  %v17913_v44 = vld [vmem:[#allocation121_spill] sm:$0xff]  ;;  %v17920_v5 = vld [vmem:[#allocation62_spill] sm:$0xff] }
 0x3c6   : > { %17891 = vst [vmem:[#allocation229_spill] sm:$0xff] %v15122_v52  ;;  %8711 = vst [vmem:[%s14919_s29 + $0x10] sm:$0xff] %v8589_v16  ;;  %v15154_v16 = vrot.slane %v17900_v9, %v17729_v2  ;;  %v17915_v28 = vcombine.high %v17913_v44, %v17914_v20  ;;  %v17926_v26 = vcombine.low %v14805_v21, %v14954_v22  ;;  %v17932_v10 = vld [vmem:[#allocation137_spill] sm:$0xff] }
 0x3c7   : > { %8332 = vrot.lane.b32.xlu0 %v17899_v27, %s9539_s20  ;;  %v15181_v51 = vrot.slane %v17904_v47, %v17729_v2  ;;  %v15197_v47 = vrot.slane %v17911_v49, %v17729_v2  ;;  %v17921_v49 = vld [vmem:[#allocation7_spill] sm:$0xff]  ;;  %v17958_v52 = vcombine.high %v14799_v17, %v14951_v36 }
 0x3c8   : > { %17901 = vst [vmem:[#allocation106_spill] sm:$0xff] %v15154_v16  ;;  %8110 = vrot.lane.b32.xlu1 %v4257_v15, %s9539_s20  ;;  %v8109_v9 = vpop.permute.xlu0 %8108  ;;  %v15234_v44 = vrot.slane %v17926_v26, %v17729_v2 }
 0x3c9   : > { %17905 = vst [vmem:[#allocation136_spill] sm:$0xff] %v15181_v51  ;;  %v8591_v55 = vsel %vm8580_vm1, %v17908_v19, %v8109_v9  ;;  %17912 = vst [vmem:[#allocation22_spill] sm:$0xff] %v15197_v47  ;;  %v17917_v19 = vld [vmem:[#allocation59_spill] sm:$0xff]  ;;  %v17969_v51 = vld [vmem:[#allocation141_spill] sm:$0xff] }
 0x3ca   : > { %8775 = vst [vmem:[%s14919_s29 + $0x210] sm:$0xff] %v8591_v55  ;;  %v17918_v27 = vcombine.low %v14783_v37, %v17917_v19  ;;  %v17924_v43 = vcombine.high %v14783_v37, %v17917_v19  ;;  %17927 = vst [vmem:[#allocation218_spill] sm:$0xff] %v15234_v44  ;;  %v17929_v37 = vcombine.high %v14805_v21, %v14954_v22  ;;  %v17939_v19 = vld [vmem:[#allocation206_spill] sm:$0xff] }
 0x3cb   : > { %8344 = vrot.lane.b32.xlu0 %v17915_v28, %s9539_s20  ;;  %v17922_v28 = vcombine.high %v17920_v5, %v17921_v49  ;;  %v17936_v21 = vcombine.low %v14819_v25, %v14957_v8 }
 0x3cc   : > { %v15212_v15 = vrot.slane %v17918_v27, %v17729_v2  ;;  %v15226_v20 = vrot.slane %v17924_v43, %v17729_v2  ;;  %v8121_v49 = vpop.permute.xlu0 %8120  ;;  %v15244_v43 = vrot.slane %v17929_v37, %v17729_v2  ;;  %v17931_v27 = vld [vmem:[#allocation15_spill] sm:$0xff]  ;;  %v17938_v37 = vld [vmem:[#allocation169_spill] sm:$0xff] }
 0x3cd   : > { %8122 = vrot.lane.b32.xlu1 %v17922_v28, %s9539_s20  ;;  %v17933_v26 = vcombine.low %v17931_v27, %v17932_v10  ;;  %v15260_v22 = vrot.slane %v17936_v21, %v17729_v2  ;;  %v17940_v30 = vcombine.high %v17938_v37, %v17939_v19  ;;  %v17946_v27 = vcombine.low %v14793_v24, %v14948_v53  ;;  %v17953_v19 = vld [vmem:[#allocation33_spill] sm:$0xff]  ;;  %v18024_v28 = vld [vmem:[#allocation194_spill] sm:$0xff] }
 0x3ce   : > { %17919 = vst [vmem:[#allocation186_spill] sm:$0xff] %v15212_v15  ;;  %17925 = vst [vmem:[#allocation217_spill] sm:$0xff] %v15226_v20  ;;  %v18008_v10 = vld [vmem:[#allocation193_spill] sm:$0xff] }
 0x3cf   : > { %17930 = vst [vmem:[#allocation219_spill] sm:$0xff] %v15244_v43  ;;  %v8593_v12 = vsel %vm8580_vm1, %v17933_v26, %v8121_v49  ;;  %17937 = vst [vmem:[#allocation59_spill] sm:$0xff] %v15260_v22  ;;  %8348 = vrot.lane.b32.xlu0 %v17940_v30, %s9539_s20  ;;  %v17942_v26 = vcombine.high %v14819_v25, %v14957_v8  ;;  %v17944_v30 = vcombine.high %v14474_v40, %v15015_v61  ;;  %v17960_v25 = vld [vmem:[#allocation122_spill] sm:$0xff]  ;;  %v17968_v61 = vld [vmem:[#allocation107_spill] sm:$0xff] }
 0x3d0   : > { %8712 = vst [vmem:[%s14919_s29 + $0x18] sm:$0xff] %v8593_v12  ;;  %v15289_v5 = vrot.slane %v17946_v27, %v17729_v2  ;;  %v17948_v8 = vcombine.high %v14793_v24, %v14948_v53  ;;  %v8125_v12 = vpop.permute.xlu0 %8124  ;;  %v17951_v27 = vcombine.low %v14799_v17, %v14951_v36  ;;  %v17954_v24 = vld [vmem:[#allocation187_spill] sm:$0xff]  ;;  %v17962_v13 = vcombine.high %v17960_v25, %v17961_v48  ;;  %v17965_v36 = vld [vmem:[#allocation93_spill] sm:$0xff] }
 0x3d1   : > { %v15275_v9 = vrot.slane %v17942_v26, %v17729_v2  ;;  %8126 = vrot.lane.b32.xlu1 %v17944_v30, %s9539_s20  ;;  %v17955_v53 = vcombine.low %v17953_v19, %v17954_v24  ;;  %v17964_v17 = vld [vmem:[#allocation63_spill] sm:$0xff]  ;;  %v17970_v24 = vcombine.low %v17968_v61, %v17969_v51  ;;  %v17981_v51 = vld [vmem:[#allocation64_spill] sm:$0xff] }
 0x3d2   : > { %17947 = vst [vmem:[#allocation137_spill] sm:$0xff] %v15289_v5  ;;  %v15297_v26 = vrot.slane %v17948_v8, %v17729_v2  ;;  %v15307_v40 = vrot.slane %v17951_v27, %v17729_v2  ;;  %v15323_v27 = vrot.slane %v17958_v52, %v17729_v2  ;;  %v17966_v52 = vcombine.high %v17964_v17, %v17965_v36  ;;  %v17972_v43 = vld [vmem:[#allocation207_spill] sm:$0xff]  ;;  %v17985_v19 = vld [vmem:[#allocation20_spill] sm:$0xff] }
 0x3d3   : > { %17943 = vst [vmem:[#allocation15_spill] sm:$0xff] %v15275_v9  ;;  %v8595_v8 = vsel %vm8580_vm1, %v17955_v53, %v8125_v12  ;;  %8360 = vrot.lane.b32.xlu0 %v17962_v13, %s9539_s20  ;;  %v17992_v5 = vld [vmem:[#allocation192_spill] sm:$0xff]  ;;  %v18001_v22 = vld [vmem:[#allocation143_spill] sm:$0xff] }
 0x3d4   : > { %17949 = vst [vmem:[#allocation231_spill] sm:$0xff] %v15297_v26  ;;  %17952 = vst [vmem:[#allocation232_spill] sm:$0xff] %v15307_v40  ;;  %v8137_v49 = vpop.permute.xlu0 %8136  ;;  %v17979_v26 = vld [vmem:[#allocation158_spill] sm:$0xff] }
 0x3d5   : > { %17959 = vst [vmem:[#allocation33_spill] sm:$0xff] %v15323_v27  ;;  %8776 = vst [vmem:[%s14919_s29 + $0x218] sm:$0xff] %v8595_v8  ;;  %8138 = vrot.lane.b32.xlu1 %v17966_v52, %s9539_s20  ;;  %v8597_v47 = vsel %vm8580_vm1, %v17970_v24, %v8137_v49  ;;  %v17971_v8 = vld [vmem:[#allocation170_spill] sm:$0xff]  ;;  %v17974_v49 = vcombine.high %v14488_v35, %v15021_v1  ;;  %v17975_v52 = vld [vmem:[#allocation155_spill] sm:$0xff] }
 0x3d6   : > { %8713 = vst [vmem:[%s14919_s29 + $0x20] sm:$0xff] %v8597_v47  ;;  %v17973_v12 = vcombine.high %v17971_v8, %v17972_v43  ;;  %v17976_v47 = vld [vmem:[#allocation190_spill] sm:$0xff] }
 0x3d7   : > { %v17977_v2 = vcombine.low %v17975_v52, %v17976_v47  ;;  %v17982_v27 = vld [vmem:[#allocation94_spill] sm:$0xff] }
 0x3d8   : > { %8364 = vrot.lane.b32.xlu0 %v17973_v12, %s9539_s20  ;;  %v8141_v24 = vpop.permute.xlu0 %8140  ;;  %v17978_v12 = vld [vmem:[#allocation123_spill] sm:$0xff]  ;;  %v17983_v13 = vcombine.high %v17981_v51, %v17982_v27 }
 0x3d9   : > { %8142 = vrot.lane.b32.xlu1 %v17974_v49, %s9539_s20  ;;  %v8599_v53 = vsel %vm8580_vm1, %v17977_v2, %v8141_v24  ;;  %v17980_v61 = vcombine.high %v17978_v12, %v17979_v26  ;;  %v17984_v49 = vld [vmem:[#allocation88_spill] sm:$0xff] }
 0x3da   : > { %8777 = vst [vmem:[%s14919_s29 + $0x220] sm:$0xff] %v8599_v53  ;;  %v17986_v33 = vcombine.low %v17984_v49, %v17985_v19  ;;  %v17987_v53 = vld [vmem:[#allocation171_spill] sm:$0xff]  ;;  %v17988_v2 = vld [vmem:[#allocation208_spill] sm:$0xff] }
 0x3db   : > { %v17989_v24 = vcombine.high %v17987_v53, %v17988_v2 }
 0x3dc   : > { %8376 = vrot.lane.b32.xlu0 %v17980_v61, %s9539_s20  ;;  %v8153_v40 = vpop.permute.xlu0 %8152  ;;  %v17990_v61 = vcombine.high %v14494_v56, %v15029_v32 }
 0x3dd   : > { %8154 = vrot.lane.b32.xlu1 %v17983_v13, %s9539_s20  ;;  %v8601_v52 = vsel %vm8580_vm1, %v17986_v33, %v8153_v40  ;;  %v17991_v13 = vld [vmem:[#allocation161_spill] sm:$0xff]  ;;  %v17994_v40 = vld [vmem:[#allocation124_spill] sm:$0xff]  ;;  %v17995_v33 = vld [vmem:[#allocation159_spill] sm:$0xff] }
 0x3de   : > { %8714 = vst [vmem:[%s14919_s29 + $0x28] sm:$0xff] %v8601_v52  ;;  %v17993_v37 = vcombine.low %v17991_v13, %v17992_v5  ;;  %v17996_v49 = vcombine.high %v17994_v40, %v17995_v33  ;;  %v17997_v52 = vld [vmem:[#allocation65_spill] sm:$0xff] }
 0x3e0   : > { %8380 = vrot.lane.b32.xlu0 %v17989_v24, %s9539_s20  ;;  %v8157_v47 = vpop.permute.xlu0 %8156  ;;  %v17998_v24 = vld [vmem:[#allocation95_spill] sm:$0xff] }
 0x3e1   : > { %8158 = vrot.lane.b32.xlu1 %v17990_v61, %s9539_s20  ;;  %v8603_v19 = vsel %vm8580_vm1, %v17993_v37, %v8157_v47  ;;  %v17999_v9 = vcombine.high %v17997_v52, %v17998_v24  ;;  %v18000_v61 = vld [vmem:[#allocation115_spill] sm:$0xff]  ;;  %v18003_v37 = vld [vmem:[#allocation172_spill] sm:$0xff]  ;;  %v18004_v47 = vld [vmem:[#allocation209_spill] sm:$0xff] }
 0x3e2   : > { %8778 = vst [vmem:[%s14919_s29 + $0x228] sm:$0xff] %v8603_v19  ;;  %v18002_v21 = vcombine.low %v18000_v61, %v18001_v22  ;;  %v18005_v13 = vcombine.high %v18003_v37, %v18004_v47  ;;  %v18006_v19 = vcombine.high %v17873_v6, %v15035_v41 }
 0x3e4   : > { %8392 = vrot.lane.b32.xlu0 %v17996_v49, %s9539_s20  ;;  %v8169_v30 = vpop.permute.xlu0 %8168 }
 0x3e5   : > { %8170 = vrot.lane.b32.xlu1 %v17999_v9, %s9539_s20  ;;  %v8605_v5 = vsel %vm8580_vm1, %v18002_v21, %v8169_v30  ;;  %v18007_v9 = vld [vmem:[#allocation162_spill] sm:$0xff]  ;;  %v18010_v21 = vld [vmem:[#allocation125_spill] sm:$0xff]  ;;  %v18011_v30 = vld [vmem:[#allocation160_spill] sm:$0xff] }
 0x3e6   : > { %8715 = vst [vmem:[%s14919_s29 + $0x30] sm:$0xff] %v8605_v5  ;;  %v18009_v44 = vcombine.low %v18007_v9, %v18008_v10  ;;  %v18012_v61 = vcombine.high %v18010_v21, %v18011_v30  ;;  %v18013_v5 = vld [vmem:[#allocation66_spill] sm:$0xff] }
 0x3e8   : > { %8396 = vrot.lane.b32.xlu0 %v18005_v13, %s9539_s20  ;;  %v8173_v49 = vpop.permute.xlu0 %8172  ;;  %v18014_v13 = vld [vmem:[#allocation96_spill] sm:$0xff] }
 0x3e9   : > { %8174 = vrot.lane.b32.xlu1 %v18006_v19, %s9539_s20  ;;  %v8607_v22 = vsel %vm8580_vm1, %v18009_v44, %v8173_v49  ;;  %v18015_v11 = vcombine.high %v18013_v5, %v18014_v13  ;;  %v18016_v19 = vld [vmem:[#allocation13_spill] sm:$0xff]  ;;  %v18020_v49 = vld [vmem:[#allocation210_spill] sm:$0xff] }
 0x3ea   : > { %8779 = vst [vmem:[%s14919_s29 + $0x230] sm:$0xff] %v8607_v22  ;;  %v18018_v15 = vcombine.low %v18016_v19, %v18017_v63  ;;  %v18019_v44 = vld [vmem:[#allocation173_spill] sm:$0xff]  ;;  %v18022_v22 = vcombine.high %v14506_v39, %v15041_v7 }
 0x3eb   : > { %v18021_v9 = vcombine.high %v18019_v44, %v18020_v49  ;;  %v18033_v39 = vld [vmem:[#allocation145_spill] sm:$0xff] }
 0x3ec   : > { %8408 = vrot.lane.b32.xlu0 %v18012_v61, %s9539_s20  ;;  %v8185_v20 = vpop.permute.xlu0 %8184 }
 0x3ed   : > { %8186 = vrot.lane.b32.xlu1 %v18015_v11, %s9539_s20  ;;  %v8609_v10 = vsel %vm8580_vm1, %v18018_v15, %v8185_v20  ;;  %v18023_v11 = vld [vmem:[#allocation164_spill] sm:$0xff]  ;;  %v18026_v20 = vld [vmem:[#allocation126_spill] sm:$0xff]  ;;  %v18027_v15 = vld [vmem:[#allocation133_spill] sm:$0xff] }
 0x3ee   : > { %8716 = vst [vmem:[%s14919_s29 + $0x38] sm:$0xff] %v8609_v10  ;;  %v18025_v55 = vcombine.low %v18023_v11, %v18024_v28  ;;  %v18028_v19 = vcombine.high %v18026_v20, %v18027_v15  ;;  %v18029_v10 = vld [vmem:[#allocation67_spill] sm:$0xff] }
 0x3f0   : > { %8412 = vrot.lane.b32.xlu0 %v18021_v9, %s9539_s20  ;;  %v8189_v61 = vpop.permute.xlu0 %8188  ;;  %v18030_v9 = vld [vmem:[#allocation97_spill] sm:$0xff] }
 0x3f1   : > { %8190 = vrot.lane.b32.xlu1 %v18022_v22, %s9539_s20  ;;  %v8611_v63 = vsel %vm8580_vm1, %v18025_v55, %v8189_v61  ;;  %v18031_v49 = vcombine.high %v18029_v10, %v18030_v9  ;;  %v18032_v22 = vld [vmem:[#allocation90_spill] sm:$0xff]  ;;  %v18040_v9 = vld [vmem:[#allocation195_spill] sm:$0xff] }
 0x3f2   : > { %8780 = vst [vmem:[%s14919_s29 + $0x238] sm:$0xff] %v8611_v63  ;;  %v18034_v44 = vcombine.low %v18032_v22, %v18033_v39  ;;  %v18035_v55 = vld [vmem:[#allocation174_spill] sm:$0xff]  ;;  %v18038_v63 = vcombine.high %v17877_v29, %v15047_v42 }
 0x3f3   : > { %v18036_v61 = vld [vmem:[#allocation182_spill] sm:$0xff] }
 0x3f4   : > { %8424 = vrot.lane.b32.xlu0 %v18028_v19, %s9539_s20  ;;  %v8201_v7 = vpop.permute.xlu0 %8200  ;;  %v18037_v11 = vcombine.high %v18035_v55, %v18036_v61  ;;  %v18049_v29 = vld [vmem:[#allocation146_spill] sm:$0xff] }
 0x3f5   : > { %8202 = vrot.lane.b32.xlu1 %v18031_v49, %s9539_s20  ;;  %v8613_v28 = vsel %vm8580_vm1, %v18034_v44, %v8201_v7  ;;  %v18039_v49 = vld [vmem:[#allocation23_spill] sm:$0xff] }
 0x3f6   : > { %8717 = vst [vmem:[%s14919_s29 + $0x40] sm:$0xff] %v8613_v28  ;;  %v18041_v10 = vcombine.low %v18039_v49, %v18040_v9  ;;  %v18042_v7 = vld [vmem:[#allocation127_spill] sm:$0xff]  ;;  %v18045_v28 = vld [vmem:[#allocation68_spill] sm:$0xff] }
 0x3f7   : > { %v18043_v44 = vld [vmem:[#allocation163_spill] sm:$0xff] }
 0x3f8   : > { %8428 = vrot.lane.b32.xlu0 %v18037_v11, %s9539_s20  ;;  %v8205_v19 = vpop.permute.xlu0 %8204  ;;  %v18044_v22 = vcombine.high %v18042_v7, %v18043_v44  ;;  %v18046_v11 = vld [vmem:[#allocation98_spill] sm:$0xff] }
 0x3f9   : > { %8206 = vrot.lane.b32.xlu1 %v18038_v63, %s9539_s20  ;;  %v8615_v39 = vsel %vm8580_vm1, %v18041_v10, %v8205_v19  ;;  %v18047_v61 = vcombine.high %v18045_v28, %v18046_v11  ;;  %v18048_v63 = vld [vmem:[#allocation14_spill] sm:$0xff]  ;;  %v18051_v10 = vld [vmem:[#allocation175_spill] sm:$0xff]  ;;  %v18052_v19 = vld [vmem:[#allocation213_spill] sm:$0xff] }
 0x3fa   : > { %8781 = vst [vmem:[%s14919_s29 + $0x240] sm:$0xff] %v8615_v39  ;;  %v18050_v55 = vcombine.low %v18048_v63, %v18049_v29  ;;  %v18053_v49 = vcombine.high %v18051_v10, %v18052_v19  ;;  %v18054_v39 = vcombine.high %v14518_v31, %v15057_v3  ;;  %v18056_v11 = vld [vmem:[#allocation196_spill] sm:$0xff]  ;;  %v18065_v31 = vld [vmem:[#allocation147_spill] sm:$0xff] }
 0x3fc   : > { %8440 = vrot.lane.b32.xlu0 %v18044_v22, %s9539_s20  ;;  %v8217_v42 = vpop.permute.xlu0 %8216 }
 0x3fd   : > { %8218 = vrot.lane.b32.xlu1 %v18047_v61, %s9539_s20  ;;  %v8617_v9 = vsel %vm8580_vm1, %v18050_v55, %v8217_v42  ;;  %v18055_v61 = vld [vmem:[#allocation135_spill] sm:$0xff]  ;;  %v18058_v42 = vld [vmem:[#allocation128_spill] sm:$0xff]  ;;  %v18059_v55 = vld [vmem:[#allocation21_spill] sm:$0xff] }
 0x3fe   : > { %8718 = vst [vmem:[%s14919_s29 + $0x48] sm:$0xff] %v8617_v9  ;;  %v18057_v28 = vcombine.low %v18055_v61, %v18056_v11  ;;  %v18060_v63 = vcombine.high %v18058_v42, %v18059_v55  ;;  %v18061_v9 = vld [vmem:[#allocation69_spill] sm:$0xff] }
 0x400   : > { %8444 = vrot.lane.b32.xlu0 %v18053_v49, %s9539_s20  ;;  %v8221_v22 = vpop.permute.xlu0 %8220  ;;  %v18062_v49 = vld [vmem:[#allocation99_spill] sm:$0xff] }
 0x401   : > { %8222 = vrot.lane.b32.xlu1 %v18054_v39, %s9539_s20  ;;  %v8619_v29 = vsel %vm8580_vm1, %v18057_v28, %v8221_v22  ;;  %v18063_v19 = vcombine.high %v18061_v9, %v18062_v49  ;;  %v18064_v39 = vld [vmem:[#allocation24_spill] sm:$0xff]  ;;  %v18068_v22 = vld [vmem:[#allocation214_spill] sm:$0xff]  ;;  %v18072_v49 = vld [vmem:[#allocation197_spill] sm:$0xff] }
 0x402   : > { %8782 = vst [vmem:[%s14919_s29 + $0x248] sm:$0xff] %v8619_v29  ;;  %v18066_v10 = vcombine.low %v18064_v39, %v18065_v31  ;;  %v18067_v28 = vld [vmem:[#allocation176_spill] sm:$0xff]  ;;  %v18070_v29 = vcombine.high %v14532_v4, %v15063_v38 }
 0x403   : > { %v18069_v61 = vcombine.high %v18067_v28, %v18068_v22  ;;  %v18081_v4 = vld [vmem:[#allocation148_spill] sm:$0xff] }
 0x404   : > { %8456 = vrot.lane.b32.xlu0 %v18060_v63, %s9539_s20  ;;  %v8233_v3 = vpop.permute.xlu0 %8232 }
 0x405   : > { %8234 = vrot.lane.b32.xlu1 %v18063_v19, %s9539_s20  ;;  %v8621_v11 = vsel %vm8580_vm1, %v18066_v10, %v8233_v3  ;;  %v18071_v19 = vld [vmem:[#allocation26_spill] sm:$0xff]  ;;  %v18074_v3 = vld [vmem:[#allocation129_spill] sm:$0xff] }
 0x406   : > { %8719 = vst [vmem:[%s14919_s29 + $0x50] sm:$0xff] %v8621_v11  ;;  %v18073_v9 = vcombine.low %v18071_v19, %v18072_v49  ;;  %v18075_v10 = vld [vmem:[#allocation165_spill] sm:$0xff]  ;;  %v18077_v11 = vld [vmem:[#allocation70_spill] sm:$0xff] }
 0x407   : > { %v18076_v39 = vcombine.high %v18074_v3, %v18075_v10 }
 0x408   : > { %8460 = vrot.lane.b32.xlu0 %v18069_v61, %s9539_s20  ;;  %v8237_v63 = vpop.permute.xlu0 %8236  ;;  %v18078_v61 = vld [vmem:[#allocation100_spill] sm:$0xff] }
 0x409   : > { %8238 = vrot.lane.b32.xlu1 %v18070_v29, %s9539_s20  ;;  %v8623_v31 = vsel %vm8580_vm1, %v18073_v9, %v8237_v63  ;;  %v18079_v22 = vcombine.high %v18077_v11, %v18078_v61  ;;  %v18080_v29 = vld [vmem:[#allocation17_spill] sm:$0xff]  ;;  %v18084_v63 = vld [vmem:[#allocation215_spill] sm:$0xff]  ;;  %v18088_v61 = vld [vmem:[#allocation198_spill] sm:$0xff] }
 0x40a   : > { %8783 = vst [vmem:[%s14919_s29 + $0x250] sm:$0xff] %v8623_v31  ;;  %v18082_v28 = vcombine.low %v18080_v29, %v18081_v4  ;;  %v18083_v9 = vld [vmem:[#allocation177_spill] sm:$0xff]  ;;  %v18086_v31 = vcombine.high %v17889_v58, %v15090_v46  ;;  %v18097_v58 = vld [vmem:[#allocation150_spill] sm:$0xff] }
 0x40b   : > { %v18085_v19 = vcombine.high %v18083_v9, %v18084_v63 }
 0x40c   : > { %8472 = vrot.lane.b32.xlu0 %v18076_v39, %s9539_s20  ;;  %v8249_v38 = vpop.permute.xlu0 %8248 }
 0x40d   : > { %8250 = vrot.lane.b32.xlu1 %v18079_v22, %s9539_s20  ;;  %v8625_v49 = vsel %vm8580_vm1, %v18082_v28, %v8249_v38  ;;  %v18087_v22 = vld [vmem:[#allocation36_spill] sm:$0xff]  ;;  %v18090_v38 = vld [vmem:[#allocation130_spill] sm:$0xff] }
 0x40e   : > { %8720 = vst [vmem:[%s14919_s29 + $0x58] sm:$0xff] %v8625_v49  ;;  %v18089_v11 = vcombine.low %v18087_v22, %v18088_v61  ;;  %v18091_v28 = vld [vmem:[#allocation166_spill] sm:$0xff]  ;;  %v18093_v49 = vld [vmem:[#allocation71_spill] sm:$0xff] }
 0x40f   : > { %v18092_v29 = vcombine.high %v18090_v38, %v18091_v28 }
 0x410   : > { %8476 = vrot.lane.b32.xlu0 %v18085_v19, %s9539_s20  ;;  %v8253_v39 = vpop.permute.xlu0 %8252  ;;  %v18094_v19 = vld [vmem:[#allocation103_spill] sm:$0xff] }
 0x411   : > { %8254 = vrot.lane.b32.xlu1 %v18086_v31, %s9539_s20  ;;  %v8627_v4 = vsel %vm8580_vm1, %v18089_v11, %v8253_v39  ;;  %v18095_v63 = vcombine.high %v18093_v49, %v18094_v19  ;;  %v18096_v31 = vld [vmem:[#allocation27_spill] sm:$0xff]  ;;  %v18099_v11 = vld [vmem:[#allocation178_spill] sm:$0xff]  ;;  %v18100_v39 = vld [vmem:[#allocation216_spill] sm:$0xff] }
 0x412   : > { %8784 = vst [vmem:[%s14919_s29 + $0x258] sm:$0xff] %v8627_v4  ;;  %v18098_v9 = vcombine.low %v18096_v31, %v18097_v58  ;;  %v18101_v22 = vcombine.high %v18099_v11, %v18100_v39  ;;  %v18102_v4 = vcombine.high %v17896_v54, %v15100_v23  ;;  %v18104_v19 = vld [vmem:[#allocation200_spill] sm:$0xff]  ;;  %v18113_v54 = vld [vmem:[#allocation151_spill] sm:$0xff] }
 0x414   : > { %8488 = vrot.lane.b32.xlu0 %v18092_v29, %s9539_s20  ;;  %v8265_v46 = vpop.permute.xlu0 %8264 }
 0x415   : > { %8266 = vrot.lane.b32.xlu1 %v18095_v63, %s9539_s20  ;;  %v8629_v61 = vsel %vm8580_vm1, %v18098_v9, %v8265_v46  ;;  %v18103_v63 = vld [vmem:[#allocation32_spill] sm:$0xff]  ;;  %v18106_v46 = vld [vmem:[#allocation131_spill] sm:$0xff] }
 0x416   : > { %8721 = vst [vmem:[%s14919_s29 + $0x60] sm:$0xff] %v8629_v61  ;;  %v18105_v49 = vcombine.low %v18103_v63, %v18104_v19  ;;  %v18107_v9 = vld [vmem:[#allocation31_spill] sm:$0xff]  ;;  %v18109_v61 = vld [vmem:[#allocation72_spill] sm:$0xff] }
 0x417   : > { %v18108_v31 = vcombine.high %v18106_v46, %v18107_v9 }
 0x418   : > { %8492 = vrot.lane.b32.xlu0 %v18101_v22, %s9539_s20  ;;  %v8269_v29 = vpop.permute.xlu0 %8268  ;;  %v18110_v22 = vld [vmem:[#allocation104_spill] sm:$0xff] }
 0x419   : > { %8270 = vrot.lane.b32.xlu1 %v18102_v4, %s9539_s20  ;;  %v8631_v58 = vsel %vm8580_vm1, %v18105_v49, %v8269_v29  ;;  %v18111_v39 = vcombine.high %v18109_v61, %v18110_v22  ;;  %v18112_v4 = vld [vmem:[#allocation118_spill] sm:$0xff]  ;;  %v18115_v49 = vld [vmem:[#allocation179_spill] sm:$0xff]  ;;  %v18116_v29 = vld [vmem:[#allocation44_spill] sm:$0xff] }
 0x41a   : > { %8785 = vst [vmem:[%s14919_s29 + $0x260] sm:$0xff] %v8631_v58  ;;  %v18114_v11 = vcombine.low %v18112_v4, %v18113_v54  ;;  %v18117_v63 = vcombine.high %v18115_v49, %v18116_v29  ;;  %v18118_v58 = vcombine.high %v14553_v50, %v15106_v57  ;;  %v18120_v22 = vld [vmem:[#allocation201_spill] sm:$0xff] }
 0x41b   : > { %v18129_v50 = vld [vmem:[#allocation153_spill] sm:$0xff] }
 0x41c   : > { %8504 = vrot.lane.b32.xlu0 %v18108_v31, %s9539_s20  ;;  %v8281_v23 = vpop.permute.xlu0 %8280 }
 0x41d   : > { %8282 = vrot.lane.b32.xlu1 %v18111_v39, %s9539_s20  ;;  %v8633_v19 = vsel %vm8580_vm1, %v18114_v11, %v8281_v23  ;;  %v18119_v39 = vld [vmem:[#allocation38_spill] sm:$0xff]  ;;  %v18122_v23 = vld [vmem:[#allocation28_spill] sm:$0xff] }
 0x41e   : > { %8722 = vst [vmem:[%s14919_s29 + $0x68] sm:$0xff] %v8633_v19  ;;  %v18121_v61 = vcombine.low %v18119_v39, %v18120_v22  ;;  %v18123_v11 = vld [vmem:[#allocation18_spill] sm:$0xff]  ;;  %v18125_v19 = vld [vmem:[#allocation73_spill] sm:$0xff] }
 0x41f   : > { %v18124_v4 = vcombine.high %v18122_v23, %v18123_v11  ;;  %v18137_v11 = vld [vmem:[#allocation34_spill] sm:$0xff] }
 0x420   : > { %8508 = vrot.lane.b32.xlu0 %v18117_v63, %s9539_s20  ;;  %v8285_v31 = vpop.permute.xlu0 %8284  ;;  %v18126_v63 = vld [vmem:[#allocation105_spill] sm:$0xff] }
 0x421   : > { %8286 = vrot.lane.b32.xlu1 %v18118_v58, %s9539_s20  ;;  %v8635_v54 = vsel %vm8580_vm1, %v18121_v61, %v8285_v31  ;;  %v18127_v29 = vcombine.high %v18125_v19, %v18126_v63  ;;  %v18128_v58 = vld [vmem:[#allocation119_spill] sm:$0xff]  ;;  %v18131_v61 = vld [vmem:[#allocation140_spill] sm:$0xff] }
 0x422   : > { %8786 = vst [vmem:[%s14919_s29 + $0x268] sm:$0xff] %v8635_v54  ;;  %v18130_v49 = vcombine.low %v18128_v58, %v18129_v50  ;;  %v18132_v31 = vld [vmem:[#allocation39_spill] sm:$0xff]  ;;  %v8079_v63 = vpop.permute.xlu1 %8078  ;;  %v18140_v58 = vld [vmem:[#allocation52_spill] sm:$0xff] }
 0x423   : > { %v18133_v39 = vcombine.high %v18131_v61, %v18132_v31  ;;  %v18134_v54 = vld [vmem:[#allocation203_spill] sm:$0xff]  ;;  %v18143_v31 = vld [vmem:[#allocation134_spill] sm:$0xff] }
 0x424   : > { %8520 = vrot.lane.b32.xlu0 %v18124_v4, %s9539_s20  ;;  %v8297_v57 = vpop.permute.xlu0 %8296  ;;  %v18135_v4 = vcombine.high %v14559_v45, %v18134_v54  ;;  %v18136_v19 = vld [vmem:[#allocation167_spill] sm:$0xff]  ;;  %v18146_v54 = vld [vmem:[#allocation108_spill] sm:$0xff] }
 0x425   : > { %8298 = vrot.lane.b32.xlu1 %v18127_v29, %s9539_s20  ;;  %v8637_v22 = vsel %vm8580_vm1, %v18130_v49, %v8297_v57  ;;  %v18138_v50 = vcombine.low %v18136_v19, %v18137_v11  ;;  %v18139_v49 = vld [vmem:[#allocation199_spill] sm:$0xff] }
 0x426   : > { %8723 = vst [vmem:[%s14919_s29 + $0x70] sm:$0xff] %v8637_v22  ;;  %v18141_v22 = vcombine.low %v18139_v49, %v18140_v58  ;;  %v18152_v58 = vld [vmem:[#allocation87_spill] sm:$0xff] }
 0x427   : > { %v8091_v19 = vpop.permute.xlu1 %8090 }
 0x428   : > { %8524 = vrot.lane.b32.xlu0 %v18133_v39, %s9539_s20  ;;  %v8301_v29 = vpop.permute.xlu0 %8300  ;;  %v8584_v23 = vsel %vm8580_vm1, %v18141_v22, %v8079_v63  ;;  %v18142_v39 = vld [vmem:[#allocation91_spill] sm:$0xff] }
 0x429   : > { %8302 = vrot.lane.b32.xlu1 %v18135_v4, %s9539_s20  ;;  %v8639_v57 = vsel %vm8580_vm1, %v18138_v50, %v8301_v29  ;;  %v18144_v61 = vcombine.high %v18142_v39, %v18143_v31  ;;  %8805 = vst [vmem:[%s14919_s29 + $0x300] sm:$0xff] %v8584_v23  ;;  %v18145_v4 = vld [vmem:[#allocation74_spill] sm:$0xff]  ;;  %v18148_v29 = vld [vmem:[#allocation120_spill] sm:$0xff]  ;;  %v18154_v23 = vld [vmem:[#allocation185_spill] sm:$0xff] }
 0x42a   : > { %8787 = vst [vmem:[%s14919_s29 + $0x270] sm:$0xff] %v8639_v57  ;;  %v18147_v45 = vcombine.high %v18145_v4, %v18146_v54  ;;  %v18149_v50 = vld [vmem:[#allocation154_spill] sm:$0xff]  ;;  %v18151_v57 = vld [vmem:[#allocation60_spill] sm:$0xff] }
 0x42b   : > { %v18150_v49 = vcombine.low %v18148_v29, %v18149_v50  ;;  %v18153_v22 = vcombine.low %v18151_v57, %v18152_v58  ;;  %v8095_v29 = vpop.permute.xlu1 %8094  ;;  %v18159_v50 = vld [vmem:[#allocation37_spill] sm:$0xff]  ;;  %v18163_v58 = vld [vmem:[#allocation51_spill] sm:$0xff] }
 0x42c   : > { %8536 = vrot.lane.b32.xlu0 %v18144_v61, %s9539_s20  ;;  %v8313_v11 = vpop.permute.xlu0 %8312  ;;  %v18155_v61 = vld [vmem:[#allocation183_spill] sm:$0xff] }
 0x42d   : > { %8314 = vrot.lane.b32.xlu1 %v18147_v45, %s9539_s20  ;;  %v8641_v63 = vsel %vm8580_vm1, %v18150_v49, %v8313_v11  ;;  %v8586_v31 = vsel %vm8580_vm1, %v18153_v22, %v8091_v19  ;;  %v18156_v39 = vcombine.high %v18154_v23, %v18155_v61  ;;  %v18157_v45 = vld [vmem:[#allocation229_spill] sm:$0xff] }
 0x42e   : > { %8724 = vst [vmem:[%s14919_s29 + $0x78] sm:$0xff] %v8641_v63  ;;  %8742 = vst [vmem:[%s14919_s29 + $0x108] sm:$0xff] %v8586_v31  ;;  %v18158_v54 = vcombine.high %v14567_v59, %v18157_v45  ;;  %v18160_v49 = vld [vmem:[#allocation205_spill] sm:$0xff]  ;;  %v18162_v63 = vld [vmem:[#allocation47_spill] sm:$0xff] }
 0x42f   : > { %v18161_v57 = vcombine.low %v18159_v50, %v18160_v49  ;;  %v18164_v22 = vcombine.low %v18162_v63, %v18163_v58  ;;  %v18165_v31 = vld [vmem:[#allocation92_spill] sm:$0xff]  ;;  %v18169_v45 = vld [vmem:[#allocation109_spill] sm:$0xff] }
 0x430   : > { %8540 = vrot.lane.b32.xlu0 %v18156_v39, %s9539_s20  ;;  %v8317_v11 = vpop.permute.xlu0 %8316  ;;  %v18166_v39 = vld [vmem:[#allocation29_spill] sm:$0xff]  ;;  %v18175_v58 = vld [vmem:[#allocation56_spill] sm:$0xff] }
 0x431   : > { %8318 = vrot.lane.b32.xlu1 %v18158_v54, %s9539_s20  ;;  %v8643_v19 = vsel %vm8580_vm1, %v18161_v57, %v8317_v11  ;;  %v8588_v61 = vsel %vm8580_vm1, %v18164_v22, %v8095_v29  ;;  %v18167_v23 = vcombine.high %v18165_v31, %v18166_v39  ;;  %v18168_v54 = vld [vmem:[#allocation75_spill] sm:$0xff]  ;;  %v18171_v49 = vld [vmem:[#allocation25_spill] sm:$0xff]  ;;  %v18172_v57 = vld [vmem:[#allocation156_spill] sm:$0xff] }
 0x432   : > { %8788 = vst [vmem:[%s14919_s29 + $0x278] sm:$0xff] %v8643_v19  ;;  %8806 = vst [vmem:[%s14919_s29 + $0x308] sm:$0xff] %v8588_v61  ;;  %v18170_v59 = vcombine.high %v18168_v54, %v18169_v45  ;;  %v18173_v63 = vcombine.low %v18171_v49, %v18172_v57  ;;  %v18174_v19 = vld [vmem:[#allocation61_spill] sm:$0xff]  ;;  %v18178_v61 = vld [vmem:[#allocation180_spill] sm:$0xff] }
 0x433   : > { %v18176_v22 = vcombine.low %v18174_v19, %v18175_v58  ;;  %v18181_v45 = vld [vmem:[#allocation230_spill] sm:$0xff]  ;;  %v18183_v57 = vld [vmem:[#allocation168_spill] sm:$0xff] }
 0x434   : > { %8552 = vrot.lane.b32.xlu0 %v18167_v23, %s9539_s20  ;;  %v8329_v11 = vpop.permute.xlu0 %8328  ;;  %v18177_v23 = vld [vmem:[#allocation139_spill] sm:$0xff]  ;;  %v18187_v58 = vld [vmem:[#allocation6_spill] sm:$0xff] }
 0x435   : > { %8330 = vrot.lane.b32.xlu1 %v18170_v59, %s9539_s20  ;;  %v8645_v29 = vsel %vm8580_vm1, %v18173_v63, %v8329_v11  ;;  %v18179_v31 = vcombine.high %v18177_v23, %v18178_v61  ;;  %v18180_v59 = vld [vmem:[#allocation48_spill] sm:$0xff]  ;;  %v18184_v63 = vld [vmem:[#allocation43_spill] sm:$0xff] }
 0x436   : > { %v8107_v50 = vpop.permute.xlu1 %8106  ;;  %8725 = vst [vmem:[%s14919_s29 + $0x80] sm:$0xff] %v8645_v29  ;;  %v18182_v54 = vcombine.high %v18180_v59, %v18181_v45  ;;  %v18185_v19 = vcombine.low %v18183_v57, %v18184_v63  ;;  %v18186_v29 = vld [vmem:[#allocation50_spill] sm:$0xff]  ;;  %v18193_v45 = vld [vmem:[#allocation11_spill] sm:$0xff] }
 0x437   : > { %v8590_v39 = vsel %vm8580_vm1, %v18176_v22, %v8107_v50  ;;  %v18188_v22 = vcombine.low %v18186_v29, %v18187_v58  ;;  %v18196_v29 = vld [vmem:[#allocation30_spill] sm:$0xff] }
 0x438   : > { %8556 = vrot.lane.b32.xlu0 %v18179_v31, %s9539_s20  ;;  %8743 = vst [vmem:[%s14919_s29 + $0x110] sm:$0xff] %v8590_v39  ;;  %v18189_v31 = vld [vmem:[#allocation101_spill] sm:$0xff]  ;;  %v18190_v39 = vld [vmem:[#allocation138_spill] sm:$0xff] }
 0x439   : > { %8334 = vrot.lane.b32.xlu1 %v18182_v54, %s9539_s20  ;;  %v8333_v11 = vpop.permute.xlu0 %8332  ;;  %v18191_v23 = vcombine.high %v18189_v31, %v18190_v39  ;;  %v18192_v54 = vld [vmem:[#allocation76_spill] sm:$0xff] }
 0x43a   : > { %v8111_v49 = vpop.permute.xlu1 %8110  ;;  %v8647_v50 = vsel %vm8580_vm1, %v18185_v19, %v8333_v11  ;;  %v18194_v57 = vcombine.high %v18192_v54, %v18193_v45  ;;  %v18195_v19 = vld [vmem:[#allocation121_spill] sm:$0xff] }
 0x43b   : > { %v8592_v61 = vsel %vm8580_vm1, %v18188_v22, %v8111_v49  ;;  %8789 = vst [vmem:[%s14919_s29 + $0x280] sm:$0xff] %v8647_v50  ;;  %v18197_v58 = vcombine.low %v18195_v19, %v18196_v29  ;;  %v18198_v50 = vld [vmem:[#allocation62_spill] sm:$0xff]  ;;  %v18199_v22 = vld [vmem:[#allocation7_spill] sm:$0xff]  ;;  %v18205_v29 = vld [vmem:[#allocation169_spill] sm:$0xff] }
 0x43c   : > { %8568 = vrot.lane.b32.xlu0 %v18191_v23, %s9539_s20  ;;  %8807 = vst [vmem:[%s14919_s29 + $0x310] sm:$0xff] %v8592_v61  ;;  %v18200_v59 = vcombine.low %v18198_v50, %v18199_v22  ;;  %v18201_v23 = vld [vmem:[#allocation142_spill] sm:$0xff]  ;;  %v18202_v61 = vld [vmem:[#allocation189_spill] sm:$0xff] }
 0x43d   : > { %8346 = vrot.lane.b32.xlu1 %v18194_v57, %s9539_s20  ;;  %v8345_v11 = vpop.permute.xlu0 %8344  ;;  %v18203_v31 = vcombine.high %v18201_v23, %v18202_v61  ;;  %v18204_v57 = vcombine.high %v14580_v14, %v15154_v16 }
 0x43e   : > { %v8649_v49 = vsel %vm8580_vm1, %v18197_v58, %v8345_v11  ;;  %v18206_v58 = vld [vmem:[#allocation206_spill] sm:$0xff] }
 0x43f   : > { %v8123_v63 = vpop.permute.xlu1 %8122  ;;  %8726 = vst [vmem:[%s14919_s29 + $0x88] sm:$0xff] %v8649_v49  ;;  %v18207_v50 = vcombine.low %v18205_v29, %v18206_v58  ;;  %v18209_v49 = vld [vmem:[#allocation102_spill] sm:$0xff]  ;;  %v18214_v29 = vcombine.low %v17960_v25, %v17961_v48  ;;  %v18215_v58 = vcombine.low %v17964_v17, %v17965_v36  ;;  %v18217_v48 = vcombine.low %v17971_v8, %v17972_v43  ;;  %v18220_v36 = vld [vmem:[#allocation111_spill] sm:$0xff] }
 0x440   : > { %v8594_v39 = vsel %vm8580_vm1, %v18200_v59, %v8123_v63  ;;  %8572 = vrot.lane.b32.xlu0 %v18203_v31, %s9539_s20  ;;  %v18208_v63 = vld [vmem:[#allocation202_spill] sm:$0xff]  ;;  %v18211_v31 = vld [vmem:[#allocation77_spill] sm:$0xff]  ;;  %v18218_v25 = vcombine.low %v14488_v35, %v15021_v1  ;;  %v18222_v43 = vcombine.low %v17978_v12, %v17979_v26  ;;  %v18223_v35 = vcombine.low %v17981_v51, %v17982_v27 }
 0x441   : > { %8744 = vst [vmem:[%s14919_s29 + $0x118] sm:$0xff] %v8594_v39  ;;  %8350 = vrot.lane.b32.xlu1 %v18204_v57, %s9539_s20  ;;  %v8349_v11 = vpop.permute.xlu0 %8348  ;;  %v18210_v22 = vcombine.low %v18208_v63, %v18209_v49  ;;  %v18212_v39 = vld [vmem:[#allocation110_spill] sm:$0xff]  ;;  %v18225_v26 = vcombine.low %v17987_v53, %v17988_v2  ;;  %v18226_v27 = vcombine.low %v14494_v56, %v15029_v32 }
 0x442   : > { %v8651_v59 = vsel %vm8580_vm1, %v18207_v50, %v8349_v11  ;;  %v18213_v57 = vcombine.high %v18211_v31, %v18212_v39  ;;  %v18219_v17 = vld [vmem:[#allocation78_spill] sm:$0xff]  ;;  %v18230_v53 = vcombine.low %v17994_v40, %v17995_v33  ;;  %v18231_v56 = vcombine.low %v17997_v52, %v17998_v24 }
 0x443   : > { %v8127_v19 = vpop.permute.xlu1 %8126  ;;  %8790 = vst [vmem:[%s14919_s29 + $0x288] sm:$0xff] %v8651_v59  ;;  %v18221_v63 = vcombine.high %v18219_v17, %v18220_v36  ;;  %v18234_v40 = vcombine.low %v18003_v37, %v18004_v47  ;;  %v18235_v52 = vcombine.low %v17873_v6, %v15035_v41  ;;  %v18239_v37 = vcombine.low %v18010_v21, %v18011_v30  ;;  %v18245_v21 = vld [vmem:[#allocation210_spill] sm:$0xff] }
 0x444   : > { %v8596_v61 = vsel %vm8580_vm1, %v18210_v22, %v8127_v19  ;;  %v18240_v6 = vcombine.low %v18013_v5, %v18014_v13  ;;  %v18248_v5 = vld [vmem:[#allocation19_spill] sm:$0xff] }
 0x445   : > { %8808 = vst [vmem:[%s14919_s29 + $0x318] sm:$0xff] %v8596_v61  ;;  %8362 = vrot.lane.b32.xlu1 %v18213_v57, %s9539_s20  ;;  %v8361_v16 = vpop.permute.xlu0 %8360  ;;  %v18216_v61 = vcombine.high %v17909_v34, %v15163_v60  ;;  %v18224_v57 = vcombine.high %v17910_v0, %v15171_v62 }
 0x446   : > { %v8653_v11 = vsel %vm8580_vm1, %v18214_v29, %v8361_v16 }
 0x447   : > { %v8139_v14 = vpop.permute.xlu1 %8138  ;;  %8727 = vst [vmem:[%s14919_s29 + $0x90] sm:$0xff] %v8653_v11 }
 0x448   : > { %v8598_v19 = vsel %vm8580_vm1, %v18215_v58, %v8139_v14  ;;  %v18227_v58 = vld [vmem:[#allocation79_spill] sm:$0xff] }
 0x449   : > { %8745 = vst [vmem:[%s14919_s29 + $0x120] sm:$0xff] %v8598_v19  ;;  %8366 = vrot.lane.b32.xlu1 %v18216_v61, %s9539_s20  ;;  %v18228_v19 = vld [vmem:[#allocation112_spill] sm:$0xff] }
 0x44a   : > { %v8365_v50 = vpop.permute.xlu0 %8364  ;;  %v18229_v61 = vcombine.high %v18227_v58, %v18228_v19 }
 0x44b   : > { %v8143_v59 = vpop.permute.xlu1 %8142  ;;  %v8655_v16 = vsel %vm8580_vm1, %v18217_v48, %v8365_v50  ;;  %v18232_v48 = vld [vmem:[#allocation136_spill] sm:$0xff] }
 0x44c   : > { %v8600_v14 = vsel %vm8580_vm1, %v18218_v25, %v8143_v59  ;;  %8791 = vst [vmem:[%s14919_s29 + $0x290] sm:$0xff] %v8655_v16  ;;  %v18233_v16 = vcombine.high %v17916_v18, %v18232_v48 }
 0x44d   : > { %8809 = vst [vmem:[%s14919_s29 + $0x320] sm:$0xff] %v8600_v14  ;;  %8378 = vrot.lane.b32.xlu1 %v18221_v63, %s9539_s20  ;;  %v18236_v63 = vld [vmem:[#allocation80_spill] sm:$0xff] }
 0x44e   : > { %v8377_v49 = vpop.permute.xlu0 %8376 }
 0x44f   : > { %v8155_v22 = vpop.permute.xlu1 %8154  ;;  %v8657_v8 = vsel %vm8580_vm1, %v18222_v43, %v8377_v49  ;;  %v18237_v49 = vld [vmem:[#allocation113_spill] sm:$0xff] }
 0x450   : > { %v8602_v1 = vsel %vm8580_vm1, %v18223_v35, %v8155_v22  ;;  %8728 = vst [vmem:[%s14919_s29 + $0x98] sm:$0xff] %v8657_v8  ;;  %v18238_v22 = vcombine.high %v18236_v63, %v18237_v49  ;;  %v18241_v35 = vld [vmem:[#allocation220_spill] sm:$0xff] }
 0x451   : > { %8746 = vst [vmem:[%s14919_s29 + $0x128] sm:$0xff] %v8602_v1  ;;  %8382 = vrot.lane.b32.xlu1 %v18224_v57, %s9539_s20  ;;  %v18242_v1 = vld [vmem:[#allocation22_spill] sm:$0xff] }
 0x452   : > { %v8381_v29 = vpop.permute.xlu0 %8380  ;;  %v18243_v57 = vcombine.high %v18241_v35, %v18242_v1 }
 0x453   : > { %v8159_v11 = vpop.permute.xlu1 %8158  ;;  %v8659_v12 = vsel %vm8580_vm1, %v18225_v26, %v8381_v29  ;;  %v18244_v26 = vld [vmem:[#allocation173_spill] sm:$0xff] }
 0x454   : > { %v8604_v51 = vsel %vm8580_vm1, %v18226_v27, %v8159_v11  ;;  %8792 = vst [vmem:[%s14919_s29 + $0x298] sm:$0xff] %v8659_v12  ;;  %v18246_v30 = vcombine.low %v18244_v26, %v18245_v21  ;;  %v18247_v27 = vld [vmem:[#allocation181_spill] sm:$0xff] }
 0x455   : > { %8810 = vst [vmem:[%s14919_s29 + $0x328] sm:$0xff] %v8604_v51  ;;  %8394 = vrot.lane.b32.xlu1 %v18229_v61, %s9539_s20  ;;  %v18249_v13 = vcombine.low %v18247_v27, %v18248_v5  ;;  %v18250_v61 = vld [vmem:[#allocation81_spill] sm:$0xff]  ;;  %v18270_v5 = vld [vmem:[#allocation68_spill] sm:$0xff] }
 0x456   : > { %v8393_v50 = vpop.permute.xlu0 %8392 }
 0x457   : > { %v8171_v59 = vpop.permute.xlu1 %8170  ;;  %v8661_v2 = vsel %vm8580_vm1, %v18230_v53, %v8393_v50  ;;  %v18251_v50 = vld [vmem:[#allocation5_spill] sm:$0xff] }
 0x458   : > { %v8606_v32 = vsel %vm8580_vm1, %v18231_v56, %v8171_v59  ;;  %8729 = vst [vmem:[%s14919_s29 + $0xa0] sm:$0xff] %v8661_v2  ;;  %v18252_v59 = vcombine.high %v18250_v61, %v18251_v50  ;;  %v18253_v56 = vcombine.low %v18026_v20, %v18027_v15  ;;  %v18261_v20 = vld [vmem:[#allocation182_spill] sm:$0xff] }
 0x459   : > { %8747 = vst [vmem:[%s14919_s29 + $0x130] sm:$0xff] %v8606_v32  ;;  %8398 = vrot.lane.b32.xlu1 %v18233_v16, %s9539_s20  ;;  %v18254_v16 = vld [vmem:[#allocation67_spill] sm:$0xff] }
 0x45a   : > { %v8397_v25 = vpop.permute.xlu0 %8396 }
 0x45b   : > { %v8175_v14 = vpop.permute.xlu1 %8174  ;;  %v8663_v33 = vsel %vm8580_vm1, %v18234_v40, %v8397_v25  ;;  %v18255_v25 = vld [vmem:[#allocation97_spill] sm:$0xff] }
 0x45c   : > { %v8608_v24 = vsel %vm8580_vm1, %v18235_v52, %v8175_v14  ;;  %8793 = vst [vmem:[%s14919_s29 + $0x2a0] sm:$0xff] %v8663_v33  ;;  %v18256_v14 = vcombine.low %v18254_v16, %v18255_v25  ;;  %v18257_v33 = vld [vmem:[#allocation221_spill] sm:$0xff]  ;;  %v18258_v52 = vld [vmem:[#allocation186_spill] sm:$0xff]  ;;  %v18276_v25 = vld [vmem:[#allocation175_spill] sm:$0xff] }
 0x45d   : > { %8811 = vst [vmem:[%s14919_s29 + $0x330] sm:$0xff] %v8608_v24  ;;  %8410 = vrot.lane.b32.xlu1 %v18238_v22, %s9539_s20  ;;  %v18259_v24 = vcombine.high %v18257_v33, %v18258_v52 }
 0x45e   : > { %v8409_v43 = vpop.permute.xlu0 %8408 }
 0x45f   : > { %v8187_v8 = vpop.permute.xlu1 %8186  ;;  %v8665_v47 = vsel %vm8580_vm1, %v18239_v37, %v8409_v43 }
 0x460   : > { %v8610_v41 = vsel %vm8580_vm1, %v18240_v6, %v8187_v8  ;;  %8730 = vst [vmem:[%s14919_s29 + $0xa8] sm:$0xff] %v8665_v47  ;;  %v18260_v8 = vld [vmem:[#allocation174_spill] sm:$0xff]  ;;  %v18264_v6 = vld [vmem:[#allocation149_spill] sm:$0xff] }
 0x461   : > { %8748 = vst [vmem:[%s14919_s29 + $0x138] sm:$0xff] %v8610_v41  ;;  %8414 = vrot.lane.b32.xlu1 %v18243_v57, %s9539_s20  ;;  %v18262_v15 = vcombine.low %v18260_v8, %v18261_v20  ;;  %v18263_v47 = vld [vmem:[#allocation46_spill] sm:$0xff]  ;;  %v18282_v8 = vld [vmem:[#allocation83_spill] sm:$0xff]  ;;  %v18283_v20 = vld [vmem:[#allocation8_spill] sm:$0xff] }
 0x462   : > { %v8413_v29 = vpop.permute.xlu0 %8412  ;;  %v18265_v41 = vcombine.low %v18263_v47, %v18264_v6  ;;  %v18285_v6 = vcombine.low %v18058_v42, %v18059_v55  ;;  %v18293_v42 = vld [vmem:[#allocation214_spill] sm:$0xff] }
 0x463   : > { %v8191_v11 = vpop.permute.xlu1 %8190  ;;  %v8667_v12 = vsel %vm8580_vm1, %v18246_v30, %v8413_v29  ;;  %v18266_v29 = vld [vmem:[#allocation82_spill] sm:$0xff] }
 0x464   : > { %v8612_v51 = vsel %vm8580_vm1, %v18249_v13, %v8191_v11  ;;  %8794 = vst [vmem:[%s14919_s29 + $0x2a8] sm:$0xff] %v8667_v12  ;;  %v18267_v11 = vld [vmem:[#allocation114_spill] sm:$0xff]  ;;  %v18269_v12 = vcombine.low %v18042_v7, %v18043_v44  ;;  %v18277_v7 = vld [vmem:[#allocation213_spill] sm:$0xff] }
 0x465   : > { %8812 = vst [vmem:[%s14919_s29 + $0x338] sm:$0xff] %v8612_v51  ;;  %8426 = vrot.lane.b32.xlu1 %v18252_v59, %s9539_s20  ;;  %v18268_v26 = vcombine.high %v18266_v29, %v18267_v11  ;;  %v18271_v13 = vld [vmem:[#allocation98_spill] sm:$0xff]  ;;  %v18278_v44 = vcombine.low %v18276_v25, %v18277_v7 }
 0x466   : > { %v8425_v53 = vpop.permute.xlu0 %8424  ;;  %v18272_v51 = vcombine.low %v18270_v5, %v18271_v13 }
 0x467   : > { %v8203_v2 = vpop.permute.xlu1 %8202  ;;  %v8669_v32 = vsel %vm8580_vm1, %v18253_v56, %v8425_v53  ;;  %v18273_v53 = vld [vmem:[#allocation222_spill] sm:$0xff] }
 0x468   : > { %v8614_v40 = vsel %vm8580_vm1, %v18256_v14, %v8203_v2  ;;  %8731 = vst [vmem:[%s14919_s29 + $0xb0] sm:$0xff] %v8669_v32  ;;  %v18274_v2 = vld [vmem:[#allocation217_spill] sm:$0xff] }
 0x469   : > { %8749 = vst [vmem:[%s14919_s29 + $0x140] sm:$0xff] %v8614_v40  ;;  %8430 = vrot.lane.b32.xlu1 %v18259_v24, %s9539_s20  ;;  %v18275_v56 = vcombine.high %v18273_v53, %v18274_v2  ;;  %v18279_v40 = vld [vmem:[#allocation204_spill] sm:$0xff]  ;;  %v18280_v24 = vld [vmem:[#allocation35_spill] sm:$0xff] }
 0x46a   : > { %v8429_v22 = vpop.permute.xlu0 %8428 }
 0x46b   : > { %v8207_v43 = vpop.permute.xlu1 %8206  ;;  %v8671_v37 = vsel %vm8580_vm1, %v18262_v15, %v8429_v22  ;;  %v18281_v22 = vcombine.low %v18279_v40, %v18280_v24  ;;  %v18284_v15 = vcombine.high %v18282_v8, %v18283_v20 }
 0x46c   : > { %v8616_v57 = vsel %vm8580_vm1, %v18265_v41, %v8207_v43  ;;  %8795 = vst [vmem:[%s14919_s29 + $0x2b0] sm:$0xff] %v8671_v37 }
 0x46d   : > { %8813 = vst [vmem:[%s14919_s29 + $0x340] sm:$0xff] %v8616_v57  ;;  %8442 = vrot.lane.b32.xlu1 %v18268_v26, %s9539_s20  ;;  %v18286_v57 = vld [vmem:[#allocation69_spill] sm:$0xff]  ;;  %v18287_v26 = vld [vmem:[#allocation99_spill] sm:$0xff] }
 0x46e   : > { %v8441_v21 = vpop.permute.xlu0 %8440 }
 0x46f   : > { %v8219_v30 = vpop.permute.xlu1 %8218  ;;  %v8673_v27 = vsel %vm8580_vm1, %v18269_v12, %v8441_v21  ;;  %v18288_v21 = vcombine.low %v18286_v57, %v18287_v26  ;;  %v18289_v12 = vld [vmem:[#allocation223_spill] sm:$0xff]  ;;  %v18305_v57 = vld [vmem:[#allocation224_spill] sm:$0xff] }
 0x470   : > { %v8618_v59 = vsel %vm8580_vm1, %v18272_v51, %v8219_v30  ;;  %8732 = vst [vmem:[%s14919_s29 + $0xb8] sm:$0xff] %v8673_v27  ;;  %v18290_v27 = vld [vmem:[#allocation218_spill] sm:$0xff]  ;;  %v18306_v26 = vld [vmem:[#allocation219_spill] sm:$0xff] }
 0x471   : > { %8750 = vst [vmem:[%s14919_s29 + $0x148] sm:$0xff] %v8618_v59  ;;  %8446 = vrot.lane.b32.xlu1 %v18275_v56, %s9539_s20  ;;  %v18291_v5 = vcombine.high %v18289_v12, %v18290_v27  ;;  %v18292_v59 = vld [vmem:[#allocation176_spill] sm:$0xff] }
 0x472   : > { %v8445_v32 = vpop.permute.xlu0 %8444  ;;  %v18294_v55 = vcombine.low %v18292_v59, %v18293_v42  ;;  %v18311_v59 = vld [vmem:[#allocation212_spill] sm:$0xff] }
 0x473   : > { %v8223_v16 = vpop.permute.xlu1 %8222  ;;  %v8675_v14 = vsel %vm8580_vm1, %v18278_v44, %v8445_v32  ;;  %v18295_v32 = vld [vmem:[#allocation211_spill] sm:$0xff]  ;;  %v18298_v44 = vld [vmem:[#allocation84_spill] sm:$0xff] }
 0x474   : > { %v8620_v43 = vsel %vm8580_vm1, %v18281_v22, %v8223_v16  ;;  %8796 = vst [vmem:[%s14919_s29 + $0x2b8] sm:$0xff] %v8675_v14  ;;  %v18296_v16 = vld [vmem:[#allocation10_spill] sm:$0xff]  ;;  %v18299_v14 = vld [vmem:[#allocation116_spill] sm:$0xff] }
 0x475   : > { %8814 = vst [vmem:[%s14919_s29 + $0x348] sm:$0xff] %v8620_v43  ;;  %8458 = vrot.lane.b32.xlu1 %v18284_v15, %s9539_s20  ;;  %v18297_v25 = vcombine.low %v18295_v32, %v18296_v16  ;;  %v18300_v40 = vcombine.high %v18298_v44, %v18299_v14  ;;  %v18301_v43 = vcombine.low %v18074_v3, %v18075_v10  ;;  %v18309_v3 = vld [vmem:[#allocation215_spill] sm:$0xff]  ;;  %v18312_v42 = vld [vmem:[#allocation132_spill] sm:$0xff]  ;;  %v18314_v32 = vld [vmem:[#allocation57_spill] sm:$0xff] }
 0x476   : > { %v8457_v37 = vpop.permute.xlu0 %8456  ;;  %v18315_v16 = vld [vmem:[#allocation117_spill] sm:$0xff] }
 0x477   : > { %v8235_v47 = vpop.permute.xlu1 %8234  ;;  %v8677_v41 = vsel %vm8580_vm1, %v18285_v6, %v8457_v37  ;;  %v18302_v37 = vld [vmem:[#allocation70_spill] sm:$0xff] }
 0x478   : > { %v8622_v30 = vsel %vm8580_vm1, %v18288_v21, %v8235_v47  ;;  %8733 = vst [vmem:[%s14919_s29 + $0xc0] sm:$0xff] %v8677_v41  ;;  %v18303_v47 = vld [vmem:[#allocation100_spill] sm:$0xff]  ;;  %v18307_v21 = vcombine.high %v18305_v57, %v18306_v26 }
 0x479   : > { %8751 = vst [vmem:[%s14919_s29 + $0x150] sm:$0xff] %v8622_v30  ;;  %8462 = vrot.lane.b32.xlu1 %v18291_v5, %s9539_s20  ;;  %v18304_v6 = vcombine.low %v18302_v37, %v18303_v47 }
 0x47a   : > { %v8461_v13 = vpop.permute.xlu0 %8460 }
 0x47b   : > { %v8239_v51 = vpop.permute.xlu1 %8238  ;;  %v8679_v56 = vsel %vm8580_vm1, %v18294_v55, %v8461_v13  ;;  %v18308_v13 = vld [vmem:[#allocation177_spill] sm:$0xff]  ;;  %v18313_v55 = vcombine.low %v18311_v59, %v18312_v42 }
 0x47c   : > { %v8624_v7 = vsel %vm8580_vm1, %v18297_v25, %v8239_v51  ;;  %8797 = vst [vmem:[%s14919_s29 + $0x2c0] sm:$0xff] %v8679_v56  ;;  %v18310_v10 = vcombine.low %v18308_v13, %v18309_v3  ;;  %v18316_v25 = vcombine.high %v18314_v32, %v18315_v16  ;;  %v18324_v13 = vld [vmem:[#allocation178_spill] sm:$0xff] }
 0x47d   : > { %8815 = vst [vmem:[%s14919_s29 + $0x350] sm:$0xff] %v8624_v7  ;;  %8474 = vrot.lane.b32.xlu1 %v18300_v40, %s9539_s20 }
 0x47e   : > { %v8473_v24 = vpop.permute.xlu0 %8472 }
 0x47f   : > { %v8251_v22 = vpop.permute.xlu1 %8250  ;;  %v8681_v15 = vsel %vm8580_vm1, %v18301_v43, %v8473_v24  ;;  %v18317_v24 = vcombine.low %v18090_v38, %v18091_v28  ;;  %v18318_v43 = vld [vmem:[#allocation71_spill] sm:$0xff]  ;;  %v18325_v38 = vld [vmem:[#allocation216_spill] sm:$0xff] }
 0x480   : > { %v8626_v41 = vsel %vm8580_vm1, %v18304_v6, %v8251_v22  ;;  %8734 = vst [vmem:[%s14919_s29 + $0xc8] sm:$0xff] %v8681_v15  ;;  %v18319_v15 = vld [vmem:[#allocation103_spill] sm:$0xff]  ;;  %v18321_v6 = vld [vmem:[#allocation225_spill] sm:$0xff]  ;;  %v18326_v28 = vcombine.low %v18324_v13, %v18325_v38 }
 0x481   : > { %8752 = vst [vmem:[%s14919_s29 + $0x158] sm:$0xff] %v8626_v41  ;;  %8478 = vrot.lane.b32.xlu1 %v18307_v21, %s9539_s20  ;;  %v18320_v37 = vcombine.low %v18318_v43, %v18319_v15  ;;  %v18322_v41 = vld [vmem:[#allocation59_spill] sm:$0xff]  ;;  %v18334_v43 = vld [vmem:[#allocation72_spill] sm:$0xff] }
 0x482   : > { %v8477_v30 = vpop.permute.xlu0 %8476  ;;  %v18323_v21 = vcombine.high %v18321_v6, %v18322_v41  ;;  %v18335_v15 = vld [vmem:[#allocation104_spill] sm:$0xff] }
 0x483   : > { %v8255_v5 = vpop.permute.xlu1 %8254  ;;  %v8683_v51 = vsel %vm8580_vm1, %v18310_v10, %v8477_v30  ;;  %v18327_v10 = vld [vmem:[#allocation184_spill] sm:$0xff] }
 0x484   : > { %v8628_v56 = vsel %vm8580_vm1, %v18313_v55, %v8255_v5  ;;  %8798 = vst [vmem:[%s14919_s29 + $0x2c8] sm:$0xff] %v8683_v51  ;;  %v18328_v51 = vld [vmem:[#allocation152_spill] sm:$0xff]  ;;  %v18330_v55 = vld [vmem:[#allocation85_spill] sm:$0xff] }
 0x485   : > { %8816 = vst [vmem:[%s14919_s29 + $0x358] sm:$0xff] %v8628_v56  ;;  %8490 = vrot.lane.b32.xlu1 %v18316_v25, %s9539_s20  ;;  %v18329_v59 = vcombine.low %v18327_v10, %v18328_v51  ;;  %v18331_v56 = vld [vmem:[#allocation12_spill] sm:$0xff] }
 0x486   : > { %v8489_v7 = vpop.permute.xlu0 %8488  ;;  %v18332_v25 = vcombine.high %v18330_v55, %v18331_v56  ;;  %v18343_v10 = vld [vmem:[#allocation188_spill] sm:$0xff] }
 0x487   : > { %v8267_v40 = vpop.permute.xlu1 %8266  ;;  %v8685_v22 = vsel %vm8580_vm1, %v18317_v24, %v8489_v7  ;;  %v18333_v24 = vcombine.low %v18106_v46, %v18107_v9  ;;  %v18341_v46 = vld [vmem:[#allocation44_spill] sm:$0xff] }
 0x488   : > { %v8630_v47 = vsel %vm8580_vm1, %v18320_v37, %v8267_v40  ;;  %8735 = vst [vmem:[%s14919_s29 + $0xd0] sm:$0xff] %v8685_v22  ;;  %v18336_v37 = vcombine.low %v18334_v43, %v18335_v15  ;;  %v18344_v51 = vld [vmem:[#allocation40_spill] sm:$0xff]  ;;  %v18350_v15 = vld [vmem:[#allocation18_spill] sm:$0xff] }
 0x489   : > { %8753 = vst [vmem:[%s14919_s29 + $0x160] sm:$0xff] %v8630_v47  ;;  %8494 = vrot.lane.b32.xlu1 %v18323_v21, %s9539_s20  ;;  %v18337_v21 = vld [vmem:[#allocation226_spill] sm:$0xff]  ;;  %v18349_v43 = vld [vmem:[#allocation28_spill] sm:$0xff] }
 0x48a   : > { %v8493_v30 = vpop.permute.xlu0 %8492 }
 0x48b   : > { %v8271_v5 = vpop.permute.xlu1 %8270  ;;  %v8687_v3 = vsel %vm8580_vm1, %v18326_v28, %v8493_v30  ;;  %v18338_v30 = vld [vmem:[#allocation15_spill] sm:$0xff] }
 0x48c   : > { %v8632_v42 = vsel %vm8580_vm1, %v18329_v59, %v8271_v5  ;;  %8799 = vst [vmem:[%s14919_s29 + $0x2d0] sm:$0xff] %v8687_v3  ;;  %v18339_v5 = vcombine.high %v18337_v21, %v18338_v30  ;;  %v18340_v28 = vld [vmem:[#allocation179_spill] sm:$0xff]  ;;  %v18345_v59 = vcombine.low %v18343_v10, %v18344_v51 }
 0x48d   : > { %8817 = vst [vmem:[%s14919_s29 + $0x360] sm:$0xff] %v8632_v42  ;;  %8506 = vrot.lane.b32.xlu1 %v18332_v25, %s9539_s20  ;;  %v18342_v9 = vcombine.low %v18340_v28, %v18341_v46  ;;  %v18346_v25 = vld [vmem:[#allocation9_spill] sm:$0xff]  ;;  %v18355_v46 = vld [vmem:[#allocation227_spill] sm:$0xff] }
 0x48e   : > { %v8505_v7 = vpop.permute.xlu0 %8504 }
 0x48f   : > { %v8283_v40 = vpop.permute.xlu1 %8282  ;;  %v8689_v22 = vsel %vm8580_vm1, %v18333_v24, %v8505_v7  ;;  %v18347_v7 = vld [vmem:[#allocation16_spill] sm:$0xff] }
 0x490   : > { %v8634_v47 = vsel %vm8580_vm1, %v18336_v37, %v8283_v40  ;;  %8736 = vst [vmem:[%s14919_s29 + $0xd8] sm:$0xff] %v8689_v22  ;;  %v18348_v40 = vcombine.high %v18346_v25, %v18347_v7  ;;  %v18351_v37 = vcombine.low %v18349_v43, %v18350_v15  ;;  %v18361_v43 = vld [vmem:[#allocation45_spill] sm:$0xff]  ;;  %v18362_v15 = vld [vmem:[#allocation203_spill] sm:$0xff] }
 0x491   : > { %8754 = vst [vmem:[%s14919_s29 + $0x168] sm:$0xff] %v8634_v47  ;;  %8510 = vrot.lane.b32.xlu1 %v18339_v5, %s9539_s20  ;;  %v18352_v5 = vld [vmem:[#allocation73_spill] sm:$0xff] }
 0x492   : > { %v8509_v13 = vpop.permute.xlu0 %8508 }
 0x493   : > { %v8287_v38 = vpop.permute.xlu1 %8286  ;;  %v8691_v3 = vsel %vm8580_vm1, %v18342_v9, %v8509_v13  ;;  %v18353_v13 = vld [vmem:[#allocation105_spill] sm:$0xff] }
 0x494   : > { %v8636_v42 = vsel %vm8580_vm1, %v18345_v59, %v8287_v38  ;;  %8800 = vst [vmem:[%s14919_s29 + $0x2d8] sm:$0xff] %v8691_v3  ;;  %v18354_v28 = vcombine.low %v18352_v5, %v18353_v13  ;;  %v18356_v9 = vld [vmem:[#allocation137_spill] sm:$0xff]  ;;  %v18358_v59 = vld [vmem:[#allocation140_spill] sm:$0xff] }
 0x495   : > { %8818 = vst [vmem:[%s14919_s29 + $0x368] sm:$0xff] %v8636_v42  ;;  %8522 = vrot.lane.b32.xlu1 %v18348_v40, %s9539_s20  ;;  %v18357_v3 = vcombine.high %v18355_v46, %v18356_v9  ;;  %v18359_v42 = vld [vmem:[#allocation39_spill] sm:$0xff]  ;;  %v18365_v5 = vld [vmem:[#allocation89_spill] sm:$0xff] }
 0x496   : > { %v8521_v24 = vpop.permute.xlu0 %8520  ;;  %v18360_v40 = vcombine.low %v18358_v59, %v18359_v42  ;;  %v18368_v59 = vld [vmem:[#allocation134_spill] sm:$0xff] }
 0x497   : > { %v8299_v22 = vpop.permute.xlu1 %8298  ;;  %v8693_v47 = vsel %vm8580_vm1, %v18351_v37, %v8521_v24  ;;  %v18363_v37 = vcombine.low %v18361_v43, %v18362_v15  ;;  %v18373_v15 = vld [vmem:[#allocation231_spill] sm:$0xff] }
 0x498   : > { %v8638_v38 = vsel %vm8580_vm1, %v18354_v28, %v8299_v22  ;;  %8737 = vst [vmem:[%s14919_s29 + $0xe0] sm:$0xff] %v8693_v47  ;;  %v18364_v47 = vld [vmem:[#allocation53_spill] sm:$0xff] }
 0x499   : > { %8755 = vst [vmem:[%s14919_s29 + $0x170] sm:$0xff] %v8638_v38  ;;  %8526 = vrot.lane.b32.xlu1 %v18357_v3, %s9539_s20  ;;  %v18366_v13 = vcombine.high %v18364_v47, %v18365_v5  ;;  %v18367_v3 = vld [vmem:[#allocation91_spill] sm:$0xff]  ;;  %v18375_v5 = vld [vmem:[#allocation185_spill] sm:$0xff] }
 0x49a   : > { %v8525_v10 = vpop.permute.xlu0 %8524  ;;  %v18369_v42 = vcombine.low %v18367_v3, %v18368_v59  ;;  %v18376_v3 = vld [vmem:[#allocation183_spill] sm:$0xff] }
 0x49b   : > { %v8303_v51 = vpop.permute.xlu1 %8302  ;;  %v8695_v24 = vsel %vm8580_vm1, %v18360_v40, %v8525_v10  ;;  %v18370_v40 = vld [vmem:[#allocation108_spill] sm:$0xff]  ;;  %v18377_v59 = vcombine.low %v18375_v5, %v18376_v3  ;;  %v18385_v5 = vld [vmem:[#allocation29_spill] sm:$0xff] }
 0x49c   : > { %v8640_v22 = vsel %vm8580_vm1, %v18363_v37, %v8303_v51  ;;  %8801 = vst [vmem:[%s14919_s29 + $0x2e0] sm:$0xff] %v8695_v24  ;;  %v18371_v43 = vcombine.low %v18145_v4, %v18370_v40  ;;  %v18372_v24 = vld [vmem:[#allocation228_spill] sm:$0xff]  ;;  %v18379_v4 = vld [vmem:[#allocation229_spill] sm:$0xff] }
 0x49d   : > { %8819 = vst [vmem:[%s14919_s29 + $0x370] sm:$0xff] %v8640_v22  ;;  %8538 = vrot.lane.b32.xlu1 %v18366_v13, %s9539_s20  ;;  %v18374_v37 = vcombine.high %v18372_v24, %v18373_v15  ;;  %v18384_v24 = vld [vmem:[#allocation92_spill] sm:$0xff] }
 0x49e   : > { %v8537_v28 = vpop.permute.xlu0 %8536  ;;  %v18386_v3 = vcombine.low %v18384_v24, %v18385_v5  ;;  %v18394_v24 = vld [vmem:[#allocation180_spill] sm:$0xff] }
 0x49f   : > { %v8315_v38 = vpop.permute.xlu1 %8314  ;;  %v8697_v10 = vsel %vm8580_vm1, %v18369_v42, %v8537_v28  ;;  %v18378_v42 = vld [vmem:[#allocation58_spill] sm:$0xff] }
 0x4a0   : > { %v8642_v51 = vsel %vm8580_vm1, %v18371_v43, %v8315_v38  ;;  %8738 = vst [vmem:[%s14919_s29 + $0xe8] sm:$0xff] %v8697_v10  ;;  %v18380_v40 = vcombine.low %v18378_v42, %v18379_v4  ;;  %v18381_v10 = vld [vmem:[#allocation55_spill] sm:$0xff]  ;;  %v18382_v43 = vld [vmem:[#allocation86_spill] sm:$0xff]  ;;  %v18388_v42 = vld [vmem:[#allocation109_spill] sm:$0xff] }
 0x4a1   : > { %8756 = vst [vmem:[%s14919_s29 + $0x178] sm:$0xff] %v8642_v51  ;;  %8542 = vrot.lane.b32.xlu1 %v18374_v37, %s9539_s20  ;;  %v18383_v51 = vcombine.high %v18381_v10, %v18382_v43  ;;  %v18393_v10 = vld [vmem:[#allocation139_spill] sm:$0xff] }
 0x4a2   : > { %v8541_v22 = vpop.permute.xlu0 %8540  ;;  %v18395_v5 = vcombine.low %v18393_v10, %v18394_v24  ;;  %v18402_v10 = vld [vmem:[#allocation101_spill] sm:$0xff]  ;;  %v18403_v24 = vld [vmem:[#allocation138_spill] sm:$0xff] }
 0x4a3   : > { %v8319_v13 = vpop.permute.xlu1 %8318  ;;  %v8699_v28 = vsel %vm8580_vm1, %v18377_v59, %v8541_v22  ;;  %v18387_v59 = vld [vmem:[#allocation75_spill] sm:$0xff] }
 0x4a4   : > { %v8644_v38 = vsel %vm8580_vm1, %v18380_v40, %v8319_v13  ;;  %8802 = vst [vmem:[%s14919_s29 + $0x2e8] sm:$0xff] %v8699_v28  ;;  %v18389_v4 = vcombine.low %v18387_v59, %v18388_v42  ;;  %v18390_v28 = vld [vmem:[#allocation42_spill] sm:$0xff]  ;;  %v18391_v40 = vld [vmem:[#allocation232_spill] sm:$0xff] }
 0x4a5   : > { %8820 = vst [vmem:[%s14919_s29 + $0x378] sm:$0xff] %v8644_v38  ;;  %8554 = vrot.lane.b32.xlu1 %v18383_v51, %s9539_s20  ;;  %v18392_v38 = vcombine.high %v18390_v28, %v18391_v40  ;;  %v18397_v59 = vld [vmem:[#allocation230_spill] sm:$0xff] }
 0x4a6   : > { %v8553_v37 = vpop.permute.xlu0 %8552 }
 0x4a7   : > { %v8331_v15 = vpop.permute.xlu1 %8330  ;;  %v8701_v22 = vsel %vm8580_vm1, %v18386_v3, %v8553_v37  ;;  %v18396_v3 = vld [vmem:[#allocation48_spill] sm:$0xff] }
 0x4a8   : > { %v8646_v13 = vsel %vm8580_vm1, %v18389_v4, %v8331_v15  ;;  %8739 = vst [vmem:[%s14919_s29 + $0xf0] sm:$0xff] %v8701_v22  ;;  %v18398_v42 = vcombine.low %v18396_v3, %v18397_v59  ;;  %v18399_v22 = vld [vmem:[#allocation54_spill] sm:$0xff]  ;;  %v18400_v4 = vld [vmem:[#allocation41_spill] sm:$0xff]  ;;  %v18405_v3 = vcombine.low %v18192_v54, %v18193_v45 }
 0x4a9   : > { %8757 = vst [vmem:[%s14919_s29 + $0x180] sm:$0xff] %v8646_v13  ;;  %8558 = vrot.lane.b32.xlu1 %v18392_v38, %s9539_s20  ;;  %v18401_v13 = vcombine.high %v18399_v22, %v18400_v4  ;;  %v18407_v59 = vld [vmem:[#allocation33_spill] sm:$0xff]  ;;  %v18412_v54 = vld [vmem:[#allocation106_spill] sm:$0xff] }
 0x4aa   : > { %v8557_v51 = vpop.permute.xlu0 %8556  ;;  %v18411_v45 = vld [vmem:[#allocation49_spill] sm:$0xff] }
 0x4ab   : > { %v8335_v43 = vpop.permute.xlu1 %8334  ;;  %v8703_v37 = vsel %vm8580_vm1, %v18395_v5, %v8557_v51  ;;  %v18404_v51 = vcombine.low %v18402_v10, %v18403_v24  ;;  %v18409_v10 = vld [vmem:[#allocation189_spill] sm:$0xff] }
 0x4ac   : > { %v8648_v15 = vsel %vm8580_vm1, %v18398_v42, %v8335_v43  ;;  %8803 = vst [vmem:[%s14919_s29 + $0x2f0] sm:$0xff] %v8703_v37  ;;  %v18406_v37 = vld [vmem:[#allocation191_spill] sm:$0xff]  ;;  %v18410_v24 = vcombine.low %v18201_v23, %v18409_v10  ;;  %v18416_v10 = vcombine.low %v18219_v17, %v18220_v36  ;;  %v18419_v36 = vcombine.low %v17916_v18, %v18232_v48 }
 0x4ad   : > { %8821 = vst [vmem:[%s14919_s29 + $0x380] sm:$0xff] %v8648_v15  ;;  %8570 = vrot.lane.b32.xlu1 %v18401_v13, %s9539_s20  ;;  %v18408_v42 = vcombine.high %v18406_v37, %v18407_v59  ;;  %v18422_v48 = vcombine.low %v18250_v61, %v18251_v50  ;;  %v18425_v50 = vcombine.low %v18273_v53, %v18274_v2 }
 0x4ae   : > { %v8569_v38 = vpop.permute.xlu0 %8568  ;;  %v18428_v2 = vcombine.low %v18298_v44, %v18299_v14  ;;  %v18431_v14 = vcombine.low %v18321_v6, %v18322_v41  ;;  %v18434_v41 = vcombine.low %v18346_v25, %v18347_v7 }
 0x4af   : > { %v8347_v40 = vpop.permute.xlu1 %8346  ;;  %v8705_v5 = vsel %vm8580_vm1, %v18404_v51, %v8569_v38  ;;  %v18413_v51 = vcombine.low %v18411_v45, %v18412_v54 }
 0x4b0   : > { %v8650_v43 = vsel %vm8580_vm1, %v18405_v3, %v8347_v40  ;;  %8740 = vst [vmem:[%s14919_s29 + $0xf8] sm:$0xff] %v8705_v5  ;;  %v18414_v3 = vcombine.low %v18211_v31, %v18212_v39  ;;  %v18417_v39 = vcombine.low %v17910_v0, %v15171_v62  ;;  %v18420_v62 = vcombine.low %v18236_v63, %v18237_v49 }
 0x4b1   : > { %8758 = vst [vmem:[%s14919_s29 + $0x188] sm:$0xff] %v8650_v43  ;;  %8574 = vrot.lane.b32.xlu1 %v18408_v42, %s9539_s20  ;;  %v18415_v42 = vcombine.low %v17909_v34, %v15163_v60  ;;  %v18418_v60 = vcombine.low %v18227_v58, %v18228_v19  ;;  %v18421_v19 = vcombine.low %v18241_v35, %v18242_v1 }
 0x4b2   : > { %v8573_v15 = vpop.permute.xlu0 %8572  ;;  %v18423_v49 = vcombine.low %v18257_v33, %v18258_v52  ;;  %v18424_v1 = vcombine.low %v18266_v29, %v18267_v11  ;;  %v18426_v52 = vcombine.low %v18282_v8, %v18283_v20  ;;  %v18427_v11 = vcombine.low %v18289_v12, %v18290_v27 }
 0x4b3   : > { %v8351_v13 = vpop.permute.xlu1 %8350  ;;  %v8707_v38 = vsel %vm8580_vm1, %v18410_v24, %v8573_v15  ;;  %v18429_v20 = vcombine.low %v18305_v57, %v18306_v26  ;;  %v18430_v27 = vcombine.low %v18314_v32, %v18315_v16  ;;  %v18432_v26 = vcombine.low %v18330_v55, %v18331_v56 }
 0x4b4   : > { %v8652_v40 = vsel %vm8580_vm1, %v18413_v51, %v8351_v13  ;;  %8804 = vst [vmem:[%s14919_s29 + $0x2f8] sm:$0xff] %v8707_v38  ;;  %v18433_v16 = vcombine.low %v18337_v21, %v18338_v30  ;;  %v18435_v56 = vcombine.low %v18355_v46, %v18356_v9  ;;  %v18436_v30 = vld [vmem:[#allocation89_spill] sm:$0xff]  ;;  %v18441_v9 = vld [vmem:[#allocation55_spill] sm:$0xff] }
 0x4b5   : > { %8822 = vst [vmem:[%s14919_s29 + $0x388] sm:$0xff] %v8652_v40 }
 0x4b7   : > { %v8363_v5 = vpop.permute.xlu1 %8362 }
 0x4b8   : > { %v8654_v43 = vsel %vm8580_vm1, %v18414_v3, %v8363_v5 }
 0x4b9   : > { %8759 = vst [vmem:[%s14919_s29 + $0x190] sm:$0xff] %v8654_v43 }
 0x4bb   : > { %v8367_v23 = vpop.permute.xlu1 %8366 }
 0x4bc   : > { %v8656_v15 = vsel %vm8580_vm1, %v18415_v42, %v8367_v23 }
 0x4bd   : > { %8823 = vst [vmem:[%s14919_s29 + $0x390] sm:$0xff] %v8656_v15 }
 0x4bf   : > { %v8379_v13 = vpop.permute.xlu1 %8378 }
 0x4c0   : > { %v8658_v24 = vsel %vm8580_vm1, %v18416_v10, %v8379_v13 }
 0x4c1   : > { %8760 = vst [vmem:[%s14919_s29 + $0x198] sm:$0xff] %v8658_v24 }
 0x4c3   : > { %v8383_v31 = vpop.permute.xlu1 %8382 }
 0x4c4   : > { %v8660_v38 = vsel %vm8580_vm1, %v18417_v39, %v8383_v31 }
 0x4c5   : > { %8824 = vst [vmem:[%s14919_s29 + $0x398] sm:$0xff] %v8660_v38 }
 0x4c7   : > { %v8395_v34 = vpop.permute.xlu1 %8394 }
 0x4c8   : > { %v8662_v45 = vsel %vm8580_vm1, %v18418_v60, %v8395_v34 }
 0x4c9   : > { %8761 = vst [vmem:[%s14919_s29 + $0x1a0] sm:$0xff] %v8662_v45  ;;  %v18437_v45 = vcombine.low %v18364_v47, %v18436_v30 }
 0x4cb   : > { %v8399_v17 = vpop.permute.xlu1 %8398 }
 0x4cc   : > { %v8664_v54 = vsel %vm8580_vm1, %v18419_v36, %v8399_v17  ;;  %v18438_v17 = vld [vmem:[#allocation228_spill] sm:$0xff]  ;;  %v18439_v36 = vld [vmem:[#allocation231_spill] sm:$0xff] }
 0x4cd   : > { %8825 = vst [vmem:[%s14919_s29 + $0x3a0] sm:$0xff] %v8664_v54  ;;  %v18440_v54 = vcombine.low %v18438_v17, %v18439_v36 }
 0x4cf   : > { %v8411_v0 = vpop.permute.xlu1 %8410 }
 0x4d0   : > { %v8666_v51 = vsel %vm8580_vm1, %v18420_v62, %v8411_v0  ;;  %v18442_v62 = vld [vmem:[#allocation86_spill] sm:$0xff] }
 0x4d1   : > { %8762 = vst [vmem:[%s14919_s29 + $0x1a8] sm:$0xff] %v8666_v51  ;;  %v18443_v51 = vcombine.low %v18441_v9, %v18442_v62 }
 0x4d3   : > { %v8415_v58 = vpop.permute.xlu1 %8414 }
 0x4d4   : > { %v8668_v40 = vsel %vm8580_vm1, %v18421_v19, %v8415_v58  ;;  %v18444_v19 = vld [vmem:[#allocation232_spill] sm:$0xff] }
 0x4d5   : > { %8826 = vst [vmem:[%s14919_s29 + $0x3a8] sm:$0xff] %v8668_v40  ;;  %v18445_v40 = vcombine.low %v18390_v28, %v18444_v19 }
 0x4d7   : > { %v8427_v18 = vpop.permute.xlu1 %8426 }
 0x4d8   : > { %v8670_v5 = vsel %vm8580_vm1, %v18422_v48, %v8427_v18 }
 0x4d9   : > { %8763 = vst [vmem:[%s14919_s29 + $0x1b0] sm:$0xff] %v8670_v5  ;;  %v18446_v5 = vcombine.low %v18399_v22, %v18400_v4 }
 0x4db   : > { %v8431_v63 = vpop.permute.xlu1 %8430 }
 0x4dc   : > { %v8672_v3 = vsel %vm8580_vm1, %v18423_v49, %v8431_v63  ;;  %v18447_v49 = vcombine.low %v18406_v37, %v18407_v59 }
 0x4dd   : > { %8827 = vst [vmem:[%s14919_s29 + $0x3b0] sm:$0xff] %v8672_v3 }
 0x4df   : > { %v8443_v35 = vpop.permute.xlu1 %8442 }
 0x4e0   : > { %v8674_v43 = vsel %vm8580_vm1, %v18424_v1, %v8443_v35 }
 0x4e1   : > { %8764 = vst [vmem:[%s14919_s29 + $0x1b8] sm:$0xff] %v8674_v43 }
 0x4e3   : > { %v8447_v61 = vpop.permute.xlu1 %8446 }
 0x4e4   : > { %v8676_v23 = vsel %vm8580_vm1, %v18425_v50, %v8447_v61 }
 0x4e5   : > { %8828 = vst [vmem:[%s14919_s29 + $0x3b8] sm:$0xff] %v8676_v23 }
 0x4e7   : > { %v8459_v33 = vpop.permute.xlu1 %8458 }
 0x4e8   : > { %v8678_v42 = vsel %vm8580_vm1, %v18426_v52, %v8459_v33 }
 0x4e9   : > { %8765 = vst [vmem:[%s14919_s29 + $0x1c0] sm:$0xff] %v8678_v42 }
 0x4eb   : > { %v8463_v29 = vpop.permute.xlu1 %8462 }
 0x4ec   : > { %v8680_v15 = vsel %vm8580_vm1, %v18427_v11, %v8463_v29 }
 0x4ed   : > { %8829 = vst [vmem:[%s14919_s29 + $0x3c0] sm:$0xff] %v8680_v15 }
 0x4ef   : > { %v8475_v53 = vpop.permute.xlu1 %8474 }
 0x4f0   : > { %v8682_v13 = vsel %vm8580_vm1, %v18428_v2, %v8475_v53 }
 0x4f1   : > { %8766 = vst [vmem:[%s14919_s29 + $0x1c8] sm:$0xff] %v8682_v13 }
 0x4f3   : > { %v8479_v8 = vpop.permute.xlu1 %8478 }
 0x4f4   : > { %v8684_v10 = vsel %vm8580_vm1, %v18429_v20, %v8479_v8 }
 0x4f5   : > { %8830 = vst [vmem:[%s14919_s29 + $0x3c8] sm:$0xff] %v8684_v10 }
 0x4f7   : > { %v8491_v12 = vpop.permute.xlu1 %8490 }
 0x4f8   : > { %v8686_v24 = vsel %vm8580_vm1, %v18430_v27, %v8491_v12 }
 0x4f9   : > { %8767 = vst [vmem:[%s14919_s29 + $0x1d0] sm:$0xff] %v8686_v24 }
 0x4fb   : > { %v8495_v44 = vpop.permute.xlu1 %8494 }
 0x4fc   : > { %v8688_v31 = vsel %vm8580_vm1, %v18431_v14, %v8495_v44 }
 0x4fd   : > { %8831 = vst [vmem:[%s14919_s29 + $0x3d0] sm:$0xff] %v8688_v31 }
 0x4ff   : > { %v8507_v57 = vpop.permute.xlu1 %8506 }
 0x500   : > { %v8690_v39 = vsel %vm8580_vm1, %v18432_v26, %v8507_v57 }
 0x501   : > { %8768 = vst [vmem:[%s14919_s29 + $0x1d8] sm:$0xff] %v8690_v39 }
 0x503   : > { %v8511_v32 = vpop.permute.xlu1 %8510 }
 0x504   : > { %v8692_v38 = vsel %vm8580_vm1, %v18433_v16, %v8511_v32 }
 0x505   : > { %8832 = vst [vmem:[%s14919_s29 + $0x3d8] sm:$0xff] %v8692_v38 }
 0x507   : > { %v8523_v6 = vpop.permute.xlu1 %8522 }
 0x508   : > { %v8694_v34 = vsel %vm8580_vm1, %v18434_v41, %v8523_v6 }
 0x509   : > { %8769 = vst [vmem:[%s14919_s29 + $0x1e0] sm:$0xff] %v8694_v34 }
 0x50b   : > { %v8527_v55 = vpop.permute.xlu1 %8526 }
 0x50c   : > { %v8696_v60 = vsel %vm8580_vm1, %v18435_v56, %v8527_v55 }
 0x50d   : > { %8833 = vst [vmem:[%s14919_s29 + $0x3e0] sm:$0xff] %v8696_v60 }
 0x50f   : > { %v8539_v21 = vpop.permute.xlu1 %8538 }
 0x510   : > { %v8698_v25 = vsel %vm8580_vm1, %v18437_v45, %v8539_v21 }
 0x511   : > { %8770 = vst [vmem:[%s14919_s29 + $0x1e8] sm:$0xff] %v8698_v25 }
 0x513   : > { %v8543_v7 = vpop.permute.xlu1 %8542 }
 0x514   : > { %v8700_v0 = vsel %vm8580_vm1, %v18440_v54, %v8543_v7 }
 0x515   : > { %8834 = vst [vmem:[%s14919_s29 + $0x3e8] sm:$0xff] %v8700_v0 }
 0x517   : > { %v8555_v46 = vpop.permute.xlu1 %8554 }
 0x518   : > { %v8702_v58 = vsel %vm8580_vm1, %v18443_v51, %v8555_v46 }
 0x519   : > { %8771 = vst [vmem:[%s14919_s29 + $0x1f0] sm:$0xff] %v8702_v58 }
 0x51b   : > { %v8559_v47 = vpop.permute.xlu1 %8558 }
 0x51c   : > { %v8704_v18 = vsel %vm8580_vm1, %v18445_v40, %v8559_v47 }
 0x51d   : > { %8835 = vst [vmem:[%s14919_s29 + $0x3f0] sm:$0xff] %v8704_v18 }
 0x51f   : > { %v8571_v48 = vpop.permute.xlu1 %8570 }
 0x520   : > { %v8706_v63 = vsel %vm8580_vm1, %v18446_v5, %v8571_v48 }
 0x521   : > { %8772 = vst [vmem:[%s14919_s29 + $0x1f8] sm:$0xff] %v8706_v63 }
 0x523   : > { %v8575_v28 = vpop.permute.xlu1 %8574 }
 0x524   : > { %v8708_v3 = vsel %vm8580_vm1, %v18447_v49, %v8575_v28 }
 0x525   : > { %8836 = vst [vmem:[%s14919_s29 + $0x3f8] sm:$0xff] %v8708_v3 }
 0x526   : > { %9485 = shalt.err (!%p9482_p3)
}
 0x527   : > { %s9486_s18 = scalar_lea.hbm %s16291_s13, 16384  ;;  %s9490_s26 = scalar_lea.hbm %s16349_s6, 32768 }
 0x528   : > { %p9487_p4 = scmp.ne.s32.totalorder %s16291_s13, %s9486_s18  ;;  %p9491_p9 = scmp.lt.u32.totalorder %s16291_s13, %s16349_s6 }
 0x529   : > { %p9492_p10 = scmp.lt.u32.totalorder %s9490_s26, %s9486_s18  ;;  %p9494_p12 = scmp.lt.u32.totalorder %s9486_s18, %s16291_s13 }
 0x52a   : > { %p9488_p7 = pnand %p9487_p4, %p9616_p5 }
 0x52b   : > { %p9493_p11 = por %p9492_p10, %p9491_p9 }
 0x52c   : > { %p9489_p8 = pneg %p9488_p7 }
 0x52d   : > { %p9495_p13 = por %p9494_p12, %p9493_p11 }
 0x52f   : > { %p9496_p0 = pnand %p9495_p13, %p9489_p8 }
 0x531   : > { %9499 = shalt.err (!%p9496_p0)
}
 0x532   : > { %s9541_s9 = smov 4096   ;;  %s9542_s11 = smov 256  }
 0x533   : > { %9427 = dma.vmem_to_hbm [thread:$0]  (%p9616_p5), %s16293_s10, 16384, %s16291_s13, %s16302_s25, %s9541_s9, %s9541_s9, %s9542_s11  }
 0x534 PF: > { %p9433_p1 = scmp.ge.s32.totalorder %s9534_s24, 2  ;;  %s8867_s12 = sand.u32 1, %s9522_s21  }
 0x535   : > { %s8868_s14 = scalar_lea.sflag [#allocation3], %s8867_s12 }
 0x536   : > { %p9430_p2 = pnand %p9433_p1, %p9620_p6 }
 0x538   : > { %9517 = dma.done.wait (!%p9430_p2), %s8868_s14, 16384  }
 0x539   : > { %9519 = vsyncadd (!%p9430_p2), %s8868_s14, 4294950912  ;;  %p16_p3 = scmp.ge.s32.totalorder %s9603_s27, 4   ;;  %s18448_s21 = smov %s9526_s22 }
 0x53a   : > { %s18449_s22 = smov %s9530_s23  ;;  %s18450_s23 = smov %s9614_s30 }
 0x53b   : > { %s18451_s24 = smov %s9603_s27  ;;  %18 = sbr.rel (!%p16_p3) target bundleno = 3 (0x3), region = 79 }
 0x542   :  { %8873 = vsyncpa [#allocation3], 1 }
 0x543   :  { %8875 = vsyncpa [#allocation3 + $0x1], 1 }

// kernel: tpu_custom_call.1
= control target key start
LH: loop header
LB: loop body
LE: loop exit
PB: predicated region body
PF: predicated region fallthrough
CT: control target
= control target key end

     0   :  { %s8192_s0 = inlined_call_operand.vmem [shape: f32[64,32], index: 0, kind: input, shape index: {}]   ;;  %s8193_s1 = inlined_call_operand.vmem [shape: f32[64,32], index: 1, kind: input, shape index: {}]   ;;  %s8194_s2 = inlined_call_operand.hbm [shape: f32[32,64], index: 2, kind: input, shape index: {}]   ;;  %s8195_s3 = inlined_call_operand.hbm [shape: f32[1,64], index: 3, kind: input, shape index: {}]   ;;  %s8196_s4 = inlined_call_operand.hbm [shape: f32[32,64], index: 4, kind: input, shape index: {}]   ;;  %s8197_s5 = inlined_call_operand.hbm [shape: f32[1,64], index: 5, kind: input, shape index: {}]   ;;  %s8198_s6 = inlined_call_operand.hbm [shape: f32[32,64], index: 6, kind: input, shape index: {}]   ;;  %s8199_s7 = inlined_call_operand.hbm [shape: f32[1,64], index: 7, kind: input, shape index: {}]   ;;  %s8200_s8 = inlined_call_operand.hbm [shape: f32[64,64,64], index: 8, kind: output, shape index: {}]  }
   0x1   :  { %8229 = sst [smem:[#allocation44_spill]] %s8195_s3 }
   0x2   :  { %8230 = sst [smem:[#allocation45_spill]] %s8197_s5 }
   0x3   :  { %13 = vsyncpa [#allocation3], 0 }
   0x4   :  { %14 = vsyncpa [#allocation6], 0 }
   0x5   :  { %15 = vsyncpa [#allocation9], 0 }
   0x6   :  { %16 = vsyncpa [#allocation12], 0 }
   0x7   :  { %17 = vsyncpa [#allocation4], 0 }
   0x8   :  { %19 = vsyncpa [#allocation4 + $0x1], 0  ;;  %s6101_s27 = smov 0   ;;  %s6103_s28 = smov 0  }
   0x9   :  { %s6105_s29 = smov 0   ;;  %s6107_s30 = smov 0  }
   0xa   :  { %s6109_s9 = smov 0   ;;  %s6111_s10 = smov 0  }
   0xb LB: > { %8231 = sst [smem:[#allocation19_spill]] %s6030_s29  ;;  %s4932_s11 = sadd.s32 4294967295, %s6042_s10   ;;  %s6042_s10 = sphi %s6111_s10, %s25_s10   ;;  %s6038_s9 = sphi %s6109_s9, %s8292_s9   ;;  %s6034_s30 = sphi %s6107_s30, %s8291_s30   ;;  %s6030_s29 = sphi %s6105_s29, %s8290_s29   ;;  %s6026_s28 = sphi %s6103_s28, %s8294_s28   ;;  %s6022_s27 = sphi %s6101_s27, %s8293_s27  }
   0xc   : > { %8232 = sst [smem:[#allocation20_spill]] %s6038_s9  ;;  %s4933_s12 = sadd.s32 4294967294, %s6042_s10  }
   0xd   : > { %s37_s13 = sadd.s32 1, %s6038_s9  ;;  %s239_s14 = sadd.s32 1, %s6030_s29 }
   0xe   : > { %p39_p0 = scmp.ge.s32.totalorder %s37_s13, 2  ;;  %p249_p1 = scmp.ne.s32.totalorder %s6030_s29, %s6026_s28 }
   0xf   : > { %p250_p2 = scmp.eq.s32.totalorder %s4932_s11, 1  ;;  %p255_p3 = scmp.ne.s32.totalorder %s6026_s28, %s6022_s27 }
  0x10   : > { %s8296_s13 = smov (%p39_p0, %s37_s13), 0  ;;  %p256_p5 = scmp.eq.s32.totalorder %s4933_s12, 1 }
  0x11   : > { %8233 = sst [smem:[#allocation21_spill]] %s8296_s13  ;;  %p6141_p4 = por %p250_p2, %p249_p1 }
  0x12   : > { %s234_s16 = ssub.s32 %s6038_s9, %s8296_s13  ;;  %p4934_p6 = scmp.ge.s32.totalorder %s6042_s10, 1 }
  0x13   : > { %s8234_s15 = scalar_select %p6141_p4, 1, 0 }
  0x14   : > { %p237_p7 = scmp.eq.s32.totalorder %s234_s16, 0  ;;  %p6148_p8 = por %p256_p5, %p255_p3 }
  0x15   : > { %p263_p9 = scmp.lt.s32.totalorder %s6042_s10, 3  ;;  %p6160_p11 = scmp.eq.s32.totalorder %s4932_s11, 0 }
  0x16   : > { %s8235_s17 = scalar_select %p6148_p8, 1, 0 }
  0x17   : > { %s6154_s18 = scalar_select %p237_p7, %s6030_s29, %s239_s14  }
  0x18   : > { %p6156_p10 = pnand %p4934_p6, %p263_p9  ;;  %s6044_s21 = smov [#allocation5]  }
  0x19   : > { %8236 = sst [smem:[#allocation22_spill]] %s6154_s18  ;;  %s292_s22 = sshll.u32 %s6044_s21, 4  ;;  %s293_s22 = int_to_ptr.vmem [resolvable:$true] %s292_s22 }
  0x1a   : > { %s8237_s19 = scalar_select %p6156_p10, 1, 0 }
  0x1b   : > { %s8238_s20 = scalar_select %p6160_p11, 1, 0 }
  0x1c   : > { %p5685_p12 = pneg %p6156_p10  ;;  %s6045_s23 = smov [#allocation8]  }
  0x1d   : > { %s320_s24 = sshll.u32 %s6045_s23, 4  ;;  %s8240_s3 = sld [smem:[#allocation44_spill]]  ;;  %s6172_s24 = int_to_ptr.vmem [resolvable:$true] %s320_s24 }
  0x1e   : > { %p6168_p13 = pnand %p6160_p11, %p5685_p12 }
  0x20   : > { %p6182_p1 = pneg %p6168_p13 }
  0x23   : > { %s5780_s12 = scalar_lea.hbm %s8240_s3, 16 }
  0x24   : > { %p5781_p0 = scmp.ne.s32.totalorder %s8240_s3, %s5780_s12  ;;  %p5787_p5 = scmp.lt.u32.totalorder %s5780_s12, %s8240_s3 }
  0x26   : > { %p5783_p2 = pnand %p6182_p1, %p5781_p0 }
  0x28   : > { %p5784_p3 = pneg %p5783_p2 }
  0x2a   : > { %p5789_p6 = pnand %p5787_p5, %p5784_p3 }
  0x2c   : > { %5792 = shalt.err (!%p5789_p6)
}
  0x2d   : > { %s5793_s26 = scalar_lea.vmem %s293_s22, 16  ;;  %s5800_s11 = scalar_lea.vmem %s293_s22, 32 }
  0x2e   : > { %p5794_p7 = scmp.ne.s32.totalorder %s293_s22, %s5793_s26  ;;  %p5801_p8 = scmp.lt.s32.totalorder %s293_s22, %s293_s22 }
  0x2f   : > { %p5802_p4 = scmp.lt.s32.totalorder %s5800_s11, %s5793_s26 }
  0x30   : > { %p5796_p9 = pnand %p5794_p7, %p6182_p1 }
  0x31   : > { %p5803_p11 = por %p5802_p4, %p5801_p8 }
  0x32   : > { %p5797_p12 = pneg %p5796_p9 }
  0x34   : > { %p5804_p10 = pnand %p5803_p11, %p5797_p12 }
  0x36   : > { %5807 = shalt.err (!%p5804_p10)
}
  0x37   : > { %5691 = dma.hbm_to_vmem [thread:$0]  (!%p6168_p13), %s8240_s3, 16, %s293_s22, [#allocation6]  }
  0x38   : > { %s8242_s5 = sld [smem:[#allocation45_spill]] }
  0x3e   : > { %s5808_s23 = scalar_lea.hbm %s8242_s5, 16 }
  0x3f   : > { %p5809_p0 = scmp.ne.s32.totalorder %s8242_s5, %s5808_s23  ;;  %p5815_p8 = scmp.lt.u32.totalorder %s5808_s23, %s8242_s5 }
  0x41   : > { %p5811_p2 = pnand %p5809_p0, %p6182_p1 }
  0x43   : > { %p5812_p4 = pneg %p5811_p2 }
  0x45   : > { %p5817_p10 = pnand %p5815_p8, %p5812_p4 }
  0x47   : > { %5820 = shalt.err (!%p5817_p10)
}
  0x48   : > { %s5821_s22 = scalar_lea.vmem %s6172_s24, 16  ;;  %s5828_s9 = scalar_lea.vmem %s6172_s24, 32 }
  0x49   : > { %p5822_p11 = scmp.ne.s32.totalorder %s6172_s24, %s5821_s22  ;;  %p5829_p6 = scmp.lt.s32.totalorder %s6172_s24, %s6172_s24 }
  0x4a   : > { %p5830_p7 = scmp.lt.s32.totalorder %s5828_s9, %s5821_s22 }
  0x4b   : > { %p5824_p3 = pnand %p5822_p11, %p6182_p1 }
  0x4c   : > { %p5831_p9 = por %p5830_p7, %p5829_p6 }
  0x4d   : > { %p5825_p5 = pneg %p5824_p3 }
  0x4f   : > { %p5832_p12 = pnand %p5831_p9, %p5825_p5 }
  0x51   : > { %5835 = shalt.err (!%p5832_p12)
}
  0x52   : > { %5697 = dma.hbm_to_vmem [thread:$0]  (!%p6168_p13), %s8242_s5, 16, %s6172_s24, [#allocation9]  }
  0x53   : > { %s6046_s16 = smov [#allocation2]   ;;  %s5836_s26 = scalar_lea.hbm %s8194_s2, 512 }
  0x54   : > { %s278_s13 = sshll.u32 %s6046_s16, 4  ;;  %p5837_p0 = scmp.ne.s32.totalorder %s8194_s2, %s5836_s26  ;;  %s279_s13 = int_to_ptr.vmem [resolvable:$true] %s278_s13 }
  0x55   : > { %p5843_p8 = scmp.lt.u32.totalorder %s5836_s26, %s8194_s2 }
  0x56   : > { %p5839_p2 = pnand %p5837_p0, %p6182_p1 }
  0x58   : > { %p5840_p4 = pneg %p5839_p2 }
  0x5a   : > { %p5845_p10 = pnand %p5843_p8, %p5840_p4 }
  0x5c   : > { %5848 = shalt.err (!%p5845_p10)
}
  0x5d   : > { %s5849_s24 = scalar_lea.vmem %s279_s13, 512  ;;  %p5857_p6 = scmp.lt.s32.totalorder %s279_s13, %s279_s13 }
  0x5e   : > { %p5850_p11 = scmp.ne.s32.totalorder %s279_s13, %s5849_s24  ;;  %p5858_p7 = scmp.lt.s32.totalorder %s5849_s24, %s5849_s24 }
  0x60   : > { %p5852_p3 = pnand %p5850_p11, %p6182_p1  ;;  %p5859_p9 = por %p5858_p7, %p5857_p6 }
  0x62   : > { %p5853_p5 = pneg %p5852_p3 }
  0x64   : > { %p5860_p12 = pnand %p5859_p9, %p5853_p5 }
  0x66   : > { %5863 = shalt.err (!%p5860_p12)
}
  0x67   : > { %s6047_s18 = smov 128   ;;  %s6048_s14 = smov 8  }
  0x68   : > { %5688 = dma.hbm_to_vmem [thread:$0]  (!%p6168_p13), %s8194_s2, 512, %s279_s13, [#allocation3], %s6047_s18, %s6047_s18, %s6048_s14  }
  0x69   : > { %s6049_s12 = smov [#allocation7]   ;;  %s6050_s26 = smov [#allocation10]  }
  0x6a   : > { %s304_s23 = sshll.u32 %s6049_s12, 4  ;;  %s332_s11 = sshll.u32 %s6050_s26, 4  ;;  %s305_s23 = int_to_ptr.vmem [resolvable:$true] %s304_s23  ;;  %s6243_s11 = int_to_ptr.vmem [resolvable:$true] %s332_s11 }
  0x6b   : > { %s5864_s24 = scalar_lea.hbm %s8196_s4, 512 }
  0x6c   : > { %p5865_p0 = scmp.ne.s32.totalorder %s8196_s4, %s5864_s24  ;;  %p5871_p8 = scmp.lt.u32.totalorder %s5864_s24, %s8196_s4 }
  0x6e   : > { %p5867_p2 = pnand %p5865_p0, %p6182_p1 }
  0x70   : > { %p5868_p4 = pneg %p5867_p2 }
  0x72   : > { %p5873_p10 = pnand %p5871_p8, %p5868_p4 }
  0x74   : > { %5876 = shalt.err (!%p5873_p10)
}
  0x75   : > { %s5877_s16 = scalar_lea.vmem %s305_s23, 512  ;;  %p5885_p6 = scmp.lt.s32.totalorder %s305_s23, %s305_s23 }
  0x76   : > { %p5878_p11 = scmp.ne.s32.totalorder %s305_s23, %s5877_s16  ;;  %p5886_p7 = scmp.lt.s32.totalorder %s5877_s16, %s5877_s16 }
  0x78   : > { %p5880_p3 = pnand %p5878_p11, %p6182_p1  ;;  %p5887_p9 = por %p5886_p7, %p5885_p6 }
  0x7a   : > { %p5881_p5 = pneg %p5880_p3 }
  0x7c   : > { %p5888_p12 = pnand %p5887_p9, %p5881_p5 }
  0x7e   : > { %5891 = shalt.err (!%p5888_p12)
}
  0x7f   : > { %5694 = dma.hbm_to_vmem [thread:$0]  (!%p6168_p13), %s8196_s4, 512, %s305_s23, [#allocation6], %s6047_s18, %s6047_s18, %s6048_s14  }
  0x80   : > { %s5892_s22 = scalar_lea.hbm %s8198_s6, 512 }
  0x81   : > { %p5893_p0 = scmp.ne.s32.totalorder %s8198_s6, %s5892_s22  ;;  %p5899_p8 = scmp.lt.u32.totalorder %s5892_s22, %s8198_s6 }
  0x83   : > { %p5895_p2 = pnand %p5893_p0, %p6182_p1 }
  0x85   : > { %p5896_p4 = pneg %p5895_p2 }
  0x87   : > { %p5901_p10 = pnand %p5899_p8, %p5896_p4 }
  0x89   : > { %5904 = shalt.err (!%p5901_p10)
}
  0x8a   : > { %s5905_s23 = scalar_lea.vmem %s6243_s11, 512  ;;  %p5913_p6 = scmp.lt.s32.totalorder %s6243_s11, %s6243_s11 }
  0x8b   : > { %p5906_p11 = scmp.ne.s32.totalorder %s6243_s11, %s5905_s23  ;;  %p5914_p7 = scmp.lt.s32.totalorder %s5905_s23, %s5905_s23 }
  0x8d   : > { %p5908_p3 = pnand %p5906_p11, %p6182_p1  ;;  %p5915_p9 = por %p5914_p7, %p5913_p6 }
  0x8f   : > { %p5909_p5 = pneg %p5908_p3 }
  0x91   : > { %p5916_p12 = pnand %p5915_p9, %p5909_p5 }
  0x93   : > { %5919 = shalt.err (!%p5916_p12)
}
  0x94   : > { %5700 = dma.hbm_to_vmem [thread:$0]  (!%p6168_p13), %s8198_s6, 512, %s6243_s11, [#allocation9], %s6047_s18, %s6047_s18, %s6048_s14  }
  0x95   : > { %s6051_s29 = smov [#allocation11]   ;;  %s5920_s9 = scalar_lea.hbm %s8199_s7, 16 }
  0x96   : > { %s348_s12 = sshll.u32 %s6051_s29, 4  ;;  %p5921_p0 = scmp.ne.s32.totalorder %s8199_s7, %s5920_s9  ;;  %s349_s12 = int_to_ptr.vmem [resolvable:$true] %s348_s12 }
  0x97   : > { %p5927_p8 = scmp.lt.u32.totalorder %s5920_s9, %s8199_s7 }
  0x98   : > { %p5923_p2 = pnand %p5921_p0, %p6182_p1 }
  0x9a   : > { %p5924_p4 = pneg %p5923_p2 }
  0x9c   : > { %p5929_p10 = pnand %p5927_p8, %p5924_p4 }
  0x9e   : > { %5932 = shalt.err (!%p5929_p10)
}
  0x9f   : > { %s5933_s18 = scalar_lea.vmem %s349_s12, 16  ;;  %s5940_s14 = scalar_lea.vmem %s349_s12, 32 }
  0xa0   : > { %p5934_p11 = scmp.ne.s32.totalorder %s349_s12, %s5933_s18  ;;  %p5941_p6 = scmp.lt.s32.totalorder %s349_s12, %s349_s12 }
  0xa1   : > { %p5942_p7 = scmp.lt.s32.totalorder %s5940_s14, %s5933_s18 }
  0xa2   : > { %p5936_p3 = pnand %p5934_p11, %p6182_p1 }
  0xa3   : > { %p5943_p9 = por %p5942_p7, %p5941_p6 }
  0xa4   : > { %p5937_p5 = pneg %p5936_p3 }
  0xa6   : > { %p5944_p12 = pnand %p5943_p9, %p5937_p5 }
  0xa8   : > { %5947 = shalt.err (!%p5944_p12)
}
  0xa9   : > { %5703 = dma.hbm_to_vmem [thread:$0]  (!%p6168_p13), %s8199_s7, 16, %s349_s12, [#allocation12]  }
  0xaa   : > { %p8243_p0 = scmp.ne.s32.totalorder %s8237_s19, 0 }
  0xac   : > { %370 = sbr.rel (%p8243_p0) target bundleno = 1105 (0x451), region = 52 }
  0xb3   : > { %p8244_p2 = scmp.ne.s32.totalorder %s8238_s20, 0 }
  0xb5   : > { %6001 = dma.done.wait (%p8244_p2), [#allocation3], 512  }
  0xb6   : > { %6003 = vsyncadd (%p8244_p2), [#allocation3], 4294966784 }
  0xb7   : > { %6005 = dma.done.wait (%p8244_p2), [#allocation6], 528  }
  0xb8   : > { %6007 = vsyncadd (%p8244_p2), [#allocation6], 4294966768 }
  0xb9   : > { %6009 = dma.done.wait (%p8244_p2), [#allocation9], 528  }
  0xba   : > { %6011 = vsyncadd (%p8244_p2), [#allocation9], 4294966768 }
  0xbb   : > { %6013 = dma.done.wait (%p8244_p2), [#allocation12], 16  }
  0xbc   : > { %6015 = vsyncadd (%p8244_p2), [#allocation12], 4294967280  ;;  %s4950_s19 = sshll.u32 %s6034_s30, 2  ;;  %vm446_vm0 = vcmask 261120   ;;  %v435_v0 = vld [vmem:[#allocation2] sm:$0xff]  ;;  %v436_v1 = vld [vmem:[#allocation2 + $0x8] sm:$0xff] }
  0xbd   : > { %p425_p13 = scmp.lt.s32.totalorder %s4950_s19, 7  ;;  %v437_v2 = vld [vmem:[#allocation2 + $0x10] sm:$0xff]  ;;  %v460_v3 = vand.u32 4294901760, %v435_v0  ;;  %v463_v4 = vand.u32 4294901760, %v436_v1  ;;  %v438_v5 = vld [vmem:[#allocation2 + $0x18] sm:$0xff]  ;;  %v1073_v49 = vld [vmem:[#allocation7] sm:$0xff] }
  0xbe   : > { %v466_v6 = vand.u32 4294901760, %v437_v2  ;;  %v469_v9 = vand.u32 4294901760, %v438_v5  ;;  %v1074_v50 = vld [vmem:[#allocation7 + $0x8] sm:$0xff]  ;;  %v1075_v55 = vld [vmem:[#allocation7 + $0x10] sm:$0xff]  ;;  %v1076_v56 = vld [vmem:[#allocation7 + $0x18] sm:$0xff]  ;;  %v1085_v60 = vand.u32 4294901760, %v1073_v49 }
  0xbf   : > { %s8298_s19 = smov (!%p425_p13, %s4950_s19), 7  ;;  %v6334_v14 = vpack.c.bf16 %v463_v4, %v460_v3  ;;  %v6340_v17 = vsub.f32 %v435_v0, %v460_v3  ;;  %v6344_v19 = vsub.f32 %v436_v1, %v463_v4  ;;  %v1088_v61 = vand.u32 4294901760, %v1074_v50  ;;  %s421_s5 = sand.u32 1, %s6026_s28  }
  0xc0   : > { %s4951_s25 = sshll.u32 %s8298_s19, 3  ;;  %v6342_v18 = vpack.c.bf16 %v469_v9, %v466_v6  ;;  %v6362_v28 = vsub.f32 %v437_v2, %v466_v6  ;;  %v6364_v29 = vsub.f32 %v438_v5, %v469_v9  ;;  %v1091_v62 = vand.u32 4294901760, %v1075_v55  ;;  %s4962_s12 = sshll.u32 %s6034_s30, 15 }
  0xc1   : > { %s428_s29 = scalar_lea.vmem %s8192_s0, %s4951_s25  ;;  %5420 = vmatprep.subr.bf16.mxu0 %v6334_v14  ;;  %v571_v24 = vand.u32 4294901760, %v6340_v17  ;;  %v578_v26 = vand.u32 4294901760, %v6344_v19  ;;  %v1094_v63 = vand.u32 4294901760, %v1076_v56  ;;  %v5435_v0 = vpack.c.bf16 %v6344_v19, %v6340_v17  ;;  %s8134_s24 = scalar_lea.hbm %s8200_s8, %s4962_s12 }
  0xc2   : > { %v431_v7 = vld [vmem:[%s428_s29] sm:$0xff]  ;;  %v432_v8 = vld [vmem:[%s428_s29 + $0x8] sm:$0xff]  ;;  %v433_v12 = vld [vmem:[%s428_s29 + $0x10] sm:$0xff]  ;;  %5422 = vmatpush3.bf16.msra.mxu0 %v6334_v14  ;;  %v585_v36 = vand.u32 4294901760, %v6362_v28  ;;  %v592_v37 = vand.u32 4294901760, %v6364_v29  ;;  %v6410_v1 = vpack.c.bf16 %v1088_v61, %v1085_v60  ;;  %v6412_v2 = vsub.f32 %v1073_v49, %v1085_v60  ;;  %s8146_s30 = scalar_lea.sflag [#allocation4], %s421_s5 }
  0xc3   : > { %v448_v10 = vsel %vm446_vm0, %v431_v7, 0  ;;  %v451_v11 = vsel %vm446_vm0, %v432_v8, 0  ;;  %v434_v13 = vld [vmem:[%s428_s29 + $0x18] sm:$0xff]  ;;  %v454_v20 = vsel %vm446_vm0, %v433_v12, 0  ;;  %5424 = vmatprep.subr.bf16.mxu0 %v6342_v18  ;;  %v572_v32 = vsub.f32 %v6340_v17, %v571_v24  ;;  %s4949_s29 = sshll.u32 %s421_s5, 11  ;;  %p8287_p4 = scmp.ne.s32.totalorder %s8234_s15, 0 }
  0xc4   : > { %v6336_v15 = vand.u32 4294901760, %v448_v10  ;;  %v6338_v16 = vand.u32 4294901760, %v451_v11  ;;  %v457_v21 = vsel %vm446_vm0, %v434_v13, 0  ;;  %v6356_v25 = vand.u32 4294901760, %v454_v20  ;;  %5468 = vmatprep.subr.bf16.mxu1 %v6410_v1  ;;  %s6921_s20 = scalar_lea.vmem [#allocation13], %s4949_s29  ;;  %s6053_s13 = smov [#allocation13]  }
  0xc5   : > { %v6360_v27 = vand.u32 4294901760, %v457_v21  ;;  %v579_v34 = vsub.f32 %v6344_v19, %v578_v26  ;;  %v573_v40 = vand.u32 4294901760, %v572_v32  ;;  %v586_v44 = vsub.f32 %v6362_v28, %v585_v36  ;;  %5470 = vmatpush3.bf16.msra.mxu1 %v6410_v1  ;;  %v1706_v19 = vld [vmem:[#allocation10] sm:$0xff]  ;;  %s4792_s26 = sshll.u32 %s6921_s20, 4  ;;  %s5952_s23 = sshll.u32 %s6053_s13, 4  ;;  %s8136_s26 = int_to_ptr.vmem [resolvable:$true] %s4792_s26  ;;  %s5953_s23 = int_to_ptr.vmem [resolvable:$false] %s5952_s23 }
  0xc6   : > { %v6350_v22 = vsub.f32 %v448_v10, %v6336_v15  ;;  %v6353_v23 = vsub.f32 %v451_v11, %v6338_v16  ;;  %v6377_v33 = vsub.f32 %v454_v20, %v6356_v25  ;;  %5426 = vmatpush3.bf16.msra.mxu0 %v6342_v18  ;;  %v593_v45 = vsub.f32 %v6364_v29, %v592_v37  ;;  %s5948_s3 = scalar_lea.vmem %s8136_s26, 32768  ;;  %s5954_s18 = scalar_lea.vmem %s5953_s23, 65536 }
  0xc7   : > { %v6383_v35 = vsub.f32 %v457_v21, %v6360_v27  ;;  %v580_v42 = vand.u32 4294901760, %v579_v34  ;;  %v587_v53 = vand.u32 4294901760, %v586_v44  ;;  %v6414_v3 = vsub.f32 %v1074_v50, %v1088_v61  ;;  %p5949_p1 = scmp.ne.s32.totalorder %s8136_s26, %s5948_s3  ;;  %p5955_p11 = scmp.lt.s32.totalorder %s8136_s26, %s5953_s23 }
  0xc8   : > { %v6368_v30 = vand.u32 4294901760, %v6350_v22  ;;  %v6371_v31 = vand.u32 4294901760, %v6353_v23  ;;  %v6392_v41 = vand.u32 4294901760, %v6377_v33  ;;  %v594_v54 = vand.u32 4294901760, %v593_v45  ;;  %p5956_p3 = scmp.lt.s32.totalorder %s5954_s18, %s5948_s3 }
  0xc9   : > { %v6396_v43 = vand.u32 4294901760, %v6383_v35  ;;  %v5427_v51 = vpack.c.bf16 %v580_v42, %v573_v40  ;;  %v6416_v4 = vpack.c.bf16 %v1094_v63, %v1091_v62  ;;  %v6418_v5 = vsub.f32 %v1075_v55, %v1091_v62  ;;  %p5950_p8 = pnand %p5949_p1, %p8287_p4 }
  0xca   : > { %v531_v38 = vsub.f32 %v6350_v22, %v6368_v30  ;;  %v541_v39 = vsub.f32 %v6353_v23, %v6371_v31  ;;  %v551_v48 = vsub.f32 %v6377_v33, %v6392_v41  ;;  %v5431_v59 = vpack.c.bf16 %v594_v54, %v587_v53  ;;  %v1702_v53 = vld [vmem:[%s8193_s1 + $0x20] sm:$0xff]  ;;  %p5957_p5 = por %p5956_p3, %p5955_p11 }
  0xcb   : > { %v561_v52 = vsub.f32 %v6383_v35, %v6396_v43  ;;  %5428 = vmatprep.subr.bf16.mxu0 %v5427_v51  ;;  %v6420_v6 = vsub.f32 %v1076_v56, %v1094_v63  ;;  %v1196_v7 = vand.u32 4294901760, %v6412_v2  ;;  %v1203_v8 = vand.u32 4294901760, %v6414_v3  ;;  %5472 = vmatprep.subr.bf16.mxu1 %v6416_v4  ;;  %p5951_p10 = pneg %p5950_p8 }
  0xcc   : > { %v532_v46 = vand.u32 4294901760, %v531_v38  ;;  %v542_v47 = vand.u32 4294901760, %v541_v39  ;;  %v552_v57 = vand.u32 4294901760, %v551_v48  ;;  %v1210_v9 = vand.u32 4294901760, %v6418_v5  ;;  %5474 = vmatpush3.bf16.msra.mxu1 %v6416_v4 }
  0xcd   : > { %v562_v58 = vand.u32 4294901760, %v561_v52  ;;  %v1217_v10 = vand.u32 4294901760, %v6420_v6  ;;  %v5439_v11 = vpack.c.bf16 %v6364_v29, %v6362_v28  ;;  %v1197_v12 = vsub.f32 %v6412_v2, %v1196_v7  ;;  %v1708_v29 = vld [vmem:[#allocation10 + $0x10] sm:$0xff]  ;;  %p5958_p6 = pnand %p5957_p5, %p5951_p10 }
  0xce   : > { %5139 = vmatprep.mubr.f32.mxu0 %v532_v46  ;;  %5223 = vmatprep.mubr.f32.mxu1 %v532_v46  ;;  %v1204_v13 = vsub.f32 %v6414_v3, %v1203_v8  ;;  %v1211_v20 = vsub.f32 %v6418_v5, %v1210_v9  ;;  %v5483_v44 = vpack.c.bf16 %v6414_v3, %v6412_v2  ;;  %v1748_v48 = vand.u32 4294901760, %v1708_v29 }
  0xcf   : > { %5140 = vmatmul.mubr.f32.vlgmr.msra.gmra.mrb[0].mxu0 %v542_v47  ;;  %v1218_v21 = vsub.f32 %v6420_v6, %v1217_v10  ;;  %v1198_v32 = vand.u32 4294901760, %v1197_v12  ;;  %5224 = vmatmul.mubr.f32.vlgmr.msra.gmra.mrb[0].mxu1 %v542_v47  ;;  %v5451_v45 = vpack.c.bf16 %v578_v26, %v571_v24  ;;  %v5487_v46 = vpack.c.bf16 %v6420_v6, %v6418_v5  ;;  %v1707_v24 = vld [vmem:[#allocation10 + $0x8] sm:$0xff]  ;;  %v1698_v26 = vld [vmem:[%s8193_s1] sm:$0xff] }
  0xd0   : > { %5430 = vmatpush3.bf16.msra.mxu0 %v5427_v51  ;;  %5142 = vmatprep.mubr.f32.mxu0 %v552_v57  ;;  %v1205_v34 = vand.u32 4294901760, %v1204_v13  ;;  %v1212_v38 = vand.u32 4294901760, %v1211_v20  ;;  %v5455_v17 = vpack.c.bf16 %v592_v37, %v585_v36  ;;  %v1745_v28 = vand.u32 4294901760, %v1707_v24  ;;  %v1709_v36 = vld [vmem:[#allocation10 + $0x18] sm:$0xff] }
  0xd1   : > { %5432 = vmatprep.subr.bf16.mxu0 %v5431_v59  ;;  %v1219_v39 = vand.u32 4294901760, %v1218_v21  ;;  %5226 = vmatprep.mubr.f32.mxu1 %v552_v57  ;;  %v5499_v37 = vpack.c.bf16 %v1203_v8, %v1196_v7  ;;  %v1718_v47 = vsel %vm446_vm0, %v1698_v26, 0  ;;  %v1751_v49 = vand.u32 4294901760, %v1709_v36 }
  0xd2   : > { %v5475_v40 = vpack.c.bf16 %v1205_v34, %v1198_v32  ;;  %v6507_v51 = vand.u32 4294901760, %v1718_v47  ;;  %v6524_v55 = vsub.f32 %v1707_v24, %v1745_v28  ;;  %v1730_v60 = vsel %vm446_vm0, %v1702_v53, 0 }
  0xd3   : > { %5143 = vmatmul.mubr.f32.gmra.mrb[2].mxu0 %v562_v58  ;;  %v5479_v42 = vpack.c.bf16 %v1219_v39, %v1212_v38  ;;  %5227 = vmatmul.mubr.f32.gmra.mrb[2].mxu1 %v562_v58  ;;  %v6530_v56 = vpack.c.bf16 %v1751_v49, %v1748_v48  ;;  %v6548_v62 = vsub.f32 %v1708_v29, %v1748_v48  ;;  %v6569_v8 = vand.u32 4294901760, %v1730_v60 }
  0xd4   : > { %5434 = vmatpush3.bf16.msra.mxu0 %v5431_v59  ;;  %5153 = vmatprep.mubr.f32.mxu0 %v6336_v15  ;;  %v6536_v58 = vsub.f32 %v1718_v47, %v6507_v51  ;;  %v6550_v63 = vsub.f32 %v1709_v36, %v1751_v49  ;;  %vm4519_vm1 = vcmask 523264  }
  0xd5   : > { %5436 = vmatprep.subr.bf16.mxu0 %v5435_v0  ;;  %5476 = vmatprep.subr.bf16.mxu1 %v5475_v40  ;;  %v6592_v38 = vsub.f32 %v1730_v60, %v6569_v8 }
  0xd6   : > { %5478 = vmatpush3.bf16.msra.mxu1 %v5475_v40  ;;  %5237 = vmatprep.mubr.f32.mxu1 %v6336_v15  ;;  %v1812_v6 = vand.u32 4294901760, %v6536_v58  ;;  %v1914_v12 = vand.u32 4294901760, %v6550_v63 }
  0xd7   : > { %5154 = vmatmul.mubr.f32.vlgmr.msra.gmra.mrb[0].mxu0 %v6338_v16  ;;  %5480 = vmatprep.subr.bf16.mxu1 %v5479_v42 }
  0xd8   : > { %5438 = vmatpush3.bf16.msra.mxu0 %v5435_v0  ;;  %5156 = vmatprep.mubr.f32.mxu0 %v6356_v25  ;;  %v1704_v0 = vld [vmem:[%s8193_s1 + $0x30] sm:$0xff]  ;;  %v1915_v29 = vsub.f32 %v6550_v63, %v1914_v12 }
  0xd9   : > { %5440 = vmatprep.subr.bf16.mxu0 %v5439_v11 }
  0xda   : > { %5482 = vmatpush3.bf16.msra.mxu1 %v5479_v42  ;;  %v1916_v48 = vand.u32 4294901760, %v1915_v29 }
  0xdb   : > { %5157 = vmatmul.mubr.f32.gmra.mrb[2].mxu0 %v6360_v27  ;;  %5484 = vmatprep.subr.bf16.mxu1 %v5483_v44 }
  0xdc   : > { %5442 = vmatpush3.bf16.msra.mxu0 %v5439_v11  ;;  %5167 = vmatprep.mubr.f32.mxu0 %v6350_v22  ;;  %v1907_v11 = vand.u32 4294901760, %v6548_v62 }
  0xdd   : > { %5444 = vmatprep.subr.bf16.mxu0 %v6334_v14  ;;  %5238 = vmatmul.mubr.f32.vlgmr.msra.gmra.mrb[0].mxu1 %v6338_v16 }
  0xde   : > { %5486 = vmatpush3.bf16.msra.mxu1 %v5483_v44  ;;  %5240 = vmatprep.mubr.f32.mxu1 %v6356_v25  ;;  %v5551_v32 = vpack.c.bf16 %v1914_v12, %v1907_v11 }
  0xdf   : > { %5168 = vmatmul.mubr.f32.vlgmr.msra.gmra.mrb[0].mxu0 %v6353_v23  ;;  %5488 = vmatprep.subr.bf16.mxu1 %v5487_v46 }
  0xe0   : > { %5446 = vmatpush3.bf16.msra.mxu0 %v6334_v14  ;;  %5170 = vmatprep.mubr.f32.mxu0 %v6377_v33 }
  0xe1   : > { %5448 = vmatprep.subr.bf16.mxu0 %v6342_v18  ;;  %5241 = vmatmul.mubr.f32.gmra.mrb[2].mxu1 %v6360_v27 }
  0xe2   : > { %5490 = vmatpush3.bf16.msra.mxu1 %v5487_v46  ;;  %5251 = vmatprep.mubr.f32.mxu1 %v6350_v22  ;;  %v1742_v22 = vand.u32 4294901760, %v1706_v19 }
  0xe3   : > { %5171 = vmatmul.mubr.f32.gmra.mrb[2].mxu0 %v6383_v35  ;;  %5492 = vmatprep.subr.bf16.mxu1 %v6410_v1 }
  0xe4   : > { %5450 = vmatpush3.bf16.msra.mxu0 %v6342_v18  ;;  %5181 = vmatprep.mubr.f32.mxu0 %v6368_v30  ;;  %v6505_v50 = vpack.c.bf16 %v1745_v28, %v1742_v22  ;;  %v6522_v54 = vsub.f32 %v1706_v19, %v1742_v22  ;;  %v1852_v19 = vand.u32 4294901760, %v6592_v38  ;;  %v1908_v28 = vsub.f32 %v6548_v62, %v1907_v11 }
  0xe5   : > { %5452 = vmatprep.subr.bf16.mxu0 %v5451_v45  ;;  %5252 = vmatmul.mubr.f32.vlgmr.msra.gmra.mrb[0].mxu1 %v6353_v23  ;;  %v1699_v23 = vld [vmem:[%s8193_s1 + $0x8] sm:$0xff] }
  0xe6   : > { %5494 = vmatpush3.bf16.msra.mxu1 %v6410_v1  ;;  %5254 = vmatprep.mubr.f32.mxu1 %v6377_v33  ;;  %v1700_v33 = vld [vmem:[%s8193_s1 + $0x10] sm:$0xff]  ;;  %v1893_v61 = vand.u32 4294901760, %v6522_v54 }
  0xe7   : > { %5182 = vmatmul.mubr.f32.vlgmr.msra.gmra.mrb[0].mxu0 %v6371_v31  ;;  %5496 = vmatprep.subr.bf16.mxu1 %v6416_v4  ;;  %v1724_v52 = vsel %vm446_vm0, %v1700_v33, 0  ;;  %v1909_v33 = vand.u32 4294901760, %v1908_v28 }
  0xe8   : > { %5454 = vmatpush3.bf16.msra.mxu0 %v5451_v45  ;;  %5184 = vmatprep.mubr.f32.mxu0 %v6392_v41  ;;  %v6538_v59 = vand.u32 4294901760, %v1724_v52  ;;  %v1894_v42 = vsub.f32 %v6522_v54, %v1893_v61 }
  0xe9   : > { %5456 = vmatprep.subr.bf16.mxu0 %v5455_v17  ;;  %5255 = vmatmul.mubr.f32.gmra.mrb[2].mxu1 %v6383_v35  ;;  %v5503_v35 = vpack.c.bf16 %v1217_v10, %v1210_v9  ;;  %v1736_v9 = vsel %vm446_vm0, %v1704_v0, 0  ;;  %v1705_v10 = vld [vmem:[%s8193_s1 + $0x38] sm:$0xff] }
  0xea   : > { %5498 = vmatpush3.bf16.msra.mxu1 %v6416_v4  ;;  %5265 = vmatprep.mubr.f32.mxu1 %v6368_v30  ;;  %v1701_v30 = vld [vmem:[%s8193_s1 + $0x18] sm:$0xff]  ;;  %v6567_v7 = vsub.f32 %v1724_v52, %v6538_v59  ;;  %v6594_v39 = vand.u32 4294901760, %v1736_v9  ;;  %v1739_v40 = vsel %vm446_vm0, %v1705_v10, 0  ;;  %v1895_v26 = vand.u32 4294901760, %v1894_v42 }
  0xeb   : > { %5185 = vmatmul.mubr.f32.gmra.mrb[2].mxu0 %v6396_v43  ;;  %5500 = vmatprep.subr.bf16.mxu1 %v5499_v37  ;;  %v6605_v46 = vand.u32 4294901760, %v1739_v40  ;;  %v1853_v52 = vsub.f32 %v6592_v38, %v1852_v19 }
  0xec   : > { %5458 = vmatpush3.bf16.msra.mxu0 %v5455_v17  ;;  %5195 = vmatprep.mubr.f32.mxu0 %v6336_v15  ;;  %v1832_v34 = vand.u32 4294901760, %v6567_v7  ;;  %v1813_v17 = vsub.f32 %v6536_v58, %v1812_v6  ;;  %v6612_v24 = vsub.f32 %v1736_v9, %v6594_v39 }
  0xed   : > { %5460 = vmatprep.subr.bf16.mxu0 %v6334_v14  ;;  %5266 = vmatmul.mubr.f32.vlgmr.msra.gmra.mrb[0].mxu1 %v6371_v31  ;;  %v1703_v31 = vld [vmem:[%s8193_s1 + $0x28] sm:$0xff]  ;;  %v6621_v36 = vsub.f32 %v1739_v40, %v6605_v46 }
  0xee   : > { %5502 = vmatpush3.bf16.msra.mxu1 %v5499_v37  ;;  %5268 = vmatprep.mubr.f32.mxu1 %v6392_v41  ;;  %v1900_v41 = vand.u32 4294901760, %v6524_v55  ;;  %v1814_v37 = vand.u32 4294901760, %v1813_v17  ;;  %v1833_v47 = vsub.f32 %v6567_v7, %v1832_v34 }
  0xef   : > { %5196 = vmatmul.mubr.f32.vlgmr.msra.gmra.mrb[0].mxu0 %v6338_v16  ;;  %5504 = vmatprep.subr.bf16.mxu1 %v5503_v35 }
  0xf0   : > { %5462 = vmatpush3.bf16.msra.mxu0 %v6334_v14  ;;  %5198 = vmatprep.mubr.f32.mxu0 %v6356_v25  ;;  %v1721_v14 = vsel %vm446_vm0, %v1699_v23, 0  ;;  %v5547_v5 = vpack.c.bf16 %v1900_v41, %v1893_v61  ;;  %v1901_v44 = vsub.f32 %v6524_v55, %v1900_v41  ;;  %v1872_v23 = vand.u32 4294901760, %v6612_v24 }
  0xf1   : > { %5464 = vmatprep.subr.bf16.mxu0 %v6342_v18  ;;  %v6532_v57 = vand.u32 4294901760, %v1721_v14  ;;  %5269 = vmatmul.mubr.f32.gmra.mrb[2].mxu1 %v6396_v43  ;;  %v1733_v43 = vsel %vm446_vm0, %v1703_v31, 0  ;;  %v5531_v31 = vpack.c.bf16 %v6524_v55, %v6522_v54 }
  0xf2   : > { %5506 = vmatpush3.bf16.msra.mxu1 %v5503_v35  ;;  %5279 = vmatprep.mubr.f32.mxu1 %v6336_v15  ;;  %v6586_v21 = vand.u32 4294901760, %v1733_v43  ;;  %v1902_v22 = vand.u32 4294901760, %v1901_v44  ;;  %v1882_v35 = vand.u32 4294901760, %v6621_v36  ;;  %v1873_v60 = vsub.f32 %v6612_v24, %v1872_v23 }
  0xf3   : > { %5199 = vmatmul.mubr.f32.gmra.mrb[2].mxu0 %v6360_v27  ;;  %v6560_v2 = vsub.f32 %v1721_v14, %v6532_v57  ;;  %5508 = vmatprep.subr.bf16.mxu1 %v6410_v1 }
  0xf4   : > { %5466 = vmatpush3.bf16.msra.mxu0 %v6342_v18  ;;  %5209 = vmatprep.mubr.f32.mxu0 %v6336_v15  ;;  %v1727_v18 = vsel %vm446_vm0, %v1701_v30, 0  ;;  %v6603_v45 = vsub.f32 %v1733_v43, %v6586_v21  ;;  %v5527_v30 = vpack.c.bf16 %v1916_v48, %v1909_v33  ;;  %v1883_v41 = vsub.f32 %v6621_v36, %v1882_v35  ;;  %v4953_v48 = vld [vmem:[#allocation8] ss:$0 sm:$0xff] }
  0xf5   : > { %5540 = vmatprep.subr.bf16.mxu0 %v6505_v50  ;;  %v6562_v3 = vand.u32 4294901760, %v1727_v18  ;;  %5280 = vmatmul.mubr.f32.vlgmr.msra.gmra.mrb[0].mxu1 %v6338_v16  ;;  %v1822_v13 = vand.u32 4294901760, %v6560_v2  ;;  %v1874_v0 = vand.u32 4294901760, %v1873_v60 }
  0xf6   : > { %5510 = vmatpush3.bf16.msra.mxu1 %v6410_v1  ;;  %5282 = vmatprep.mubr.f32.mxu1 %v6356_v25  ;;  %v1884_v54 = vand.u32 4294901760, %v1883_v41 }
  0xf7   : > { %5210 = vmatmul.mubr.f32.vlgmr.msra.gmra.mrb[0].mxu0 %v6338_v16  ;;  %v6584_v20 = vsub.f32 %v1727_v18, %v6562_v3  ;;  %5512 = vmatprep.subr.bf16.mxu1 %v6416_v4  ;;  %v1854_v18 = vand.u32 4294901760, %v1853_v52 }
  0xf8   : > { %5212 = vmatprep.mubr.f32.mxu0 %v6356_v25  ;;  %5542 = vmatpush3.bf16.msra.mxu0 %v6505_v50 }
  0xf9   : > { %5544 = vmatprep.subr.bf16.mxu0 %v6530_v56  ;;  %5283 = vmatmul.mubr.f32.gmra.mrb[2].mxu1 %v6360_v27  ;;  %v1842_v1 = vand.u32 4294901760, %v6584_v20 }
  0xfa   : > { %5514 = vmatpush3.bf16.msra.mxu1 %v6416_v4  ;;  %5293 = vmatprep.mubr.f32.mxu1 %v6336_v15  ;;  %v1823_v15 = vsub.f32 %v6560_v2, %v1822_v13  ;;  %v1862_v4 = vand.u32 4294901760, %v6603_v45 }
  0xfb   : > { %5213 = vmatmul.mubr.f32.gmra.mrb[2].mxu0 %v6360_v27  ;;  %5516 = vmatprep.subr.bf16.mxu1 %v6505_v50  ;;  %v1843_v14 = vsub.f32 %v6584_v20, %v1842_v1 }
  0xfc   : > { %5546 = vmatpush3.bf16.msra.mxu0 %v6530_v56  ;;  %5367 = vmatprep.mubr.f32.mxu0 %v1812_v6  ;;  %v1824_v49 = vand.u32 4294901760, %v1823_v15 }
  0xfd   : > { %5548 = vmatprep.subr.bf16.mxu0 %v5547_v5  ;;  %5294 = vmatmul.mubr.f32.vlgmr.msra.gmra.mrb[0].mxu1 %v6338_v16  ;;  %v5523_v16 = vpack.c.bf16 %v1902_v22, %v1895_v26  ;;  %v1844_v53 = vand.u32 4294901760, %v1843_v14 }
  0xfe   : > { %5518 = vmatpush3.bf16.msra.mxu1 %v6505_v50  ;;  %5296 = vmatprep.mubr.f32.mxu1 %v6356_v25  ;;  %v1834_v25 = vand.u32 4294901760, %v1833_v47 }
  0xff   : > { %5368 = vmatmul.mubr.f32.vlgmr.msra.gmra.mrb[4].mxu0 %v1822_v13  ;;  %5520 = vmatprep.subr.bf16.mxu1 %v6530_v56  ;;  %v6052_v13 = vmov 1966171168  }
 0x100   : > { %5370 = vmatprep.mubr.f32.mxu0 %v1832_v34  ;;  %5550 = vmatpush3.bf16.msra.mxu0 %v5547_v5 }
 0x101   : > { %5552 = vmatprep.subr.bf16.mxu0 %v5551_v32  ;;  %5297 = vmatmul.mubr.f32.gmra.mrb[2].mxu1 %v6360_v27  ;;  %v1863_v27 = vsub.f32 %v6603_v45, %v1862_v4 }
 0x102   : > { %5522 = vmatpush3.bf16.msra.mxu1 %v6530_v56  ;;  %5307 = vmatprep.mubr.f32.mxu1 %v1814_v37 }
 0x103   : > { %5371 = vmatmul.mubr.f32.gmra.mrb[6].mxu0 %v1842_v1  ;;  %5524 = vmatprep.subr.bf16.mxu1 %v5523_v16  ;;  %v1864_v61 = vand.u32 4294901760, %v1863_v27 }
 0x104   : > { %5373 = vmatprep.mubr.f32.mxu0 %v1852_v19  ;;  %5554 = vmatpush3.bf16.msra.mxu0 %v5551_v32 }
 0x105   : > { %5556 = vmatprep.subr.bf16.mxu0 %v6505_v50  ;;  %5308 = vmatmul.mubr.f32.vlgmr.msra.gmra.mrb[4].mxu1 %v1824_v49 }
 0x106   : > { %5310 = vmatprep.mubr.f32.mxu1 %v1834_v25  ;;  %5526 = vmatpush3.bf16.msra.mxu1 %v5523_v16 }
 0x107   : > { %5374 = vmatmul.mubr.f32.gmra.mrb[8].mxu0 %v1862_v4  ;;  %5528 = vmatprep.subr.bf16.mxu1 %v5527_v30 }
 0x108   : > { %5376 = vmatprep.mubr.f32.mxu0 %v1872_v23 }
 0x109   : > { %5311 = vmatmul.mubr.f32.gmra.mrb[6].mxu1 %v1844_v53 }
 0x10a   : > { %5313 = vmatprep.mubr.f32.mxu1 %v1854_v18  ;;  %5530 = vmatpush3.bf16.msra.mxu1 %v5527_v30 }
 0x10b   : > { %5377 = vmatmul.mubr.f32.gmra.mrb[10].mxu0 %v1882_v35  ;;  %5532 = vmatprep.subr.bf16.mxu1 %v5531_v31 }
 0x10c   : > { %5387 = vmatprep.mubr.f32.mxu0 %v6507_v51 }
 0x10d   : > { %5314 = vmatmul.mubr.f32.gmra.mrb[8].mxu1 %v1864_v61 }
 0x10e   : > { %5316 = vmatprep.mubr.f32.mxu1 %v1874_v0 }
 0x10f   : > { %5388 = vmatmul.mubr.f32.vlgmr.msra.gmra.mrb[4].mxu0 %v6532_v57 }
 0x110   : > { %5390 = vmatprep.mubr.f32.mxu0 %v6538_v59  ;;  %5558 = vmatpush3.bf16.msra.mxu0 %v6505_v50  ;;  %v5535_v50 = vpack.c.bf16 %v6550_v63, %v6548_v62 }
 0x111   : > { %5560 = vmatprep.subr.bf16.mxu0 %v6530_v56  ;;  %5317 = vmatmul.mubr.f32.gmra.mrb[10].mxu1 %v1884_v54 }
 0x112   : > { %5327 = vmatprep.mubr.f32.mxu1 %v6507_v51 }
 0x113   : > { %5391 = vmatmul.mubr.f32.gmra.mrb[6].mxu0 %v6562_v3 }
 0x114   : > { %5393 = vmatprep.mubr.f32.mxu0 %v6569_v8  ;;  %5562 = vmatpush3.bf16.msra.mxu0 %v6530_v56  ;;  %v4952_v56 = vld [vmem:[#allocation5] ss:$0 sm:$0xff] }
 0x115   : > { %5328 = vmatmul.mubr.f32.vlgmr.msra.gmra.mrb[4].mxu1 %v6532_v57 }
 0x116   : > { %5330 = vmatprep.mubr.f32.mxu1 %v6538_v59  ;;  %5534 = vmatpush3.bf16.msra.mxu1 %v5531_v31 }
 0x117   : > { %5394 = vmatmul.mubr.f32.gmra.mrb[8].mxu0 %v6586_v21  ;;  %5536 = vmatprep.subr.bf16.mxu1 %v5535_v50 }
 0x118   : > { %5396 = vmatprep.mubr.f32.mxu0 %v6594_v39 }
 0x119   : > { %5331 = vmatmul.mubr.f32.gmra.mrb[6].mxu1 %v6562_v3 }
 0x11a   : > { %5333 = vmatprep.mubr.f32.mxu1 %v6569_v8  ;;  %5538 = vmatpush3.bf16.msra.mxu1 %v5535_v50 }
 0x11b   : > { %5397 = vmatmul.mubr.f32.gmra.mrb[10].mxu0 %v6605_v46 }
 0x11c   : > { %5407 = vmatprep.mubr.f32.mxu0 %v6507_v51  ;;  %v2527_v51 = vlaneseq }
 0x11d   : > { %5334 = vmatmul.mubr.f32.gmra.mrb[8].mxu1 %v6586_v21 }
 0x11e   : > { %5336 = vmatprep.mubr.f32.mxu1 %v6594_v39  ;;  %v2528_v55 = vshrl.u32 %v2527_v51, 7 }
 0x11f   : > { %5408 = vmatmul.mubr.f32.vlgmr.msra.gmra.mrb[4].mxu0 %v6532_v57 }
 0x120   : > { %5410 = vmatprep.mubr.f32.mxu0 %v6538_v59  ;;  %v6676_v57 = vsub.s32 0, %v2528_v55  ;;  %v2564_v63 = vsub.s32 1, %v2528_v55  ;;  %v6682_v5 = vsub.s32 3, %v2528_v55  ;;  %v6684_v6 = vsub.s32 4, %v2528_v55 }
 0x121   : > { %5337 = vmatmul.mubr.f32.gmra.mrb[10].mxu1 %v6605_v46  ;;  %v6690_v43 = vsub.s32 6, %v2528_v55  ;;  %v6692_v9 = vsub.s32 7, %v2528_v55 }
 0x122   : > { %5347 = vmatprep.mubr.f32.mxu1 %v6536_v58 }
 0x123   : > { %5411 = vmatmul.mubr.f32.gmra.mrb[6].mxu0 %v6562_v3 }
 0x124   : > { %5413 = vmatprep.mubr.f32.mxu0 %v6569_v8  ;;  %v6688_v8 = vsub.s32 5, %v2528_v55 }
 0x125   : > { %5348 = vmatmul.mubr.f32.vlgmr.msra.gmra.mrb[4].mxu1 %v6560_v2  ;;  %v6680_v2 = vsub.s32 2, %v2528_v55 }
 0x126   : > { %5350 = vmatprep.mubr.f32.mxu1 %v6567_v7 }
 0x127   : > { %5414 = vmatmul.mubr.f32.gmra.mrb[8].mxu0 %v6586_v21 }
 0x128   : > { %5416 = vmatprep.mubr.f32.mxu0 %v6594_v39 }
 0x129   : > { %5351 = vmatmul.mubr.f32.gmra.mrb[6].mxu1 %v6584_v20  ;;  %v3653_v20 = vunpack.c.l.s4 %v6052_v13 }
 0x12a   : > { %5353 = vmatprep.mubr.f32.mxu1 %v6592_v38 }
 0x12b   : > { %5417 = vmatmul.mubr.f32.gmra.mrb[10].mxu0 %v6605_v46  ;;  %v3654_v26 = vunpack.c.0.s8 %v3653_v20 }
 0x12d   : > { %5354 = vmatmul.mubr.f32.gmra.mrb[8].mxu1 %v6603_v45  ;;  %v6763_v49 = vsub.s32 %v3654_v26, %v2528_v55 }
 0x12e   : > { %5356 = vmatprep.mubr.f32.mxu1 %v6612_v24 }
 0x131   : > { %5357 = vmatmul.mubr.f32.gmra.mrb[10].mxu1 %v6621_v36 }
 0x1ca   : > { %v5211_v58 = vpop.f32.mrb[0].mxu0 }
 0x1cb   : > { %v6678_v59 = vadd.f32 %v5211_v58, %v4952_v56  ;;  %v1051_v62 = vpop.f32.mrb[1].mxu0 }
 0x1cc   : > { %v5564_v3 = vadd.f32 %v4952_v56, %v1051_v62 }
 0x1cd   : > { %v2810_v7 = vrot.slane %v6678_v59, %v6676_v57  ;;  %v2845_v27 = vrot.slane %v6678_v59, %v2564_v63 }
 0x1ce   : > { %v5214_v10 = vpop.f32.mrb[2].mxu0  ;;  %v6695_v21 = vrot.slane %v5564_v3, %v6676_v57  ;;  %v6697_v32 = vrot.slane %v5564_v3, %v2564_v63  ;;  %v6700_v38 = vrot.slane %v5564_v3, %v6680_v2  ;;  %v6703_v39 = vrot.slane %v5564_v3, %v6682_v5 }
 0x1cf   : > { %v5565_v11 = vadd.f32 %v5214_v10, %v4952_v56  ;;  %2816 = vbcast.lane.b32.xlu1 %v2810_v7, 264  ;;  %2812 = vbcast.lane.b32.xlu0 %v2810_v7, 256  ;;  %v1063_v12 = vpop.f32.mrb[3].mxu0  ;;  %v6706_v40 = vrot.slane %v5564_v3, %v6684_v6  ;;  %v6709_v42 = vrot.slane %v5564_v3, %v6688_v8 }
 0x1d0   : > { %v5566_v34 = vadd.f32 %v4952_v56, %v1063_v12  ;;  %v6712_v44 = vrot.slane %v5564_v3, %v6690_v43  ;;  %v6715_v1 = vrot.slane %v5564_v3, %v6692_v9  ;;  %v5295_v14 = vpop.f32.mrb[0].mxu1 }
 0x1d1   : > { %v6718_v45 = vrot.slane %v5565_v11, %v6676_v57  ;;  %v6743_v4 = vrot.slane %v5565_v11, %v2564_v63  ;;  %v6746_v36 = vrot.slane %v5565_v11, %v6680_v2  ;;  %v6749_v37 = vrot.slane %v5565_v11, %v6682_v5  ;;  %v1676_v25 = vpop.f32.mrb[1].mxu1 }
 0x1d2   : > { %v6721_v46 = vrot.slane %v5566_v34, %v6676_v57  ;;  %v6723_v17 = vrot.slane %v5566_v34, %v2564_v63  ;;  %v6726_v19 = vrot.slane %v5566_v34, %v6680_v2  ;;  %v6729_v24 = vrot.slane %v5566_v34, %v6682_v5 }
 0x1d3   : > { %2824 = vbcast.lane.b32.xlu1 %v2810_v7, 280  ;;  %2820 = vbcast.lane.b32.xlu0 %v2810_v7, 272  ;;  %v6732_v22 = vrot.slane %v5566_v34, %v6684_v6  ;;  %v6735_v28 = vrot.slane %v5566_v34, %v6688_v8  ;;  %v6738_v29 = vrot.slane %v5566_v34, %v6690_v43 }
 0x1d4   : > { %v6741_v15 = vrot.slane %v5566_v34, %v6692_v9  ;;  %8245 = vst [vmem:[#allocation23_spill] sm:$0xff] %v6743_v4  ;;  %8246 = vst [vmem:[#allocation24_spill] sm:$0xff] %v6746_v36  ;;  %v6752_v47 = vrot.slane %v5565_v11, %v6684_v6  ;;  %v6755_v23 = vrot.slane %v5565_v11, %v6688_v8  ;;  %v5298_v31 = vpop.f32.mrb[2].mxu1 }
 0x1d5   : > { %8247 = vst [vmem:[#allocation25_spill] sm:$0xff] %v6749_v37  ;;  %v6758_v16 = vrot.slane %v5565_v11, %v6690_v43  ;;  %v6761_v33 = vrot.slane %v5565_v11, %v6692_v9  ;;  %v5567_v35 = vadd.f32 %v5295_v14, %v4953_v48  ;;  %v5568_v52 = vadd.f32 %v4953_v48, %v1676_v25  ;;  %v1688_v50 = vpop.f32.mrb[3].mxu1 }
 0x1d6   : > { %8248 = vst [vmem:[#allocation26_spill] sm:$0xff] %v6752_v47  ;;  %8249 = vst [vmem:[#allocation27_spill] sm:$0xff] %v6755_v23  ;;  %v5569_v54 = vadd.f32 %v5298_v31, %v4953_v48  ;;  %v5570_v58 = vadd.f32 %v4953_v48, %v1688_v50 }
 0x1d7   : > { %8250 = vst [vmem:[#allocation28_spill] sm:$0xff] %v6758_v16  ;;  %8251 = vst [vmem:[#allocation29_spill] sm:$0xff] %v6761_v33  ;;  %2832 = vbcast.lane.b32.xlu1 %v2810_v7, 296  ;;  %2828 = vbcast.lane.b32.xlu0 %v2810_v7, 288  ;;  %v3700_v30 = vcombine.high %v5567_v35, %v5567_v35  ;;  %v3707_v53 = vrot.slane %v5567_v35, %v6763_v49 }
 0x1d8   : > { %v3651_v18 = vcombine.high %v5568_v52, %v5568_v52  ;;  %v3658_v60 = vrot.slane %v5568_v52, %v6763_v49 }
 0x1d9   : > { %v3714_v61 = vrot.slane %v3700_v30, %v6763_v49  ;;  %v3715_v41 = vcombine.high %v3707_v53, %v3707_v53  ;;  %v3723_v0 = vrot.slane %v3707_v53, %v6763_v49 }
 0x1da   : > { %v3665_v51 = vrot.slane %v3651_v18, %v6763_v49  ;;  %v3666_v55 = vcombine.high %v3658_v60, %v3658_v60  ;;  %v3674_v56 = vrot.slane %v3658_v60, %v6763_v49 }
 0x1db   : > { %2840 = vbcast.lane.b32.xlu1 %v2810_v7, 312  ;;  %2836 = vbcast.lane.b32.xlu0 %v2810_v7, 304  ;;  %v3716_v62 = vcombine.high %v3714_v61, %v3714_v61  ;;  %v3730_v63 = vrot.slane %v3714_v61, %v6763_v49  ;;  %v3737_v3 = vrot.slane %v3715_v41, %v6763_v49 }
 0x1dc   : > { %v3745_v7 = vcombine.high %v3723_v0, %v3723_v0  ;;  %v6775_v10 = vrot.slane %v3723_v0, %v6676_v57  ;;  %v3667_v11 = vcombine.high %v3665_v51, %v3665_v51  ;;  %v3681_v12 = vrot.slane %v3665_v51, %v6763_v49 }
 0x1dd   : > { %v3744_v13 = vrot.slane %v3716_v62, %v6763_v49  ;;  %v3746_v20 = vcombine.high %v3730_v63, %v3730_v63  ;;  %v3747_v34 = vcombine.high %v3737_v3, %v3737_v3  ;;  %v6780_v26 = vrot.slane %v3737_v3, %v6676_v57 }
 0x1de   : > { %v6783_v48 = vrot.slane %v3745_v7, %v6676_v57  ;;  %v6786_v14 = vrot.slane %v3730_v63, %v6676_v57  ;;  %v3688_v35 = vrot.slane %v3666_v55, %v6763_v49  ;;  %v3695_v25 = vrot.slane %v3667_v11, %v6763_v49 }
 0x1df   : > { %2851 = vbcast.lane.b32.xlu1 %v2845_v27, 264  ;;  %2847 = vbcast.lane.b32.xlu0 %v2845_v27, 256  ;;  %v3748_v52 = vcombine.high %v3744_v13, %v3744_v13  ;;  %v6791_v30 = vrot.slane %v3747_v34, %v6676_v57  ;;  %v6794_v53 = vrot.slane %v3744_v13, %v6676_v57 }
 0x1e0   : > { %v6797_v18 = vrot.slane %v3746_v20, %v6676_v57  ;;  %v3696_v60 = vcombine.high %v3674_v56, %v3674_v56  ;;  %v3697_v31 = vcombine.high %v3681_v12, %v3681_v12  ;;  %v3698_v61 = vcombine.high %v3688_v35, %v3688_v35 }
 0x1e1   : > { %v6800_v41 = vrot.slane %v3748_v52, %v6676_v57  ;;  %v3699_v0 = vcombine.high %v3695_v25, %v3695_v25  ;;  %v6803_v50 = vrot.slane %v3674_v56, %v6676_v57  ;;  %v6806_v51 = vrot.slane %v3688_v35, %v6676_v57 }
 0x1e2   : > { %v6809_v55 = vrot.slane %v3696_v60, %v6676_v57  ;;  %v6812_v62 = vrot.slane %v3698_v61, %v6676_v57  ;;  %v6815_v63 = vrot.slane %v3681_v12, %v6676_v57  ;;  %v6818_v3 = vrot.slane %v3695_v25, %v6676_v57 }
 0x1e3   : > { %2859 = vbcast.lane.b32.xlu1 %v2845_v27, 280  ;;  %2855 = vbcast.lane.b32.xlu0 %v2845_v27, 272  ;;  %v6821_v56 = vrot.slane %v3697_v31, %v6676_v57  ;;  %v6824_v7 = vrot.slane %v3699_v0, %v6676_v57  ;;  %v3798_v11 = vcombine.high %v5569_v54, %v5569_v54 }
 0x1e4   : > { %v3805_v13 = vrot.slane %v5569_v54, %v6763_v49  ;;  %v3749_v20 = vcombine.high %v5570_v58, %v5570_v58  ;;  %v3756_v34 = vrot.slane %v5570_v58, %v6763_v49  ;;  %v2880_v12 = vrot.slane %v6678_v59, %v6680_v2 }
 0x1e5   : > { %v3812_v35 = vrot.slane %v3798_v11, %v6763_v49 }
 0x1e6   : > { %v3813_v25 = vcombine.high %v3805_v13, %v3805_v13  ;;  %v3821_v52 = vrot.slane %v3805_v13, %v6763_v49  ;;  %v3763_v60 = vrot.slane %v3749_v20, %v6763_v49  ;;  %v3764_v31 = vcombine.high %v3756_v34, %v3756_v34 }
 0x1e7   : > { %2867 = vbcast.lane.b32.xlu1 %v2845_v27, 296  ;;  %2863 = vbcast.lane.b32.xlu0 %v2845_v27, 288  ;;  %v3814_v61 = vcombine.high %v3812_v35, %v3812_v35  ;;  %v3828_v0 = vrot.slane %v3812_v35, %v6763_v49  ;;  %v3772_v54 = vrot.slane %v3756_v34, %v6763_v49 }
 0x1e8   : > { %v3835_v58 = vrot.slane %v3813_v25, %v6763_v49  ;;  %v3843_v33 = vcombine.high %v3821_v52, %v3821_v52  ;;  %v6837_v2 = vrot.slane %v3821_v52, %v6676_v57  ;;  %v3765_v11 = vcombine.high %v3763_v60, %v3763_v60 }
 0x1e9   : > { %v3842_v16 = vrot.slane %v3814_v61, %v6763_v49  ;;  %v3844_v13 = vcombine.high %v3828_v0, %v3828_v0  ;;  %v6841_v20 = vrot.slane %v3828_v0, %v6676_v57  ;;  %v3786_v25 = vrot.slane %v3764_v31, %v6763_v49 }
 0x1ea   : > { %8252 = vst [vmem:[#allocation30_spill] sm:$0xff] %v6837_v2  ;;  %v3845_v23 = vcombine.high %v3835_v58, %v3835_v58  ;;  %v6845_v35 = vrot.slane %v3835_v58, %v6676_v57  ;;  %v6848_v34 = vrot.slane %v3843_v33, %v6676_v57  ;;  %v3793_v58 = vrot.slane %v3765_v11, %v6763_v49 }
 0x1eb   : > { %2875 = vbcast.lane.b32.xlu1 %v2845_v27, 312  ;;  %2871 = vbcast.lane.b32.xlu0 %v2845_v27, 304  ;;  %8253 = vst [vmem:[#allocation31_spill] sm:$0xff] %v6841_v20  ;;  %v3779_v27 = vrot.slane %v3763_v60, %v6763_v49  ;;  %v3846_v52 = vcombine.high %v3842_v16, %v3842_v16 }
 0x1ec   : > { %8254 = vst [vmem:[#allocation32_spill] sm:$0xff] %v6845_v35  ;;  %8255 = vst [vmem:[#allocation33_spill] sm:$0xff] %v6848_v34  ;;  %v6852_v61 = vrot.slane %v3842_v16, %v6676_v57  ;;  %v6855_v0 = vrot.slane %v3844_v13, %v6676_v57  ;;  %v6858_v60 = vrot.slane %v3845_v23, %v6676_v57 }
 0x1ed   : > { %v3794_v20 = vcombine.high %v3772_v54, %v3772_v54  ;;  %v3795_v35 = vcombine.high %v3779_v27, %v3779_v27  ;;  %v6862_v33 = vrot.slane %v3846_v52, %v6676_v57  ;;  %v3796_v31 = vcombine.high %v3786_v25, %v3786_v25 }
 0x1ee   : > { %8256 = vst [vmem:[#allocation34_spill] sm:$0xff] %v6852_v61  ;;  %8257 = vst [vmem:[#allocation35_spill] sm:$0xff] %v6855_v0  ;;  %v6865_v34 = vrot.slane %v3772_v54, %v6676_v57  ;;  %v6868_v16 = vrot.slane %v3786_v25, %v6676_v57  ;;  %v3797_v61 = vcombine.high %v3793_v58, %v3793_v58 }
 0x1ef   : > { %2886 = vbcast.lane.b32.xlu1 %v2880_v12, 264  ;;  %2882 = vbcast.lane.b32.xlu0 %v2880_v12, 256  ;;  %8258 = vst [vmem:[#allocation36_spill] sm:$0xff] %v6858_v60  ;;  %8259 = vst [vmem:[#allocation37_spill] sm:$0xff] %v6862_v33  ;;  %v6871_v13 = vrot.slane %v3794_v20, %v6676_v57  ;;  %v6874_v23 = vrot.slane %v3779_v27, %v6676_v57 }
 0x1f0   : > { %v6877_v49 = vrot.slane %v3793_v58, %v6676_v57  ;;  %v6880_v52 = vrot.slane %v3796_v31, %v6676_v57  ;;  %v6883_v54 = vrot.slane %v3795_v35, %v6676_v57  ;;  %v6886_v33 = vrot.slane %v3797_v61, %v6676_v57  ;;  %v4954_v31 = vld [vmem:[#allocation11] ss:$0 sm:$0xff] }
 0x1f1   : > { %8260 = vst [vmem:[#allocation38_spill] sm:$0xff] %v6871_v13  ;;  %8261 = vst [vmem:[#allocation39_spill] sm:$0xff] %v6874_v23  ;;  %v2915_v60 = vrot.slane %v6678_v59, %v6682_v5 }
 0x1f2   : > { %8262 = vst [vmem:[#allocation40_spill] sm:$0xff] %v6877_v49  ;;  %v5409_v11 = vpop.f32.mrb[4].mxu0  ;;  %8263 = vst [vmem:[#allocation41_spill] sm:$0xff] %v6880_v52 }
 0x1f3   : > { %2894 = vbcast.lane.b32.xlu1 %v2880_v12, 280  ;;  %2890 = vbcast.lane.b32.xlu0 %v2880_v12, 272  ;;  %8264 = vst [vmem:[#allocation42_spill] sm:$0xff] %v6883_v54  ;;  %v2481_v25 = vpop.f32.mrb[5].mxu0  ;;  %8265 = vst [vmem:[#allocation43_spill] sm:$0xff] %v6886_v33 }
 0x1f6   : > { %v5412_v20 = vpop.f32.mrb[6].mxu0 }
 0x1f7   : > { %2902 = vbcast.lane.b32.xlu1 %v2880_v12, 296  ;;  %2898 = vbcast.lane.b32.xlu0 %v2880_v12, 288  ;;  %v2493_v27 = vpop.f32.mrb[7].mxu0 }
 0x1f8   : > { %v5349_v54 = vpop.f32.mrb[4].mxu1 }
 0x1f9   : > { %v5571_v49 = vadd.f32 %v5349_v54, %v4954_v31  ;;  %v2099_v57 = vpop.f32.mrb[5].mxu1 }
 0x1fa   : > { %v5415_v0 = vpop.f32.mrb[8].mxu0  ;;  %v5573_v61 = vadd.f32 %v4954_v31, %v2099_v57 }
 0x1fb   : > { %2910 = vbcast.lane.b32.xlu1 %v2880_v12, 312  ;;  %2906 = vbcast.lane.b32.xlu0 %v2880_v12, 304  ;;  %v2505_v58 = vpop.f32.mrb[9].mxu0  ;;  %v6890_v33 = vadd.f32 %v5571_v49, %v5409_v11 }
 0x1fc   : > { %v6892_v47 = vadd.f32 %v5573_v61, %v2481_v25  ;;  %v5352_v12 = vpop.f32.mrb[6].mxu1 }
 0x1fd   : > { %v5575_v23 = vadd.f32 %v5352_v12, %v4954_v31  ;;  %v2113_v37 = vpop.f32.mrb[7].mxu1 }
 0x1fe   : > { %v5418_v2 = vpop.f32.mrb[10].mxu0  ;;  %v5577_v52 = vadd.f32 %v4954_v31, %v2113_v37  ;;  %v2950_v37 = vrot.slane %v6678_v59, %v6684_v6  ;;  %v3020_v6 = vrot.slane %v6678_v59, %v6690_v43 }
 0x1ff   : > { %2921 = vbcast.lane.b32.xlu1 %v2915_v60, 264  ;;  %2917 = vbcast.lane.b32.xlu0 %v2915_v60, 256  ;;  %v2517_v35 = vpop.f32.mrb[11].mxu0  ;;  %v6894_v5 = vadd.f32 %v5575_v23, %v5412_v20 }
 0x200   : > { %v6896_v36 = vadd.f32 %v5577_v52, %v2493_v27  ;;  %v5355_v13 = vpop.f32.mrb[8].mxu1 }
 0x201   : > { %v5579_v54 = vadd.f32 %v5355_v13, %v4954_v31  ;;  %v2127_v4 = vpop.f32.mrb[9].mxu1 }
 0x202   : > { %v5581_v57 = vadd.f32 %v4954_v31, %v2127_v4  ;;  %v2985_v4 = vrot.slane %v6678_v59, %v6688_v8  ;;  %v3055_v8 = vrot.slane %v6678_v59, %v6692_v9 }
 0x203   : > { %2929 = vbcast.lane.b32.xlu1 %v2915_v60, 280  ;;  %2925 = vbcast.lane.b32.xlu0 %v2915_v60, 272  ;;  %v6898_v49 = vadd.f32 %v5579_v54, %v5415_v0 }
 0x204   : > { %v6900_v11 = vadd.f32 %v5581_v57, %v2505_v58  ;;  %v5358_v25 = vpop.f32.mrb[10].mxu1 }
 0x205   : > { %v5583_v61 = vadd.f32 %v5358_v25, %v4954_v31  ;;  %v2141_v12 = vpop.f32.mrb[11].mxu1 }
 0x206   : > { %v5585_v23 = vadd.f32 %v4954_v31, %v2141_v12 }
 0x207   : > { %2937 = vbcast.lane.b32.xlu1 %v2915_v60, 296  ;;  %2933 = vbcast.lane.b32.xlu0 %v2915_v60, 288  ;;  %v6904_v52 = vadd.f32 %v5583_v61, %v5418_v2 }
 0x208   : > { %v6906_v13 = vadd.f32 %v5585_v23, %v2517_v35 }
 0x20b   : > { %2945 = vbcast.lane.b32.xlu1 %v2915_v60, 312  ;;  %2941 = vbcast.lane.b32.xlu0 %v2915_v60, 304 }
 0x20f   : > { %2956 = vbcast.lane.b32.xlu1 %v2950_v37, 264  ;;  %2952 = vbcast.lane.b32.xlu0 %v2950_v37, 256 }
 0x213   : > { %2964 = vbcast.lane.b32.xlu1 %v2950_v37, 280  ;;  %2960 = vbcast.lane.b32.xlu0 %v2950_v37, 272 }
 0x217   : > { %2972 = vbcast.lane.b32.xlu1 %v2950_v37, 296  ;;  %2968 = vbcast.lane.b32.xlu0 %v2950_v37, 288 }
 0x21b   : > { %2980 = vbcast.lane.b32.xlu1 %v2950_v37, 312  ;;  %2976 = vbcast.lane.b32.xlu0 %v2950_v37, 304 }
 0x21f   : > { %2991 = vbcast.lane.b32.xlu1 %v2985_v4, 264  ;;  %2987 = vbcast.lane.b32.xlu0 %v2985_v4, 256 }
 0x223   : > { %2999 = vbcast.lane.b32.xlu1 %v2985_v4, 280  ;;  %2995 = vbcast.lane.b32.xlu0 %v2985_v4, 272 }
 0x227   : > { %3007 = vbcast.lane.b32.xlu1 %v2985_v4, 296  ;;  %3003 = vbcast.lane.b32.xlu0 %v2985_v4, 288 }
 0x22b   : > { %3015 = vbcast.lane.b32.xlu1 %v2985_v4, 312  ;;  %3011 = vbcast.lane.b32.xlu0 %v2985_v4, 304 }
 0x22f   : > { %3026 = vbcast.lane.b32.xlu1 %v3020_v6, 264  ;;  %3022 = vbcast.lane.b32.xlu0 %v3020_v6, 256 }
 0x233   : > { %3034 = vbcast.lane.b32.xlu1 %v3020_v6, 280  ;;  %3030 = vbcast.lane.b32.xlu0 %v3020_v6, 272 }
 0x237   : > { %3042 = vbcast.lane.b32.xlu1 %v3020_v6, 296  ;;  %3038 = vbcast.lane.b32.xlu0 %v3020_v6, 288 }
 0x23b   : > { %3050 = vbcast.lane.b32.xlu1 %v3020_v6, 312  ;;  %3046 = vbcast.lane.b32.xlu0 %v3020_v6, 304 }
 0x23f   : > { %3061 = vbcast.lane.b32.xlu1 %v3055_v8, 264  ;;  %3057 = vbcast.lane.b32.xlu0 %v3055_v8, 256 }
 0x241   : > { %v2817_v2 = vpop.permute.xlu1 %2816  ;;  %v2813_v0 = vpop.permute.xlu0 %2812 }
 0x242   : > { %v4072_v43 = vmul.f32 %v6775_v10, %v2817_v2  ;;  %v4071_v60 = vmul.f32 %v6775_v10, %v2813_v0 }
 0x243   : > { %3069 = vbcast.lane.b32.xlu1 %v3055_v8, 280  ;;  %3065 = vbcast.lane.b32.xlu0 %v3055_v8, 272 }
 0x244   : > { %v4328_v20 = vmul.f32 %v6890_v33, %v4072_v43  ;;  %v4327_v27 = vmul.f32 %v6892_v47, %v4071_v60 }
 0x245   : > { %v2825_v58 = vpop.permute.xlu1 %2824  ;;  %v2821_v59 = vpop.permute.xlu0 %2820 }
 0x246   : > { %4585 = vst.msk [vmem:[%s6921_s20 + $0x208] sm:$0xff] %vm4519_vm1, %v4328_v20  ;;  %4584 = vst.msk [vmem:[%s6921_s20 + $0x200] sm:$0xff] %vm4519_vm1, %v4327_v27  ;;  %v4074_v9 = vmul.f32 %v6775_v10, %v2825_v58  ;;  %v4073_v31 = vmul.f32 %v6775_v10, %v2821_v59 }
 0x247   : > { %3077 = vbcast.lane.b32.xlu1 %v3055_v8, 296  ;;  %3073 = vbcast.lane.b32.xlu0 %v3055_v8, 288 }
 0x248   : > { %v4330_v35 = vmul.f32 %v6894_v5, %v4074_v9  ;;  %v4329_v54 = vmul.f32 %v6896_v36, %v4073_v31 }
 0x249   : > { %v2833_v57 = vpop.permute.xlu1 %2832  ;;  %v2829_v25 = vpop.permute.xlu0 %2828 }
 0x24a   : > { %4587 = vst.msk [vmem:[%s6921_s20 + $0x218] sm:$0xff] %vm4519_vm1, %v4330_v35  ;;  %4586 = vst.msk [vmem:[%s6921_s20 + $0x210] sm:$0xff] %vm4519_vm1, %v4329_v54  ;;  %v4076_v37 = vmul.f32 %v6775_v10, %v2833_v57  ;;  %v4075_v61 = vmul.f32 %v6775_v10, %v2829_v25 }
 0x24b   : > { %3085 = vbcast.lane.b32.xlu1 %v3055_v8, 312  ;;  %3081 = vbcast.lane.b32.xlu0 %v3055_v8, 304 }
 0x24c   : > { %v4332_v12 = vmul.f32 %v6898_v49, %v4076_v37  ;;  %v4331_v23 = vmul.f32 %v6900_v11, %v4075_v61 }
 0x24d   : > { %v2841_v4 = vpop.permute.xlu1 %2840  ;;  %v2837_v6 = vpop.permute.xlu0 %2836 }
 0x24e   : > { %4589 = vst.msk [vmem:[%s6921_s20 + $0x228] sm:$0xff] %vm4519_vm1, %v4332_v12  ;;  %4588 = vst.msk [vmem:[%s6921_s20 + $0x220] sm:$0xff] %vm4519_vm1, %v4331_v23  ;;  %v4078_v2 = vmul.f32 %v6775_v10, %v2841_v4  ;;  %v4077_v0 = vmul.f32 %v6775_v10, %v2837_v6 }
 0x24f   : > { %2540 = vbcast.lane.b32.xlu1 %v6695_v21, 272  ;;  %2532 = vbcast.lane.b32.xlu0 %v6695_v21, 256 }
 0x250   : > { %v4334_v8 = vmul.f32 %v6904_v52, %v4078_v2  ;;  %v4333_v43 = vmul.f32 %v6906_v13, %v4077_v0 }
 0x251   : > { %v2852_v60 = vpop.permute.xlu1 %2851  ;;  %v2848_v20 = vpop.permute.xlu0 %2847 }
 0x252   : > { %4591 = vst.msk [vmem:[%s6921_s20 + $0x238] sm:$0xff] %vm4519_vm1, %v4334_v8  ;;  %4590 = vst.msk [vmem:[%s6921_s20 + $0x230] sm:$0xff] %vm4519_vm1, %v4333_v43  ;;  %v4080_v27 = vmul.f32 %v6780_v26, %v2852_v60  ;;  %v4079_v10 = vmul.f32 %v6780_v26, %v2848_v20 }
 0x253   : > { %2544 = vbcast.lane.b32.xlu1 %v6695_v21, 280  ;;  %2536 = vbcast.lane.b32.xlu0 %v6695_v21, 264 }
 0x254   : > { %v4336_v58 = vmul.f32 %v6890_v33, %v4080_v27  ;;  %v4335_v59 = vmul.f32 %v6892_v47, %v4079_v10 }
 0x255   : > { %v2860_v9 = vpop.permute.xlu1 %2859  ;;  %v2856_v31 = vpop.permute.xlu0 %2855 }
 0x256   : > { %4593 = vst.msk [vmem:[%s6921_s20 + $0x248] sm:$0xff] %vm4519_vm1, %v4336_v58  ;;  %4592 = vst.msk [vmem:[%s6921_s20 + $0x240] sm:$0xff] %vm4519_vm1, %v4335_v59  ;;  %v4082_v35 = vmul.f32 %v6780_v26, %v2860_v9  ;;  %v4081_v54 = vmul.f32 %v6780_v26, %v2856_v31 }
 0x257   : > { %2552 = vbcast.lane.b32.xlu1 %v6695_v21, 296  ;;  %2548 = vbcast.lane.b32.xlu0 %v6695_v21, 288 }
 0x258   : > { %v4338_v57 = vmul.f32 %v6894_v5, %v4082_v35  ;;  %v4337_v25 = vmul.f32 %v6896_v36, %v4081_v54 }
 0x259   : > { %v2868_v37 = vpop.permute.xlu1 %2867  ;;  %v2864_v61 = vpop.permute.xlu0 %2863 }
 0x25a   : > { %4595 = vst.msk [vmem:[%s6921_s20 + $0x258] sm:$0xff] %vm4519_vm1, %v4338_v57  ;;  %4594 = vst.msk [vmem:[%s6921_s20 + $0x250] sm:$0xff] %vm4519_vm1, %v4337_v25  ;;  %v4084_v12 = vmul.f32 %v6780_v26, %v2868_v37  ;;  %v4083_v23 = vmul.f32 %v6780_v26, %v2864_v61 }
 0x25b   : > { %2560 = vbcast.lane.b32.xlu1 %v6695_v21, 312  ;;  %2556 = vbcast.lane.b32.xlu0 %v6695_v21, 304 }
 0x25c   : > { %v4340_v4 = vmul.f32 %v6898_v49, %v4084_v12  ;;  %v4339_v6 = vmul.f32 %v6900_v11, %v4083_v23 }
 0x25d   : > { %v2876_v2 = vpop.permute.xlu1 %2875  ;;  %v2872_v0 = vpop.permute.xlu0 %2871 }
 0x25e   : > { %4597 = vst.msk [vmem:[%s6921_s20 + $0x268] sm:$0xff] %vm4519_vm1, %v4340_v4  ;;  %4596 = vst.msk [vmem:[%s6921_s20 + $0x260] sm:$0xff] %vm4519_vm1, %v4339_v6  ;;  %v4086_v8 = vmul.f32 %v6780_v26, %v2876_v2  ;;  %v4085_v43 = vmul.f32 %v6780_v26, %v2872_v0 }
 0x25f   : > { %2571 = vbcast.lane.b32.xlu1 %v6697_v32, 264  ;;  %2567 = vbcast.lane.b32.xlu0 %v6697_v32, 256 }
 0x260   : > { %v4342_v21 = vmul.f32 %v6904_v52, %v4086_v8  ;;  %v4341_v60 = vmul.f32 %v6906_v13, %v4085_v43 }
 0x261   : > { %v2887_v20 = vpop.permute.xlu1 %2886  ;;  %v2883_v27 = vpop.permute.xlu0 %2882 }
 0x262   : > { %4599 = vst.msk [vmem:[%s6921_s20 + $0x278] sm:$0xff] %vm4519_vm1, %v4342_v21  ;;  %4598 = vst.msk [vmem:[%s6921_s20 + $0x270] sm:$0xff] %vm4519_vm1, %v4341_v60  ;;  %v4088_v10 = vmul.f32 %v6783_v48, %v2887_v20  ;;  %v4087_v26 = vmul.f32 %v6783_v48, %v2883_v27 }
 0x263   : > { %2579 = vbcast.lane.b32.xlu1 %v6697_v32, 280  ;;  %2575 = vbcast.lane.b32.xlu0 %v6697_v32, 272 }
 0x264   : > { %v4344_v58 = vmul.f32 %v6890_v33, %v4088_v10  ;;  %v4343_v59 = vmul.f32 %v6892_v47, %v4087_v26 }
 0x265   : > { %v2895_v9 = vpop.permute.xlu1 %2894  ;;  %v2891_v31 = vpop.permute.xlu0 %2890 }
 0x266   : > { %4601 = vst.msk [vmem:[%s6921_s20 + $0x288] sm:$0xff] %vm4519_vm1, %v4344_v58  ;;  %4600 = vst.msk [vmem:[%s6921_s20 + $0x280] sm:$0xff] %vm4519_vm1, %v4343_v59  ;;  %v4090_v35 = vmul.f32 %v6783_v48, %v2895_v9  ;;  %v4089_v54 = vmul.f32 %v6783_v48, %v2891_v31 }
 0x267   : > { %2587 = vbcast.lane.b32.xlu1 %v6697_v32, 296  ;;  %2583 = vbcast.lane.b32.xlu0 %v6697_v32, 288 }
 0x268   : > { %v4346_v57 = vmul.f32 %v6894_v5, %v4090_v35  ;;  %v4345_v25 = vmul.f32 %v6896_v36, %v4089_v54 }
 0x269   : > { %v2903_v37 = vpop.permute.xlu1 %2902  ;;  %v2899_v61 = vpop.permute.xlu0 %2898 }
 0x26a   : > { %4603 = vst.msk [vmem:[%s6921_s20 + $0x298] sm:$0xff] %vm4519_vm1, %v4346_v57  ;;  %4602 = vst.msk [vmem:[%s6921_s20 + $0x290] sm:$0xff] %vm4519_vm1, %v4345_v25  ;;  %v4092_v12 = vmul.f32 %v6783_v48, %v2903_v37  ;;  %v4091_v23 = vmul.f32 %v6783_v48, %v2899_v61 }
 0x26b   : > { %2595 = vbcast.lane.b32.xlu1 %v6697_v32, 312  ;;  %2591 = vbcast.lane.b32.xlu0 %v6697_v32, 304 }
 0x26c   : > { %v4348_v4 = vmul.f32 %v6898_v49, %v4092_v12  ;;  %v4347_v6 = vmul.f32 %v6900_v11, %v4091_v23 }
 0x26d   : > { %v2911_v2 = vpop.permute.xlu1 %2910  ;;  %v2907_v0 = vpop.permute.xlu0 %2906 }
 0x26e   : > { %4605 = vst.msk [vmem:[%s6921_s20 + $0x2a8] sm:$0xff] %vm4519_vm1, %v4348_v4  ;;  %4604 = vst.msk [vmem:[%s6921_s20 + $0x2a0] sm:$0xff] %vm4519_vm1, %v4347_v6  ;;  %v4094_v8 = vmul.f32 %v6783_v48, %v2911_v2  ;;  %v4093_v43 = vmul.f32 %v6783_v48, %v2907_v0 }
 0x26f   : > { %2606 = vbcast.lane.b32.xlu1 %v6700_v38, 264  ;;  %2602 = vbcast.lane.b32.xlu0 %v6700_v38, 256 }
 0x270   : > { %v4350_v32 = vmul.f32 %v6904_v52, %v4094_v8  ;;  %v4349_v21 = vmul.f32 %v6906_v13, %v4093_v43 }
 0x271   : > { %v2922_v60 = vpop.permute.xlu1 %2921  ;;  %v2918_v20 = vpop.permute.xlu0 %2917 }
 0x272   : > { %4607 = vst.msk [vmem:[%s6921_s20 + $0x2b8] sm:$0xff] %vm4519_vm1, %v4350_v32  ;;  %4606 = vst.msk [vmem:[%s6921_s20 + $0x2b0] sm:$0xff] %vm4519_vm1, %v4349_v21  ;;  %v4096_v27 = vmul.f32 %v6791_v30, %v2922_v60  ;;  %v4095_v48 = vmul.f32 %v6791_v30, %v2918_v20 }
 0x273   : > { %2614 = vbcast.lane.b32.xlu1 %v6700_v38, 280  ;;  %2610 = vbcast.lane.b32.xlu0 %v6700_v38, 272 }
 0x274   : > { %v4352_v10 = vmul.f32 %v6890_v33, %v4096_v27  ;;  %v4351_v26 = vmul.f32 %v6892_v47, %v4095_v48 }
 0x275   : > { %v2930_v58 = vpop.permute.xlu1 %2929  ;;  %v2926_v59 = vpop.permute.xlu0 %2925 }
 0x276   : > { %4609 = vst.msk [vmem:[%s6921_s20 + $0x2c8] sm:$0xff] %vm4519_vm1, %v4352_v10  ;;  %4608 = vst.msk [vmem:[%s6921_s20 + $0x2c0] sm:$0xff] %vm4519_vm1, %v4351_v26  ;;  %v4098_v9 = vmul.f32 %v6791_v30, %v2930_v58  ;;  %v4097_v31 = vmul.f32 %v6791_v30, %v2926_v59 }
 0x277   : > { %2622 = vbcast.lane.b32.xlu1 %v6700_v38, 296  ;;  %2618 = vbcast.lane.b32.xlu0 %v6700_v38, 288 }
 0x278   : > { %v4354_v35 = vmul.f32 %v6894_v5, %v4098_v9  ;;  %v4353_v54 = vmul.f32 %v6896_v36, %v4097_v31 }
 0x279   : > { %v2938_v57 = vpop.permute.xlu1 %2937  ;;  %v2934_v25 = vpop.permute.xlu0 %2933 }
 0x27a   : > { %4611 = vst.msk [vmem:[%s6921_s20 + $0x2d8] sm:$0xff] %vm4519_vm1, %v4354_v35  ;;  %4610 = vst.msk [vmem:[%s6921_s20 + $0x2d0] sm:$0xff] %vm4519_vm1, %v4353_v54  ;;  %v4100_v37 = vmul.f32 %v6791_v30, %v2938_v57  ;;  %v4099_v61 = vmul.f32 %v6791_v30, %v2934_v25 }
 0x27b   : > { %2630 = vbcast.lane.b32.xlu1 %v6700_v38, 312  ;;  %2626 = vbcast.lane.b32.xlu0 %v6700_v38, 304 }
 0x27c   : > { %v4356_v12 = vmul.f32 %v6898_v49, %v4100_v37  ;;  %v4355_v23 = vmul.f32 %v6900_v11, %v4099_v61 }
 0x27d   : > { %v2946_v4 = vpop.permute.xlu1 %2945  ;;  %v2942_v6 = vpop.permute.xlu0 %2941 }
 0x27e   : > { %4613 = vst.msk [vmem:[%s6921_s20 + $0x2e8] sm:$0xff] %vm4519_vm1, %v4356_v12  ;;  %4612 = vst.msk [vmem:[%s6921_s20 + $0x2e0] sm:$0xff] %vm4519_vm1, %v4355_v23  ;;  %v4102_v2 = vmul.f32 %v6791_v30, %v2946_v4  ;;  %v4101_v0 = vmul.f32 %v6791_v30, %v2942_v6 }
 0x27f   : > { %2641 = vbcast.lane.b32.xlu1 %v6703_v39, 264  ;;  %2637 = vbcast.lane.b32.xlu0 %v6703_v39, 256 }
 0x280   : > { %v4358_v38 = vmul.f32 %v6904_v52, %v4102_v2  ;;  %v4357_v8 = vmul.f32 %v6906_v13, %v4101_v0 }
 0x281   : > { %v2957_v43 = vpop.permute.xlu1 %2956  ;;  %v2953_v32 = vpop.permute.xlu0 %2952 }
 0x282   : > { %4615 = vst.msk [vmem:[%s6921_s20 + $0x2f8] sm:$0xff] %vm4519_vm1, %v4358_v38  ;;  %4614 = vst.msk [vmem:[%s6921_s20 + $0x2f0] sm:$0xff] %vm4519_vm1, %v4357_v8  ;;  %v4104_v21 = vmul.f32 %v6786_v14, %v2957_v43  ;;  %v4103_v30 = vmul.f32 %v6786_v14, %v2953_v32 }
 0x283   : > { %2649 = vbcast.lane.b32.xlu1 %v6703_v39, 280  ;;  %2645 = vbcast.lane.b32.xlu0 %v6703_v39, 272 }
 0x284   : > { %v4360_v60 = vmul.f32 %v6890_v33, %v4104_v21  ;;  %v4359_v20 = vmul.f32 %v6892_v47, %v4103_v30 }
 0x285   : > { %v2965_v27 = vpop.permute.xlu1 %2964  ;;  %v2961_v48 = vpop.permute.xlu0 %2960 }
 0x286   : > { %4617 = vst.msk [vmem:[%s6921_s20 + $0x308] sm:$0xff] %vm4519_vm1, %v4360_v60  ;;  %4616 = vst.msk [vmem:[%s6921_s20 + $0x300] sm:$0xff] %vm4519_vm1, %v4359_v20  ;;  %v4106_v10 = vmul.f32 %v6786_v14, %v2965_v27  ;;  %v4105_v26 = vmul.f32 %v6786_v14, %v2961_v48 }
 0x287   : > { %2657 = vbcast.lane.b32.xlu1 %v6703_v39, 296  ;;  %2653 = vbcast.lane.b32.xlu0 %v6703_v39, 288 }
 0x288   : > { %v4362_v58 = vmul.f32 %v6894_v5, %v4106_v10  ;;  %v4361_v59 = vmul.f32 %v6896_v36, %v4105_v26 }
 0x289   : > { %v2973_v9 = vpop.permute.xlu1 %2972  ;;  %v2969_v31 = vpop.permute.xlu0 %2968 }
 0x28a   : > { %4619 = vst.msk [vmem:[%s6921_s20 + $0x318] sm:$0xff] %vm4519_vm1, %v4362_v58  ;;  %4618 = vst.msk [vmem:[%s6921_s20 + $0x310] sm:$0xff] %vm4519_vm1, %v4361_v59  ;;  %v4108_v35 = vmul.f32 %v6786_v14, %v2973_v9  ;;  %v4107_v54 = vmul.f32 %v6786_v14, %v2969_v31 }
 0x28b   : > { %2665 = vbcast.lane.b32.xlu1 %v6703_v39, 312  ;;  %2661 = vbcast.lane.b32.xlu0 %v6703_v39, 304 }
 0x28c   : > { %v4364_v57 = vmul.f32 %v6898_v49, %v4108_v35  ;;  %v4363_v25 = vmul.f32 %v6900_v11, %v4107_v54 }
 0x28d   : > { %v2981_v37 = vpop.permute.xlu1 %2980  ;;  %v2977_v61 = vpop.permute.xlu0 %2976 }
 0x28e   : > { %4621 = vst.msk [vmem:[%s6921_s20 + $0x328] sm:$0xff] %vm4519_vm1, %v4364_v57  ;;  %4620 = vst.msk [vmem:[%s6921_s20 + $0x320] sm:$0xff] %vm4519_vm1, %v4363_v25  ;;  %v4110_v12 = vmul.f32 %v6786_v14, %v2981_v37  ;;  %v4109_v23 = vmul.f32 %v6786_v14, %v2977_v61 }
 0x28f   : > { %2676 = vbcast.lane.b32.xlu1 %v6706_v40, 264  ;;  %2672 = vbcast.lane.b32.xlu0 %v6706_v40, 256 }
 0x290   : > { %v4366_v39 = vmul.f32 %v6904_v52, %v4110_v12  ;;  %v4365_v4 = vmul.f32 %v6906_v13, %v4109_v23 }
 0x291   : > { %v2992_v6 = vpop.permute.xlu1 %2991  ;;  %v2988_v2 = vpop.permute.xlu0 %2987 }
 0x292   : > { %4623 = vst.msk [vmem:[%s6921_s20 + $0x338] sm:$0xff] %vm4519_vm1, %v4366_v39  ;;  %4622 = vst.msk [vmem:[%s6921_s20 + $0x330] sm:$0xff] %vm4519_vm1, %v4365_v4  ;;  %v4112_v0 = vmul.f32 %v6794_v53, %v2992_v6  ;;  %v4111_v14 = vmul.f32 %v6794_v53, %v2988_v2 }
 0x293   : > { %2684 = vbcast.lane.b32.xlu1 %v6706_v40, 280  ;;  %2680 = vbcast.lane.b32.xlu0 %v6706_v40, 272 }
 0x294   : > { %v4368_v38 = vmul.f32 %v6890_v33, %v4112_v0  ;;  %v4367_v8 = vmul.f32 %v6892_v47, %v4111_v14 }
 0x295   : > { %v3000_v43 = vpop.permute.xlu1 %2999  ;;  %v2996_v32 = vpop.permute.xlu0 %2995 }
 0x296   : > { %4625 = vst.msk [vmem:[%s6921_s20 + $0x348] sm:$0xff] %vm4519_vm1, %v4368_v38  ;;  %4624 = vst.msk [vmem:[%s6921_s20 + $0x340] sm:$0xff] %vm4519_vm1, %v4367_v8  ;;  %v4114_v21 = vmul.f32 %v6794_v53, %v3000_v43  ;;  %v4113_v30 = vmul.f32 %v6794_v53, %v2996_v32 }
 0x297   : > { %2692 = vbcast.lane.b32.xlu1 %v6706_v40, 296  ;;  %2688 = vbcast.lane.b32.xlu0 %v6706_v40, 288 }
 0x298   : > { %v4370_v60 = vmul.f32 %v6894_v5, %v4114_v21  ;;  %v4369_v20 = vmul.f32 %v6896_v36, %v4113_v30 }
 0x299   : > { %v3008_v27 = vpop.permute.xlu1 %3007  ;;  %v3004_v48 = vpop.permute.xlu0 %3003 }
 0x29a   : > { %4627 = vst.msk [vmem:[%s6921_s20 + $0x358] sm:$0xff] %vm4519_vm1, %v4370_v60  ;;  %4626 = vst.msk [vmem:[%s6921_s20 + $0x350] sm:$0xff] %vm4519_vm1, %v4369_v20  ;;  %v4116_v10 = vmul.f32 %v6794_v53, %v3008_v27  ;;  %v4115_v26 = vmul.f32 %v6794_v53, %v3004_v48 }
 0x29b   : > { %2700 = vbcast.lane.b32.xlu1 %v6706_v40, 312  ;;  %2696 = vbcast.lane.b32.xlu0 %v6706_v40, 304 }
 0x29c   : > { %v4372_v58 = vmul.f32 %v6898_v49, %v4116_v10  ;;  %v4371_v59 = vmul.f32 %v6900_v11, %v4115_v26 }
 0x29d   : > { %v3016_v9 = vpop.permute.xlu1 %3015  ;;  %v3012_v31 = vpop.permute.xlu0 %3011 }
 0x29e   : > { %4629 = vst.msk [vmem:[%s6921_s20 + $0x368] sm:$0xff] %vm4519_vm1, %v4372_v58  ;;  %4628 = vst.msk [vmem:[%s6921_s20 + $0x360] sm:$0xff] %vm4519_vm1, %v4371_v59  ;;  %v4118_v35 = vmul.f32 %v6794_v53, %v3016_v9  ;;  %v4117_v54 = vmul.f32 %v6794_v53, %v3012_v31 }
 0x29f   : > { %2711 = vbcast.lane.b32.xlu1 %v6709_v42, 264  ;;  %2707 = vbcast.lane.b32.xlu0 %v6709_v42, 256 }
 0x2a0   : > { %v4374_v40 = vmul.f32 %v6904_v52, %v4118_v35  ;;  %v4373_v57 = vmul.f32 %v6906_v13, %v4117_v54 }
 0x2a1   : > { %v3027_v25 = vpop.permute.xlu1 %3026  ;;  %v3023_v37 = vpop.permute.xlu0 %3022 }
 0x2a2   : > { %4631 = vst.msk [vmem:[%s6921_s20 + $0x378] sm:$0xff] %vm4519_vm1, %v4374_v40  ;;  %4630 = vst.msk [vmem:[%s6921_s20 + $0x370] sm:$0xff] %vm4519_vm1, %v4373_v57  ;;  %v4120_v61 = vmul.f32 %v6797_v18, %v3027_v25  ;;  %v4119_v53 = vmul.f32 %v6797_v18, %v3023_v37 }
 0x2a3   : > { %2719 = vbcast.lane.b32.xlu1 %v6709_v42, 280  ;;  %2715 = vbcast.lane.b32.xlu0 %v6709_v42, 272 }
 0x2a4   : > { %v4376_v12 = vmul.f32 %v6890_v33, %v4120_v61  ;;  %v4375_v23 = vmul.f32 %v6892_v47, %v4119_v53 }
 0x2a5   : > { %v3035_v39 = vpop.permute.xlu1 %3034  ;;  %v3031_v4 = vpop.permute.xlu0 %3030 }
 0x2a6   : > { %4633 = vst.msk [vmem:[%s6921_s20 + $0x388] sm:$0xff] %vm4519_vm1, %v4376_v12  ;;  %4632 = vst.msk [vmem:[%s6921_s20 + $0x380] sm:$0xff] %vm4519_vm1, %v4375_v23  ;;  %v4122_v6 = vmul.f32 %v6797_v18, %v3035_v39  ;;  %v4121_v2 = vmul.f32 %v6797_v18, %v3031_v4 }
 0x2a7   : > { %2727 = vbcast.lane.b32.xlu1 %v6709_v42, 296  ;;  %2723 = vbcast.lane.b32.xlu0 %v6709_v42, 288 }
 0x2a8   : > { %v4378_v0 = vmul.f32 %v6894_v5, %v4122_v6  ;;  %v4377_v14 = vmul.f32 %v6896_v36, %v4121_v2 }
 0x2a9   : > { %v3043_v38 = vpop.permute.xlu1 %3042  ;;  %v3039_v8 = vpop.permute.xlu0 %3038 }
 0x2aa   : > { %4635 = vst.msk [vmem:[%s6921_s20 + $0x398] sm:$0xff] %vm4519_vm1, %v4378_v0  ;;  %4634 = vst.msk [vmem:[%s6921_s20 + $0x390] sm:$0xff] %vm4519_vm1, %v4377_v14  ;;  %v4124_v43 = vmul.f32 %v6797_v18, %v3043_v38  ;;  %v4123_v32 = vmul.f32 %v6797_v18, %v3039_v8 }
 0x2ab   : > { %2735 = vbcast.lane.b32.xlu1 %v6709_v42, 312  ;;  %2731 = vbcast.lane.b32.xlu0 %v6709_v42, 304 }
 0x2ac   : > { %v4380_v21 = vmul.f32 %v6898_v49, %v4124_v43  ;;  %v4379_v30 = vmul.f32 %v6900_v11, %v4123_v32 }
 0x2ad   : > { %v3051_v60 = vpop.permute.xlu1 %3050  ;;  %v3047_v20 = vpop.permute.xlu0 %3046 }
 0x2ae   : > { %4637 = vst.msk [vmem:[%s6921_s20 + $0x3a8] sm:$0xff] %vm4519_vm1, %v4380_v21  ;;  %4636 = vst.msk [vmem:[%s6921_s20 + $0x3a0] sm:$0xff] %vm4519_vm1, %v4379_v30  ;;  %v4126_v27 = vmul.f32 %v6797_v18, %v3051_v60  ;;  %v4125_v48 = vmul.f32 %v6797_v18, %v3047_v20 }
 0x2af   : > { %2746 = vbcast.lane.b32.xlu1 %v6712_v44, 264  ;;  %2742 = vbcast.lane.b32.xlu0 %v6712_v44, 256 }
 0x2b0   : > { %v4382_v42 = vmul.f32 %v6904_v52, %v4126_v27  ;;  %v4381_v10 = vmul.f32 %v6906_v13, %v4125_v48 }
 0x2b1   : > { %v3062_v26 = vpop.permute.xlu1 %3061  ;;  %v3058_v58 = vpop.permute.xlu0 %3057 }
 0x2b2   : > { %4639 = vst.msk [vmem:[%s6921_s20 + $0x3b8] sm:$0xff] %vm4519_vm1, %v4382_v42  ;;  %4638 = vst.msk [vmem:[%s6921_s20 + $0x3b0] sm:$0xff] %vm4519_vm1, %v4381_v10  ;;  %v4128_v59 = vmul.f32 %v6800_v41, %v3062_v26  ;;  %v4127_v18 = vmul.f32 %v6800_v41, %v3058_v58 }
 0x2b3   : > { %2754 = vbcast.lane.b32.xlu1 %v6712_v44, 280  ;;  %2750 = vbcast.lane.b32.xlu0 %v6712_v44, 272 }
 0x2b4   : > { %v4384_v9 = vmul.f32 %v6890_v33, %v4128_v59  ;;  %v4383_v31 = vmul.f32 %v6892_v47, %v4127_v18 }
 0x2b5   : > { %v3070_v35 = vpop.permute.xlu1 %3069  ;;  %v3066_v54 = vpop.permute.xlu0 %3065 }
 0x2b6   : > { %4641 = vst.msk [vmem:[%s6921_s20 + $0x3c8] sm:$0xff] %vm4519_vm1, %v4384_v9  ;;  %4640 = vst.msk [vmem:[%s6921_s20 + $0x3c0] sm:$0xff] %vm4519_vm1, %v4383_v31  ;;  %v4130_v40 = vmul.f32 %v6800_v41, %v3070_v35  ;;  %v4129_v57 = vmul.f32 %v6800_v41, %v3066_v54 }
 0x2b7   : > { %2762 = vbcast.lane.b32.xlu1 %v6712_v44, 296  ;;  %2758 = vbcast.lane.b32.xlu0 %v6712_v44, 288 }
 0x2b8   : > { %v4386_v25 = vmul.f32 %v6894_v5, %v4130_v40  ;;  %v4385_v37 = vmul.f32 %v6896_v36, %v4129_v57 }
 0x2b9   : > { %v3078_v61 = vpop.permute.xlu1 %3077  ;;  %v3074_v53 = vpop.permute.xlu0 %3073 }
 0x2ba   : > { %4643 = vst.msk [vmem:[%s6921_s20 + $0x3d8] sm:$0xff] %vm4519_vm1, %v4386_v25  ;;  %4642 = vst.msk [vmem:[%s6921_s20 + $0x3d0] sm:$0xff] %vm4519_vm1, %v4385_v37  ;;  %v4132_v12 = vmul.f32 %v6800_v41, %v3078_v61  ;;  %v4131_v23 = vmul.f32 %v6800_v41, %v3074_v53 }
 0x2bb   : > { %2770 = vbcast.lane.b32.xlu1 %v6712_v44, 312  ;;  %2766 = vbcast.lane.b32.xlu0 %v6712_v44, 304 }
 0x2bc   : > { %v4388_v39 = vmul.f32 %v6898_v49, %v4132_v12  ;;  %v4387_v4 = vmul.f32 %v6900_v11, %v4131_v23 }
 0x2bd   : > { %v3086_v6 = vpop.permute.xlu1 %3085  ;;  %v3082_v2 = vpop.permute.xlu0 %3081 }
 0x2be   : > { %4645 = vst.msk [vmem:[%s6921_s20 + $0x3e8] sm:$0xff] %vm4519_vm1, %v4388_v39  ;;  %4644 = vst.msk [vmem:[%s6921_s20 + $0x3e0] sm:$0xff] %vm4519_vm1, %v4387_v4  ;;  %v4134_v0 = vmul.f32 %v6800_v41, %v3086_v6  ;;  %v4133_v14 = vmul.f32 %v6800_v41, %v3082_v2 }
 0x2bf   : > { %2781 = vbcast.lane.b32.xlu1 %v6715_v1, 264  ;;  %2777 = vbcast.lane.b32.xlu0 %v6715_v1, 256 }
 0x2c0   : > { %v4390_v44 = vmul.f32 %v6904_v52, %v4134_v0  ;;  %v4389_v38 = vmul.f32 %v6906_v13, %v4133_v14 }
 0x2c1   : > { %v2541_v8 = vpop.permute.xlu1 %2540  ;;  %v2533_v43 = vpop.permute.xlu0 %2532 }
 0x2c2   : > { %4647 = vst.msk [vmem:[%s6921_s20 + $0x3f8] sm:$0xff] %vm4519_vm1, %v4390_v44  ;;  %4646 = vst.msk [vmem:[%s6921_s20 + $0x3f0] sm:$0xff] %vm4519_vm1, %v4389_v38  ;;  %v4009_v32 = vmul.f32 %v6803_v50, %v2541_v8  ;;  %v4007_v41 = vmul.f32 %v6803_v50, %v2533_v43 }
 0x2c3   : > { %2789 = vbcast.lane.b32.xlu1 %v6715_v1, 280  ;;  %2785 = vbcast.lane.b32.xlu0 %v6715_v1, 272 }
 0x2c4   : > { %v4265_v21 = vmul.f32 %v6896_v36, %v4009_v32  ;;  %v4263_v30 = vmul.f32 %v6892_v47, %v4007_v41 }
 0x2c5   : > { %v2545_v60 = vpop.permute.xlu1 %2544  ;;  %v2537_v20 = vpop.permute.xlu0 %2536 }
 0x2c6   : > { %4522 = vst.msk [vmem:[%s6921_s20 + $0x10] sm:$0xff] %vm4519_vm1, %v4265_v21  ;;  %4520 = vst.msk [vmem:[%s6921_s20] sm:$0xff] %vm4519_vm1, %v4263_v30  ;;  %v4010_v27 = vmul.f32 %v6803_v50, %v2545_v60  ;;  %v4008_v48 = vmul.f32 %v6803_v50, %v2537_v20 }
 0x2c7   : > { %2797 = vbcast.lane.b32.xlu1 %v6715_v1, 296  ;;  %2793 = vbcast.lane.b32.xlu0 %v6715_v1, 288 }
 0x2c8   : > { %v4266_v42 = vmul.f32 %v6894_v5, %v4010_v27  ;;  %v4264_v10 = vmul.f32 %v6890_v33, %v4008_v48 }
 0x2c9   : > { %v2553_v26 = vpop.permute.xlu1 %2552  ;;  %v2549_v58 = vpop.permute.xlu0 %2548 }
 0x2ca   : > { %4523 = vst.msk [vmem:[%s6921_s20 + $0x18] sm:$0xff] %vm4519_vm1, %v4266_v42  ;;  %4521 = vst.msk [vmem:[%s6921_s20 + $0x8] sm:$0xff] %vm4519_vm1, %v4264_v10  ;;  %v4012_v59 = vmul.f32 %v6803_v50, %v2553_v26  ;;  %v4011_v18 = vmul.f32 %v6803_v50, %v2549_v58 }
 0x2cb   : > { %2805 = vbcast.lane.b32.xlu1 %v6715_v1, 312  ;;  %2801 = vbcast.lane.b32.xlu0 %v6715_v1, 304 }
 0x2cc   : > { %v4268_v9 = vmul.f32 %v6898_v49, %v4012_v59  ;;  %v4267_v31 = vmul.f32 %v6900_v11, %v4011_v18 }
 0x2cd   : > { %v2561_v35 = vpop.permute.xlu1 %2560  ;;  %v2557_v54 = vpop.permute.xlu0 %2556 }
 0x2ce   : > { %4525 = vst.msk [vmem:[%s6921_s20 + $0x28] sm:$0xff] %vm4519_vm1, %v4268_v9  ;;  %4524 = vst.msk [vmem:[%s6921_s20 + $0x20] sm:$0xff] %vm4519_vm1, %v4267_v31  ;;  %v4014_v40 = vmul.f32 %v6803_v50, %v2561_v35  ;;  %v4013_v57 = vmul.f32 %v6803_v50, %v2557_v54 }
 0x2cf   : > { %3096 = vbcast.lane.b32.xlu1 %v6721_v46, 264  ;;  %3092 = vbcast.lane.b32.xlu0 %v6721_v46, 256 }
 0x2d0   : > { %v4270_v1 = vmul.f32 %v6904_v52, %v4014_v40  ;;  %v4269_v25 = vmul.f32 %v6906_v13, %v4013_v57 }
 0x2d1   : > { %v2572_v37 = vpop.permute.xlu1 %2571  ;;  %v2568_v61 = vpop.permute.xlu0 %2567 }
 0x2d2   : > { %4527 = vst.msk [vmem:[%s6921_s20 + $0x38] sm:$0xff] %vm4519_vm1, %v4270_v1  ;;  %4526 = vst.msk [vmem:[%s6921_s20 + $0x30] sm:$0xff] %vm4519_vm1, %v4269_v25  ;;  %v4016_v53 = vmul.f32 %v6806_v51, %v2572_v37  ;;  %v4015_v50 = vmul.f32 %v6806_v51, %v2568_v61 }
 0x2d3   : > { %3104 = vbcast.lane.b32.xlu1 %v6721_v46, 280  ;;  %3100 = vbcast.lane.b32.xlu0 %v6721_v46, 272 }
 0x2d4   : > { %v4272_v12 = vmul.f32 %v6890_v33, %v4016_v53  ;;  %v4271_v23 = vmul.f32 %v6892_v47, %v4015_v50 }
 0x2d5   : > { %v2580_v39 = vpop.permute.xlu1 %2579  ;;  %v2576_v4 = vpop.permute.xlu0 %2575 }
 0x2d6   : > { %4529 = vst.msk [vmem:[%s6921_s20 + $0x48] sm:$0xff] %vm4519_vm1, %v4272_v12  ;;  %4528 = vst.msk [vmem:[%s6921_s20 + $0x40] sm:$0xff] %vm4519_vm1, %v4271_v23  ;;  %v4018_v6 = vmul.f32 %v6806_v51, %v2580_v39  ;;  %v4017_v2 = vmul.f32 %v6806_v51, %v2576_v4 }
 0x2d7   : > { %3112 = vbcast.lane.b32.xlu1 %v6721_v46, 296  ;;  %3108 = vbcast.lane.b32.xlu0 %v6721_v46, 288 }
 0x2d8   : > { %v4274_v0 = vmul.f32 %v6894_v5, %v4018_v6  ;;  %v4273_v14 = vmul.f32 %v6896_v36, %v4017_v2 }
 0x2d9   : > { %v2588_v44 = vpop.permute.xlu1 %2587  ;;  %v2584_v38 = vpop.permute.xlu0 %2583 }
 0x2da   : > { %4531 = vst.msk [vmem:[%s6921_s20 + $0x58] sm:$0xff] %vm4519_vm1, %v4274_v0  ;;  %4530 = vst.msk [vmem:[%s6921_s20 + $0x50] sm:$0xff] %vm4519_vm1, %v4273_v14  ;;  %v4020_v8 = vmul.f32 %v6806_v51, %v2588_v44  ;;  %v4019_v43 = vmul.f32 %v6806_v51, %v2584_v38 }
 0x2db   : > { %3120 = vbcast.lane.b32.xlu1 %v6721_v46, 312  ;;  %3116 = vbcast.lane.b32.xlu0 %v6721_v46, 304 }
 0x2dc   : > { %v4276_v32 = vmul.f32 %v6898_v49, %v4020_v8  ;;  %v4275_v41 = vmul.f32 %v6900_v11, %v4019_v43 }
 0x2dd   : > { %v2596_v21 = vpop.permute.xlu1 %2595  ;;  %v2592_v30 = vpop.permute.xlu0 %2591 }
 0x2de   : > { %4533 = vst.msk [vmem:[%s6921_s20 + $0x68] sm:$0xff] %vm4519_vm1, %v4276_v32  ;;  %4532 = vst.msk [vmem:[%s6921_s20 + $0x60] sm:$0xff] %vm4519_vm1, %v4275_v41  ;;  %v4022_v60 = vmul.f32 %v6806_v51, %v2596_v21  ;;  %v4021_v20 = vmul.f32 %v6806_v51, %v2592_v30 }
 0x2df   : > { %3131 = vbcast.lane.b32.xlu1 %v6723_v17, 264  ;;  %3127 = vbcast.lane.b32.xlu0 %v6723_v17, 256 }
 0x2e0   : > { %v4278_v46 = vmul.f32 %v6904_v52, %v4022_v60  ;;  %v4277_v27 = vmul.f32 %v6906_v13, %v4021_v20 }
 0x2e1   : > { %v2607_v48 = vpop.permute.xlu1 %2606  ;;  %v2603_v42 = vpop.permute.xlu0 %2602 }
 0x2e2   : > { %4535 = vst.msk [vmem:[%s6921_s20 + $0x78] sm:$0xff] %vm4519_vm1, %v4278_v46  ;;  %4534 = vst.msk [vmem:[%s6921_s20 + $0x70] sm:$0xff] %vm4519_vm1, %v4277_v27  ;;  %v4024_v10 = vmul.f32 %v6809_v55, %v2607_v48  ;;  %v4023_v51 = vmul.f32 %v6809_v55, %v2603_v42 }
 0x2e3   : > { %3139 = vbcast.lane.b32.xlu1 %v6723_v17, 280  ;;  %3135 = vbcast.lane.b32.xlu0 %v6723_v17, 272 }
 0x2e4   : > { %v4280_v26 = vmul.f32 %v6890_v33, %v4024_v10  ;;  %v4279_v58 = vmul.f32 %v6892_v47, %v4023_v51 }
 0x2e5   : > { %v2615_v59 = vpop.permute.xlu1 %2614  ;;  %v2611_v18 = vpop.permute.xlu0 %2610 }
 0x2e6   : > { %4537 = vst.msk [vmem:[%s6921_s20 + $0x88] sm:$0xff] %vm4519_vm1, %v4280_v26  ;;  %4536 = vst.msk [vmem:[%s6921_s20 + $0x80] sm:$0xff] %vm4519_vm1, %v4279_v58  ;;  %v4026_v9 = vmul.f32 %v6809_v55, %v2615_v59  ;;  %v4025_v31 = vmul.f32 %v6809_v55, %v2611_v18 }
 0x2e7   : > { %3147 = vbcast.lane.b32.xlu1 %v6723_v17, 296  ;;  %3143 = vbcast.lane.b32.xlu0 %v6723_v17, 288 }
 0x2e8   : > { %v4282_v35 = vmul.f32 %v6894_v5, %v4026_v9  ;;  %v4281_v54 = vmul.f32 %v6896_v36, %v4025_v31 }
 0x2e9   : > { %v2623_v40 = vpop.permute.xlu1 %2622  ;;  %v2619_v57 = vpop.permute.xlu0 %2618 }
 0x2ea   : > { %4539 = vst.msk [vmem:[%s6921_s20 + $0x98] sm:$0xff] %vm4519_vm1, %v4282_v35  ;;  %4538 = vst.msk [vmem:[%s6921_s20 + $0x90] sm:$0xff] %vm4519_vm1, %v4281_v54  ;;  %v4028_v1 = vmul.f32 %v6809_v55, %v2623_v40  ;;  %v4027_v25 = vmul.f32 %v6809_v55, %v2619_v57 }
 0x2eb   : > { %3155 = vbcast.lane.b32.xlu1 %v6723_v17, 312  ;;  %3151 = vbcast.lane.b32.xlu0 %v6723_v17, 304 }
 0x2ec   : > { %v4284_v37 = vmul.f32 %v6898_v49, %v4028_v1  ;;  %v4283_v61 = vmul.f32 %v6900_v11, %v4027_v25 }
 0x2ed   : > { %v2631_v53 = vpop.permute.xlu1 %2630  ;;  %v2627_v50 = vpop.permute.xlu0 %2626 }
 0x2ee   : > { %4541 = vst.msk [vmem:[%s6921_s20 + $0xa8] sm:$0xff] %vm4519_vm1, %v4284_v37  ;;  %4540 = vst.msk [vmem:[%s6921_s20 + $0xa0] sm:$0xff] %vm4519_vm1, %v4283_v61  ;;  %v4030_v12 = vmul.f32 %v6809_v55, %v2631_v53  ;;  %v4029_v23 = vmul.f32 %v6809_v55, %v2627_v50 }
 0x2ef   : > { %3166 = vbcast.lane.b32.xlu1 %v6726_v19, 264  ;;  %3162 = vbcast.lane.b32.xlu0 %v6726_v19, 256 }
 0x2f0   : > { %v4286_v17 = vmul.f32 %v6904_v52, %v4030_v12  ;;  %v4285_v39 = vmul.f32 %v6906_v13, %v4029_v23 }
 0x2f1   : > { %v2642_v4 = vpop.permute.xlu1 %2641  ;;  %v2638_v6 = vpop.permute.xlu0 %2637 }
 0x2f2   : > { %4543 = vst.msk [vmem:[%s6921_s20 + $0xb8] sm:$0xff] %vm4519_vm1, %v4286_v17  ;;  %4542 = vst.msk [vmem:[%s6921_s20 + $0xb0] sm:$0xff] %vm4519_vm1, %v4285_v39  ;;  %v4032_v2 = vmul.f32 %v6812_v62, %v2642_v4  ;;  %v4031_v55 = vmul.f32 %v6812_v62, %v2638_v6 }
 0x2f3   : > { %3174 = vbcast.lane.b32.xlu1 %v6726_v19, 280  ;;  %3170 = vbcast.lane.b32.xlu0 %v6726_v19, 272 }
 0x2f4   : > { %v4288_v0 = vmul.f32 %v6890_v33, %v4032_v2  ;;  %v4287_v14 = vmul.f32 %v6892_v47, %v4031_v55 }
 0x2f5   : > { %v2650_v44 = vpop.permute.xlu1 %2649  ;;  %v2646_v38 = vpop.permute.xlu0 %2645 }
 0x2f6   : > { %4545 = vst.msk [vmem:[%s6921_s20 + $0xc8] sm:$0xff] %vm4519_vm1, %v4288_v0  ;;  %4544 = vst.msk [vmem:[%s6921_s20 + $0xc0] sm:$0xff] %vm4519_vm1, %v4287_v14  ;;  %v4034_v8 = vmul.f32 %v6812_v62, %v2650_v44  ;;  %v4033_v43 = vmul.f32 %v6812_v62, %v2646_v38 }
 0x2f7   : > { %3182 = vbcast.lane.b32.xlu1 %v6726_v19, 296  ;;  %3178 = vbcast.lane.b32.xlu0 %v6726_v19, 288 }
 0x2f8   : > { %v4290_v32 = vmul.f32 %v6894_v5, %v4034_v8  ;;  %v4289_v41 = vmul.f32 %v6896_v36, %v4033_v43 }
 0x2f9   : > { %v2658_v21 = vpop.permute.xlu1 %2657  ;;  %v2654_v30 = vpop.permute.xlu0 %2653 }
 0x2fa   : > { %4547 = vst.msk [vmem:[%s6921_s20 + $0xd8] sm:$0xff] %vm4519_vm1, %v4290_v32  ;;  %4546 = vst.msk [vmem:[%s6921_s20 + $0xd0] sm:$0xff] %vm4519_vm1, %v4289_v41  ;;  %v4036_v60 = vmul.f32 %v6812_v62, %v2658_v21  ;;  %v4035_v20 = vmul.f32 %v6812_v62, %v2654_v30 }
 0x2fb   : > { %3190 = vbcast.lane.b32.xlu1 %v6726_v19, 312  ;;  %3186 = vbcast.lane.b32.xlu0 %v6726_v19, 304 }
 0x2fc   : > { %v4292_v46 = vmul.f32 %v6898_v49, %v4036_v60  ;;  %v4291_v27 = vmul.f32 %v6900_v11, %v4035_v20 }
 0x2fd   : > { %v2666_v48 = vpop.permute.xlu1 %2665  ;;  %v2662_v42 = vpop.permute.xlu0 %2661 }
 0x2fe   : > { %4549 = vst.msk [vmem:[%s6921_s20 + $0xe8] sm:$0xff] %vm4519_vm1, %v4292_v46  ;;  %4548 = vst.msk [vmem:[%s6921_s20 + $0xe0] sm:$0xff] %vm4519_vm1, %v4291_v27  ;;  %v4038_v10 = vmul.f32 %v6812_v62, %v2666_v48  ;;  %v4037_v51 = vmul.f32 %v6812_v62, %v2662_v42 }
 0x2ff   : > { %3201 = vbcast.lane.b32.xlu1 %v6729_v24, 264  ;;  %3197 = vbcast.lane.b32.xlu0 %v6729_v24, 256 }
 0x300   : > { %v4294_v19 = vmul.f32 %v6904_v52, %v4038_v10  ;;  %v4293_v26 = vmul.f32 %v6906_v13, %v4037_v51 }
 0x301   : > { %v2677_v58 = vpop.permute.xlu1 %2676  ;;  %v2673_v59 = vpop.permute.xlu0 %2672 }
 0x302   : > { %4551 = vst.msk [vmem:[%s6921_s20 + $0xf8] sm:$0xff] %vm4519_vm1, %v4294_v19  ;;  %4550 = vst.msk [vmem:[%s6921_s20 + $0xf0] sm:$0xff] %vm4519_vm1, %v4293_v26  ;;  %v4040_v18 = vmul.f32 %v6815_v63, %v2677_v58  ;;  %v4039_v62 = vmul.f32 %v6815_v63, %v2673_v59 }
 0x303   : > { %3209 = vbcast.lane.b32.xlu1 %v6729_v24, 280  ;;  %3205 = vbcast.lane.b32.xlu0 %v6729_v24, 272 }
 0x304   : > { %v4296_v9 = vmul.f32 %v6890_v33, %v4040_v18  ;;  %v4295_v31 = vmul.f32 %v6892_v47, %v4039_v62 }
 0x305   : > { %v2685_v35 = vpop.permute.xlu1 %2684  ;;  %v2681_v54 = vpop.permute.xlu0 %2680 }
 0x306   : > { %4553 = vst.msk [vmem:[%s6921_s20 + $0x108] sm:$0xff] %vm4519_vm1, %v4296_v9  ;;  %4552 = vst.msk [vmem:[%s6921_s20 + $0x100] sm:$0xff] %vm4519_vm1, %v4295_v31  ;;  %v4042_v40 = vmul.f32 %v6815_v63, %v2685_v35  ;;  %v4041_v57 = vmul.f32 %v6815_v63, %v2681_v54 }
 0x307   : > { %3217 = vbcast.lane.b32.xlu1 %v6729_v24, 296  ;;  %3213 = vbcast.lane.b32.xlu0 %v6729_v24, 288 }
 0x308   : > { %v4298_v1 = vmul.f32 %v6894_v5, %v4042_v40  ;;  %v4297_v25 = vmul.f32 %v6896_v36, %v4041_v57 }
 0x309   : > { %v2693_v37 = vpop.permute.xlu1 %2692  ;;  %v2689_v61 = vpop.permute.xlu0 %2688 }
 0x30a   : > { %4555 = vst.msk [vmem:[%s6921_s20 + $0x118] sm:$0xff] %vm4519_vm1, %v4298_v1  ;;  %4554 = vst.msk [vmem:[%s6921_s20 + $0x110] sm:$0xff] %vm4519_vm1, %v4297_v25  ;;  %v4044_v53 = vmul.f32 %v6815_v63, %v2693_v37  ;;  %v4043_v50 = vmul.f32 %v6815_v63, %v2689_v61 }
 0x30b   : > { %3225 = vbcast.lane.b32.xlu1 %v6729_v24, 312  ;;  %3221 = vbcast.lane.b32.xlu0 %v6729_v24, 304 }
 0x30c   : > { %v4300_v12 = vmul.f32 %v6898_v49, %v4044_v53  ;;  %v4299_v23 = vmul.f32 %v6900_v11, %v4043_v50 }
 0x30d   : > { %v2701_v17 = vpop.permute.xlu1 %2700  ;;  %v2697_v39 = vpop.permute.xlu0 %2696 }
 0x30e   : > { %4557 = vst.msk [vmem:[%s6921_s20 + $0x128] sm:$0xff] %vm4519_vm1, %v4300_v12  ;;  %4556 = vst.msk [vmem:[%s6921_s20 + $0x120] sm:$0xff] %vm4519_vm1, %v4299_v23  ;;  %v4046_v4 = vmul.f32 %v6815_v63, %v2701_v17  ;;  %v4045_v6 = vmul.f32 %v6815_v63, %v2697_v39 }
 0x30f   : > { %3236 = vbcast.lane.b32.xlu1 %v6732_v22, 264  ;;  %3232 = vbcast.lane.b32.xlu0 %v6732_v22, 256 }
 0x310   : > { %v4302_v24 = vmul.f32 %v6904_v52, %v4046_v4  ;;  %v4301_v2 = vmul.f32 %v6906_v13, %v4045_v6 }
 0x311   : > { %v2712_v55 = vpop.permute.xlu1 %2711  ;;  %v2708_v0 = vpop.permute.xlu0 %2707 }
 0x312   : > { %4559 = vst.msk [vmem:[%s6921_s20 + $0x138] sm:$0xff] %vm4519_vm1, %v4302_v24  ;;  %4558 = vst.msk [vmem:[%s6921_s20 + $0x130] sm:$0xff] %vm4519_vm1, %v4301_v2  ;;  %v4048_v14 = vmul.f32 %v6818_v3, %v2712_v55  ;;  %v4047_v63 = vmul.f32 %v6818_v3, %v2708_v0 }
 0x313   : > { %3244 = vbcast.lane.b32.xlu1 %v6732_v22, 280  ;;  %3240 = vbcast.lane.b32.xlu0 %v6732_v22, 272 }
 0x314   : > { %v4304_v44 = vmul.f32 %v6890_v33, %v4048_v14  ;;  %v4303_v38 = vmul.f32 %v6892_v47, %v4047_v63 }
 0x315   : > { %v2720_v8 = vpop.permute.xlu1 %2719  ;;  %v2716_v43 = vpop.permute.xlu0 %2715 }
 0x316   : > { %4561 = vst.msk [vmem:[%s6921_s20 + $0x148] sm:$0xff] %vm4519_vm1, %v4304_v44  ;;  %4560 = vst.msk [vmem:[%s6921_s20 + $0x140] sm:$0xff] %vm4519_vm1, %v4303_v38  ;;  %v4050_v32 = vmul.f32 %v6818_v3, %v2720_v8  ;;  %v4049_v41 = vmul.f32 %v6818_v3, %v2716_v43 }
 0x317   : > { %3252 = vbcast.lane.b32.xlu1 %v6732_v22, 296  ;;  %3248 = vbcast.lane.b32.xlu0 %v6732_v22, 288 }
 0x318   : > { %v4306_v21 = vmul.f32 %v6894_v5, %v4050_v32  ;;  %v4305_v30 = vmul.f32 %v6896_v36, %v4049_v41 }
 0x319   : > { %v2728_v60 = vpop.permute.xlu1 %2727  ;;  %v2724_v20 = vpop.permute.xlu0 %2723 }
 0x31a   : > { %4563 = vst.msk [vmem:[%s6921_s20 + $0x158] sm:$0xff] %vm4519_vm1, %v4306_v21  ;;  %4562 = vst.msk [vmem:[%s6921_s20 + $0x150] sm:$0xff] %vm4519_vm1, %v4305_v30  ;;  %v4052_v46 = vmul.f32 %v6818_v3, %v2728_v60  ;;  %v4051_v27 = vmul.f32 %v6818_v3, %v2724_v20 }
 0x31b   : > { %3260 = vbcast.lane.b32.xlu1 %v6732_v22, 312  ;;  %3256 = vbcast.lane.b32.xlu0 %v6732_v22, 304 }
 0x31c   : > { %v4308_v48 = vmul.f32 %v6898_v49, %v4052_v46  ;;  %v4307_v42 = vmul.f32 %v6900_v11, %v4051_v27 }
 0x31d   : > { %v2736_v10 = vpop.permute.xlu1 %2735  ;;  %v2732_v51 = vpop.permute.xlu0 %2731 }
 0x31e   : > { %4565 = vst.msk [vmem:[%s6921_s20 + $0x168] sm:$0xff] %vm4519_vm1, %v4308_v48  ;;  %4564 = vst.msk [vmem:[%s6921_s20 + $0x160] sm:$0xff] %vm4519_vm1, %v4307_v42  ;;  %v4054_v19 = vmul.f32 %v6818_v3, %v2736_v10  ;;  %v4053_v26 = vmul.f32 %v6818_v3, %v2732_v51 }
 0x31f   : > { %3271 = vbcast.lane.b32.xlu1 %v6735_v28, 264  ;;  %3267 = vbcast.lane.b32.xlu0 %v6735_v28, 256 }
 0x320   : > { %v4310_v22 = vmul.f32 %v6904_v52, %v4054_v19  ;;  %v4309_v58 = vmul.f32 %v6906_v13, %v4053_v26 }
 0x321   : > { %v2747_v59 = vpop.permute.xlu1 %2746  ;;  %v2743_v18 = vpop.permute.xlu0 %2742 }
 0x322   : > { %4567 = vst.msk [vmem:[%s6921_s20 + $0x178] sm:$0xff] %vm4519_vm1, %v4310_v22  ;;  %4566 = vst.msk [vmem:[%s6921_s20 + $0x170] sm:$0xff] %vm4519_vm1, %v4309_v58  ;;  %v4056_v62 = vmul.f32 %v6821_v56, %v2747_v59  ;;  %v4055_v3 = vmul.f32 %v6821_v56, %v2743_v18 }
 0x323   : > { %3279 = vbcast.lane.b32.xlu1 %v6735_v28, 280  ;;  %3275 = vbcast.lane.b32.xlu0 %v6735_v28, 272 }
 0x324   : > { %v4312_v9 = vmul.f32 %v6890_v33, %v4056_v62  ;;  %v4311_v31 = vmul.f32 %v6892_v47, %v4055_v3 }
 0x325   : > { %v2755_v35 = vpop.permute.xlu1 %2754  ;;  %v2751_v54 = vpop.permute.xlu0 %2750 }
 0x326   : > { %4569 = vst.msk [vmem:[%s6921_s20 + $0x188] sm:$0xff] %vm4519_vm1, %v4312_v9  ;;  %4568 = vst.msk [vmem:[%s6921_s20 + $0x180] sm:$0xff] %vm4519_vm1, %v4311_v31  ;;  %v4058_v40 = vmul.f32 %v6821_v56, %v2755_v35  ;;  %v4057_v57 = vmul.f32 %v6821_v56, %v2751_v54 }
 0x327   : > { %3287 = vbcast.lane.b32.xlu1 %v6735_v28, 296  ;;  %3283 = vbcast.lane.b32.xlu0 %v6735_v28, 288 }
 0x328   : > { %v4314_v1 = vmul.f32 %v6894_v5, %v4058_v40  ;;  %v4313_v25 = vmul.f32 %v6896_v36, %v4057_v57 }
 0x329   : > { %v2763_v37 = vpop.permute.xlu1 %2762  ;;  %v2759_v61 = vpop.permute.xlu0 %2758 }
 0x32a   : > { %4571 = vst.msk [vmem:[%s6921_s20 + $0x198] sm:$0xff] %vm4519_vm1, %v4314_v1  ;;  %4570 = vst.msk [vmem:[%s6921_s20 + $0x190] sm:$0xff] %vm4519_vm1, %v4313_v25  ;;  %v4060_v53 = vmul.f32 %v6821_v56, %v2763_v37  ;;  %v4059_v50 = vmul.f32 %v6821_v56, %v2759_v61 }
 0x32b   : > { %3295 = vbcast.lane.b32.xlu1 %v6735_v28, 312  ;;  %3291 = vbcast.lane.b32.xlu0 %v6735_v28, 304 }
 0x32c   : > { %v4316_v12 = vmul.f32 %v6898_v49, %v4060_v53  ;;  %v4315_v23 = vmul.f32 %v6900_v11, %v4059_v50 }
 0x32d   : > { %v2771_v17 = vpop.permute.xlu1 %2770  ;;  %v2767_v39 = vpop.permute.xlu0 %2766 }
 0x32e   : > { %4573 = vst.msk [vmem:[%s6921_s20 + $0x1a8] sm:$0xff] %vm4519_vm1, %v4316_v12  ;;  %4572 = vst.msk [vmem:[%s6921_s20 + $0x1a0] sm:$0xff] %vm4519_vm1, %v4315_v23  ;;  %v4062_v4 = vmul.f32 %v6821_v56, %v2771_v17  ;;  %v4061_v6 = vmul.f32 %v6821_v56, %v2767_v39 }
 0x32f   : > { %3306 = vbcast.lane.b32.xlu1 %v6738_v29, 264  ;;  %3302 = vbcast.lane.b32.xlu0 %v6738_v29, 256 }
 0x330   : > { %v4318_v28 = vmul.f32 %v6904_v52, %v4062_v4  ;;  %v4317_v24 = vmul.f32 %v6906_v13, %v4061_v6 }
 0x331   : > { %v2782_v2 = vpop.permute.xlu1 %2781  ;;  %v2778_v55 = vpop.permute.xlu0 %2777 }
 0x332   : > { %4575 = vst.msk [vmem:[%s6921_s20 + $0x1b8] sm:$0xff] %vm4519_vm1, %v4318_v28  ;;  %4574 = vst.msk [vmem:[%s6921_s20 + $0x1b0] sm:$0xff] %vm4519_vm1, %v4317_v24  ;;  %v4064_v0 = vmul.f32 %v6824_v7, %v2782_v2  ;;  %v4063_v56 = vmul.f32 %v6824_v7, %v2778_v55 }
 0x333   : > { %3314 = vbcast.lane.b32.xlu1 %v6738_v29, 280  ;;  %3310 = vbcast.lane.b32.xlu0 %v6738_v29, 272 }
 0x334   : > { %v4320_v14 = vmul.f32 %v6890_v33, %v4064_v0  ;;  %v4319_v63 = vmul.f32 %v6892_v47, %v4063_v56 }
 0x335   : > { %v2790_v44 = vpop.permute.xlu1 %2789  ;;  %v2786_v38 = vpop.permute.xlu0 %2785 }
 0x336   : > { %4577 = vst.msk [vmem:[%s6921_s20 + $0x1c8] sm:$0xff] %vm4519_vm1, %v4320_v14  ;;  %4576 = vst.msk [vmem:[%s6921_s20 + $0x1c0] sm:$0xff] %vm4519_vm1, %v4319_v63  ;;  %v4066_v8 = vmul.f32 %v6824_v7, %v2790_v44  ;;  %v4065_v43 = vmul.f32 %v6824_v7, %v2786_v38 }
 0x337   : > { %3322 = vbcast.lane.b32.xlu1 %v6738_v29, 296  ;;  %3318 = vbcast.lane.b32.xlu0 %v6738_v29, 288 }
 0x338   : > { %v4322_v32 = vmul.f32 %v6894_v5, %v4066_v8  ;;  %v4321_v41 = vmul.f32 %v6896_v36, %v4065_v43 }
 0x339   : > { %v2798_v21 = vpop.permute.xlu1 %2797  ;;  %v2794_v30 = vpop.permute.xlu0 %2793 }
 0x33a   : > { %4579 = vst.msk [vmem:[%s6921_s20 + $0x1d8] sm:$0xff] %vm4519_vm1, %v4322_v32  ;;  %4578 = vst.msk [vmem:[%s6921_s20 + $0x1d0] sm:$0xff] %vm4519_vm1, %v4321_v41  ;;  %v4068_v60 = vmul.f32 %v6824_v7, %v2798_v21  ;;  %v4067_v20 = vmul.f32 %v6824_v7, %v2794_v30 }
 0x33b   : > { %3330 = vbcast.lane.b32.xlu1 %v6738_v29, 312  ;;  %3326 = vbcast.lane.b32.xlu0 %v6738_v29, 304 }
 0x33c   : > { %v4324_v46 = vmul.f32 %v6898_v49, %v4068_v60  ;;  %v4323_v27 = vmul.f32 %v6900_v11, %v4067_v20 }
 0x33d   : > { %v2806_v48 = vpop.permute.xlu1 %2805  ;;  %v2802_v42 = vpop.permute.xlu0 %2801 }
 0x33e   : > { %4581 = vst.msk [vmem:[%s6921_s20 + $0x1e8] sm:$0xff] %vm4519_vm1, %v4324_v46  ;;  %4580 = vst.msk [vmem:[%s6921_s20 + $0x1e0] sm:$0xff] %vm4519_vm1, %v4323_v27  ;;  %v4070_v10 = vmul.f32 %v6824_v7, %v2806_v48  ;;  %v4069_v51 = vmul.f32 %v6824_v7, %v2802_v42  ;;  %v8266_v46 = vld [vmem:[#allocation23_spill] sm:$0xff] }
 0x33f   : > { %3341 = vbcast.lane.b32.xlu1 %v6741_v15, 264  ;;  %3337 = vbcast.lane.b32.xlu0 %v6741_v15, 256 }
 0x340   : > { %v4326_v29 = vmul.f32 %v6904_v52, %v4070_v10  ;;  %v4325_v19 = vmul.f32 %v6906_v13, %v4069_v51  ;;  %v8267_v10 = vld [vmem:[#allocation38_spill] sm:$0xff] }
 0x341   : > { %v3097_v26 = vpop.permute.xlu1 %3096  ;;  %v3093_v22 = vpop.permute.xlu0 %3092 }
 0x342   : > { %4583 = vst.msk [vmem:[%s6921_s20 + $0x1f8] sm:$0xff] %vm4519_vm1, %v4326_v29  ;;  %4582 = vst.msk [vmem:[%s6921_s20 + $0x1f0] sm:$0xff] %vm4519_vm1, %v4325_v19  ;;  %v4136_v58 = vmul.f32 %v6865_v34, %v3097_v26  ;;  %v4135_v7 = vmul.f32 %v6865_v34, %v3093_v22 }
 0x343   : > { %3349 = vbcast.lane.b32.xlu1 %v6741_v15, 280  ;;  %3345 = vbcast.lane.b32.xlu0 %v6741_v15, 272 }
 0x344   : > { %v4392_v59 = vmul.f32 %v6890_v33, %v4136_v58  ;;  %v4391_v18 = vmul.f32 %v6892_v47, %v4135_v7 }
 0x345   : > { %v3105_v62 = vpop.permute.xlu1 %3104  ;;  %v3101_v3 = vpop.permute.xlu0 %3100 }
 0x346   : > { %4649 = vst.msk [vmem:[%s6921_s20 + $0x408] sm:$0xff] %vm4519_vm1, %v4392_v59  ;;  %4648 = vst.msk [vmem:[%s6921_s20 + $0x400] sm:$0xff] %vm4519_vm1, %v4391_v18  ;;  %v4138_v9 = vmul.f32 %v6865_v34, %v3105_v62  ;;  %v4137_v31 = vmul.f32 %v6865_v34, %v3101_v3 }
 0x347   : > { %3357 = vbcast.lane.b32.xlu1 %v6741_v15, 296  ;;  %3353 = vbcast.lane.b32.xlu0 %v6741_v15, 288 }
 0x348   : > { %v4394_v35 = vmul.f32 %v6894_v5, %v4138_v9  ;;  %v4393_v54 = vmul.f32 %v6896_v36, %v4137_v31 }
 0x349   : > { %v3113_v40 = vpop.permute.xlu1 %3112  ;;  %v3109_v57 = vpop.permute.xlu0 %3108 }
 0x34a   : > { %4651 = vst.msk [vmem:[%s6921_s20 + $0x418] sm:$0xff] %vm4519_vm1, %v4394_v35  ;;  %4650 = vst.msk [vmem:[%s6921_s20 + $0x410] sm:$0xff] %vm4519_vm1, %v4393_v54  ;;  %v4140_v1 = vmul.f32 %v6865_v34, %v3113_v40  ;;  %v4139_v25 = vmul.f32 %v6865_v34, %v3109_v57 }
 0x34b   : > { %3365 = vbcast.lane.b32.xlu1 %v6741_v15, 312  ;;  %3361 = vbcast.lane.b32.xlu0 %v6741_v15, 304 }
 0x34c   : > { %v4396_v37 = vmul.f32 %v6898_v49, %v4140_v1  ;;  %v4395_v61 = vmul.f32 %v6900_v11, %v4139_v25 }
 0x34d   : > { %v3121_v53 = vpop.permute.xlu1 %3120  ;;  %v3117_v50 = vpop.permute.xlu0 %3116 }
 0x34e   : > { %4653 = vst.msk [vmem:[%s6921_s20 + $0x428] sm:$0xff] %vm4519_vm1, %v4396_v37  ;;  %4652 = vst.msk [vmem:[%s6921_s20 + $0x420] sm:$0xff] %vm4519_vm1, %v4395_v61  ;;  %v4142_v12 = vmul.f32 %v6865_v34, %v3121_v53  ;;  %v4141_v23 = vmul.f32 %v6865_v34, %v3117_v50  ;;  %v8268_v37 = vld [vmem:[#allocation24_spill] sm:$0xff] }
 0x34f   : > { %3376 = vbcast.lane.b32.xlu1 %v6718_v45, 264  ;;  %3372 = vbcast.lane.b32.xlu0 %v6718_v45, 256 }
 0x350   : > { %v4398_v15 = vmul.f32 %v6904_v52, %v4142_v12  ;;  %v4397_v17 = vmul.f32 %v6906_v13, %v4141_v23  ;;  %v8269_v23 = vld [vmem:[#allocation41_spill] sm:$0xff] }
 0x351   : > { %v3132_v39 = vpop.permute.xlu1 %3131  ;;  %v3128_v4 = vpop.permute.xlu0 %3127 }
 0x352   : > { %4655 = vst.msk [vmem:[%s6921_s20 + $0x438] sm:$0xff] %vm4519_vm1, %v4398_v15  ;;  %4654 = vst.msk [vmem:[%s6921_s20 + $0x430] sm:$0xff] %vm4519_vm1, %v4397_v17  ;;  %v4144_v6 = vmul.f32 %v6868_v16, %v3132_v39  ;;  %v4143_v34 = vmul.f32 %v6868_v16, %v3128_v4 }
 0x353   : > { %3384 = vbcast.lane.b32.xlu1 %v6718_v45, 280  ;;  %3380 = vbcast.lane.b32.xlu0 %v6718_v45, 272 }
 0x354   : > { %v4400_v28 = vmul.f32 %v6890_v33, %v4144_v6  ;;  %v4399_v24 = vmul.f32 %v6892_v47, %v4143_v34 }
 0x355   : > { %v3140_v2 = vpop.permute.xlu1 %3139  ;;  %v3136_v55 = vpop.permute.xlu0 %3135 }
 0x356   : > { %4657 = vst.msk [vmem:[%s6921_s20 + $0x448] sm:$0xff] %vm4519_vm1, %v4400_v28  ;;  %4656 = vst.msk [vmem:[%s6921_s20 + $0x440] sm:$0xff] %vm4519_vm1, %v4399_v24  ;;  %v4146_v0 = vmul.f32 %v6868_v16, %v3140_v2  ;;  %v4145_v56 = vmul.f32 %v6868_v16, %v3136_v55 }
 0x357   : > { %3392 = vbcast.lane.b32.xlu1 %v6718_v45, 296  ;;  %3388 = vbcast.lane.b32.xlu0 %v6718_v45, 288 }
 0x358   : > { %v4402_v14 = vmul.f32 %v6894_v5, %v4146_v0  ;;  %v4401_v63 = vmul.f32 %v6896_v36, %v4145_v56 }
 0x359   : > { %v3148_v44 = vpop.permute.xlu1 %3147  ;;  %v3144_v38 = vpop.permute.xlu0 %3143 }
 0x35a   : > { %4659 = vst.msk [vmem:[%s6921_s20 + $0x458] sm:$0xff] %vm4519_vm1, %v4402_v14  ;;  %4658 = vst.msk [vmem:[%s6921_s20 + $0x450] sm:$0xff] %vm4519_vm1, %v4401_v63  ;;  %v4148_v8 = vmul.f32 %v6868_v16, %v3148_v44  ;;  %v4147_v43 = vmul.f32 %v6868_v16, %v3144_v38 }
 0x35b   : > { %3400 = vbcast.lane.b32.xlu1 %v6718_v45, 312  ;;  %3396 = vbcast.lane.b32.xlu0 %v6718_v45, 304 }
 0x35c   : > { %v4404_v32 = vmul.f32 %v6898_v49, %v4148_v8  ;;  %v4403_v41 = vmul.f32 %v6900_v11, %v4147_v43 }
 0x35d   : > { %v3156_v21 = vpop.permute.xlu1 %3155  ;;  %v3152_v30 = vpop.permute.xlu0 %3151 }
 0x35e   : > { %4661 = vst.msk [vmem:[%s6921_s20 + $0x468] sm:$0xff] %vm4519_vm1, %v4404_v32  ;;  %4660 = vst.msk [vmem:[%s6921_s20 + $0x460] sm:$0xff] %vm4519_vm1, %v4403_v41  ;;  %v4150_v60 = vmul.f32 %v6868_v16, %v3156_v21  ;;  %v4149_v20 = vmul.f32 %v6868_v16, %v3152_v30  ;;  %v8270_v21 = vld [vmem:[#allocation25_spill] sm:$0xff] }
 0x35f   : > { %3411 = vbcast.lane.b32.xlu1 %v8266_v46, 264  ;;  %3407 = vbcast.lane.b32.xlu0 %v8266_v46, 256 }
 0x360   : > { %v4406_v45 = vmul.f32 %v6904_v52, %v4150_v60  ;;  %v4405_v27 = vmul.f32 %v6906_v13, %v4149_v20 }
 0x361   : > { %v3167_v48 = vpop.permute.xlu1 %3166  ;;  %v3163_v42 = vpop.permute.xlu0 %3162 }
 0x362   : > { %4663 = vst.msk [vmem:[%s6921_s20 + $0x478] sm:$0xff] %vm4519_vm1, %v4406_v45  ;;  %4662 = vst.msk [vmem:[%s6921_s20 + $0x470] sm:$0xff] %vm4519_vm1, %v4405_v27  ;;  %v4152_v51 = vmul.f32 %v8267_v10, %v3167_v48  ;;  %v4151_v16 = vmul.f32 %v8267_v10, %v3163_v42  ;;  %v8271_v45 = vld [vmem:[#allocation39_spill] sm:$0xff] }
 0x363   : > { %3419 = vbcast.lane.b32.xlu1 %v8266_v46, 280  ;;  %3415 = vbcast.lane.b32.xlu0 %v8266_v46, 272 }
 0x364   : > { %v4408_v29 = vmul.f32 %v6890_v33, %v4152_v51  ;;  %v4407_v19 = vmul.f32 %v6892_v47, %v4151_v16 }
 0x365   : > { %v3175_v26 = vpop.permute.xlu1 %3174  ;;  %v3171_v22 = vpop.permute.xlu0 %3170 }
 0x366   : > { %4665 = vst.msk [vmem:[%s6921_s20 + $0x488] sm:$0xff] %vm4519_vm1, %v4408_v29  ;;  %4664 = vst.msk [vmem:[%s6921_s20 + $0x480] sm:$0xff] %vm4519_vm1, %v4407_v19  ;;  %v4154_v58 = vmul.f32 %v8267_v10, %v3175_v26  ;;  %v4153_v7 = vmul.f32 %v8267_v10, %v3171_v22 }
 0x367   : > { %3427 = vbcast.lane.b32.xlu1 %v8266_v46, 296  ;;  %3423 = vbcast.lane.b32.xlu0 %v8266_v46, 288 }
 0x368   : > { %v4410_v59 = vmul.f32 %v6894_v5, %v4154_v58  ;;  %v4409_v18 = vmul.f32 %v6896_v36, %v4153_v7 }
 0x369   : > { %v3183_v62 = vpop.permute.xlu1 %3182  ;;  %v3179_v3 = vpop.permute.xlu0 %3178 }
 0x36a   : > { %4667 = vst.msk [vmem:[%s6921_s20 + $0x498] sm:$0xff] %vm4519_vm1, %v4410_v59  ;;  %4666 = vst.msk [vmem:[%s6921_s20 + $0x490] sm:$0xff] %vm4519_vm1, %v4409_v18  ;;  %v4156_v9 = vmul.f32 %v8267_v10, %v3183_v62  ;;  %v4155_v31 = vmul.f32 %v8267_v10, %v3179_v3 }
 0x36b   : > { %3435 = vbcast.lane.b32.xlu1 %v8266_v46, 312  ;;  %3431 = vbcast.lane.b32.xlu0 %v8266_v46, 304 }
 0x36c   : > { %v4412_v35 = vmul.f32 %v6898_v49, %v4156_v9  ;;  %v4411_v54 = vmul.f32 %v6900_v11, %v4155_v31 }
 0x36d   : > { %v3191_v40 = vpop.permute.xlu1 %3190  ;;  %v3187_v57 = vpop.permute.xlu0 %3186 }
 0x36e   : > { %4669 = vst.msk [vmem:[%s6921_s20 + $0x4a8] sm:$0xff] %vm4519_vm1, %v4412_v35  ;;  %4668 = vst.msk [vmem:[%s6921_s20 + $0x4a0] sm:$0xff] %vm4519_vm1, %v4411_v54  ;;  %v4158_v1 = vmul.f32 %v8267_v10, %v3191_v40  ;;  %v4157_v25 = vmul.f32 %v8267_v10, %v3187_v57  ;;  %v8272_v40 = vld [vmem:[#allocation26_spill] sm:$0xff] }
 0x36f   : > { %3446 = vbcast.lane.b32.xlu1 %v8268_v37, 264  ;;  %3442 = vbcast.lane.b32.xlu0 %v8268_v37, 256 }
 0x370   : > { %v4414_v61 = vmul.f32 %v6904_v52, %v4158_v1  ;;  %v4413_v53 = vmul.f32 %v6906_v13, %v4157_v25 }
 0x371   : > { %v3202_v50 = vpop.permute.xlu1 %3201  ;;  %v3198_v12 = vpop.permute.xlu0 %3197 }
 0x372   : > { %4671 = vst.msk [vmem:[%s6921_s20 + $0x4b8] sm:$0xff] %vm4519_vm1, %v4414_v61  ;;  %4670 = vst.msk [vmem:[%s6921_s20 + $0x4b0] sm:$0xff] %vm4519_vm1, %v4413_v53  ;;  %v4160_v15 = vmul.f32 %v8269_v23, %v3202_v50  ;;  %v4159_v17 = vmul.f32 %v8269_v23, %v3198_v12  ;;  %v8273_v61 = vld [vmem:[#allocation40_spill] sm:$0xff] }
 0x373   : > { %3454 = vbcast.lane.b32.xlu1 %v8268_v37, 280  ;;  %3450 = vbcast.lane.b32.xlu0 %v8268_v37, 272 }
 0x374   : > { %v4416_v39 = vmul.f32 %v6890_v33, %v4160_v15  ;;  %v4415_v4 = vmul.f32 %v6892_v47, %v4159_v17 }
 0x375   : > { %v3210_v6 = vpop.permute.xlu1 %3209  ;;  %v3206_v34 = vpop.permute.xlu0 %3205 }
 0x376   : > { %4673 = vst.msk [vmem:[%s6921_s20 + $0x4c8] sm:$0xff] %vm4519_vm1, %v4416_v39  ;;  %4672 = vst.msk [vmem:[%s6921_s20 + $0x4c0] sm:$0xff] %vm4519_vm1, %v4415_v4  ;;  %v4162_v28 = vmul.f32 %v8269_v23, %v3210_v6  ;;  %v4161_v24 = vmul.f32 %v8269_v23, %v3206_v34 }
 0x377   : > { %3462 = vbcast.lane.b32.xlu1 %v8268_v37, 296  ;;  %3458 = vbcast.lane.b32.xlu0 %v8268_v37, 288 }
 0x378   : > { %v4418_v2 = vmul.f32 %v6894_v5, %v4162_v28  ;;  %v4417_v55 = vmul.f32 %v6896_v36, %v4161_v24 }
 0x379   : > { %v3218_v0 = vpop.permute.xlu1 %3217  ;;  %v3214_v56 = vpop.permute.xlu0 %3213 }
 0x37a   : > { %4675 = vst.msk [vmem:[%s6921_s20 + $0x4d8] sm:$0xff] %vm4519_vm1, %v4418_v2  ;;  %4674 = vst.msk [vmem:[%s6921_s20 + $0x4d0] sm:$0xff] %vm4519_vm1, %v4417_v55  ;;  %v4164_v14 = vmul.f32 %v8269_v23, %v3218_v0  ;;  %v4163_v63 = vmul.f32 %v8269_v23, %v3214_v56 }
 0x37b   : > { %3470 = vbcast.lane.b32.xlu1 %v8268_v37, 312  ;;  %3466 = vbcast.lane.b32.xlu0 %v8268_v37, 304 }
 0x37c   : > { %v4420_v44 = vmul.f32 %v6898_v49, %v4164_v14  ;;  %v4419_v38 = vmul.f32 %v6900_v11, %v4163_v63 }
 0x37d   : > { %v3226_v8 = vpop.permute.xlu1 %3225  ;;  %v3222_v43 = vpop.permute.xlu0 %3221 }
 0x37e   : > { %4677 = vst.msk [vmem:[%s6921_s20 + $0x4e8] sm:$0xff] %vm4519_vm1, %v4420_v44  ;;  %4676 = vst.msk [vmem:[%s6921_s20 + $0x4e0] sm:$0xff] %vm4519_vm1, %v4419_v38  ;;  %v4166_v32 = vmul.f32 %v8269_v23, %v3226_v8  ;;  %v4165_v41 = vmul.f32 %v8269_v23, %v3222_v43  ;;  %v8274_v8 = vld [vmem:[#allocation27_spill] sm:$0xff] }
 0x37f   : > { %3481 = vbcast.lane.b32.xlu1 %v8270_v21, 264  ;;  %3477 = vbcast.lane.b32.xlu0 %v8270_v21, 256 }
 0x380   : > { %v4422_v30 = vmul.f32 %v6904_v52, %v4166_v32  ;;  %v4421_v60 = vmul.f32 %v6906_v13, %v4165_v41 }
 0x381   : > { %v3237_v20 = vpop.permute.xlu1 %3236  ;;  %v3233_v46 = vpop.permute.xlu0 %3232 }
 0x382   : > { %4679 = vst.msk [vmem:[%s6921_s20 + $0x4f8] sm:$0xff] %vm4519_vm1, %v4422_v30  ;;  %4678 = vst.msk [vmem:[%s6921_s20 + $0x4f0] sm:$0xff] %vm4519_vm1, %v4421_v60  ;;  %v4168_v27 = vmul.f32 %v8271_v45, %v3237_v20  ;;  %v4167_v48 = vmul.f32 %v8271_v45, %v3233_v46  ;;  %v8275_v30 = vld [vmem:[#allocation42_spill] sm:$0xff] }
 0x383   : > { %3489 = vbcast.lane.b32.xlu1 %v8270_v21, 280  ;;  %3485 = vbcast.lane.b32.xlu0 %v8270_v21, 272 }
 0x384   : > { %v4424_v42 = vmul.f32 %v6890_v33, %v4168_v27  ;;  %v4423_v10 = vmul.f32 %v6892_v47, %v4167_v48 }
 0x385   : > { %v3245_v51 = vpop.permute.xlu1 %3244  ;;  %v3241_v16 = vpop.permute.xlu0 %3240 }
 0x386   : > { %4681 = vst.msk [vmem:[%s6921_s20 + $0x508] sm:$0xff] %vm4519_vm1, %v4424_v42  ;;  %4680 = vst.msk [vmem:[%s6921_s20 + $0x500] sm:$0xff] %vm4519_vm1, %v4423_v10  ;;  %v4170_v29 = vmul.f32 %v8271_v45, %v3245_v51  ;;  %v4169_v19 = vmul.f32 %v8271_v45, %v3241_v16 }
 0x387   : > { %3497 = vbcast.lane.b32.xlu1 %v8270_v21, 296  ;;  %3493 = vbcast.lane.b32.xlu0 %v8270_v21, 288 }
 0x388   : > { %v4426_v26 = vmul.f32 %v6894_v5, %v4170_v29  ;;  %v4425_v22 = vmul.f32 %v6896_v36, %v4169_v19 }
 0x389   : > { %v3253_v58 = vpop.permute.xlu1 %3252  ;;  %v3249_v7 = vpop.permute.xlu0 %3248 }
 0x38a   : > { %4683 = vst.msk [vmem:[%s6921_s20 + $0x518] sm:$0xff] %vm4519_vm1, %v4426_v26  ;;  %4682 = vst.msk [vmem:[%s6921_s20 + $0x510] sm:$0xff] %vm4519_vm1, %v4425_v22  ;;  %v4172_v59 = vmul.f32 %v8271_v45, %v3253_v58  ;;  %v4171_v18 = vmul.f32 %v8271_v45, %v3249_v7 }
 0x38b   : > { %3505 = vbcast.lane.b32.xlu1 %v8270_v21, 312  ;;  %3501 = vbcast.lane.b32.xlu0 %v8270_v21, 304 }
 0x38c   : > { %v4428_v62 = vmul.f32 %v6898_v49, %v4172_v59  ;;  %v4427_v3 = vmul.f32 %v6900_v11, %v4171_v18 }
 0x38d   : > { %v3261_v9 = vpop.permute.xlu1 %3260  ;;  %v3257_v31 = vpop.permute.xlu0 %3256 }
 0x38e   : > { %4685 = vst.msk [vmem:[%s6921_s20 + $0x528] sm:$0xff] %vm4519_vm1, %v4428_v62  ;;  %4684 = vst.msk [vmem:[%s6921_s20 + $0x520] sm:$0xff] %vm4519_vm1, %v4427_v3  ;;  %v4174_v35 = vmul.f32 %v8271_v45, %v3261_v9  ;;  %v4173_v54 = vmul.f32 %v8271_v45, %v3257_v31  ;;  %v8276_v9 = vld [vmem:[#allocation28_spill] sm:$0xff] }
 0x38f   : > { %3516 = vbcast.lane.b32.xlu1 %v8272_v40, 264  ;;  %3512 = vbcast.lane.b32.xlu0 %v8272_v40, 256 }
 0x390   : > { %v4430_v57 = vmul.f32 %v6904_v52, %v4174_v35  ;;  %v4429_v1 = vmul.f32 %v6906_v13, %v4173_v54 }
 0x391   : > { %v3272_v25 = vpop.permute.xlu1 %3271  ;;  %v3268_v37 = vpop.permute.xlu0 %3267 }
 0x392   : > { %4687 = vst.msk [vmem:[%s6921_s20 + $0x538] sm:$0xff] %vm4519_vm1, %v4430_v57  ;;  %4686 = vst.msk [vmem:[%s6921_s20 + $0x530] sm:$0xff] %vm4519_vm1, %v4429_v1  ;;  %v4176_v53 = vmul.f32 %v8273_v61, %v3272_v25  ;;  %v4175_v50 = vmul.f32 %v8273_v61, %v3268_v37  ;;  %v8277_v57 = vld [vmem:[#allocation43_spill] sm:$0xff] }
 0x393   : > { %3524 = vbcast.lane.b32.xlu1 %v8272_v40, 280  ;;  %3520 = vbcast.lane.b32.xlu0 %v8272_v40, 272 }
 0x394   : > { %v4432_v12 = vmul.f32 %v6890_v33, %v4176_v53  ;;  %v4431_v23 = vmul.f32 %v6892_v47, %v4175_v50 }
 0x395   : > { %v3280_v15 = vpop.permute.xlu1 %3279  ;;  %v3276_v17 = vpop.permute.xlu0 %3275 }
 0x396   : > { %4689 = vst.msk [vmem:[%s6921_s20 + $0x548] sm:$0xff] %vm4519_vm1, %v4432_v12  ;;  %4688 = vst.msk [vmem:[%s6921_s20 + $0x540] sm:$0xff] %vm4519_vm1, %v4431_v23  ;;  %v4178_v39 = vmul.f32 %v8273_v61, %v3280_v15  ;;  %v4177_v4 = vmul.f32 %v8273_v61, %v3276_v17 }
 0x397   : > { %3532 = vbcast.lane.b32.xlu1 %v8272_v40, 296  ;;  %3528 = vbcast.lane.b32.xlu0 %v8272_v40, 288 }
 0x398   : > { %v4434_v6 = vmul.f32 %v6894_v5, %v4178_v39  ;;  %v4433_v34 = vmul.f32 %v6896_v36, %v4177_v4 }
 0x399   : > { %v3288_v28 = vpop.permute.xlu1 %3287  ;;  %v3284_v24 = vpop.permute.xlu0 %3283 }
 0x39a   : > { %4691 = vst.msk [vmem:[%s6921_s20 + $0x558] sm:$0xff] %vm4519_vm1, %v4434_v6  ;;  %4690 = vst.msk [vmem:[%s6921_s20 + $0x550] sm:$0xff] %vm4519_vm1, %v4433_v34  ;;  %v4180_v2 = vmul.f32 %v8273_v61, %v3288_v28  ;;  %v4179_v55 = vmul.f32 %v8273_v61, %v3284_v24 }
 0x39b   : > { %3540 = vbcast.lane.b32.xlu1 %v8272_v40, 312  ;;  %3536 = vbcast.lane.b32.xlu0 %v8272_v40, 304 }
 0x39c   : > { %v4436_v0 = vmul.f32 %v6898_v49, %v4180_v2  ;;  %v4435_v56 = vmul.f32 %v6900_v11, %v4179_v55 }
 0x39d   : > { %v3296_v14 = vpop.permute.xlu1 %3295  ;;  %v3292_v63 = vpop.permute.xlu0 %3291 }
 0x39e   : > { %4693 = vst.msk [vmem:[%s6921_s20 + $0x568] sm:$0xff] %vm4519_vm1, %v4436_v0  ;;  %4692 = vst.msk [vmem:[%s6921_s20 + $0x560] sm:$0xff] %vm4519_vm1, %v4435_v56  ;;  %v4182_v44 = vmul.f32 %v8273_v61, %v3296_v14  ;;  %v4181_v38 = vmul.f32 %v8273_v61, %v3292_v63  ;;  %v8278_v14 = vld [vmem:[#allocation29_spill] sm:$0xff] }
 0x39f   : > { %3551 = vbcast.lane.b32.xlu1 %v8274_v8, 264  ;;  %3547 = vbcast.lane.b32.xlu0 %v8274_v8, 256 }
 0x3a0   : > { %v4438_v43 = vmul.f32 %v6904_v52, %v4182_v44  ;;  %v4437_v32 = vmul.f32 %v6906_v13, %v4181_v38 }
 0x3a1   : > { %v3307_v41 = vpop.permute.xlu1 %3306  ;;  %v3303_v21 = vpop.permute.xlu0 %3302 }
 0x3a2   : > { %4695 = vst.msk [vmem:[%s6921_s20 + $0x578] sm:$0xff] %vm4519_vm1, %v4438_v43  ;;  %4694 = vst.msk [vmem:[%s6921_s20 + $0x570] sm:$0xff] %vm4519_vm1, %v4437_v32  ;;  %v4184_v60 = vmul.f32 %v8275_v30, %v3307_v41  ;;  %v4183_v20 = vmul.f32 %v8275_v30, %v3303_v21  ;;  %v8279_v43 = vld [vmem:[#allocation30_spill] sm:$0xff] }
 0x3a3   : > { %3559 = vbcast.lane.b32.xlu1 %v8274_v8, 280  ;;  %3555 = vbcast.lane.b32.xlu0 %v8274_v8, 272 }
 0x3a4   : > { %v4440_v46 = vmul.f32 %v6890_v33, %v4184_v60  ;;  %v4439_v45 = vmul.f32 %v6892_v47, %v4183_v20 }
 0x3a5   : > { %v3315_v27 = vpop.permute.xlu1 %3314  ;;  %v3311_v48 = vpop.permute.xlu0 %3310 }
 0x3a6   : > { %4697 = vst.msk [vmem:[%s6921_s20 + $0x588] sm:$0xff] %vm4519_vm1, %v4440_v46  ;;  %4696 = vst.msk [vmem:[%s6921_s20 + $0x580] sm:$0xff] %vm4519_vm1, %v4439_v45  ;;  %v4186_v42 = vmul.f32 %v8275_v30, %v3315_v27  ;;  %v4185_v10 = vmul.f32 %v8275_v30, %v3311_v48 }
 0x3a7   : > { %3567 = vbcast.lane.b32.xlu1 %v8274_v8, 296  ;;  %3563 = vbcast.lane.b32.xlu0 %v8274_v8, 288 }
 0x3a8   : > { %v4442_v51 = vmul.f32 %v6894_v5, %v4186_v42  ;;  %v4441_v16 = vmul.f32 %v6896_v36, %v4185_v10 }
 0x3a9   : > { %v3323_v29 = vpop.permute.xlu1 %3322  ;;  %v3319_v19 = vpop.permute.xlu0 %3318 }
 0x3aa   : > { %4699 = vst.msk [vmem:[%s6921_s20 + $0x598] sm:$0xff] %vm4519_vm1, %v4442_v51  ;;  %4698 = vst.msk [vmem:[%s6921_s20 + $0x590] sm:$0xff] %vm4519_vm1, %v4441_v16  ;;  %v4188_v26 = vmul.f32 %v8275_v30, %v3323_v29  ;;  %v4187_v22 = vmul.f32 %v8275_v30, %v3319_v19 }
 0x3ab   : > { %3575 = vbcast.lane.b32.xlu1 %v8274_v8, 312  ;;  %3571 = vbcast.lane.b32.xlu0 %v8274_v8, 304 }
 0x3ac   : > { %v4444_v58 = vmul.f32 %v6898_v49, %v4188_v26  ;;  %v4443_v7 = vmul.f32 %v6900_v11, %v4187_v22 }
 0x3ad   : > { %v3331_v59 = vpop.permute.xlu1 %3330  ;;  %v3327_v18 = vpop.permute.xlu0 %3326 }
 0x3ae   : > { %4701 = vst.msk [vmem:[%s6921_s20 + $0x5a8] sm:$0xff] %vm4519_vm1, %v4444_v58  ;;  %4700 = vst.msk [vmem:[%s6921_s20 + $0x5a0] sm:$0xff] %vm4519_vm1, %v4443_v7  ;;  %v4190_v62 = vmul.f32 %v8275_v30, %v3331_v59  ;;  %v4189_v3 = vmul.f32 %v8275_v30, %v3327_v18 }
 0x3af   : > { %3586 = vbcast.lane.b32.xlu1 %v8276_v9, 264  ;;  %3582 = vbcast.lane.b32.xlu0 %v8276_v9, 256 }
 0x3b0   : > { %v4446_v31 = vmul.f32 %v6904_v52, %v4190_v62  ;;  %v4445_v35 = vmul.f32 %v6906_v13, %v4189_v3 }
 0x3b1   : > { %v3342_v54 = vpop.permute.xlu1 %3341  ;;  %v3338_v40 = vpop.permute.xlu0 %3337 }
 0x3b2   : > { %4703 = vst.msk [vmem:[%s6921_s20 + $0x5b8] sm:$0xff] %vm4519_vm1, %v4446_v31  ;;  %4702 = vst.msk [vmem:[%s6921_s20 + $0x5b0] sm:$0xff] %vm4519_vm1, %v4445_v35  ;;  %v4192_v1 = vmul.f32 %v8277_v57, %v3342_v54  ;;  %v4191_v25 = vmul.f32 %v8277_v57, %v3338_v40 }
 0x3b3   : > { %3594 = vbcast.lane.b32.xlu1 %v8276_v9, 280  ;;  %3590 = vbcast.lane.b32.xlu0 %v8276_v9, 272 }
 0x3b4   : > { %v4448_v37 = vmul.f32 %v6890_v33, %v4192_v1  ;;  %v4447_v61 = vmul.f32 %v6892_v47, %v4191_v25 }
 0x3b5   : > { %v3350_v53 = vpop.permute.xlu1 %3349  ;;  %v3346_v50 = vpop.permute.xlu0 %3345 }
 0x3b6   : > { %4705 = vst.msk [vmem:[%s6921_s20 + $0x5c8] sm:$0xff] %vm4519_vm1, %v4448_v37  ;;  %4704 = vst.msk [vmem:[%s6921_s20 + $0x5c0] sm:$0xff] %vm4519_vm1, %v4447_v61  ;;  %v4194_v12 = vmul.f32 %v8277_v57, %v3350_v53  ;;  %v4193_v23 = vmul.f32 %v8277_v57, %v3346_v50 }
 0x3b7   : > { %3602 = vbcast.lane.b32.xlu1 %v8276_v9, 296  ;;  %3598 = vbcast.lane.b32.xlu0 %v8276_v9, 288 }
 0x3b8   : > { %v4450_v15 = vmul.f32 %v6894_v5, %v4194_v12  ;;  %v4449_v17 = vmul.f32 %v6896_v36, %v4193_v23 }
 0x3b9   : > { %v3358_v39 = vpop.permute.xlu1 %3357  ;;  %v3354_v4 = vpop.permute.xlu0 %3353 }
 0x3ba   : > { %4707 = vst.msk [vmem:[%s6921_s20 + $0x5d8] sm:$0xff] %vm4519_vm1, %v4450_v15  ;;  %4706 = vst.msk [vmem:[%s6921_s20 + $0x5d0] sm:$0xff] %vm4519_vm1, %v4449_v17  ;;  %v4196_v6 = vmul.f32 %v8277_v57, %v3358_v39  ;;  %v4195_v34 = vmul.f32 %v8277_v57, %v3354_v4 }
 0x3bb   : > { %3610 = vbcast.lane.b32.xlu1 %v8276_v9, 312  ;;  %3606 = vbcast.lane.b32.xlu0 %v8276_v9, 304  ;;  %v8280_v9 = vld [vmem:[#allocation32_spill] sm:$0xff] }
 0x3bc   : > { %v4452_v28 = vmul.f32 %v6898_v49, %v4196_v6  ;;  %v4451_v24 = vmul.f32 %v6900_v11, %v4195_v34 }
 0x3bd   : > { %v3366_v2 = vpop.permute.xlu1 %3365  ;;  %v3362_v55 = vpop.permute.xlu0 %3361 }
 0x3be   : > { %4709 = vst.msk [vmem:[%s6921_s20 + $0x5e8] sm:$0xff] %vm4519_vm1, %v4452_v28  ;;  %4708 = vst.msk [vmem:[%s6921_s20 + $0x5e0] sm:$0xff] %vm4519_vm1, %v4451_v24  ;;  %v4198_v0 = vmul.f32 %v8277_v57, %v3366_v2  ;;  %v4197_v56 = vmul.f32 %v8277_v57, %v3362_v55 }
 0x3bf   : > { %3621 = vbcast.lane.b32.xlu1 %v8278_v14, 264  ;;  %3617 = vbcast.lane.b32.xlu0 %v8278_v14, 256 }
 0x3c0   : > { %v4454_v63 = vmul.f32 %v6904_v52, %v4198_v0  ;;  %v4453_v44 = vmul.f32 %v6906_v13, %v4197_v56  ;;  %v8281_v56 = vld [vmem:[#allocation33_spill] sm:$0xff] }
 0x3c1   : > { %v3377_v38 = vpop.permute.xlu1 %3376  ;;  %v3373_v8 = vpop.permute.xlu0 %3372 }
 0x3c2   : > { %4711 = vst.msk [vmem:[%s6921_s20 + $0x5f8] sm:$0xff] %vm4519_vm1, %v4454_v63  ;;  %4710 = vst.msk [vmem:[%s6921_s20 + $0x5f0] sm:$0xff] %vm4519_vm1, %v4453_v44  ;;  %v4200_v32 = vmul.f32 %v8279_v43, %v3377_v38  ;;  %v4199_v41 = vmul.f32 %v8279_v43, %v3373_v8 }
 0x3c3   : > { %3629 = vbcast.lane.b32.xlu1 %v8278_v14, 280  ;;  %3625 = vbcast.lane.b32.xlu0 %v8278_v14, 272 }
 0x3c4   : > { %v4456_v21 = vmul.f32 %v6890_v33, %v4200_v32  ;;  %v4455_v30 = vmul.f32 %v6892_v47, %v4199_v41 }
 0x3c5   : > { %v3385_v60 = vpop.permute.xlu1 %3384  ;;  %v3381_v20 = vpop.permute.xlu0 %3380 }
 0x3c6   : > { %4713 = vst.msk [vmem:[%s6921_s20 + $0x608] sm:$0xff] %vm4519_vm1, %v4456_v21  ;;  %4712 = vst.msk [vmem:[%s6921_s20 + $0x600] sm:$0xff] %vm4519_vm1, %v4455_v30  ;;  %v4202_v46 = vmul.f32 %v8279_v43, %v3385_v60  ;;  %v4201_v45 = vmul.f32 %v8279_v43, %v3381_v20 }
 0x3c7   : > { %3637 = vbcast.lane.b32.xlu1 %v8278_v14, 296  ;;  %3633 = vbcast.lane.b32.xlu0 %v8278_v14, 288 }
 0x3c8   : > { %v4458_v27 = vmul.f32 %v6894_v5, %v4202_v46  ;;  %v4457_v48 = vmul.f32 %v6896_v36, %v4201_v45 }
 0x3c9   : > { %v3393_v42 = vpop.permute.xlu1 %3392  ;;  %v3389_v10 = vpop.permute.xlu0 %3388 }
 0x3ca   : > { %4715 = vst.msk [vmem:[%s6921_s20 + $0x618] sm:$0xff] %vm4519_vm1, %v4458_v27  ;;  %4714 = vst.msk [vmem:[%s6921_s20 + $0x610] sm:$0xff] %vm4519_vm1, %v4457_v48  ;;  %v4204_v51 = vmul.f32 %v8279_v43, %v3393_v42  ;;  %v4203_v16 = vmul.f32 %v8279_v43, %v3389_v10 }
 0x3cb   : > { %3645 = vbcast.lane.b32.xlu1 %v8278_v14, 312  ;;  %3641 = vbcast.lane.b32.xlu0 %v8278_v14, 304 }
 0x3cc   : > { %v4460_v29 = vmul.f32 %v6898_v49, %v4204_v51  ;;  %v4459_v19 = vmul.f32 %v6900_v11, %v4203_v16 }
 0x3cd   : > { %v3401_v26 = vpop.permute.xlu1 %3400  ;;  %v3397_v22 = vpop.permute.xlu0 %3396 }
 0x3ce   : > { %4717 = vst.msk [vmem:[%s6921_s20 + $0x628] sm:$0xff] %vm4519_vm1, %v4460_v29  ;;  %4716 = vst.msk [vmem:[%s6921_s20 + $0x620] sm:$0xff] %vm4519_vm1, %v4459_v19  ;;  %v4206_v58 = vmul.f32 %v8279_v43, %v3401_v26  ;;  %v4205_v7 = vmul.f32 %v8279_v43, %v3397_v22 }
 0x3d0   : > { %v4462_v59 = vmul.f32 %v6904_v52, %v4206_v58  ;;  %v4461_v18 = vmul.f32 %v6906_v13, %v4205_v7  ;;  %v8282_v58 = vld [vmem:[#allocation36_spill] sm:$0xff] }
 0x3d1   : > { %v3412_v62 = vpop.permute.xlu1 %3411  ;;  %v3408_v3 = vpop.permute.xlu0 %3407 }
 0x3d2   : > { %4719 = vst.msk [vmem:[%s6921_s20 + $0x638] sm:$0xff] %vm4519_vm1, %v4462_v59  ;;  %4718 = vst.msk [vmem:[%s6921_s20 + $0x630] sm:$0xff] %vm4519_vm1, %v4461_v18  ;;  %v4208_v31 = vmul.f32 %v8280_v9, %v3412_v62  ;;  %v4207_v35 = vmul.f32 %v8280_v9, %v3408_v3 }
 0x3d4   : > { %v4464_v54 = vmul.f32 %v6890_v33, %v4208_v31  ;;  %v4463_v40 = vmul.f32 %v6892_v47, %v4207_v35 }
 0x3d5   : > { %v3420_v57 = vpop.permute.xlu1 %3419  ;;  %v3416_v1 = vpop.permute.xlu0 %3415 }
 0x3d6   : > { %4721 = vst.msk [vmem:[%s6921_s20 + $0x648] sm:$0xff] %vm4519_vm1, %v4464_v54  ;;  %4720 = vst.msk [vmem:[%s6921_s20 + $0x640] sm:$0xff] %vm4519_vm1, %v4463_v40  ;;  %v4210_v25 = vmul.f32 %v8280_v9, %v3420_v57  ;;  %v4209_v37 = vmul.f32 %v8280_v9, %v3416_v1 }
 0x3d8   : > { %v4466_v61 = vmul.f32 %v6894_v5, %v4210_v25  ;;  %v4465_v53 = vmul.f32 %v6896_v36, %v4209_v37 }
 0x3d9   : > { %v3428_v50 = vpop.permute.xlu1 %3427  ;;  %v3424_v12 = vpop.permute.xlu0 %3423 }
 0x3da   : > { %4723 = vst.msk [vmem:[%s6921_s20 + $0x658] sm:$0xff] %vm4519_vm1, %v4466_v61  ;;  %4722 = vst.msk [vmem:[%s6921_s20 + $0x650] sm:$0xff] %vm4519_vm1, %v4465_v53  ;;  %v4212_v23 = vmul.f32 %v8280_v9, %v3428_v50  ;;  %v4211_v15 = vmul.f32 %v8280_v9, %v3424_v12 }
 0x3dc   : > { %v4468_v17 = vmul.f32 %v6898_v49, %v4212_v23  ;;  %v4467_v39 = vmul.f32 %v6900_v11, %v4211_v15 }
 0x3dd   : > { %v3436_v4 = vpop.permute.xlu1 %3435  ;;  %v3432_v6 = vpop.permute.xlu0 %3431 }
 0x3de   : > { %4725 = vst.msk [vmem:[%s6921_s20 + $0x668] sm:$0xff] %vm4519_vm1, %v4468_v17  ;;  %4724 = vst.msk [vmem:[%s6921_s20 + $0x660] sm:$0xff] %vm4519_vm1, %v4467_v39  ;;  %v4214_v34 = vmul.f32 %v8280_v9, %v3436_v4  ;;  %v4213_v28 = vmul.f32 %v8280_v9, %v3432_v6 }
 0x3e0   : > { %v4470_v24 = vmul.f32 %v6904_v52, %v4214_v34  ;;  %v4469_v2 = vmul.f32 %v6906_v13, %v4213_v28  ;;  %v8283_v34 = vld [vmem:[#allocation31_spill] sm:$0xff] }
 0x3e1   : > { %v3447_v55 = vpop.permute.xlu1 %3446  ;;  %v3443_v0 = vpop.permute.xlu0 %3442 }
 0x3e2   : > { %4727 = vst.msk [vmem:[%s6921_s20 + $0x678] sm:$0xff] %vm4519_vm1, %v4470_v24  ;;  %4726 = vst.msk [vmem:[%s6921_s20 + $0x670] sm:$0xff] %vm4519_vm1, %v4469_v2  ;;  %v4216_v14 = vmul.f32 %v8281_v56, %v3447_v55  ;;  %v4215_v63 = vmul.f32 %v8281_v56, %v3443_v0 }
 0x3e4   : > { %v4472_v44 = vmul.f32 %v6890_v33, %v4216_v14  ;;  %v4471_v38 = vmul.f32 %v6892_v47, %v4215_v63 }
 0x3e5   : > { %v3455_v8 = vpop.permute.xlu1 %3454  ;;  %v3451_v43 = vpop.permute.xlu0 %3450 }
 0x3e6   : > { %4729 = vst.msk [vmem:[%s6921_s20 + $0x688] sm:$0xff] %vm4519_vm1, %v4472_v44  ;;  %4728 = vst.msk [vmem:[%s6921_s20 + $0x680] sm:$0xff] %vm4519_vm1, %v4471_v38  ;;  %v4218_v32 = vmul.f32 %v8281_v56, %v3455_v8  ;;  %v4217_v41 = vmul.f32 %v8281_v56, %v3451_v43 }
 0x3e8   : > { %v4474_v21 = vmul.f32 %v6894_v5, %v4218_v32  ;;  %v4473_v30 = vmul.f32 %v6896_v36, %v4217_v41 }
 0x3e9   : > { %v3463_v60 = vpop.permute.xlu1 %3462  ;;  %v3459_v20 = vpop.permute.xlu0 %3458 }
 0x3ea   : > { %4731 = vst.msk [vmem:[%s6921_s20 + $0x698] sm:$0xff] %vm4519_vm1, %v4474_v21  ;;  %4730 = vst.msk [vmem:[%s6921_s20 + $0x690] sm:$0xff] %vm4519_vm1, %v4473_v30  ;;  %v4220_v46 = vmul.f32 %v8281_v56, %v3463_v60  ;;  %v4219_v45 = vmul.f32 %v8281_v56, %v3459_v20 }
 0x3ec   : > { %v4476_v27 = vmul.f32 %v6898_v49, %v4220_v46  ;;  %v4475_v48 = vmul.f32 %v6900_v11, %v4219_v45 }
 0x3ed   : > { %v3471_v42 = vpop.permute.xlu1 %3470  ;;  %v3467_v10 = vpop.permute.xlu0 %3466 }
 0x3ee   : > { %4733 = vst.msk [vmem:[%s6921_s20 + $0x6a8] sm:$0xff] %vm4519_vm1, %v4476_v27  ;;  %4732 = vst.msk [vmem:[%s6921_s20 + $0x6a0] sm:$0xff] %vm4519_vm1, %v4475_v48  ;;  %v4222_v51 = vmul.f32 %v8281_v56, %v3471_v42  ;;  %v4221_v16 = vmul.f32 %v8281_v56, %v3467_v10 }
 0x3f0   : > { %v4478_v29 = vmul.f32 %v6904_v52, %v4222_v51  ;;  %v4477_v19 = vmul.f32 %v6906_v13, %v4221_v16  ;;  %v8284_v51 = vld [vmem:[#allocation34_spill] sm:$0xff] }
 0x3f1   : > { %v3482_v26 = vpop.permute.xlu1 %3481  ;;  %v3478_v22 = vpop.permute.xlu0 %3477 }
 0x3f2   : > { %4735 = vst.msk [vmem:[%s6921_s20 + $0x6b8] sm:$0xff] %vm4519_vm1, %v4478_v29  ;;  %4734 = vst.msk [vmem:[%s6921_s20 + $0x6b0] sm:$0xff] %vm4519_vm1, %v4477_v19  ;;  %v4224_v7 = vmul.f32 %v8282_v58, %v3482_v26  ;;  %v4223_v59 = vmul.f32 %v8282_v58, %v3478_v22 }
 0x3f4   : > { %v4480_v18 = vmul.f32 %v6890_v33, %v4224_v7  ;;  %v4479_v62 = vmul.f32 %v6892_v47, %v4223_v59 }
 0x3f5   : > { %v3490_v3 = vpop.permute.xlu1 %3489  ;;  %v3486_v9 = vpop.permute.xlu0 %3485 }
 0x3f6   : > { %4737 = vst.msk [vmem:[%s6921_s20 + $0x6c8] sm:$0xff] %vm4519_vm1, %v4480_v18  ;;  %4736 = vst.msk [vmem:[%s6921_s20 + $0x6c0] sm:$0xff] %vm4519_vm1, %v4479_v62  ;;  %v4226_v31 = vmul.f32 %v8282_v58, %v3490_v3  ;;  %v4225_v35 = vmul.f32 %v8282_v58, %v3486_v9 }
 0x3f8   : > { %v4482_v54 = vmul.f32 %v6894_v5, %v4226_v31  ;;  %v4481_v40 = vmul.f32 %v6896_v36, %v4225_v35 }
 0x3f9   : > { %v3498_v57 = vpop.permute.xlu1 %3497  ;;  %v3494_v1 = vpop.permute.xlu0 %3493 }
 0x3fa   : > { %4739 = vst.msk [vmem:[%s6921_s20 + $0x6d8] sm:$0xff] %vm4519_vm1, %v4482_v54  ;;  %4738 = vst.msk [vmem:[%s6921_s20 + $0x6d0] sm:$0xff] %vm4519_vm1, %v4481_v40  ;;  %v4228_v25 = vmul.f32 %v8282_v58, %v3498_v57  ;;  %v4227_v37 = vmul.f32 %v8282_v58, %v3494_v1 }
 0x3fc   : > { %v4484_v61 = vmul.f32 %v6898_v49, %v4228_v25  ;;  %v4483_v53 = vmul.f32 %v6900_v11, %v4227_v37 }
 0x3fd   : > { %v3506_v50 = vpop.permute.xlu1 %3505  ;;  %v3502_v12 = vpop.permute.xlu0 %3501 }
 0x3fe   : > { %4741 = vst.msk [vmem:[%s6921_s20 + $0x6e8] sm:$0xff] %vm4519_vm1, %v4484_v61  ;;  %4740 = vst.msk [vmem:[%s6921_s20 + $0x6e0] sm:$0xff] %vm4519_vm1, %v4483_v53  ;;  %v4230_v23 = vmul.f32 %v8282_v58, %v3506_v50  ;;  %v4229_v15 = vmul.f32 %v8282_v58, %v3502_v12 }
 0x400   : > { %v4486_v17 = vmul.f32 %v6904_v52, %v4230_v23  ;;  %v4485_v39 = vmul.f32 %v6906_v13, %v4229_v15  ;;  %v8285_v23 = vld [vmem:[#allocation35_spill] sm:$0xff] }
 0x401   : > { %v3517_v4 = vpop.permute.xlu1 %3516  ;;  %v3513_v6 = vpop.permute.xlu0 %3512 }
 0x402   : > { %4743 = vst.msk [vmem:[%s6921_s20 + $0x6f8] sm:$0xff] %vm4519_vm1, %v4486_v17  ;;  %4742 = vst.msk [vmem:[%s6921_s20 + $0x6f0] sm:$0xff] %vm4519_vm1, %v4485_v39  ;;  %v4232_v28 = vmul.f32 %v8283_v34, %v3517_v4  ;;  %v4231_v24 = vmul.f32 %v8283_v34, %v3513_v6 }
 0x404   : > { %v4488_v2 = vmul.f32 %v6890_v33, %v4232_v28  ;;  %v4487_v55 = vmul.f32 %v6892_v47, %v4231_v24 }
 0x405   : > { %v3525_v0 = vpop.permute.xlu1 %3524  ;;  %v3521_v56 = vpop.permute.xlu0 %3520 }
 0x406   : > { %4745 = vst.msk [vmem:[%s6921_s20 + $0x708] sm:$0xff] %vm4519_vm1, %v4488_v2  ;;  %4744 = vst.msk [vmem:[%s6921_s20 + $0x700] sm:$0xff] %vm4519_vm1, %v4487_v55  ;;  %v4234_v14 = vmul.f32 %v8283_v34, %v3525_v0  ;;  %v4233_v63 = vmul.f32 %v8283_v34, %v3521_v56 }
 0x408   : > { %v4490_v44 = vmul.f32 %v6894_v5, %v4234_v14  ;;  %v4489_v38 = vmul.f32 %v6896_v36, %v4233_v63 }
 0x409   : > { %v3533_v8 = vpop.permute.xlu1 %3532  ;;  %v3529_v43 = vpop.permute.xlu0 %3528 }
 0x40a   : > { %4747 = vst.msk [vmem:[%s6921_s20 + $0x718] sm:$0xff] %vm4519_vm1, %v4490_v44  ;;  %4746 = vst.msk [vmem:[%s6921_s20 + $0x710] sm:$0xff] %vm4519_vm1, %v4489_v38  ;;  %v4236_v32 = vmul.f32 %v8283_v34, %v3533_v8  ;;  %v4235_v41 = vmul.f32 %v8283_v34, %v3529_v43 }
 0x40c   : > { %v4492_v21 = vmul.f32 %v6898_v49, %v4236_v32  ;;  %v4491_v30 = vmul.f32 %v6900_v11, %v4235_v41 }
 0x40d   : > { %v3541_v60 = vpop.permute.xlu1 %3540  ;;  %v3537_v20 = vpop.permute.xlu0 %3536 }
 0x40e   : > { %4749 = vst.msk [vmem:[%s6921_s20 + $0x728] sm:$0xff] %vm4519_vm1, %v4492_v21  ;;  %4748 = vst.msk [vmem:[%s6921_s20 + $0x720] sm:$0xff] %vm4519_vm1, %v4491_v30  ;;  %v4238_v46 = vmul.f32 %v8283_v34, %v3541_v60  ;;  %v4237_v45 = vmul.f32 %v8283_v34, %v3537_v20 }
 0x410   : > { %v4494_v27 = vmul.f32 %v6904_v52, %v4238_v46  ;;  %v4493_v48 = vmul.f32 %v6906_v13, %v4237_v45  ;;  %v8286_v46 = vld [vmem:[#allocation37_spill] sm:$0xff] }
 0x411   : > { %v3552_v42 = vpop.permute.xlu1 %3551  ;;  %v3548_v10 = vpop.permute.xlu0 %3547 }
 0x412   : > { %4751 = vst.msk [vmem:[%s6921_s20 + $0x738] sm:$0xff] %vm4519_vm1, %v4494_v27  ;;  %4750 = vst.msk [vmem:[%s6921_s20 + $0x730] sm:$0xff] %vm4519_vm1, %v4493_v48  ;;  %v4240_v16 = vmul.f32 %v8284_v51, %v3552_v42  ;;  %v4239_v29 = vmul.f32 %v8284_v51, %v3548_v10 }
 0x414   : > { %v4496_v19 = vmul.f32 %v6890_v33, %v4240_v16  ;;  %v4495_v26 = vmul.f32 %v6892_v47, %v4239_v29 }
 0x415   : > { %v3560_v22 = vpop.permute.xlu1 %3559  ;;  %v3556_v58 = vpop.permute.xlu0 %3555 }
 0x416   : > { %4753 = vst.msk [vmem:[%s6921_s20 + $0x748] sm:$0xff] %vm4519_vm1, %v4496_v19  ;;  %4752 = vst.msk [vmem:[%s6921_s20 + $0x740] sm:$0xff] %vm4519_vm1, %v4495_v26  ;;  %v4242_v7 = vmul.f32 %v8284_v51, %v3560_v22  ;;  %v4241_v59 = vmul.f32 %v8284_v51, %v3556_v58 }
 0x418   : > { %v4498_v18 = vmul.f32 %v6894_v5, %v4242_v7  ;;  %v4497_v62 = vmul.f32 %v6896_v36, %v4241_v59 }
 0x419   : > { %v3568_v3 = vpop.permute.xlu1 %3567  ;;  %v3564_v9 = vpop.permute.xlu0 %3563 }
 0x41a   : > { %4755 = vst.msk [vmem:[%s6921_s20 + $0x758] sm:$0xff] %vm4519_vm1, %v4498_v18  ;;  %4754 = vst.msk [vmem:[%s6921_s20 + $0x750] sm:$0xff] %vm4519_vm1, %v4497_v62  ;;  %v4244_v31 = vmul.f32 %v8284_v51, %v3568_v3  ;;  %v4243_v35 = vmul.f32 %v8284_v51, %v3564_v9 }
 0x41c   : > { %v4500_v54 = vmul.f32 %v6898_v49, %v4244_v31  ;;  %v4499_v40 = vmul.f32 %v6900_v11, %v4243_v35 }
 0x41d   : > { %v3576_v57 = vpop.permute.xlu1 %3575  ;;  %v3572_v1 = vpop.permute.xlu0 %3571 }
 0x41e   : > { %4757 = vst.msk [vmem:[%s6921_s20 + $0x768] sm:$0xff] %vm4519_vm1, %v4500_v54  ;;  %4756 = vst.msk [vmem:[%s6921_s20 + $0x760] sm:$0xff] %vm4519_vm1, %v4499_v40  ;;  %v4246_v25 = vmul.f32 %v8284_v51, %v3576_v57  ;;  %v4245_v37 = vmul.f32 %v8284_v51, %v3572_v1 }
 0x420   : > { %v4502_v61 = vmul.f32 %v6904_v52, %v4246_v25  ;;  %v4501_v53 = vmul.f32 %v6906_v13, %v4245_v37 }
 0x421   : > { %v3587_v50 = vpop.permute.xlu1 %3586  ;;  %v3583_v12 = vpop.permute.xlu0 %3582 }
 0x422   : > { %4759 = vst.msk [vmem:[%s6921_s20 + $0x778] sm:$0xff] %vm4519_vm1, %v4502_v61  ;;  %4758 = vst.msk [vmem:[%s6921_s20 + $0x770] sm:$0xff] %vm4519_vm1, %v4501_v53  ;;  %v4248_v15 = vmul.f32 %v8285_v23, %v3587_v50  ;;  %v4247_v17 = vmul.f32 %v8285_v23, %v3583_v12 }
 0x424   : > { %v4504_v39 = vmul.f32 %v6890_v33, %v4248_v15  ;;  %v4503_v4 = vmul.f32 %v6892_v47, %v4247_v17 }
 0x425   : > { %v3595_v6 = vpop.permute.xlu1 %3594  ;;  %v3591_v34 = vpop.permute.xlu0 %3590 }
 0x426   : > { %4761 = vst.msk [vmem:[%s6921_s20 + $0x788] sm:$0xff] %vm4519_vm1, %v4504_v39  ;;  %4760 = vst.msk [vmem:[%s6921_s20 + $0x780] sm:$0xff] %vm4519_vm1, %v4503_v4  ;;  %v4250_v28 = vmul.f32 %v8285_v23, %v3595_v6  ;;  %v4249_v24 = vmul.f32 %v8285_v23, %v3591_v34 }
 0x428   : > { %v4506_v2 = vmul.f32 %v6894_v5, %v4250_v28  ;;  %v4505_v55 = vmul.f32 %v6896_v36, %v4249_v24 }
 0x429   : > { %v3603_v0 = vpop.permute.xlu1 %3602  ;;  %v3599_v56 = vpop.permute.xlu0 %3598 }
 0x42a   : > { %4763 = vst.msk [vmem:[%s6921_s20 + $0x798] sm:$0xff] %vm4519_vm1, %v4506_v2  ;;  %4762 = vst.msk [vmem:[%s6921_s20 + $0x790] sm:$0xff] %vm4519_vm1, %v4505_v55  ;;  %v4252_v14 = vmul.f32 %v8285_v23, %v3603_v0  ;;  %v4251_v63 = vmul.f32 %v8285_v23, %v3599_v56 }
 0x42c   : > { %v4508_v44 = vmul.f32 %v6898_v49, %v4252_v14  ;;  %v4507_v38 = vmul.f32 %v6900_v11, %v4251_v63 }
 0x42d   : > { %v3611_v8 = vpop.permute.xlu1 %3610  ;;  %v3607_v43 = vpop.permute.xlu0 %3606 }
 0x42e   : > { %4765 = vst.msk [vmem:[%s6921_s20 + $0x7a8] sm:$0xff] %vm4519_vm1, %v4508_v44  ;;  %4764 = vst.msk [vmem:[%s6921_s20 + $0x7a0] sm:$0xff] %vm4519_vm1, %v4507_v38  ;;  %v4254_v32 = vmul.f32 %v8285_v23, %v3611_v8  ;;  %v4253_v41 = vmul.f32 %v8285_v23, %v3607_v43 }
 0x430   : > { %v4510_v21 = vmul.f32 %v6904_v52, %v4254_v32  ;;  %v4509_v30 = vmul.f32 %v6906_v13, %v4253_v41 }
 0x431   : > { %v3622_v60 = vpop.permute.xlu1 %3621  ;;  %v3618_v20 = vpop.permute.xlu0 %3617 }
 0x432   : > { %4767 = vst.msk [vmem:[%s6921_s20 + $0x7b8] sm:$0xff] %vm4519_vm1, %v4510_v21  ;;  %4766 = vst.msk [vmem:[%s6921_s20 + $0x7b0] sm:$0xff] %vm4519_vm1, %v4509_v30  ;;  %v4256_v45 = vmul.f32 %v8286_v46, %v3622_v60  ;;  %v4255_v27 = vmul.f32 %v8286_v46, %v3618_v20 }
 0x434   : > { %v4512_v48 = vmul.f32 %v6890_v33, %v4256_v45  ;;  %v4511_v42 = vmul.f32 %v6892_v47, %v4255_v27 }
 0x435   : > { %v3630_v10 = vpop.permute.xlu1 %3629  ;;  %v3626_v51 = vpop.permute.xlu0 %3625 }
 0x436   : > { %4769 = vst.msk [vmem:[%s6921_s20 + $0x7c8] sm:$0xff] %vm4519_vm1, %v4512_v48  ;;  %4768 = vst.msk [vmem:[%s6921_s20 + $0x7c0] sm:$0xff] %vm4519_vm1, %v4511_v42  ;;  %v4258_v16 = vmul.f32 %v8286_v46, %v3630_v10  ;;  %v4257_v29 = vmul.f32 %v8286_v46, %v3626_v51 }
 0x438   : > { %v4514_v19 = vmul.f32 %v6894_v5, %v4258_v16  ;;  %v4513_v33 = vmul.f32 %v6896_v36, %v4257_v29 }
 0x439   : > { %v3638_v26 = vpop.permute.xlu1 %3637  ;;  %v3634_v47 = vpop.permute.xlu0 %3633 }
 0x43a   : > { %4771 = vst.msk [vmem:[%s6921_s20 + $0x7d8] sm:$0xff] %vm4519_vm1, %v4514_v19  ;;  %4770 = vst.msk [vmem:[%s6921_s20 + $0x7d0] sm:$0xff] %vm4519_vm1, %v4513_v33  ;;  %v4260_v22 = vmul.f32 %v8286_v46, %v3638_v26  ;;  %v4259_v58 = vmul.f32 %v8286_v46, %v3634_v47 }
 0x43c   : > { %v4516_v7 = vmul.f32 %v6898_v49, %v4260_v22  ;;  %v4515_v59 = vmul.f32 %v6900_v11, %v4259_v58 }
 0x43d   : > { %v3646_v36 = vpop.permute.xlu1 %3645  ;;  %v3642_v5 = vpop.permute.xlu0 %3641 }
 0x43e   : > { %4773 = vst.msk [vmem:[%s6921_s20 + $0x7e8] sm:$0xff] %vm4519_vm1, %v4516_v7  ;;  %4772 = vst.msk [vmem:[%s6921_s20 + $0x7e0] sm:$0xff] %vm4519_vm1, %v4515_v59  ;;  %v4262_v18 = vmul.f32 %v8286_v46, %v3646_v36  ;;  %v4261_v62 = vmul.f32 %v8286_v46, %v3642_v5 }
 0x440   : > { %v4518_v49 = vmul.f32 %v6904_v52, %v4262_v18  ;;  %v4517_v11 = vmul.f32 %v6906_v13, %v4261_v62 }
 0x442   : > { %4775 = vst.msk [vmem:[%s6921_s20 + $0x7f8] sm:$0xff] %vm4519_vm1, %v4518_v49  ;;  %4774 = vst.msk [vmem:[%s6921_s20 + $0x7f0] sm:$0xff] %vm4519_vm1, %v4517_v11 }
 0x443   : > { %5961 = shalt.err (!%p5958_p6)
}
 0x444   : > { %s5962_s14 = scalar_lea.hbm %s8134_s24, 32768  ;;  %s5966_s19 = scalar_lea.hbm %s8200_s8, 65536 }
 0x445   : > { %p5963_p7 = scmp.ne.s32.totalorder %s8134_s24, %s5962_s14  ;;  %p5967_p0 = scmp.lt.u32.totalorder %s8134_s24, %s8200_s8 }
 0x446   : > { %p5968_p2 = scmp.lt.u32.totalorder %s5966_s19, %s5962_s14  ;;  %p5970_p1 = scmp.lt.u32.totalorder %s5962_s14, %s8134_s24 }
 0x447   : > { %p5964_p9 = pnand %p5963_p7, %p8287_p4 }
 0x448   : > { %p5969_p13 = por %p5968_p2, %p5967_p0 }
 0x449   : > { %p5965_p12 = pneg %p5964_p9 }
 0x44a   : > { %p5971_p8 = por %p5970_p1, %p5969_p13 }
 0x44c   : > { %p5972_p10 = pnand %p5971_p8, %p5965_p12 }
 0x44e   : > { %5975 = shalt.err (!%p5972_p10)
}
 0x44f   : > { %s6054_s5 = smov 128   ;;  %s6055_s29 = smov 8  }
 0x450   : > { %5683 = dma.vmem_to_hbm [thread:$0]  (%p8287_p4), %s8136_s26, 32768, %s8134_s24, %s8146_s30, %s6054_s5, %s6054_s5, %s6055_s29  }
 0x451 PF: > { %p5720_p11 = scmp.ge.s32.totalorder %s6042_s10, 2  ;;  %s4807_s20 = sand.u32 1, %s6022_s27  }
 0x452   : > { %p8288_p3 = scmp.ne.s32.totalorder %s8235_s17, 0  ;;  %s4808_s12 = scalar_lea.sflag [#allocation4], %s4807_s20 }
 0x454   : > { %p5705_p5 = pnand %p5720_p11, %p8288_p3 }
 0x456   : > { %6017 = dma.done.wait (!%p5705_p5), %s4808_s12, 32768  }
 0x457   : > { %6019 = vsyncadd (!%p5705_p5), %s4808_s12, 4294934528  ;;  %s25_s10 = sadd.s32 1, %s6042_s10   ;;  %s8289_s22 = sld [smem:[#allocation19_spill]] }
 0x458   : > { %p22_p6 = scmp.ge.s32.totalorder %s25_s10, 4   ;;  %s8290_s29 = sld [smem:[#allocation22_spill]] }
 0x459   : > { %s8291_s30 = sld [smem:[#allocation20_spill]]  ;;  %s8292_s9 = sld [smem:[#allocation21_spill]] }
 0x45a   : > { %s8293_s27 = smov %s6026_s28  ;;  %24 = sbr.rel (!%p22_p6) target bundleno = 11 (0xb), region = 116 }
 0x45d   : > { %s8294_s28 = smov %s8289_s22 }
 0x461   :  { %4813 = vsyncpa [#allocation3], 1 }
 0x462   :  { %4815 = vsyncpa [#allocation3 + $0x1], 1 }
 0x463   :  { %4816 = vsyncpa [#allocation6], 1 }
 0x464   :  { %4817 = vsyncpa [#allocation9], 1 }
 0x465   :  { %4818 = vsyncpa [#allocation12], 1 }
 0x466   :  { %4819 = vsyncpa [#allocation4], 1 }
 0x467   :  { %4821 = vsyncpa [#allocation4 + $0x1], 1 }

</bundles_post_ra>
